<compile_context>
chip_gen: v7x
topology: tpu7x:2x2x1
jax: 0.10.0
libtpu: 0.0.40
codegen_flags: <defaults>
</compile_context>

<pallas_src>
import jax
import jax.numpy as jnp
from jax.experimental import pallas as pl
from jax.experimental.pallas import tpu as pltpu

BN_EPS = 1e-5

# Packed per-channel parameter table columns:
#   [s1, b1, w_left, w_center, w_right, alpha, bias_out]
_P_S1, _P_B1, _P_WL, _P_WC, _P_WR, _P_ALPHA, _P_BIAS = range(7)
_NUM_P = 7


def visual_conv1d_kernel(x_ref, p_ref, w_pw_ref, o_ref):
    # x_ref: (Mb, C, K) batch block; p_ref: (C, 7) f32; w_pw_ref: (C, C) bf16.
    Mb, C, K = x_ref.shape

    p = p_ref[...]                                  # (C, 7) f32
    s1 = p[:, _P_S1:_P_S1 + 1]
    b1 = p[:, _P_B1:_P_B1 + 1]
    wl = p[:, _P_WL:_P_WL + 1]
    wc = p[:, _P_WC:_P_WC + 1]
    wr = p[:, _P_WR:_P_WR + 1]
    alpha = p[:, _P_ALPHA:_P_ALPHA + 1]
    bias = p[:, _P_BIAS:_P_BIAS + 1]                # folded BN2 bias: pw_w @ b2

    w_bf16 = w_pw_ref[...]                          # (C, C) bf16, BN2 scale folded

    # (1, K) f32 edge masks for the zero padding of the 3-tap depthwise conv.
    lane = jax.lax.broadcasted_iota(jnp.int32, (1, K), 1)
    mask_l = (lane >= 1).astype(jnp.float32)
    mask_r = (lane <= K - 2).astype(jnp.float32)

    # Mb is a small static block size -> unrolled; each iteration is one
    # lane-dense (C, K) slab and one MXU dot against the resident pw_w.
    for b in range(Mb):
        x = x_ref[b].astype(jnp.float32)            # (C, K)

        # ReLU + folded BN1: one max + one FMA per element.
        h = jnp.maximum(x, 0.0) * s1 + b1

        # Depthwise conv (kernel 3, zero padding 1) via XLU rolls + edge masks.
        h_prev = pltpu.roll(h, shift=1, axis=1) * mask_l
        h_next = pltpu.roll(h, shift=K - 1, axis=1) * mask_r
        d = wl * h_prev + wc * h + wr * h_next

        # PReLU (single shared alpha, replicated per channel).
        d = jnp.where(d >= 0.0, d, alpha * d)

        # 1x1 pointwise conv on the MXU: bf16 operands, f32 accumulation.
        pw = jnp.dot(w_bf16, d.astype(jnp.bfloat16),
                     preferred_element_type=jnp.float32)

        # Folded-BN2 bias + residual.
        o_ref[b] = (pw + bias + x).astype(o_ref.dtype)


def _pick_batch_block(M, K):
    """Pick Mb: aim for >= ~256 lanes of matmul work per grid step, but keep
    the grid >= 2 steps whenever M >= 2 (dual-TC v7x)."""
    target = max(1, 256 // max(K, 1))
    mb = max(1, min(target, M))
    while M % mb:
        mb -= 1
    while mb > 1 and (M // mb) < 2:
        mb -= 1
        while M % mb:
            mb -= 1
    return max(mb, 1)


def visual_conv1d(x, gamma1, beta1, mean1, var1, dw_w, alpha,
                  gamma2, beta2, mean2, var2, pw_w, eps=BN_EPS):
    """x: [M, C, K];  dw_w: [C, 3];  pw_w: [C, C];  BN params: [C]."""
    M, C, K = x.shape

    # Fold BatchNorm (inference mode) into per-channel scale / shift.
    s1 = gamma1 * jax.lax.rsqrt(var1.astype(jnp.float32) + eps)
    b1 = beta1 - mean1 * s1
    s2 = gamma2 * jax.lax.rsqrt(var2.astype(jnp.float32) + eps)
    b2 = beta2 - mean2 * s2

    # Fold BN2 into the pointwise conv:
    #   pw_w @ (d * s2 + b2) == (pw_w * s2[None, :]) @ d  +  pw_w @ b2
    pw_w32 = pw_w.astype(jnp.float32)
    pw_scaled_bf16 = (pw_w32 * s2[None, :]).astype(jnp.bfloat16)   # (C, C)
    bias_out = pw_w32 @ b2.astype(jnp.float32)                     # (C,)

    alpha_col = jnp.full((C,), alpha, dtype=jnp.float32)
    params = jnp.stack(
        [s1, b1, dw_w[:, 0], dw_w[:, 1], dw_w[:, 2], alpha_col, bias_out],
        axis=1,
    ).astype(jnp.float32)                                          # (C, 7)

    mb = _pick_batch_block(M, K)

    # Explicit VMEM budget: x/out pipeline buffers + resident weights + slack.
    xbytes = jnp.dtype(x.dtype).itemsize
    step_bytes = (2 * 2 * mb * C * K * xbytes      # x + out, double-buffered
                  + 2 * C * C * 2                  # pw_w bf16, double-buffered
                  + 2 * C * 128 * 4                # params (lane-padded)
                  + 4 * mb * C * K * 4)            # in-kernel f32 temporaries
    vmem_limit = int(min(max(step_bytes * 5 // 4, 32 * 1024 * 1024),
                         64 * 1024 * 1024))

    return pl.pallas_call(
        visual_conv1d_kernel,
        out_shape=jax.ShapeDtypeStruct((M, C, K), x.dtype),
        grid_spec=pltpu.PrefetchScalarGridSpec(
            num_scalar_prefetch=0,
            grid=(M // mb,),
            in_specs=[
                # (Mb, C, K) batch block; (C, K) slabs are lane-dense.
                pl.BlockSpec((mb, C, K), lambda m: (m, 0, 0)),
                # Constant-index blocks: fetched once, revisited across steps.
                pl.BlockSpec((C, _NUM_P), lambda m: (0, 0)),
                pl.BlockSpec((C, C), lambda m: (0, 0)),
            ],
            out_specs=pl.BlockSpec((mb, C, K), lambda m: (m, 0, 0)),
        ),
        compiler_params=pltpu.CompilerParams(
            dimension_semantics=("parallel",),
            vmem_limit_bytes=vmem_limit,
        ),
    )(x, params, pw_scaled_bf16)


def visual_conv1d_reference(x, gamma1, beta1, mean1, var1, dw_w, alpha,
                            gamma2, beta2, mean2, var2, pw_w, eps=BN_EPS):
    """Plain-JAX reference with the same (eval-mode BN) semantics."""
    x32 = x.astype(jnp.float32)
    h = jnp.maximum(x32, 0.0)
    h = ((h - mean1[None, :, None]) * jax.lax.rsqrt(var1[None, :, None] + eps)
         * gamma1[None, :, None] + beta1[None, :, None])
    hp = jnp.pad(h, ((0, 0), (0, 0), (1, 1)))
    d = (dw_w[None, :, 0:1] * hp[:, :, :-2]
         + dw_w[None, :, 1:2] * hp[:, :, 1:-1]
         + dw_w[None, :, 2:3] * hp[:, :, 2:])
    d = jnp.where(d >= 0.0, d, alpha * d)
    d = ((d - mean2[None, :, None]) * jax.lax.rsqrt(var2[None, :, None] + eps)
         * gamma2[None, :, None] + beta2[None, :, None])
    pw = jnp.einsum('oc,mck->mok', pw_w, d)
    return (pw + x32).astype(x.dtype)


if __name__ == "__main__":
    key = jax.random.PRNGKey(0)
    M, C, K = 2, 512, 128   # channels fixed at 512 by the module; K lane-dense

    ks = jax.random.split(key, 11)
    x = jax.random.normal(ks[0], (M, C, K), dtype=jnp.float32)

    gamma1 = 1.0 + 0.1 * jax.random.normal(ks[1], (C,), dtype=jnp.float32)
    beta1 = 0.1 * jax.random.normal(ks[2], (C,), dtype=jnp.float32)
    mean1 = 0.1 * jax.random.normal(ks[3], (C,), dtype=jnp.float32)
    var1 = jax.random.uniform(ks[4], (C,), jnp.float32, 0.5, 1.5)

    dw_w = jax.random.normal(ks[5], (C, 3), dtype=jnp.float32) * (1.0 / 3.0) ** 0.5
    alpha = jnp.float32(0.25)   # PReLU default init

    gamma2 = 1.0 + 0.1 * jax.random.normal(ks[6], (C,), dtype=jnp.float32)
    beta2 = 0.1 * jax.random.normal(ks[7], (C,), dtype=jnp.float32)
    mean2 = 0.1 * jax.random.normal(ks[8], (C,), dtype=jnp.float32)
    var2 = jax.random.uniform(ks[9], (C,), jnp.float32, 0.5, 1.5)

    pw_w = jax.random.normal(ks[10], (C, C), dtype=jnp.float32) * (1.0 / C) ** 0.5

    out = visual_conv1d(x, gamma1, beta1, mean1, var1, dw_w, alpha,
                        gamma2, beta2, mean2, var2, pw_w)
    jax.block_until_ready(out)

    ref = visual_conv1d_reference(x, gamma1, beta1, mean1, var1, dw_w, alpha,
                                  gamma2, beta2, mean2, var2, pw_w)

    assert out.shape == ref.shape
    # Tolerance covers the bf16-operand / f32-accumulation pointwise matmul.
    assert jnp.allclose(out, ref, atol=2e-2, rtol=2e-2), "mismatch vs reference"

    print("KERNEL_OK")
</pallas_src>

<mosaic_0001>
module attributes {stable_mosaic.version = 11 : i64} {
  func.func @visual_conv1d_kernel(%arg0: i32, %arg1: memref<1x512x128xf32, #tpu.memory_space<vmem>>, %arg2: memref<512x7xf32, #tpu.memory_space<vmem>>, %arg3: memref<512x512xbf16, #tpu.memory_space<vmem>>, %arg4: memref<1x512x128xf32, #tpu.memory_space<vmem>>) attributes {dimension_semantics = [#tpu.dimension_semantics<parallel>], iteration_bounds = array<i64: 2>, scalar_prefetch = 0 : i64, scratch_operands = 0 : i64, tpu.core_type = #tpu.core_type<tc>, window_params = [{transform_indices = @transform_0, window_bounds = array<i64: 1, 512, 128>}, {pipeline_mode = #tpu.pipeline_mode<synchronous>, transform_indices = @transform_1, window_bounds = array<i64: 512, 7>}, {pipeline_mode = #tpu.pipeline_mode<synchronous>, transform_indices = @transform_2, window_bounds = array<i64: 512, 512>}, {transform_indices = @transform_3, window_bounds = array<i64: 1, 512, 128>}]} {
    %c0 = arith.constant 0 : index
    %c0_0 = arith.constant 0 : index
    %0 = vector.load %arg2[%c0, %c0_0] : memref<512x7xf32, #tpu.memory_space<vmem>>, vector<512x7xf32>
    %1 = vector.extract_strided_slice %0 {offsets = [0, 0], sizes = [512, 1], strides = [1, 1]} : vector<512x7xf32> to vector<512x1xf32>
    %2 = vector.extract_strided_slice %0 {offsets = [0, 1], sizes = [512, 1], strides = [1, 1]} : vector<512x7xf32> to vector<512x1xf32>
    %3 = vector.extract_strided_slice %0 {offsets = [0, 2], sizes = [512, 1], strides = [1, 1]} : vector<512x7xf32> to vector<512x1xf32>
    %4 = vector.extract_strided_slice %0 {offsets = [0, 3], sizes = [512, 1], strides = [1, 1]} : vector<512x7xf32> to vector<512x1xf32>
    %5 = vector.extract_strided_slice %0 {offsets = [0, 4], sizes = [512, 1], strides = [1, 1]} : vector<512x7xf32> to vector<512x1xf32>
    %6 = vector.extract_strided_slice %0 {offsets = [0, 5], sizes = [512, 1], strides = [1, 1]} : vector<512x7xf32> to vector<512x1xf32>
    %7 = vector.extract_strided_slice %0 {offsets = [0, 6], sizes = [512, 1], strides = [1, 1]} : vector<512x7xf32> to vector<512x1xf32>
    %c0_1 = arith.constant 0 : index
    %c0_2 = arith.constant 0 : index
    %8 = vector.load %arg3[%c0_1, %c0_2] : memref<512x512xbf16, #tpu.memory_space<vmem>>, vector<512x512xbf16>
    %9 = tpu.iota {dimensions = array<i32: 1>} : vector<1x128xi32>
    %c1_i32 = arith.constant 1 : i32
    %10 = vector.broadcast %c1_i32 : i32 to vector<1x128xi32>
    %11 = arith.cmpi sge, %9, %10 : vector<1x128xi32>
    %12 = arith.extui %11 : vector<1x128xi1> to vector<1x128xi32>
    %13 = arith.sitofp %12 : vector<1x128xi32> to vector<1x128xf32>
    %c126_i32 = arith.constant 126 : i32
    %14 = vector.broadcast %c126_i32 : i32 to vector<1x128xi32>
    %15 = arith.cmpi sle, %9, %14 : vector<1x128xi32>
    %16 = arith.extui %15 : vector<1x128xi1> to vector<1x128xi32>
    %17 = arith.sitofp %16 : vector<1x128xi32> to vector<1x128xf32>
    %c0_3 = arith.constant 0 : index
    %c0_4 = arith.constant 0 : index
    %c0_5 = arith.constant 0 : index
    %18 = vector.load %arg1[%c0_3, %c0_4, %c0_5] : memref<1x512x128xf32, #tpu.memory_space<vmem>>, vector<1x512x128xf32>
    %19 = vector.shape_cast %18 : vector<1x512x128xf32> to vector<512x128xf32>
    %cst = arith.constant 0.000000e+00 : f32
    %20 = vector.broadcast %cst : f32 to vector<512x128xf32>
    %21 = arith.maximumf %19, %20 : vector<512x128xf32>
    %22 = vector.broadcast %1 : vector<512x1xf32> to vector<512x128xf32>
    %23 = arith.mulf %21, %22 : vector<512x128xf32>
    %24 = vector.broadcast %2 : vector<512x1xf32> to vector<512x128xf32>
    %25 = arith.addf %23, %24 : vector<512x128xf32>
    %c1_i32_6 = arith.constant 1 : i32
    %26 = tpu.dynamic_rotate %25 by %c1_i32_6 dim 1 : vector<512x128xf32>, i32 -> vector<512x128xf32>
    %27 = vector.broadcast %13 : vector<1x128xf32> to vector<512x128xf32>
    %28 = arith.mulf %26, %27 : vector<512x128xf32>
    %c127_i32 = arith.constant 127 : i32
    %29 = tpu.dynamic_rotate %25 by %c127_i32 dim 1 : vector<512x128xf32>, i32 -> vector<512x128xf32>
    %30 = vector.broadcast %17 : vector<1x128xf32> to vector<512x128xf32>
    %31 = arith.mulf %29, %30 : vector<512x128xf32>
    %32 = vector.broadcast %3 : vector<512x1xf32> to vector<512x128xf32>
    %33 = arith.mulf %32, %28 : vector<512x128xf32>
    %34 = vector.broadcast %4 : vector<512x1xf32> to vector<512x128xf32>
    %35 = arith.mulf %34, %25 : vector<512x128xf32>
    %36 = arith.addf %33, %35 : vector<512x128xf32>
    %37 = vector.broadcast %5 : vector<512x1xf32> to vector<512x128xf32>
    %38 = arith.mulf %37, %31 : vector<512x128xf32>
    %39 = arith.addf %36, %38 : vector<512x128xf32>
    %cst_7 = arith.constant 0.000000e+00 : f32
    %40 = vector.broadcast %cst_7 : f32 to vector<512x128xf32>
    %41 = arith.cmpf oge, %39, %40 : vector<512x128xf32>
    %42 = vector.broadcast %6 : vector<512x1xf32> to vector<512x128xf32>
    %43 = arith.mulf %42, %39 : vector<512x128xf32>
    %44 = arith.select %41, %39, %43 : vector<512x128xi1>, vector<512x128xf32>
    %45 = arith.truncf %44 : vector<512x128xf32> to vector<512x128xbf16>
    %cst_8 = arith.constant dense<0.000000e+00> : vector<512x128xf32>
    %46 = tpu.matmul %8, %45, %cst_8 {dimension_numbers = #tpu.dot_dimension_numbers<[1], [0], [0], [1], [0, 0, 1, 1], [], []>} : vector<512x512xbf16>, vector<512x128xbf16>, vector<512x128xf32> -> vector<512x128xf32>
    %47 = vector.broadcast %7 : vector<512x1xf32> to vector<512x128xf32>
    %48 = arith.addf %46, %47 : vector<512x128xf32>
    %49 = arith.addf %48, %19 : vector<512x128xf32>
    %c0_9 = arith.constant 0 : index
    %c0_10 = arith.constant 0 : index
    %c0_11 = arith.constant 0 : index
    %50 = vector.load %arg4[%c0_9, %c0_10, %c0_11] : memref<1x512x128xf32, #tpu.memory_space<vmem>>, vector<1x512x128xf32>
    %51 = vector.shape_cast %50 : vector<1x512x128xf32> to vector<512x128xf32>
    %52 = vector.shape_cast %49 : vector<512x128xf32> to vector<1x512x128xf32>
    tpu.vector_store %arg4[%c0_9, %c0_10, %c0_11], %52 {strides = array<i32>} : memref<1x512x128xf32, #tpu.memory_space<vmem>>, vector<1x512x128xf32>,
    return
  }
  func.func @transform_0(%arg0: i32) -> (i32, i32, i32) {
    %c0_i32 = arith.constant 0 : i32
    %c0_i32_0 = arith.constant 0 : i32
    %c0_i32_1 = arith.constant 0 : i32
    return %arg0, %c0_i32, %c0_i32_0 : i32, i32, i32
  }
  func.func @transform_1(%arg0: i32) -> (i32, i32) {
    %c0_i32 = arith.constant 0 : i32
    %c0_i32_0 = arith.constant 0 : i32
    %c0_i32_1 = arith.constant 0 : i32
    return %c0_i32, %c0_i32_0 : i32, i32
  }
  func.func @transform_2(%arg0: i32) -> (i32, i32) {
    %c0_i32 = arith.constant 0 : i32
    %c0_i32_0 = arith.constant 0 : i32
    %c0_i32_1 = arith.constant 0 : i32
    return %c0_i32, %c0_i32_0 : i32, i32
  }
  func.func @transform_3(%arg0: i32) -> (i32, i32, i32) {
    %c0_i32 = arith.constant 0 : i32
    %c0_i32_0 = arith.constant 0 : i32
    %c0_i32_1 = arith.constant 0 : i32
    return %arg0, %c0_i32, %c0_i32_0 : i32, i32, i32
  }
}

</mosaic_0001>

<bundles_post_ra>
// kernel: tpu_custom_call.1
= control target key start
LH: loop header
LB: loop body
LE: loop exit
PB: predicated region body
PF: predicated region fallthrough
CT: control target
= control target key end

     0   :  { %8 = vsyncpa [#allocation3], 0  ;;  %s9403_s0 = inlined_call_operand.hbm [shape: f32[2,512,128], index: 0, kind: input, shape index: {}]   ;;  %s9404_s1 = inlined_call_operand.vmem [shape: f32[512,7], index: 1, kind: input, shape index: {}]   ;;  %s9405_s2 = inlined_call_operand.hbm [shape: bf16[512,512], index: 2, kind: input, shape index: {}]   ;;  %s9406_s3 = inlined_call_operand.hbm [shape: f32[2,512,128], index: 3, kind: output, shape index: {}]  }
   0x1   :  { %10 = vsyncpa [#allocation3 + $0x1], 0 }
   0x2   :  { %11 = vsyncpa [#allocation6], 0 }
   0x3   :  { %12 = vsyncpa [#allocation4], 0 }
   0x4   :  { %14 = vsyncpa [#allocation4 + $0x1], 0  ;;  %s5712_s12 = smov 0   ;;  %s5714_s13 = smov 0  }
   0x5   :  { %s5716_s14 = smov 0   ;;  %s5718_s15 = smov 0  }
   0x6 LB: > { %s5733_s16 = sadd.s32 4294967295, %s5671_s15   ;;  %s4888_s17 = sadd.s32 4294967294, %s5671_s15   ;;  %s5671_s15 = sphi %s5718_s15, %s10400_s15   ;;  %s5667_s14 = sphi %s5716_s14, %s10399_s14   ;;  %s5663_s13 = sphi %s5714_s13, %s10398_s13   ;;  %s5659_s12 = sphi %s5712_s12, %s10397_s12  }
   0x7   : > { %p40_p0 = scmp.ne.s32.totalorder %s5663_s13, %s5659_s12  ;;  %p9407_p1 = scmp.eq.s32.totalorder %s5733_s16, 0 }
   0x8   : > { %p112_p3 = scmp.eq.s32.totalorder %s4888_s17, 1  ;;  %p4889_p5 = scmp.ge.s32.totalorder %s5671_s15, 1 }
   0x9   : > { %p5742_p4 = por %p9407_p1, %p40_p0  ;;  %p119_p7 = scmp.lt.s32.totalorder %s5671_s15, 3 }
   0xa   : > { %p5747_p6 = por %p112_p3, %p40_p0  ;;  %s5673_s21 = smov [#allocation5]  }
   0xb   : > { %s9518_s18 = scalar_select %p5742_p4, 1, 0 }
   0xc   : > { %s9519_s19 = scalar_select %p5747_p6, 1, 0 }
   0xd   : > { %p5752_p8 = pnand %p4889_p5, %p119_p7  ;;  %s134_s22 = sshll.u32 %s5673_s21, 4  ;;  %s5756_s22 = int_to_ptr.vmem [resolvable:$true] %s134_s22 }
   0xe   : > { %s5768_s24 = sadd.s32 1, %s5671_s15   ;;  %s27_s25 = sadd.s32 1, %s5667_s14 }
   0xf   : > { %s9520_s20 = scalar_select %p5752_p8, 1, 0 }
  0x10   : > { %p5044_p9 = pneg %p5752_p8  ;;  %s24_s26 = ssub.s32 %s5671_s15, %s5768_s24 }
  0x11   : > { %s5543_s29 = scalar_lea.hbm %s9405_s2, 16384 }
  0x12   : > { %p5763_p11 = pnand %p5044_p9, %p9407_p1  ;;  %p5544_p12 = scmp.ne.s32.totalorder %s9405_s2, %s5543_s29 }
  0x13   : > { %p5550_p5 = scmp.lt.u32.totalorder %s5543_s29, %s9405_s2 }
  0x14   : > { %p5545_p13 = pneg %p5763_p11 }
  0x16   : > { %p5546_p0 = pnand %p5545_p13, %p5544_p12 }
  0x18   : > { %p5547_p3 = pneg %p5546_p0 }
  0x1a   : > { %p5552_p7 = pnand %p5550_p5, %p5547_p3 }
  0x1c   : > { %5555 = shalt.err (!%p5552_p7)
}
  0x1d   : > { %s5556_s7 = scalar_lea.vmem %s5756_s22, 16384  ;;  %p5564_p2 = scmp.lt.s32.totalorder %s5756_s22, %s5756_s22 }
  0x1e   : > { %p5557_p9 = scmp.ne.s32.totalorder %s5756_s22, %s5556_s7  ;;  %p5565_p6 = scmp.lt.s32.totalorder %s5556_s7, %s5556_s7 }
  0x20   : > { %p5559_p10 = pnand %p5557_p9, %p5545_p13  ;;  %p5566_p4 = por %p5565_p6, %p5564_p2 }
  0x22   : > { %p5560_p1 = pneg %p5559_p10 }
  0x24   : > { %p5567_p8 = pnand %p5566_p4, %p5560_p1 }
  0x26   : > { %5570 = shalt.err (!%p5567_p8)
}
  0x27   : > { %s5674_s8 = smov 256   ;;  %s5675_s9 = smov 16  }
  0x28   : > { %5047 = dma.hbm_to_vmem [thread:$0]  (!%p5763_p11), %s9405_s2, 16384, %s5756_s22, [#allocation6], %s5674_s8, %s5674_s8, %s5675_s9  }
  0x29   : > { %p25_p2 = scmp.eq.s32.totalorder %s24_s26, 0  ;;  %p34_p1 = scmp.ne.s32.totalorder %s5667_s14, %s5663_s13 }
  0x2a   : > { %p35_p4 = scmp.eq.s32.totalorder %s5671_s15, 0  ;;  %p5057_p6 = scmp.lt.s32.totalorder %s5671_s15, 2 }
  0x2b   : > { %s5799_s17 = scalar_select %p25_p2, %s5667_s14, %s27_s25  }
  0x2c   : > { %p36_p8 = por %p35_p4, %p34_p1  ;;  %p9522_p10 = scmp.eq.s32.totalorder %s5733_s16, 1 }
  0x2d   : > { %s148_s27 = sand.u32 1, %s5667_s14   ;;  %s5034_s28 = sshll.u32 %s5671_s15, 13 }
  0x2e   : > { %p5803_p12 = por %p9522_p10, %p34_p1  ;;  %s4892_s29 = sshll.u32 %s148_s27, 9 }
  0x2f   : > { %s5812_s4 = scalar_lea.hbm %s9403_s0, %s5034_s28  ;;  %s152_s22 = scalar_lea.vmem [#allocation2], %s4892_s29 }
  0x30   : > { %s159_s25 = sshll.u32 %s152_s22, 4  ;;  %p5814_p11 = pnand %p5057_p6, %p36_p8  ;;  %s5818_s25 = int_to_ptr.vmem [resolvable:$true] %s159_s25 }
  0x31   : > { %s5820_s5 = scalar_lea.sflag [#allocation3], %s148_s27  ;;  %s5571_s6 = scalar_lea.hbm %s5812_s4, 8192 }
  0x32   : > { %p5572_p13 = scmp.ne.s32.totalorder %s5812_s4, %s5571_s6  ;;  %p5573_p0 = pneg %p5814_p11 }
  0x33   : > { %s5576_s9 = scalar_lea.hbm %s9403_s0, 16384  ;;  %p5577_p7 = scmp.lt.u32.totalorder %s5812_s4, %s9403_s0 }
  0x34   : > { %p5574_p3 = pnand %p5573_p0, %p5572_p13  ;;  %p5578_p9 = scmp.lt.u32.totalorder %s5576_s9, %s5571_s6 }
  0x35   : > { %p5580_p1 = scmp.lt.u32.totalorder %s5571_s6, %s5812_s4 }
  0x36   : > { %p5575_p5 = pneg %p5574_p3  ;;  %p5579_p2 = por %p5578_p9, %p5577_p7 }
  0x38   : > { %p5581_p4 = por %p5580_p1, %p5579_p2 }
  0x3a   : > { %p5582_p6 = pnand %p5581_p4, %p5575_p5 }
  0x3c   : > { %5585 = shalt.err (!%p5582_p6)
}
  0x3d   : > { %s5586_s27 = scalar_lea.vmem %s5818_s25, 8192  ;;  %s5676_s28 = smov [#allocation2]  }
  0x3e   : > { %p5587_p8 = scmp.ne.s32.totalorder %s5818_s25, %s5586_s27  ;;  %s5591_s29 = sshll.u32 %s5676_s28, 4  ;;  %s5592_s29 = int_to_ptr.vmem [resolvable:$false] %s5591_s29 }
  0x3f   : > { %s5593_s23 = scalar_lea.vmem %s5592_s29, 16384  ;;  %p5594_p3 = scmp.lt.s32.totalorder %s5818_s25, %s5592_s29 }
  0x40   : > { %p5589_p10 = pnand %p5587_p8, %p5573_p0  ;;  %p5595_p7 = scmp.lt.s32.totalorder %s5593_s23, %s5586_s27 }
  0x42   : > { %p5590_p13 = pneg %p5589_p10  ;;  %p5596_p9 = por %p5595_p7, %p5594_p3 }
  0x44   : > { %p5597_p2 = pnand %p5596_p9, %p5590_p13 }
  0x46   : > { %5600 = shalt.err (!%p5597_p2)
}
  0x47   : > { %s5677_s30 = smov 128   ;;  %s5678_s22 = smov 8  }
  0x48   : > { %5051 = dma.hbm_to_vmem [thread:$0]  (!%p5814_p11), %s5812_s4, 8192, %s5818_s25, %s5820_s5, %s5677_s30, %s5677_s30, %s5678_s22  }
  0x49   : > { %p9525_p0 = scmp.ne.s32.totalorder %s9520_s20, 0 }
  0x4b   : > { %171 = sbr.rel (%p9525_p0) target bundleno = 1815 (0x717), region = 32 }
  0x52   : > { %s5851_s6 = sand.u32 1, %s5663_s13   ;;  %p9526_p5 = scmp.ne.s32.totalorder %s9518_s18, 0 }
  0x53   : > { %s4896_s7 = sshll.u32 %s5851_s6, 9  ;;  %s174_s8 = scalar_lea.sflag [#allocation3], %s5851_s6 }
  0x54   : > { %s5857_s9 = scalar_lea.vmem [#allocation2], %s4896_s7 }
  0x55   : > { %5646 = dma.done.wait (%p9526_p5), %s174_s8, 8192  }
  0x56   : > { %5648 = vsyncadd (%p9526_p5), %s174_s8, 4294959104  ;;  %p9527_p11 = scmp.eq.s32.totalorder %s5733_s16, 0 }
  0x58   : > { %5650 = dma.done.wait (%p9527_p11), [#allocation6], 16384   ;;  %p9528_p1 = pmov %p9527_p11 }
  0x59   : > { %v9410_v0 = vmov 0   ;;  %v5874_v1 = vld [vmem:[%s9404_s1 + $0x10] sm:$0xff]  ;;  %v5879_v2 = vld [vmem:[%s9404_s1] sm:$0xff]  ;;  %v5886_v3 = vld [vmem:[%s9404_s1 + $0x18] sm:$0xff]  ;;  %s5681_s27 = smov 1   ;;  %s5683_s28 = smov 127  }
  0x5a   : > { %5652 = vsyncadd (%p9528_p1), [#allocation6], 4294950912  ;;  %5110 = vset.pattern.permute.xlu1 %v9410_v0  ;;  %5109 = vset.pattern.permute.xlu0 %v9410_v0  ;;  %v5891_v4 = vld [vmem:[%s9404_s1 + $0x8] sm:$0xff]  ;;  %v5903_v6 = vld [vmem:[%s9404_s1 + $0x20] sm:$0xff]  ;;  %s5689_s20 = smov [#allocation7]  }
  0x5b   : > { %4085 = vmatprep.subr.bf16.mxu0 %v9410_v0  ;;  %4374 = vmatprep.subr.bf16.mxu1 %v9410_v0  ;;  %v5898_v5 = vld [vmem:[%s9404_s1 + $0x28] sm:$0xff]  ;;  %v5910_v7 = vld [vmem:[%s9404_s1 + $0x38] sm:$0xff]  ;;  %v5915_v8 = vld [vmem:[%s9404_s1 + $0x30] sm:$0xff]  ;;  %s5605_s4 = sshll.u32 %s5689_s20, 4  ;;  %s5606_s4 = int_to_ptr.vmem [resolvable:$false] %s5605_s4 }
  0x5c   : > { %545 = vperm.xlu1 %5110, %v5874_v1   ;;  %535 = vperm.xlu0 %5109, %v5879_v2   ;;  %v5922_v9 = vld [vmem:[%s9404_s1 + $0x48] sm:$0xff]  ;;  %v5927_v10 = vld [vmem:[%s9404_s1 + $0x40] sm:$0xff]  ;;  %v5934_v11 = vld [vmem:[%s9404_s1 + $0x58] sm:$0xff]  ;;  %s5607_s18 = scalar_lea.vmem %s5606_s4, 16384 }
  0x5d   : > { %v5939_v12 = vld [vmem:[%s9404_s1 + $0x50] sm:$0xff]  ;;  %v5946_v13 = vld [vmem:[%s9404_s1 + $0x68] sm:$0xff]  ;;  %v5951_v14 = vld [vmem:[%s9404_s1 + $0x60] sm:$0xff] }
  0x5e   : > { %v5958_v15 = vld [vmem:[%s9404_s1 + $0x78] sm:$0xff]  ;;  %v5963_v16 = vld [vmem:[%s9404_s1 + $0x70] sm:$0xff]  ;;  %v5970_v17 = vld [vmem:[%s9404_s1 + $0x88] sm:$0xff] }
  0x5f   : > { %v5975_v18 = vld [vmem:[%s9404_s1 + $0x80] sm:$0xff]  ;;  %v5982_v19 = vld [vmem:[%s9404_s1 + $0x98] sm:$0xff]  ;;  %v5987_v20 = vld [vmem:[%s9404_s1 + $0x90] sm:$0xff] }
  0x60   : > { %550 = vperm.xlu1 %5110, %v5886_v3   ;;  %540 = vperm.xlu0 %5109, %v5891_v4   ;;  %v5994_v21 = vld [vmem:[%s9404_s1 + $0xa8] sm:$0xff]  ;;  %v5999_v22 = vld [vmem:[%s9404_s1 + $0xa0] sm:$0xff]  ;;  %v6006_v23 = vld [vmem:[%s9404_s1 + $0xb8] sm:$0xff] }
  0x61   : > { %v6011_v24 = vld [vmem:[%s9404_s1 + $0xb0] sm:$0xff]  ;;  %v6018_v25 = vld [vmem:[%s9404_s1 + $0xc8] sm:$0xff]  ;;  %v6023_v26 = vld [vmem:[%s9404_s1 + $0xc0] sm:$0xff] }
  0x62   : > { %v6030_v27 = vld [vmem:[%s9404_s1 + $0xd8] sm:$0xff]  ;;  %v6035_v28 = vld [vmem:[%s9404_s1 + $0xd0] sm:$0xff]  ;;  %v6042_v29 = vld [vmem:[%s9404_s1 + $0xe8] sm:$0xff] }
  0x63   : > { %v6047_v30 = vld [vmem:[%s9404_s1 + $0xe0] sm:$0xff]  ;;  %v6054_v31 = vld [vmem:[%s9404_s1 + $0xf8] sm:$0xff]  ;;  %v6059_v32 = vld [vmem:[%s9404_s1 + $0xf0] sm:$0xff] }
  0x64   : > { %560 = vperm.xlu1 %5110, %v5898_v5   ;;  %555 = vperm.xlu0 %5109, %v5903_v6   ;;  %v6066_v33 = vld [vmem:[%s9404_s1 + $0x108] sm:$0xff]  ;;  %v6071_v34 = vld [vmem:[%s9404_s1 + $0x100] sm:$0xff]  ;;  %v6078_v35 = vld [vmem:[%s9404_s1 + $0x118] sm:$0xff] }
  0x65   : > { %v6083_v36 = vld [vmem:[%s9404_s1 + $0x110] sm:$0xff]  ;;  %v6090_v37 = vld [vmem:[%s9404_s1 + $0x128] sm:$0xff]  ;;  %v6095_v38 = vld [vmem:[%s9404_s1 + $0x120] sm:$0xff] }
  0x66   : > { %v6102_v39 = vld [vmem:[%s9404_s1 + $0x138] sm:$0xff]  ;;  %v6107_v40 = vld [vmem:[%s9404_s1 + $0x130] sm:$0xff]  ;;  %v6114_v41 = vld [vmem:[%s9404_s1 + $0x148] sm:$0xff] }
  0x67   : > { %v6119_v42 = vld [vmem:[%s9404_s1 + $0x140] sm:$0xff]  ;;  %v6126_v43 = vld [vmem:[%s9404_s1 + $0x158] sm:$0xff]  ;;  %v6131_v44 = vld [vmem:[%s9404_s1 + $0x150] sm:$0xff] }
  0x68   : > { %570 = vperm.xlu1 %5110, %v5910_v7   ;;  %565 = vperm.xlu0 %5109, %v5915_v8   ;;  %v6138_v45 = vld [vmem:[%s9404_s1 + $0x168] sm:$0xff]  ;;  %v6143_v46 = vld [vmem:[%s9404_s1 + $0x160] sm:$0xff]  ;;  %v6150_v47 = vld [vmem:[%s9404_s1 + $0x178] sm:$0xff] }
  0x69   : > { %v6155_v48 = vld [vmem:[%s9404_s1 + $0x170] sm:$0xff]  ;;  %v6162_v49 = vld [vmem:[%s9404_s1 + $0x188] sm:$0xff]  ;;  %v6167_v50 = vld [vmem:[%s9404_s1 + $0x180] sm:$0xff] }
  0x6a   : > { %v6174_v51 = vld [vmem:[%s9404_s1 + $0x198] sm:$0xff]  ;;  %v6179_v52 = vld [vmem:[%s9404_s1 + $0x190] sm:$0xff]  ;;  %v6186_v53 = vld [vmem:[%s9404_s1 + $0x1a8] sm:$0xff] }
  0x6b   : > { %v6191_v54 = vld [vmem:[%s9404_s1 + $0x1a0] sm:$0xff]  ;;  %v6198_v55 = vld [vmem:[%s9404_s1 + $0x1b8] sm:$0xff]  ;;  %v6203_v56 = vld [vmem:[%s9404_s1 + $0x1b0] sm:$0xff] }
  0x6c   : > { %580 = vperm.xlu1 %5110, %v5922_v9   ;;  %575 = vperm.xlu0 %5109, %v5927_v10   ;;  %v6210_v57 = vld [vmem:[%s9404_s1 + $0x1c8] sm:$0xff]  ;;  %v6215_v58 = vld [vmem:[%s9404_s1 + $0x1c0] sm:$0xff]  ;;  %v6222_v59 = vld [vmem:[%s9404_s1 + $0x1d8] sm:$0xff] }
  0x6d   : > { %9529 = vst [vmem:[#allocation11_spill] sm:$0xff] %v6210_v57  ;;  %9530 = vst [vmem:[#allocation12_spill] sm:$0xff] %v6222_v59  ;;  %v6227_v60 = vld [vmem:[%s9404_s1 + $0x1d0] sm:$0xff]  ;;  %v6234_v61 = vld [vmem:[%s9404_s1 + $0x1e8] sm:$0xff] }
  0x6e   : > { %9531 = vst [vmem:[#allocation13_spill] sm:$0xff] %v6227_v60  ;;  %9532 = vst [vmem:[#allocation14_spill] sm:$0xff] %v6234_v61  ;;  %v6239_v62 = vld [vmem:[%s9404_s1 + $0x1e0] sm:$0xff]  ;;  %v6246_v63 = vld [vmem:[%s9404_s1 + $0x1f8] sm:$0xff] }
  0x6f   : > { %9533 = vst [vmem:[#allocation15_spill] sm:$0xff] %v6239_v62  ;;  %9534 = vst [vmem:[#allocation16_spill] sm:$0xff] %v6246_v63  ;;  %v6251_v0 = vld [vmem:[%s9404_s1 + $0x1f0] sm:$0xff] }
  0x70   : > { %590 = vperm.xlu1 %5110, %v5934_v11   ;;  %585 = vperm.xlu0 %5109, %v5939_v12  }
  0x74   : > { %600 = vperm.xlu1 %5110, %v5946_v13   ;;  %595 = vperm.xlu0 %5109, %v5951_v14  }
  0x78   : > { %610 = vperm.xlu1 %5110, %v5958_v15   ;;  %605 = vperm.xlu0 %5109, %v5963_v16  }
  0x7c   : > { %620 = vperm.xlu1 %5110, %v5970_v17   ;;  %615 = vperm.xlu0 %5109, %v5975_v18  }
  0x80   : > { %630 = vperm.xlu1 %5110, %v5982_v19   ;;  %625 = vperm.xlu0 %5109, %v5987_v20  }
  0x84   : > { %640 = vperm.xlu1 %5110, %v5994_v21   ;;  %635 = vperm.xlu0 %5109, %v5999_v22  }
  0x88   : > { %650 = vperm.xlu1 %5110, %v6006_v23   ;;  %645 = vperm.xlu0 %5109, %v6011_v24  }
  0x8c   : > { %660 = vperm.xlu1 %5110, %v6018_v25   ;;  %655 = vperm.xlu0 %5109, %v6023_v26  }
  0x90   : > { %670 = vperm.xlu1 %5110, %v6030_v27   ;;  %665 = vperm.xlu0 %5109, %v6035_v28  }
  0x94   : > { %680 = vperm.xlu1 %5110, %v6042_v29   ;;  %675 = vperm.xlu0 %5109, %v6047_v30  }
  0x98   : > { %690 = vperm.xlu1 %5110, %v6054_v31   ;;  %685 = vperm.xlu0 %5109, %v6059_v32  }
  0x9c   : > { %700 = vperm.xlu1 %5110, %v6066_v33   ;;  %695 = vperm.xlu0 %5109, %v6071_v34  }
  0xa0   : > { %710 = vperm.xlu1 %5110, %v6078_v35   ;;  %705 = vperm.xlu0 %5109, %v6083_v36  }
  0xa4   : > { %720 = vperm.xlu1 %5110, %v6090_v37   ;;  %715 = vperm.xlu0 %5109, %v6095_v38  }
  0xa8   : > { %730 = vperm.xlu1 %5110, %v6102_v39   ;;  %725 = vperm.xlu0 %5109, %v6107_v40  }
  0xac   : > { %740 = vperm.xlu1 %5110, %v6114_v41   ;;  %735 = vperm.xlu0 %5109, %v6119_v42  }
  0xb0   : > { %750 = vperm.xlu1 %5110, %v6126_v43   ;;  %745 = vperm.xlu0 %5109, %v6131_v44  }
  0xb4   : > { %760 = vperm.xlu1 %5110, %v6138_v45   ;;  %755 = vperm.xlu0 %5109, %v6143_v46  }
  0xb8   : > { %770 = vperm.xlu1 %5110, %v6150_v47   ;;  %765 = vperm.xlu0 %5109, %v6155_v48  }
  0xbc   : > { %780 = vperm.xlu1 %5110, %v6162_v49   ;;  %775 = vperm.xlu0 %5109, %v6167_v50  }
  0xc0   : > { %790 = vperm.xlu1 %5110, %v6174_v51   ;;  %785 = vperm.xlu0 %5109, %v6179_v52  }
  0xc4   : > { %800 = vperm.xlu1 %5110, %v6186_v53   ;;  %795 = vperm.xlu0 %5109, %v6191_v54  }
  0xc8   : > { %810 = vperm.xlu1 %5110, %v6198_v55   ;;  %805 = vperm.xlu0 %5109, %v6203_v56  }
  0xcc   : > { %820 = vperm.xlu1 %5110, %v6210_v57   ;;  %815 = vperm.xlu0 %5109, %v6215_v58  }
  0xd0   : > { %830 = vperm.xlu1 %5110, %v6222_v59   ;;  %825 = vperm.xlu0 %5109, %v6227_v60  }
  0xd4   : > { %840 = vperm.xlu1 %5110, %v6234_v61   ;;  %835 = vperm.xlu0 %5109, %v6239_v62   ;;  %v5680_v61 = vmov 1  }
  0xd8   : > { %850 = vperm.xlu1 %5110, %v6246_v63   ;;  %845 = vperm.xlu0 %5109, %v6251_v0  }
  0xdb   : > { %v6255_v59 = vpop.permute.xlu1 %545  ;;  %v6257_v60 = vpop.permute.xlu0 %535 }
  0xdc   : > { %9535 = vst [vmem:[#allocation17_spill] sm:$0xff] %v6255_v59  ;;  %5112 = vset.pattern.permute.xlu1 %v5680_v61  ;;  %5111 = vset.pattern.permute.xlu0 %v5680_v61 }
  0xdd   : > { %922 = vperm.xlu1 %5112, %v5891_v4   ;;  %918 = vperm.xlu0 %5111, %v5879_v2  }
  0xdf   : > { %v6261_v62 = vpop.permute.xlu1 %550  ;;  %v6263_v57 = vpop.permute.xlu0 %540 }
  0xe1   : > { %926 = vperm.xlu1 %5112, %v5874_v1   ;;  %930 = vperm.xlu0 %5111, %v5886_v3  }
  0xe3   : > { %v6267_v63 = vpop.permute.xlu1 %560  ;;  %v6269_v59 = vpop.permute.xlu0 %555 }
  0xe5   : > { %934 = vperm.xlu1 %5112, %v5903_v6   ;;  %938 = vperm.xlu0 %5111, %v5898_v5  }
  0xe7   : > { %v6273_v61 = vpop.permute.xlu1 %570  ;;  %v6275_v4 = vpop.permute.xlu0 %565 }
  0xe9   : > { %942 = vperm.xlu1 %5112, %v5915_v8   ;;  %946 = vperm.xlu0 %5111, %v5910_v7  }
  0xeb   : > { %v6279_v2 = vpop.permute.xlu1 %580  ;;  %v6281_v1 = vpop.permute.xlu0 %575 }
  0xed   : > { %950 = vperm.xlu1 %5112, %v5927_v10   ;;  %954 = vperm.xlu0 %5111, %v5922_v9  }
  0xef   : > { %v6285_v3 = vpop.permute.xlu1 %590  ;;  %v6287_v6 = vpop.permute.xlu0 %585 }
  0xf1   : > { %958 = vperm.xlu1 %5112, %v5939_v12   ;;  %962 = vperm.xlu0 %5111, %v5934_v11  }
  0xf3   : > { %v6291_v5 = vpop.permute.xlu1 %600  ;;  %v6293_v8 = vpop.permute.xlu0 %595 }
  0xf5   : > { %966 = vperm.xlu1 %5112, %v5951_v14   ;;  %970 = vperm.xlu0 %5111, %v5946_v13  }
  0xf7   : > { %v6297_v7 = vpop.permute.xlu1 %610  ;;  %v6299_v10 = vpop.permute.xlu0 %605 }
  0xf9   : > { %974 = vperm.xlu1 %5112, %v5963_v16   ;;  %978 = vperm.xlu0 %5111, %v5958_v15  }
  0xfb   : > { %v6303_v9 = vpop.permute.xlu1 %620  ;;  %v6305_v12 = vpop.permute.xlu0 %615 }
  0xfd   : > { %982 = vperm.xlu1 %5112, %v5975_v18   ;;  %986 = vperm.xlu0 %5111, %v5970_v17  }
  0xff   : > { %v6309_v11 = vpop.permute.xlu1 %630  ;;  %v6311_v14 = vpop.permute.xlu0 %625 }
 0x101   : > { %990 = vperm.xlu1 %5112, %v5987_v20   ;;  %994 = vperm.xlu0 %5111, %v5982_v19  }
 0x103   : > { %v6315_v13 = vpop.permute.xlu1 %640  ;;  %v6317_v16 = vpop.permute.xlu0 %635 }
 0x105   : > { %998 = vperm.xlu1 %5112, %v5999_v22   ;;  %1002 = vperm.xlu0 %5111, %v5994_v21  }
 0x107   : > { %v6321_v15 = vpop.permute.xlu1 %650  ;;  %v6323_v18 = vpop.permute.xlu0 %645 }
 0x109   : > { %1006 = vperm.xlu1 %5112, %v6011_v24   ;;  %1010 = vperm.xlu0 %5111, %v6006_v23  }
 0x10b   : > { %v6327_v17 = vpop.permute.xlu1 %660  ;;  %v6329_v20 = vpop.permute.xlu0 %655 }
 0x10d   : > { %1014 = vperm.xlu1 %5112, %v6023_v26   ;;  %1018 = vperm.xlu0 %5111, %v6018_v25  }
 0x10f   : > { %v6333_v19 = vpop.permute.xlu1 %670  ;;  %v6335_v22 = vpop.permute.xlu0 %665 }
 0x111   : > { %1022 = vperm.xlu1 %5112, %v6035_v28   ;;  %1026 = vperm.xlu0 %5111, %v6030_v27  }
 0x113   : > { %v6339_v21 = vpop.permute.xlu1 %680  ;;  %v6341_v24 = vpop.permute.xlu0 %675 }
 0x115   : > { %1030 = vperm.xlu1 %5112, %v6047_v30   ;;  %1034 = vperm.xlu0 %5111, %v6042_v29  }
 0x117   : > { %v6345_v23 = vpop.permute.xlu1 %690  ;;  %v6347_v26 = vpop.permute.xlu0 %685 }
 0x119   : > { %1038 = vperm.xlu1 %5112, %v6059_v32   ;;  %1042 = vperm.xlu0 %5111, %v6054_v31  }
 0x11b   : > { %v6351_v25 = vpop.permute.xlu1 %700  ;;  %v6353_v28 = vpop.permute.xlu0 %695 }
 0x11d   : > { %1046 = vperm.xlu1 %5112, %v6071_v34   ;;  %1050 = vperm.xlu0 %5111, %v6066_v33  }
 0x11f   : > { %v6357_v27 = vpop.permute.xlu1 %710  ;;  %v6359_v30 = vpop.permute.xlu0 %705 }
 0x121   : > { %1054 = vperm.xlu1 %5112, %v6083_v36   ;;  %1058 = vperm.xlu0 %5111, %v6078_v35  }
 0x123   : > { %v6363_v29 = vpop.permute.xlu1 %720  ;;  %v6365_v32 = vpop.permute.xlu0 %715 }
 0x125   : > { %1062 = vperm.xlu1 %5112, %v6095_v38   ;;  %1066 = vperm.xlu0 %5111, %v6090_v37  }
 0x127   : > { %v6369_v31 = vpop.permute.xlu1 %730  ;;  %v6371_v34 = vpop.permute.xlu0 %725 }
 0x129   : > { %1070 = vperm.xlu1 %5112, %v6107_v40   ;;  %1074 = vperm.xlu0 %5111, %v6102_v39  }
 0x12b   : > { %v6375_v33 = vpop.permute.xlu1 %740  ;;  %v6377_v36 = vpop.permute.xlu0 %735 }
 0x12d   : > { %1078 = vperm.xlu1 %5112, %v6119_v42   ;;  %1082 = vperm.xlu0 %5111, %v6114_v41  }
 0x12f   : > { %v6381_v35 = vpop.permute.xlu1 %750  ;;  %v6383_v38 = vpop.permute.xlu0 %745 }
 0x131   : > { %1086 = vperm.xlu1 %5112, %v6131_v44   ;;  %1090 = vperm.xlu0 %5111, %v6126_v43  }
 0x133   : > { %v6387_v37 = vpop.permute.xlu1 %760  ;;  %v6389_v40 = vpop.permute.xlu0 %755 }
 0x135   : > { %1094 = vperm.xlu1 %5112, %v6143_v46   ;;  %1098 = vperm.xlu0 %5111, %v6138_v45  }
 0x137   : > { %v6393_v39 = vpop.permute.xlu1 %770  ;;  %v6395_v42 = vpop.permute.xlu0 %765 }
 0x138   : > { %9536 = vst [vmem:[#allocation18_spill] sm:$0xff] %v6395_v42 }
 0x139   : > { %1102 = vperm.xlu1 %5112, %v6155_v48   ;;  %1106 = vperm.xlu0 %5111, %v6150_v47  }
 0x13b   : > { %v6399_v41 = vpop.permute.xlu1 %780  ;;  %v6401_v44 = vpop.permute.xlu0 %775 }
 0x13c   : > { %9537 = vst [vmem:[#allocation19_spill] sm:$0xff] %v6399_v41  ;;  %9538 = vst [vmem:[#allocation20_spill] sm:$0xff] %v6401_v44  ;;  %v9561_v41 = vld [vmem:[#allocation17_spill] sm:$0xff] }
 0x13d   : > { %1110 = vperm.xlu1 %5112, %v6167_v50   ;;  %1114 = vperm.xlu0 %5111, %v6162_v49  }
 0x13f   : > { %v6405_v43 = vpop.permute.xlu1 %790  ;;  %v6407_v46 = vpop.permute.xlu0 %785 }
 0x140   : > { %9539 = vst [vmem:[#allocation21_spill] sm:$0xff] %v6405_v43  ;;  %9540 = vst [vmem:[#allocation22_spill] sm:$0xff] %v6407_v46 }
 0x141   : > { %1118 = vperm.xlu1 %5112, %v6179_v52   ;;  %1122 = vperm.xlu0 %5111, %v6174_v51   ;;  %v9547_v52 = vld [vmem:[#allocation11_spill] sm:$0xff] }
 0x143   : > { %v6411_v45 = vpop.permute.xlu1 %800  ;;  %v6413_v48 = vpop.permute.xlu0 %795 }
 0x144   : > { %9541 = vst [vmem:[#allocation23_spill] sm:$0xff] %v6411_v45  ;;  %9542 = vst [vmem:[#allocation24_spill] sm:$0xff] %v6413_v48 }
 0x145   : > { %1126 = vperm.xlu1 %5112, %v6191_v54   ;;  %1130 = vperm.xlu0 %5111, %v6186_v53  }
 0x147   : > { %v6417_v47 = vpop.permute.xlu1 %810  ;;  %v6419_v49 = vpop.permute.xlu0 %805 }
 0x148   : > { %9543 = vst [vmem:[#allocation25_spill] sm:$0xff] %v6417_v47  ;;  %9544 = vst [vmem:[#allocation26_spill] sm:$0xff] %v6419_v49  ;;  %v9550_v47 = vld [vmem:[#allocation13_spill] sm:$0xff]  ;;  %v9551_v49 = vld [vmem:[#allocation12_spill] sm:$0xff] }
 0x149   : > { %1134 = vperm.xlu1 %5112, %v6203_v56   ;;  %1138 = vperm.xlu0 %5111, %v6198_v55  }
 0x14b   : > { %v6423_v50 = vpop.permute.xlu1 %820  ;;  %v6425_v51 = vpop.permute.xlu0 %815 }
 0x14c   : > { %9545 = vst [vmem:[#allocation27_spill] sm:$0xff] %v6423_v50  ;;  %9546 = vst [vmem:[#allocation28_spill] sm:$0xff] %v6425_v51  ;;  %v405_v50 = vld [vmem:[%s5857_s9] sm:$0xff]  ;;  %v406_v51 = vld [vmem:[%s5857_s9 + $0x8] sm:$0xff] }
 0x14d   : > { %1142 = vperm.xlu1 %5112, %v6215_v58   ;;  %1146 = vperm.xlu0 %5111, %v9547_v52   ;;  %v9554_v58 = vld [vmem:[#allocation15_spill] sm:$0xff]  ;;  %v9555_v52 = vld [vmem:[#allocation14_spill] sm:$0xff]  ;;  %v469_v48 = vmax.f32 %v405_v50, 0.0  ;;  %v410_v50 = vld [vmem:[%s5857_s9 + $0x28] sm:$0xff] }
 0x14f   : > { %v6429_v53 = vpop.permute.xlu1 %830  ;;  %v6431_v54 = vpop.permute.xlu0 %825  ;;  %v853_v46 = vmul.f32 %v6257_v60, %v469_v48  ;;  %v411_v60 = vld [vmem:[%s5857_s9 + $0x30] sm:$0xff] }
 0x150   : > { %9548 = vst [vmem:[#allocation11_spill] sm:$0xff] %v6429_v53  ;;  %9549 = vst [vmem:[#allocation29_spill] sm:$0xff] %v6431_v54  ;;  %v470_v53 = vmax.f32 %v406_v51, 0.0  ;;  %v409_v51 = vld [vmem:[%s5857_s9 + $0x20] sm:$0xff] }
 0x151   : > { %1150 = vperm.xlu1 %5112, %v9550_v47   ;;  %1154 = vperm.xlu0 %5111, %v9551_v49   ;;  %v407_v47 = vld [vmem:[%s5857_s9 + $0x10] sm:$0xff]  ;;  %v408_v49 = vld [vmem:[%s5857_s9 + $0x18] sm:$0xff]  ;;  %v473_v42 = vmax.f32 %v409_v51, 0.0 }
 0x152   : > { %v472_v43 = vmax.f32 %v408_v49, 0.0  ;;  %v414_v49 = vld [vmem:[%s5857_s9 + $0x48] sm:$0xff] }
 0x153   : > { %v6435_v56 = vpop.permute.xlu1 %840  ;;  %v6437_v55 = vpop.permute.xlu0 %835 }
 0x154   : > { %9552 = vst [vmem:[#allocation13_spill] sm:$0xff] %v6435_v56  ;;  %9553 = vst [vmem:[#allocation12_spill] sm:$0xff] %v6437_v55  ;;  %v9558_v56 = vld [vmem:[#allocation16_spill] sm:$0xff]  ;;  %v471_v55 = vmax.f32 %v407_v47, 0.0  ;;  %v474_v47 = vmax.f32 %v410_v50, 0.0 }
 0x155   : > { %1158 = vperm.xlu1 %5112, %v9554_v58   ;;  %1162 = vperm.xlu0 %5111, %v9555_v52   ;;  %v854_v58 = vmul.f32 %v6263_v57, %v470_v53  ;;  %v412_v57 = vld [vmem:[%s5857_s9 + $0x38] sm:$0xff] }
 0x156   : > { %v476_v53 = vmax.f32 %v412_v57, 0.0  ;;  %v415_v57 = vld [vmem:[%s5857_s9 + $0x50] sm:$0xff] }
 0x157   : > { %v6443_v45 = vpop.permute.xlu1 %850  ;;  %v6445_v54 = vpop.permute.xlu0 %845 }
 0x158   : > { %9556 = vst [vmem:[#allocation15_spill] sm:$0xff] %v6443_v45  ;;  %9557 = vst [vmem:[#allocation14_spill] sm:$0xff] %v6445_v54 }
 0x159   : > { %1166 = vperm.xlu1 %5112, %v6251_v0   ;;  %1170 = vperm.xlu0 %5111, %v9558_v56   ;;  %v855_v0 = vmul.f32 %v9561_v41, %v471_v55  ;;  %v856_v56 = vmul.f32 %v6261_v62, %v472_v43  ;;  %v858_v62 = vmul.f32 %v6267_v63, %v474_v47  ;;  %v475_v55 = vmax.f32 %v411_v60, 0.0  ;;  %v416_v47 = vld [vmem:[%s5857_s9 + $0x58] sm:$0xff] }
 0x15a   : > { %v857_v43 = vmul.f32 %v6269_v59, %v473_v42  ;;  %v860_v59 = vmul.f32 %v6273_v61, %v476_v53  ;;  %v478_v42 = vmax.f32 %v414_v49, 0.0  ;;  %v479_v53 = vmax.f32 %v415_v57, 0.0  ;;  %v417_v49 = vld [vmem:[%s5857_s9 + $0x60] sm:$0xff] }
 0x15b   : > { %v859_v63 = vmul.f32 %v6275_v4, %v475_v55  ;;  %v418_v55 = vld [vmem:[%s5857_s9 + $0x68] sm:$0xff] }
 0x15c   : > { %v923_v52 = vpop.permute.xlu1 %922  ;;  %v919_v45 = vpop.permute.xlu0 %918  ;;  %v862_v61 = vmul.f32 %v6279_v2, %v478_v42  ;;  %v481_v42 = vmax.f32 %v417_v49, 0.0 }
 0x15d   : > { %v6455_v44 = vadd.f32 %v923_v52, %v854_v58  ;;  %v6457_v54 = vadd.f32 %v919_v45, %v853_v46  ;;  %v413_v58 = vld [vmem:[%s5857_s9 + $0x40] sm:$0xff] }
 0x15f   : > { %9559 = vst [vmem:[#allocation16_spill] sm:$0xff] %v6455_v44  ;;  %9560 = vst [vmem:[#allocation30_spill] sm:$0xff] %v6457_v54  ;;  %1239 = vrot.lane.b32.xlu0 %v6455_v44, %s5681_s27  ;;  %1237 = vrot.lane.b32.xlu1 %v6457_v54, %s5681_s27 }
 0x160   : > { %v927_v48 = vpop.permute.xlu1 %926  ;;  %v931_v46 = vpop.permute.xlu0 %930 }
 0x161   : > { %v6467_v45 = vadd.f32 %v927_v48, %v855_v0  ;;  %v6469_v41 = vadd.f32 %v931_v46, %v856_v56  ;;  %v477_v56 = vmax.f32 %v413_v58, 0.0 }
 0x163   : > { %9562 = vst [vmem:[#allocation17_spill] sm:$0xff] %v6467_v45  ;;  %9563 = vst [vmem:[#allocation31_spill] sm:$0xff] %v6469_v41  ;;  %1241 = vrot.lane.b32.xlu1 %v6467_v45, %s5681_s27  ;;  %1243 = vrot.lane.b32.xlu0 %v6469_v41, %s5681_s27  ;;  %v861_v4 = vmul.f32 %v6281_v1, %v477_v56  ;;  %v863_v1 = vmul.f32 %v6287_v6, %v479_v53  ;;  %v420_v56 = vld [vmem:[%s5857_s9 + $0x78] sm:$0xff]  ;;  %v422_v53 = vld [vmem:[%s5857_s9 + $0x88] sm:$0xff] }
 0x164   : > { %v935_v50 = vpop.permute.xlu1 %934  ;;  %v939_v51 = vpop.permute.xlu0 %938  ;;  %v865_v6 = vmul.f32 %v6293_v8, %v481_v42  ;;  %v424_v42 = vld [vmem:[%s5857_s9 + $0x98] sm:$0xff] }
 0x165   : > { %v6479_v52 = vadd.f32 %v935_v50, %v857_v43  ;;  %v6481_v0 = vadd.f32 %v939_v51, %v858_v62  ;;  %v480_v43 = vmax.f32 %v416_v47, 0.0  ;;  %v419_v47 = vld [vmem:[%s5857_s9 + $0x70] sm:$0xff] }
 0x167   : > { %9564 = vst [vmem:[#allocation32_spill] sm:$0xff] %v6479_v52  ;;  %9565 = vst [vmem:[#allocation33_spill] sm:$0xff] %v6481_v0  ;;  %1245 = vrot.lane.b32.xlu1 %v6479_v52, %s5681_s27  ;;  %1247 = vrot.lane.b32.xlu0 %v6481_v0, %s5681_s27  ;;  %v864_v2 = vmul.f32 %v6285_v3, %v480_v43  ;;  %v483_v43 = vmax.f32 %v419_v47, 0.0 }
 0x168   : > { %v943_v60 = vpop.permute.xlu1 %942  ;;  %v947_v48 = vpop.permute.xlu0 %946 }
 0x169   : > { %v6491_v46 = vadd.f32 %v943_v60, %v859_v63  ;;  %v6493_v62 = vadd.f32 %v947_v48, %v860_v59  ;;  %v482_v63 = vmax.f32 %v418_v55, 0.0  ;;  %v421_v55 = vld [vmem:[%s5857_s9 + $0x80] sm:$0xff]  ;;  %v867_v8 = vmul.f32 %v6299_v10, %v483_v43  ;;  %v426_v43 = vld [vmem:[%s5857_s9 + $0xa8] sm:$0xff] }
 0x16b   : > { %9566 = vst [vmem:[#allocation34_spill] sm:$0xff] %v6491_v46  ;;  %9567 = vst [vmem:[#allocation35_spill] sm:$0xff] %v6493_v62  ;;  %1249 = vrot.lane.b32.xlu1 %v6491_v46, %s5681_s27  ;;  %1251 = vrot.lane.b32.xlu0 %v6493_v62, %s5681_s27  ;;  %v866_v3 = vmul.f32 %v6291_v5, %v482_v63  ;;  %v485_v63 = vmax.f32 %v421_v55, 0.0 }
 0x16c   : > { %v951_v58 = vpop.permute.xlu1 %950  ;;  %v955_v50 = vpop.permute.xlu0 %954 }
 0x16d   : > { %v6503_v51 = vadd.f32 %v951_v58, %v861_v4  ;;  %v6505_v59 = vadd.f32 %v955_v50, %v862_v61  ;;  %v484_v4 = vmax.f32 %v420_v56, 0.0  ;;  %v423_v56 = vld [vmem:[%s5857_s9 + $0x90] sm:$0xff]  ;;  %v869_v10 = vmul.f32 %v6305_v12, %v485_v63  ;;  %v428_v63 = vld [vmem:[%s5857_s9 + $0xb8] sm:$0xff] }
 0x16f   : > { %9568 = vst [vmem:[#allocation36_spill] sm:$0xff] %v6503_v51  ;;  %9569 = vst [vmem:[#allocation37_spill] sm:$0xff] %v6505_v59  ;;  %1253 = vrot.lane.b32.xlu1 %v6503_v51, %s5681_s27  ;;  %1255 = vrot.lane.b32.xlu0 %v6505_v59, %s5681_s27  ;;  %v868_v5 = vmul.f32 %v6297_v7, %v484_v4  ;;  %v487_v4 = vmax.f32 %v423_v56, 0.0 }
 0x170   : > { %v959_v57 = vpop.permute.xlu1 %958  ;;  %v963_v60 = vpop.permute.xlu0 %962 }
 0x171   : > { %v6515_v48 = vadd.f32 %v959_v57, %v863_v1  ;;  %v6517_v61 = vadd.f32 %v963_v60, %v864_v2  ;;  %v486_v1 = vmax.f32 %v422_v53, 0.0  ;;  %v425_v53 = vld [vmem:[%s5857_s9 + $0xa0] sm:$0xff]  ;;  %v871_v12 = vmul.f32 %v6311_v14, %v487_v4  ;;  %v430_v4 = vld [vmem:[%s5857_s9 + $0xc8] sm:$0xff] }
 0x173   : > { %9570 = vst [vmem:[#allocation38_spill] sm:$0xff] %v6515_v48  ;;  %9571 = vst [vmem:[#allocation39_spill] sm:$0xff] %v6517_v61  ;;  %1257 = vrot.lane.b32.xlu1 %v6515_v48, %s5681_s27  ;;  %1259 = vrot.lane.b32.xlu0 %v6517_v61, %s5681_s27  ;;  %v870_v7 = vmul.f32 %v6303_v9, %v486_v1  ;;  %v489_v1 = vmax.f32 %v425_v53, 0.0 }
 0x174   : > { %v967_v49 = vpop.permute.xlu1 %966  ;;  %v971_v58 = vpop.permute.xlu0 %970 }
 0x175   : > { %v6527_v50 = vadd.f32 %v967_v49, %v865_v6  ;;  %v6529_v2 = vadd.f32 %v971_v58, %v866_v3  ;;  %v488_v6 = vmax.f32 %v424_v42, 0.0  ;;  %v427_v42 = vld [vmem:[%s5857_s9 + $0xb0] sm:$0xff]  ;;  %v873_v14 = vmul.f32 %v6317_v16, %v489_v1  ;;  %v432_v1 = vld [vmem:[%s5857_s9 + $0xd8] sm:$0xff] }
 0x177   : > { %9572 = vst [vmem:[#allocation40_spill] sm:$0xff] %v6527_v50  ;;  %9573 = vst [vmem:[#allocation41_spill] sm:$0xff] %v6529_v2  ;;  %1261 = vrot.lane.b32.xlu1 %v6527_v50, %s5681_s27  ;;  %1263 = vrot.lane.b32.xlu0 %v6529_v2, %s5681_s27  ;;  %v872_v9 = vmul.f32 %v6309_v11, %v488_v6  ;;  %v491_v6 = vmax.f32 %v427_v42, 0.0 }
 0x178   : > { %v975_v47 = vpop.permute.xlu1 %974  ;;  %v979_v57 = vpop.permute.xlu0 %978 }
 0x179   : > { %v6539_v60 = vadd.f32 %v975_v47, %v867_v8  ;;  %v6541_v3 = vadd.f32 %v979_v57, %v868_v5  ;;  %v490_v8 = vmax.f32 %v426_v43, 0.0  ;;  %v429_v43 = vld [vmem:[%s5857_s9 + $0xc0] sm:$0xff]  ;;  %v875_v16 = vmul.f32 %v6323_v18, %v491_v6  ;;  %v434_v6 = vld [vmem:[%s5857_s9 + $0xe8] sm:$0xff] }
 0x17b   : > { %9574 = vst [vmem:[#allocation42_spill] sm:$0xff] %v6539_v60  ;;  %9575 = vst [vmem:[#allocation43_spill] sm:$0xff] %v6541_v3  ;;  %1265 = vrot.lane.b32.xlu1 %v6539_v60, %s5681_s27  ;;  %1267 = vrot.lane.b32.xlu0 %v6541_v3, %s5681_s27  ;;  %v874_v11 = vmul.f32 %v6315_v13, %v490_v8  ;;  %v493_v8 = vmax.f32 %v429_v43, 0.0 }
 0x17c   : > { %v983_v55 = vpop.permute.xlu1 %982  ;;  %v987_v49 = vpop.permute.xlu0 %986 }
 0x17d   : > { %v6551_v58 = vadd.f32 %v983_v55, %v869_v10  ;;  %v6553_v5 = vadd.f32 %v987_v49, %v870_v7  ;;  %v492_v10 = vmax.f32 %v428_v63, 0.0  ;;  %v431_v63 = vld [vmem:[%s5857_s9 + $0xd0] sm:$0xff]  ;;  %v877_v18 = vmul.f32 %v6329_v20, %v493_v8  ;;  %v436_v8 = vld [vmem:[%s5857_s9 + $0xf8] sm:$0xff] }
 0x17f   : > { %9576 = vst [vmem:[#allocation44_spill] sm:$0xff] %v6551_v58  ;;  %9577 = vst [vmem:[#allocation45_spill] sm:$0xff] %v6553_v5  ;;  %1269 = vrot.lane.b32.xlu1 %v6551_v58, %s5681_s27  ;;  %1271 = vrot.lane.b32.xlu0 %v6553_v5, %s5681_s27  ;;  %v876_v13 = vmul.f32 %v6321_v15, %v492_v10  ;;  %v495_v10 = vmax.f32 %v431_v63, 0.0 }
 0x180   : > { %v991_v56 = vpop.permute.xlu1 %990  ;;  %v995_v47 = vpop.permute.xlu0 %994 }
 0x181   : > { %v6563_v57 = vadd.f32 %v991_v56, %v871_v12  ;;  %v6565_v7 = vadd.f32 %v995_v47, %v872_v9  ;;  %v494_v12 = vmax.f32 %v430_v4, 0.0  ;;  %v433_v4 = vld [vmem:[%s5857_s9 + $0xe0] sm:$0xff]  ;;  %v879_v20 = vmul.f32 %v6335_v22, %v495_v10  ;;  %v438_v10 = vld [vmem:[%s5857_s9 + $0x108] sm:$0xff] }
 0x183   : > { %9578 = vst [vmem:[#allocation46_spill] sm:$0xff] %v6563_v57  ;;  %9579 = vst [vmem:[#allocation47_spill] sm:$0xff] %v6565_v7  ;;  %1273 = vrot.lane.b32.xlu1 %v6563_v57, %s5681_s27  ;;  %1275 = vrot.lane.b32.xlu0 %v6565_v7, %s5681_s27  ;;  %v878_v15 = vmul.f32 %v6327_v17, %v494_v12  ;;  %v497_v12 = vmax.f32 %v433_v4, 0.0 }
 0x184   : > { %v999_v53 = vpop.permute.xlu1 %998  ;;  %v1003_v55 = vpop.permute.xlu0 %1002 }
 0x185   : > { %v6575_v49 = vadd.f32 %v999_v53, %v873_v14  ;;  %v6577_v9 = vadd.f32 %v1003_v55, %v874_v11  ;;  %v496_v14 = vmax.f32 %v432_v1, 0.0  ;;  %v435_v1 = vld [vmem:[%s5857_s9 + $0xf0] sm:$0xff]  ;;  %v881_v22 = vmul.f32 %v6341_v24, %v497_v12  ;;  %v440_v12 = vld [vmem:[%s5857_s9 + $0x118] sm:$0xff] }
 0x187   : > { %9580 = vst [vmem:[#allocation48_spill] sm:$0xff] %v6575_v49  ;;  %9581 = vst [vmem:[#allocation49_spill] sm:$0xff] %v6577_v9  ;;  %1277 = vrot.lane.b32.xlu1 %v6575_v49, %s5681_s27  ;;  %1279 = vrot.lane.b32.xlu0 %v6577_v9, %s5681_s27  ;;  %v880_v17 = vmul.f32 %v6333_v19, %v496_v14  ;;  %v499_v14 = vmax.f32 %v435_v1, 0.0 }
 0x188   : > { %v1007_v42 = vpop.permute.xlu1 %1006  ;;  %v1011_v56 = vpop.permute.xlu0 %1010 }
 0x189   : > { %v6587_v47 = vadd.f32 %v1007_v42, %v875_v16  ;;  %v6589_v11 = vadd.f32 %v1011_v56, %v876_v13  ;;  %v498_v16 = vmax.f32 %v434_v6, 0.0  ;;  %v437_v6 = vld [vmem:[%s5857_s9 + $0x100] sm:$0xff]  ;;  %v883_v24 = vmul.f32 %v6347_v26, %v499_v14  ;;  %v442_v14 = vld [vmem:[%s5857_s9 + $0x128] sm:$0xff] }
 0x18b   : > { %9582 = vst [vmem:[#allocation50_spill] sm:$0xff] %v6587_v47  ;;  %9583 = vst [vmem:[#allocation51_spill] sm:$0xff] %v6589_v11  ;;  %1281 = vrot.lane.b32.xlu1 %v6587_v47, %s5681_s27  ;;  %1283 = vrot.lane.b32.xlu0 %v6589_v11, %s5681_s27  ;;  %v882_v19 = vmul.f32 %v6339_v21, %v498_v16  ;;  %v501_v16 = vmax.f32 %v437_v6, 0.0 }
 0x18c   : > { %v1015_v43 = vpop.permute.xlu1 %1014  ;;  %v1019_v53 = vpop.permute.xlu0 %1018 }
 0x18d   : > { %v6599_v55 = vadd.f32 %v1015_v43, %v877_v18  ;;  %v6601_v13 = vadd.f32 %v1019_v53, %v878_v15  ;;  %v500_v18 = vmax.f32 %v436_v8, 0.0  ;;  %v439_v8 = vld [vmem:[%s5857_s9 + $0x110] sm:$0xff]  ;;  %v885_v26 = vmul.f32 %v6353_v28, %v501_v16  ;;  %v444_v16 = vld [vmem:[%s5857_s9 + $0x138] sm:$0xff] }
 0x18f   : > { %9584 = vst [vmem:[#allocation52_spill] sm:$0xff] %v6599_v55  ;;  %9585 = vst [vmem:[#allocation53_spill] sm:$0xff] %v6601_v13  ;;  %1285 = vrot.lane.b32.xlu1 %v6599_v55, %s5681_s27  ;;  %1287 = vrot.lane.b32.xlu0 %v6601_v13, %s5681_s27  ;;  %v884_v21 = vmul.f32 %v6345_v23, %v500_v18  ;;  %v503_v18 = vmax.f32 %v439_v8, 0.0 }
 0x190   : > { %v1023_v63 = vpop.permute.xlu1 %1022  ;;  %v1027_v42 = vpop.permute.xlu0 %1026 }
 0x191   : > { %v6611_v56 = vadd.f32 %v1023_v63, %v879_v20  ;;  %v6613_v15 = vadd.f32 %v1027_v42, %v880_v17  ;;  %v502_v20 = vmax.f32 %v438_v10, 0.0  ;;  %v441_v10 = vld [vmem:[%s5857_s9 + $0x120] sm:$0xff]  ;;  %v887_v28 = vmul.f32 %v6359_v30, %v503_v18  ;;  %v446_v18 = vld [vmem:[%s5857_s9 + $0x148] sm:$0xff] }
 0x193   : > { %9586 = vst [vmem:[#allocation54_spill] sm:$0xff] %v6611_v56  ;;  %9587 = vst [vmem:[#allocation55_spill] sm:$0xff] %v6613_v15  ;;  %1289 = vrot.lane.b32.xlu1 %v6611_v56, %s5681_s27  ;;  %1291 = vrot.lane.b32.xlu0 %v6613_v15, %s5681_s27  ;;  %v886_v23 = vmul.f32 %v6351_v25, %v502_v20  ;;  %v505_v20 = vmax.f32 %v441_v10, 0.0 }
 0x194   : > { %v1031_v4 = vpop.permute.xlu1 %1030  ;;  %v1035_v43 = vpop.permute.xlu0 %1034 }
 0x195   : > { %v6623_v53 = vadd.f32 %v1031_v4, %v881_v22  ;;  %v6625_v17 = vadd.f32 %v1035_v43, %v882_v19  ;;  %v504_v22 = vmax.f32 %v440_v12, 0.0  ;;  %v443_v12 = vld [vmem:[%s5857_s9 + $0x130] sm:$0xff]  ;;  %v889_v30 = vmul.f32 %v6365_v32, %v505_v20  ;;  %v448_v20 = vld [vmem:[%s5857_s9 + $0x158] sm:$0xff] }
 0x197   : > { %9588 = vst [vmem:[#allocation56_spill] sm:$0xff] %v6623_v53  ;;  %9589 = vst [vmem:[#allocation57_spill] sm:$0xff] %v6625_v17  ;;  %1293 = vrot.lane.b32.xlu1 %v6623_v53, %s5681_s27  ;;  %1295 = vrot.lane.b32.xlu0 %v6625_v17, %s5681_s27  ;;  %v888_v25 = vmul.f32 %v6357_v27, %v504_v22  ;;  %v507_v22 = vmax.f32 %v443_v12, 0.0 }
 0x198   : > { %v1039_v1 = vpop.permute.xlu1 %1038  ;;  %v1043_v63 = vpop.permute.xlu0 %1042 }
 0x199   : > { %v6635_v42 = vadd.f32 %v1039_v1, %v883_v24  ;;  %v6637_v19 = vadd.f32 %v1043_v63, %v884_v21  ;;  %v506_v24 = vmax.f32 %v442_v14, 0.0  ;;  %v445_v14 = vld [vmem:[%s5857_s9 + $0x140] sm:$0xff]  ;;  %v891_v32 = vmul.f32 %v6371_v34, %v507_v22  ;;  %v450_v22 = vld [vmem:[%s5857_s9 + $0x168] sm:$0xff] }
 0x19b   : > { %9590 = vst [vmem:[#allocation58_spill] sm:$0xff] %v6635_v42  ;;  %9591 = vst [vmem:[#allocation59_spill] sm:$0xff] %v6637_v19  ;;  %1297 = vrot.lane.b32.xlu1 %v6635_v42, %s5681_s27  ;;  %1299 = vrot.lane.b32.xlu0 %v6637_v19, %s5681_s27  ;;  %v890_v27 = vmul.f32 %v6363_v29, %v506_v24  ;;  %v509_v24 = vmax.f32 %v445_v14, 0.0 }
 0x19c   : > { %v1047_v6 = vpop.permute.xlu1 %1046  ;;  %v1051_v4 = vpop.permute.xlu0 %1050 }
 0x19d   : > { %v6647_v43 = vadd.f32 %v1047_v6, %v885_v26  ;;  %v6649_v21 = vadd.f32 %v1051_v4, %v886_v23  ;;  %v508_v26 = vmax.f32 %v444_v16, 0.0  ;;  %v447_v16 = vld [vmem:[%s5857_s9 + $0x150] sm:$0xff]  ;;  %v893_v34 = vmul.f32 %v6377_v36, %v509_v24  ;;  %v452_v24 = vld [vmem:[%s5857_s9 + $0x178] sm:$0xff] }
 0x19f   : > { %9592 = vst [vmem:[#allocation60_spill] sm:$0xff] %v6647_v43  ;;  %9593 = vst [vmem:[#allocation61_spill] sm:$0xff] %v6649_v21  ;;  %1301 = vrot.lane.b32.xlu1 %v6647_v43, %s5681_s27  ;;  %1303 = vrot.lane.b32.xlu0 %v6649_v21, %s5681_s27  ;;  %v892_v29 = vmul.f32 %v6369_v31, %v508_v26  ;;  %v511_v26 = vmax.f32 %v447_v16, 0.0 }
 0x1a0   : > { %v1055_v8 = vpop.permute.xlu1 %1054  ;;  %v1059_v1 = vpop.permute.xlu0 %1058 }
 0x1a1   : > { %v6659_v63 = vadd.f32 %v1055_v8, %v887_v28  ;;  %v6661_v23 = vadd.f32 %v1059_v1, %v888_v25  ;;  %v510_v28 = vmax.f32 %v446_v18, 0.0  ;;  %v449_v18 = vld [vmem:[%s5857_s9 + $0x160] sm:$0xff]  ;;  %v895_v36 = vmul.f32 %v6383_v38, %v511_v26  ;;  %v454_v26 = vld [vmem:[%s5857_s9 + $0x188] sm:$0xff] }
 0x1a3   : > { %9594 = vst [vmem:[#allocation62_spill] sm:$0xff] %v6659_v63  ;;  %9595 = vst [vmem:[#allocation63_spill] sm:$0xff] %v6661_v23  ;;  %1305 = vrot.lane.b32.xlu1 %v6659_v63, %s5681_s27  ;;  %1307 = vrot.lane.b32.xlu0 %v6661_v23, %s5681_s27  ;;  %v894_v31 = vmul.f32 %v6375_v33, %v510_v28  ;;  %v513_v28 = vmax.f32 %v449_v18, 0.0 }
 0x1a4   : > { %v1063_v10 = vpop.permute.xlu1 %1062  ;;  %v1067_v6 = vpop.permute.xlu0 %1066 }
 0x1a5   : > { %v6671_v4 = vadd.f32 %v1063_v10, %v889_v30  ;;  %v6673_v25 = vadd.f32 %v1067_v6, %v890_v27  ;;  %v512_v30 = vmax.f32 %v448_v20, 0.0  ;;  %v451_v20 = vld [vmem:[%s5857_s9 + $0x170] sm:$0xff]  ;;  %v897_v38 = vmul.f32 %v6389_v40, %v513_v28  ;;  %v9606_v40 = vld [vmem:[#allocation18_spill] sm:$0xff] }
 0x1a7   : > { %9596 = vst [vmem:[#allocation64_spill] sm:$0xff] %v6671_v4  ;;  %9597 = vst [vmem:[#allocation65_spill] sm:$0xff] %v6673_v25  ;;  %1309 = vrot.lane.b32.xlu1 %v6671_v4, %s5681_s27  ;;  %1311 = vrot.lane.b32.xlu0 %v6673_v25, %s5681_s27  ;;  %v896_v33 = vmul.f32 %v6381_v35, %v512_v30  ;;  %v515_v30 = vmax.f32 %v451_v20, 0.0  ;;  %v455_v20 = vld [vmem:[%s5857_s9 + $0x190] sm:$0xff] }
 0x1a8   : > { %v1071_v12 = vpop.permute.xlu1 %1070  ;;  %v1075_v8 = vpop.permute.xlu0 %1074 }
 0x1a9   : > { %v6683_v1 = vadd.f32 %v1071_v12, %v891_v32  ;;  %v6685_v27 = vadd.f32 %v1075_v8, %v892_v29  ;;  %v514_v32 = vmax.f32 %v450_v22, 0.0  ;;  %v453_v22 = vld [vmem:[%s5857_s9 + $0x180] sm:$0xff] }
 0x1aa   : > { %v517_v28 = vmax.f32 %v453_v22, 0.0 }
 0x1ab   : > { %9598 = vst [vmem:[#allocation66_spill] sm:$0xff] %v6683_v1  ;;  %9599 = vst [vmem:[#allocation67_spill] sm:$0xff] %v6685_v27  ;;  %1313 = vrot.lane.b32.xlu1 %v6683_v1, %s5681_s27  ;;  %1315 = vrot.lane.b32.xlu0 %v6685_v27, %s5681_s27  ;;  %v898_v35 = vmul.f32 %v6387_v37, %v514_v32  ;;  %v518_v32 = vmax.f32 %v454_v26, 0.0 }
 0x1ac   : > { %v1079_v14 = vpop.permute.xlu1 %1078  ;;  %v1083_v10 = vpop.permute.xlu0 %1082 }
 0x1ad   : > { %v6695_v6 = vadd.f32 %v1079_v14, %v893_v34  ;;  %v6697_v29 = vadd.f32 %v1083_v10, %v894_v31  ;;  %v516_v34 = vmax.f32 %v452_v24, 0.0  ;;  %v456_v24 = vld [vmem:[%s5857_s9 + $0x198] sm:$0xff] }
 0x1ae   : > { %v520_v22 = vmax.f32 %v456_v24, 0.0  ;;  %v9614_v24 = vld [vmem:[#allocation22_spill] sm:$0xff] }
 0x1af   : > { %9600 = vst [vmem:[#allocation68_spill] sm:$0xff] %v6695_v6  ;;  %9601 = vst [vmem:[#allocation69_spill] sm:$0xff] %v6697_v29  ;;  %1317 = vrot.lane.b32.xlu1 %v6695_v6, %s5681_s27  ;;  %1319 = vrot.lane.b32.xlu0 %v6697_v29, %s5681_s27  ;;  %v900_v37 = vmul.f32 %v6393_v39, %v516_v34  ;;  %v9609_v39 = vld [vmem:[#allocation19_spill] sm:$0xff] }
 0x1b0   : > { %v1087_v16 = vpop.permute.xlu1 %1086  ;;  %v1091_v12 = vpop.permute.xlu0 %1090  ;;  %v902_v34 = vmul.f32 %v9609_v39, %v518_v32  ;;  %v9613_v32 = vld [vmem:[#allocation21_spill] sm:$0xff] }
 0x1b1   : > { %v6707_v8 = vadd.f32 %v1087_v16, %v895_v36  ;;  %v6709_v31 = vadd.f32 %v1091_v12, %v896_v33  ;;  %v899_v36 = vmul.f32 %v9606_v40, %v515_v30  ;;  %v9610_v30 = vld [vmem:[#allocation20_spill] sm:$0xff]  ;;  %v457_v40 = vld [vmem:[%s5857_s9 + $0x1a0] sm:$0xff] }
 0x1b2   : > { %v901_v26 = vmul.f32 %v9610_v30, %v517_v28  ;;  %v904_v28 = vmul.f32 %v9613_v32, %v520_v22  ;;  %v521_v30 = vmax.f32 %v457_v40, 0.0  ;;  %v9617_v22 = vld [vmem:[#allocation23_spill] sm:$0xff] }
 0x1b3   : > { %9602 = vst [vmem:[#allocation70_spill] sm:$0xff] %v6707_v8  ;;  %9603 = vst [vmem:[#allocation71_spill] sm:$0xff] %v6709_v31  ;;  %1321 = vrot.lane.b32.xlu1 %v6707_v8, %s5681_s27  ;;  %1323 = vrot.lane.b32.xlu0 %v6709_v31, %s5681_s27 }
 0x1b4   : > { %v1095_v18 = vpop.permute.xlu1 %1094  ;;  %v1099_v14 = vpop.permute.xlu0 %1098 }
 0x1b5   : > { %v6719_v10 = vadd.f32 %v1095_v18, %v897_v38  ;;  %v6721_v33 = vadd.f32 %v1099_v14, %v898_v35  ;;  %v519_v18 = vmax.f32 %v455_v20, 0.0  ;;  %v458_v14 = vld [vmem:[%s5857_s9 + $0x1a8] sm:$0xff] }
 0x1b6   : > { %v522_v20 = vmax.f32 %v458_v14, 0.0  ;;  %v9618_v14 = vld [vmem:[#allocation24_spill] sm:$0xff] }
 0x1b7   : > { %9604 = vst [vmem:[#allocation72_spill] sm:$0xff] %v6719_v10  ;;  %9605 = vst [vmem:[#allocation73_spill] sm:$0xff] %v6721_v33  ;;  %1325 = vrot.lane.b32.xlu1 %v6719_v10, %s5681_s27  ;;  %1327 = vrot.lane.b32.xlu0 %v6721_v33, %s5681_s27  ;;  %v903_v39 = vmul.f32 %v9614_v24, %v519_v18  ;;  %v905_v32 = vmul.f32 %v9618_v14, %v521_v30 }
 0x1b8   : > { %v1103_v16 = vpop.permute.xlu1 %1102  ;;  %v1107_v12 = vpop.permute.xlu0 %1106  ;;  %v906_v18 = vmul.f32 %v9617_v22, %v522_v20  ;;  %v9621_v20 = vld [vmem:[#allocation25_spill] sm:$0xff] }
 0x1b9   : > { %v6731_v35 = vadd.f32 %v1103_v16, %v899_v36  ;;  %v6733_v38 = vadd.f32 %v1107_v12, %v900_v37 }
 0x1bb   : > { %9607 = vst [vmem:[#allocation18_spill] sm:$0xff] %v6731_v35  ;;  %9608 = vst [vmem:[#allocation74_spill] sm:$0xff] %v6733_v38  ;;  %1329 = vrot.lane.b32.xlu1 %v6731_v35, %s5681_s27  ;;  %1331 = vrot.lane.b32.xlu0 %v6733_v38, %s5681_s27  ;;  %v460_v38 = vld [vmem:[%s5857_s9 + $0x1b8] sm:$0xff]  ;;  %v459_v35 = vld [vmem:[%s5857_s9 + $0x1b0] sm:$0xff] }
 0x1bc   : > { %v1111_v36 = vpop.permute.xlu1 %1110  ;;  %v1115_v16 = vpop.permute.xlu0 %1114  ;;  %v524_v40 = vmax.f32 %v460_v38, 0.0  ;;  %v523_v24 = vmax.f32 %v459_v35, 0.0  ;;  %v9622_v38 = vld [vmem:[#allocation26_spill] sm:$0xff] }
 0x1bd   : > { %v6743_v37 = vadd.f32 %v1111_v36, %v901_v26  ;;  %v6745_v12 = vadd.f32 %v1115_v16, %v902_v34 }
 0x1be   : > { %v908_v30 = vmul.f32 %v9621_v20, %v524_v40  ;;  %v907_v22 = vmul.f32 %v9622_v38, %v523_v24  ;;  %v9625_v40 = vld [vmem:[#allocation27_spill] sm:$0xff] }
 0x1bf   : > { %9611 = vst [vmem:[#allocation19_spill] sm:$0xff] %v6743_v37  ;;  %9612 = vst [vmem:[#allocation20_spill] sm:$0xff] %v6745_v12  ;;  %1333 = vrot.lane.b32.xlu1 %v6743_v37, %s5681_s27  ;;  %1335 = vrot.lane.b32.xlu0 %v6745_v12, %s5681_s27  ;;  %v462_v12 = vld [vmem:[%s5857_s9 + $0x1c8] sm:$0xff]  ;;  %v461_v37 = vld [vmem:[%s5857_s9 + $0x1c0] sm:$0xff] }
 0x1c0   : > { %v1119_v26 = vpop.permute.xlu1 %1118  ;;  %v1123_v36 = vpop.permute.xlu0 %1122  ;;  %v526_v35 = vmax.f32 %v462_v12, 0.0  ;;  %v525_v14 = vmax.f32 %v461_v37, 0.0  ;;  %v9626_v12 = vld [vmem:[#allocation28_spill] sm:$0xff] }
 0x1c1   : > { %v6755_v34 = vadd.f32 %v1119_v26, %v903_v39  ;;  %v6757_v16 = vadd.f32 %v1123_v36, %v904_v28 }
 0x1c2   : > { %v910_v24 = vmul.f32 %v9625_v40, %v526_v35  ;;  %v909_v20 = vmul.f32 %v9626_v12, %v525_v14  ;;  %v9629_v35 = vld [vmem:[#allocation11_spill] sm:$0xff] }
 0x1c3   : > { %9615 = vst [vmem:[#allocation21_spill] sm:$0xff] %v6755_v34  ;;  %9616 = vst [vmem:[#allocation22_spill] sm:$0xff] %v6757_v16  ;;  %1337 = vrot.lane.b32.xlu1 %v6755_v34, %s5681_s27  ;;  %1339 = vrot.lane.b32.xlu0 %v6757_v16, %s5681_s27  ;;  %v464_v16 = vld [vmem:[%s5857_s9 + $0x1d8] sm:$0xff]  ;;  %v463_v34 = vld [vmem:[%s5857_s9 + $0x1d0] sm:$0xff] }
 0x1c4   : > { %v1127_v39 = vpop.permute.xlu1 %1126  ;;  %v1131_v26 = vpop.permute.xlu0 %1130  ;;  %v528_v37 = vmax.f32 %v464_v16, 0.0  ;;  %v527_v38 = vmax.f32 %v463_v34, 0.0  ;;  %v9630_v16 = vld [vmem:[#allocation29_spill] sm:$0xff] }
 0x1c5   : > { %v6767_v28 = vadd.f32 %v1127_v39, %v905_v32  ;;  %v6769_v36 = vadd.f32 %v1131_v26, %v906_v18 }
 0x1c6   : > { %v912_v14 = vmul.f32 %v9629_v35, %v528_v37  ;;  %v911_v40 = vmul.f32 %v9630_v16, %v527_v38 }
 0x1c7   : > { %9619 = vst [vmem:[#allocation23_spill] sm:$0xff] %v6767_v28  ;;  %9620 = vst [vmem:[#allocation24_spill] sm:$0xff] %v6769_v36  ;;  %1341 = vrot.lane.b32.xlu1 %v6767_v28, %s5681_s27  ;;  %1343 = vrot.lane.b32.xlu0 %v6769_v36, %s5681_s27  ;;  %v466_v36 = vld [vmem:[%s5857_s9 + $0x1e8] sm:$0xff]  ;;  %v465_v28 = vld [vmem:[%s5857_s9 + $0x1e0] sm:$0xff] }
 0x1c8   : > { %v1135_v32 = vpop.permute.xlu1 %1134  ;;  %v1139_v39 = vpop.permute.xlu0 %1138  ;;  %v530_v34 = vmax.f32 %v466_v36, 0.0  ;;  %v529_v12 = vmax.f32 %v465_v28, 0.0 }
 0x1c9   : > { %v6779_v18 = vadd.f32 %v1135_v32, %v907_v22  ;;  %v6781_v26 = vadd.f32 %v1139_v39, %v908_v30 }
 0x1cb   : > { %9623 = vst [vmem:[#allocation25_spill] sm:$0xff] %v6779_v18  ;;  %9624 = vst [vmem:[#allocation26_spill] sm:$0xff] %v6781_v26  ;;  %1345 = vrot.lane.b32.xlu1 %v6779_v18, %s5681_s27  ;;  %1347 = vrot.lane.b32.xlu0 %v6781_v26, %s5681_s27  ;;  %v468_v26 = vld [vmem:[%s5857_s9 + $0x1f8] sm:$0xff]  ;;  %v467_v18 = vld [vmem:[%s5857_s9 + $0x1f0] sm:$0xff] }
 0x1cc   : > { %v1143_v22 = vpop.permute.xlu1 %1142  ;;  %v1147_v32 = vpop.permute.xlu0 %1146  ;;  %v532_v36 = vmax.f32 %v468_v26, 0.0  ;;  %v531_v28 = vmax.f32 %v467_v18, 0.0 }
 0x1cd   : > { %v6791_v30 = vadd.f32 %v1143_v22, %v909_v20  ;;  %v6793_v39 = vadd.f32 %v1147_v32, %v910_v24  ;;  %v9633_v22 = vld [vmem:[#allocation13_spill] sm:$0xff]  ;;  %v9634_v32 = vld [vmem:[#allocation12_spill] sm:$0xff] }
 0x1ce   : > { %v914_v37 = vmul.f32 %v9633_v22, %v530_v34  ;;  %v913_v38 = vmul.f32 %v9634_v32, %v529_v12 }
 0x1cf   : > { %9627 = vst [vmem:[#allocation27_spill] sm:$0xff] %v6791_v30  ;;  %9628 = vst [vmem:[#allocation28_spill] sm:$0xff] %v6793_v39  ;;  %1349 = vrot.lane.b32.xlu1 %v6791_v30, %s5681_s27  ;;  %1351 = vrot.lane.b32.xlu0 %v6793_v39, %s5681_s27 }
 0x1d0   : > { %v1151_v33 = vpop.permute.xlu1 %1150  ;;  %v1155_v10 = vpop.permute.xlu0 %1154 }
 0x1d1   : > { %v6803_v20 = vadd.f32 %v1151_v33, %v911_v40  ;;  %v6805_v24 = vadd.f32 %v1155_v10, %v912_v14  ;;  %v9637_v10 = vld [vmem:[#allocation15_spill] sm:$0xff]  ;;  %v9638_v40 = vld [vmem:[#allocation14_spill] sm:$0xff] }
 0x1d2   : > { %v916_v14 = vmul.f32 %v9637_v10, %v532_v36  ;;  %v915_v34 = vmul.f32 %v9638_v40, %v531_v28 }
 0x1d3   : > { %9631 = vst [vmem:[#allocation11_spill] sm:$0xff] %v6803_v20  ;;  %9632 = vst [vmem:[#allocation29_spill] sm:$0xff] %v6805_v24  ;;  %1353 = vrot.lane.b32.xlu1 %v6803_v20, %s5681_s27  ;;  %1355 = vrot.lane.b32.xlu0 %v6805_v24, %s5681_s27 }
 0x1d4   : > { %v1159_v35 = vpop.permute.xlu1 %1158  ;;  %v1163_v16 = vpop.permute.xlu0 %1162 }
 0x1d5   : > { %v6813_v39 = vadd.f32 %v1159_v35, %v913_v38  ;;  %v6815_v33 = vadd.f32 %v1163_v16, %v914_v37  ;;  %v5682_v38 = vmov 2  }
 0x1d6   : > { %5113 = vset.pattern.permute.xlu1 %v5682_v38  ;;  %5114 = vset.pattern.permute.xlu0 %v5682_v38 }
 0x1d7   : > { %9635 = vst [vmem:[#allocation13_spill] sm:$0xff] %v6813_v39  ;;  %9636 = vst [vmem:[#allocation12_spill] sm:$0xff] %v6815_v33  ;;  %1357 = vrot.lane.b32.xlu1 %v6813_v39, %s5681_s27  ;;  %1359 = vrot.lane.b32.xlu0 %v6815_v33, %s5681_s27 }
 0x1d8   : > { %v1167_v18 = vpop.permute.xlu1 %1166  ;;  %v1171_v26 = vpop.permute.xlu0 %1170 }
 0x1d9   : > { %v6823_v12 = vadd.f32 %v1167_v18, %v915_v34  ;;  %v6825_v22 = vadd.f32 %v1171_v26, %v916_v14 }
 0x1db   : > { %9639 = vst [vmem:[#allocation15_spill] sm:$0xff] %v6823_v12  ;;  %9640 = vst [vmem:[#allocation14_spill] sm:$0xff] %v6825_v22  ;;  %1361 = vrot.lane.b32.xlu1 %v6823_v12, %s5681_s27  ;;  %1363 = vrot.lane.b32.xlu0 %v6825_v22, %s5681_s27 }
 0x1dc   : > { %v6831_v37 = vpop.permute.xlu1 %1237  ;;  %v6833_v32 = vpop.permute.xlu0 %1239 }
 0x1dd   : > { %9641 = vst [vmem:[#allocation75_spill] sm:$0xff] %v6831_v37  ;;  %9642 = vst [vmem:[#allocation76_spill] sm:$0xff] %v6833_v32 }
 0x1df   : > { %1429 = vrot.lane.b32.xlu1 %v6457_v54, %s5683_s28  ;;  %1431 = vrot.lane.b32.xlu0 %v6455_v44, %s5683_s28 }
 0x1e0   : > { %v6839_v36 = vpop.permute.xlu1 %1241  ;;  %v6841_v28 = vpop.permute.xlu0 %1243 }
 0x1e1   : > { %9643 = vst [vmem:[#allocation77_spill] sm:$0xff] %v6839_v36  ;;  %9644 = vst [vmem:[#allocation78_spill] sm:$0xff] %v6841_v28 }
 0x1e3   : > { %1433 = vrot.lane.b32.xlu1 %v6467_v45, %s5683_s28  ;;  %1435 = vrot.lane.b32.xlu0 %v6469_v41, %s5683_s28 }
 0x1e4   : > { %v6847_v35 = vpop.permute.xlu1 %1245  ;;  %v6849_v16 = vpop.permute.xlu0 %1247 }
 0x1e5   : > { %9645 = vst [vmem:[#allocation79_spill] sm:$0xff] %v6847_v35  ;;  %9646 = vst [vmem:[#allocation80_spill] sm:$0xff] %v6849_v16 }
 0x1e7   : > { %1437 = vrot.lane.b32.xlu1 %v6479_v52, %s5683_s28  ;;  %1439 = vrot.lane.b32.xlu0 %v6481_v0, %s5683_s28  ;;  %v7212_v52 = vld [vmem:[%s9404_s1 + $0x80] sm:$0xff] }
 0x1e8   : > { %v6855_v10 = vpop.permute.xlu1 %1249  ;;  %v6857_v14 = vpop.permute.xlu0 %1251 }
 0x1e9   : > { %9647 = vst [vmem:[#allocation81_spill] sm:$0xff] %v6855_v10  ;;  %9648 = vst [vmem:[#allocation82_spill] sm:$0xff] %v6857_v14 }
 0x1eb   : > { %1441 = vrot.lane.b32.xlu1 %v6491_v46, %s5683_s28  ;;  %1443 = vrot.lane.b32.xlu0 %v6493_v62, %s5683_s28 }
 0x1ec   : > { %v6863_v40 = vpop.permute.xlu1 %1253  ;;  %v6865_v34 = vpop.permute.xlu0 %1255 }
 0x1ed   : > { %9649 = vst [vmem:[#allocation83_spill] sm:$0xff] %v6863_v40  ;;  %9650 = vst [vmem:[#allocation84_spill] sm:$0xff] %v6865_v34 }
 0x1ef   : > { %1445 = vrot.lane.b32.xlu1 %v6503_v51, %s5683_s28  ;;  %1447 = vrot.lane.b32.xlu0 %v6505_v59, %s5683_s28 }
 0x1f0   : > { %v6871_v18 = vpop.permute.xlu1 %1257  ;;  %v6873_v26 = vpop.permute.xlu0 %1259 }
 0x1f1   : > { %9651 = vst [vmem:[#allocation85_spill] sm:$0xff] %v6871_v18  ;;  %9652 = vst [vmem:[#allocation86_spill] sm:$0xff] %v6873_v26 }
 0x1f3   : > { %1449 = vrot.lane.b32.xlu1 %v6515_v48, %s5683_s28  ;;  %1451 = vrot.lane.b32.xlu0 %v6517_v61, %s5683_s28 }
 0x1f4   : > { %v6879_v38 = vpop.permute.xlu1 %1261  ;;  %v6881_v46 = vpop.permute.xlu0 %1263 }
 0x1f5   : > { %9653 = vst [vmem:[#allocation87_spill] sm:$0xff] %v6879_v38  ;;  %9654 = vst [vmem:[#allocation88_spill] sm:$0xff] %v6881_v46 }
 0x1f7   : > { %1453 = vrot.lane.b32.xlu1 %v6527_v50, %s5683_s28  ;;  %1455 = vrot.lane.b32.xlu0 %v6529_v2, %s5683_s28 }
 0x1f8   : > { %v6887_v51 = vpop.permute.xlu1 %1265  ;;  %v6889_v59 = vpop.permute.xlu0 %1267 }
 0x1f9   : > { %9655 = vst [vmem:[#allocation89_spill] sm:$0xff] %v6887_v51  ;;  %9656 = vst [vmem:[#allocation90_spill] sm:$0xff] %v6889_v59 }
 0x1fb   : > { %1457 = vrot.lane.b32.xlu1 %v6539_v60, %s5683_s28  ;;  %1459 = vrot.lane.b32.xlu0 %v6541_v3, %s5683_s28  ;;  %v9695_v60 = vld [vmem:[#allocation19_spill] sm:$0xff] }
 0x1fc   : > { %v6895_v48 = vpop.permute.xlu1 %1269  ;;  %v6897_v61 = vpop.permute.xlu0 %1271 }
 0x1fd   : > { %9657 = vst [vmem:[#allocation91_spill] sm:$0xff] %v6895_v48  ;;  %9658 = vst [vmem:[#allocation92_spill] sm:$0xff] %v6897_v61  ;;  %v9692_v61 = vld [vmem:[#allocation74_spill] sm:$0xff] }
 0x1ff   : > { %1461 = vrot.lane.b32.xlu1 %v6551_v58, %s5683_s28  ;;  %1463 = vrot.lane.b32.xlu0 %v6553_v5, %s5683_s28 }
 0x200   : > { %v6903_v50 = vpop.permute.xlu1 %1273  ;;  %v6905_v51 = vpop.permute.xlu0 %1275 }
 0x201   : > { %9659 = vst [vmem:[#allocation93_spill] sm:$0xff] %v6903_v50  ;;  %9660 = vst [vmem:[#allocation94_spill] sm:$0xff] %v6905_v51 }
 0x203   : > { %1465 = vrot.lane.b32.xlu1 %v6563_v57, %s5683_s28  ;;  %1467 = vrot.lane.b32.xlu0 %v6565_v7, %s5683_s28  ;;  %v9691_v57 = vld [vmem:[#allocation18_spill] sm:$0xff] }
 0x204   : > { %v6911_v3 = vpop.permute.xlu1 %1277  ;;  %v6913_v48 = vpop.permute.xlu0 %1279 }
 0x205   : > { %9661 = vst [vmem:[#allocation95_spill] sm:$0xff] %v6911_v3  ;;  %9662 = vst [vmem:[#allocation96_spill] sm:$0xff] %v6913_v48  ;;  %v9688_v48 = vld [vmem:[#allocation73_spill] sm:$0xff] }
 0x207   : > { %1469 = vrot.lane.b32.xlu1 %v6575_v49, %s5683_s28  ;;  %1471 = vrot.lane.b32.xlu0 %v6577_v9, %s5683_s28 }
 0x208   : > { %v6919_v5 = vpop.permute.xlu1 %1281  ;;  %v6921_v50 = vpop.permute.xlu0 %1283 }
 0x209   : > { %9663 = vst [vmem:[#allocation97_spill] sm:$0xff] %v6919_v5  ;;  %9664 = vst [vmem:[#allocation98_spill] sm:$0xff] %v6921_v50 }
 0x20b   : > { %1473 = vrot.lane.b32.xlu1 %v6587_v47, %s5683_s28  ;;  %1475 = vrot.lane.b32.xlu0 %v6589_v11, %s5683_s28  ;;  %v9687_v47 = vld [vmem:[#allocation72_spill] sm:$0xff] }
 0x20c   : > { %v6927_v7 = vpop.permute.xlu1 %1285  ;;  %v6929_v3 = vpop.permute.xlu0 %1287 }
 0x20d   : > { %9665 = vst [vmem:[#allocation99_spill] sm:$0xff] %v6927_v7  ;;  %9666 = vst [vmem:[#allocation100_spill] sm:$0xff] %v6929_v3 }
 0x20f   : > { %1477 = vrot.lane.b32.xlu1 %v6599_v55, %s5683_s28  ;;  %1479 = vrot.lane.b32.xlu0 %v6601_v13, %s5683_s28 }
 0x210   : > { %v6935_v9 = vpop.permute.xlu1 %1289  ;;  %v6937_v5 = vpop.permute.xlu0 %1291 }
 0x211   : > { %9667 = vst [vmem:[#allocation101_spill] sm:$0xff] %v6935_v9  ;;  %9668 = vst [vmem:[#allocation102_spill] sm:$0xff] %v6937_v5 }
 0x213   : > { %1481 = vrot.lane.b32.xlu1 %v6611_v56, %s5683_s28  ;;  %1483 = vrot.lane.b32.xlu0 %v6613_v15, %s5683_s28 }
 0x214   : > { %v6943_v11 = vpop.permute.xlu1 %1293  ;;  %v6945_v7 = vpop.permute.xlu0 %1295 }
 0x215   : > { %9669 = vst [vmem:[#allocation103_spill] sm:$0xff] %v6943_v11  ;;  %9670 = vst [vmem:[#allocation104_spill] sm:$0xff] %v6945_v7 }
 0x217   : > { %1485 = vrot.lane.b32.xlu1 %v6623_v53, %s5683_s28  ;;  %1487 = vrot.lane.b32.xlu0 %v6625_v17, %s5683_s28 }
 0x218   : > { %v6951_v13 = vpop.permute.xlu1 %1297  ;;  %v6953_v9 = vpop.permute.xlu0 %1299 }
 0x219   : > { %9671 = vst [vmem:[#allocation105_spill] sm:$0xff] %v6951_v13  ;;  %9672 = vst [vmem:[#allocation106_spill] sm:$0xff] %v6953_v9 }
 0x21b   : > { %1489 = vrot.lane.b32.xlu1 %v6635_v42, %s5683_s28  ;;  %1491 = vrot.lane.b32.xlu0 %v6637_v19, %s5683_s28 }
 0x21c   : > { %v6959_v15 = vpop.permute.xlu1 %1301  ;;  %v6961_v11 = vpop.permute.xlu0 %1303 }
 0x21d   : > { %9673 = vst [vmem:[#allocation107_spill] sm:$0xff] %v6959_v15  ;;  %9674 = vst [vmem:[#allocation108_spill] sm:$0xff] %v6961_v11 }
 0x21f   : > { %1493 = vrot.lane.b32.xlu1 %v6647_v43, %s5683_s28  ;;  %1495 = vrot.lane.b32.xlu0 %v6649_v21, %s5683_s28  ;;  %v7206_v43 = vld [vmem:[%s9404_s1 + $0x68] sm:$0xff] }
 0x220   : > { %v6967_v17 = vpop.permute.xlu1 %1305  ;;  %v6969_v13 = vpop.permute.xlu0 %1307 }
 0x221   : > { %9675 = vst [vmem:[#allocation109_spill] sm:$0xff] %v6967_v17  ;;  %9676 = vst [vmem:[#allocation110_spill] sm:$0xff] %v6969_v13 }
 0x223   : > { %1497 = vrot.lane.b32.xlu1 %v6659_v63, %s5683_s28  ;;  %1499 = vrot.lane.b32.xlu0 %v6661_v23, %s5683_s28  ;;  %v7190_v23 = vld [vmem:[%s9404_s1 + $0x58] sm:$0xff]  ;;  %v7196_v63 = vld [vmem:[%s9404_s1 + $0x70] sm:$0xff] }
 0x224   : > { %v6975_v19 = vpop.permute.xlu1 %1309  ;;  %v6977_v9 = vpop.permute.xlu0 %1311 }
 0x225   : > { %9677 = vst [vmem:[#allocation111_spill] sm:$0xff] %v6975_v19  ;;  %9678 = vst [vmem:[#allocation112_spill] sm:$0xff] %v6977_v9 }
 0x227   : > { %1501 = vrot.lane.b32.xlu1 %v6671_v4, %s5683_s28  ;;  %1503 = vrot.lane.b32.xlu0 %v6673_v25, %s5683_s28 }
 0x228   : > { %v6983_v42 = vpop.permute.xlu1 %1313  ;;  %v6985_v7 = vpop.permute.xlu0 %1315 }
 0x229   : > { %9679 = vst [vmem:[#allocation113_spill] sm:$0xff] %v6983_v42  ;;  %9680 = vst [vmem:[#allocation114_spill] sm:$0xff] %v6985_v7 }
 0x22b   : > { %1505 = vrot.lane.b32.xlu1 %v6683_v1, %s5683_s28  ;;  %1507 = vrot.lane.b32.xlu0 %v6685_v27, %s5683_s28  ;;  %v7180_v27 = vld [vmem:[%s9404_s1 + $0x60] sm:$0xff] }
 0x22c   : > { %v6991_v53 = vpop.permute.xlu1 %1317  ;;  %v6993_v5 = vpop.permute.xlu0 %1319 }
 0x22d   : > { %9681 = vst [vmem:[#allocation115_spill] sm:$0xff] %v6991_v53  ;;  %9682 = vst [vmem:[#allocation116_spill] sm:$0xff] %v6993_v5 }
 0x22f   : > { %1509 = vrot.lane.b32.xlu1 %v6695_v6, %s5683_s28  ;;  %1511 = vrot.lane.b32.xlu0 %v6697_v29, %s5683_s28  ;;  %v7164_v6 = vld [vmem:[%s9404_s1 + $0x50] sm:$0xff]  ;;  %v7174_v29 = vld [vmem:[%s9404_s1 + $0x48] sm:$0xff] }
 0x230   : > { %v6999_v56 = vpop.permute.xlu1 %1321  ;;  %v7001_v3 = vpop.permute.xlu0 %1323 }
 0x231   : > { %9683 = vst [vmem:[#allocation117_spill] sm:$0xff] %v6999_v56  ;;  %9684 = vst [vmem:[#allocation118_spill] sm:$0xff] %v7001_v3 }
 0x233   : > { %1513 = vrot.lane.b32.xlu1 %v6707_v8, %s5683_s28  ;;  %1515 = vrot.lane.b32.xlu0 %v6709_v31, %s5683_s28  ;;  %v7158_v8 = vld [vmem:[%s9404_s1 + $0x38] sm:$0xff] }
 0x234   : > { %v7007_v55 = vpop.permute.xlu1 %1325  ;;  %v7009_v50 = vpop.permute.xlu0 %1327 }
 0x235   : > { %9685 = vst [vmem:[#allocation119_spill] sm:$0xff] %v7007_v55  ;;  %9686 = vst [vmem:[#allocation120_spill] sm:$0xff] %v7009_v50  ;;  %v9696_v50 = vld [vmem:[#allocation20_spill] sm:$0xff] }
 0x237   : > { %1517 = vrot.lane.b32.xlu1 %v9687_v47, %s5683_s28  ;;  %1519 = vrot.lane.b32.xlu0 %v9688_v48, %s5683_s28 }
 0x238   : > { %v7015_v49 = vpop.permute.xlu1 %1329  ;;  %v7017_v51 = vpop.permute.xlu0 %1331 }
 0x239   : > { %9689 = vst [vmem:[#allocation121_spill] sm:$0xff] %v7015_v49  ;;  %9690 = vst [vmem:[#allocation122_spill] sm:$0xff] %v7017_v51  ;;  %v9699_v51 = vld [vmem:[#allocation21_spill] sm:$0xff] }
 0x23b   : > { %1521 = vrot.lane.b32.xlu1 %v9691_v57, %s5683_s28  ;;  %1523 = vrot.lane.b32.xlu0 %v9692_v61, %s5683_s28  ;;  %v9700_v57 = vld [vmem:[#allocation22_spill] sm:$0xff] }
 0x23c   : > { %v7023_v58 = vpop.permute.xlu1 %1333  ;;  %v7025_v59 = vpop.permute.xlu0 %1335 }
 0x23d   : > { %9693 = vst [vmem:[#allocation123_spill] sm:$0xff] %v7023_v58  ;;  %9694 = vst [vmem:[#allocation124_spill] sm:$0xff] %v7025_v59  ;;  %v9703_v59 = vld [vmem:[#allocation23_spill] sm:$0xff] }
 0x23f   : > { %1525 = vrot.lane.b32.xlu1 %v9695_v60, %s5683_s28  ;;  %1527 = vrot.lane.b32.xlu0 %v9696_v50, %s5683_s28  ;;  %v9704_v60 = vld [vmem:[#allocation24_spill] sm:$0xff] }
 0x240   : > { %v7031_v48 = vpop.permute.xlu1 %1337  ;;  %v7033_v49 = vpop.permute.xlu0 %1339 }
 0x241   : > { %9697 = vst [vmem:[#allocation125_spill] sm:$0xff] %v7031_v48  ;;  %9698 = vst [vmem:[#allocation126_spill] sm:$0xff] %v7033_v49  ;;  %v9707_v49 = vld [vmem:[#allocation25_spill] sm:$0xff] }
 0x243   : > { %1529 = vrot.lane.b32.xlu1 %v9699_v51, %s5683_s28  ;;  %1531 = vrot.lane.b32.xlu0 %v9700_v57, %s5683_s28  ;;  %v9708_v51 = vld [vmem:[#allocation26_spill] sm:$0xff] }
 0x244   : > { %v7039_v61 = vpop.permute.xlu1 %1341  ;;  %v7041_v58 = vpop.permute.xlu0 %1343 }
 0x245   : > { %9701 = vst [vmem:[#allocation127_spill] sm:$0xff] %v7039_v61  ;;  %9702 = vst [vmem:[#allocation128_spill] sm:$0xff] %v7041_v58  ;;  %v9711_v58 = vld [vmem:[#allocation28_spill] sm:$0xff] }
 0x247   : > { %1533 = vrot.lane.b32.xlu1 %v9703_v59, %s5683_s28  ;;  %1535 = vrot.lane.b32.xlu0 %v9704_v60, %s5683_s28  ;;  %v7148_v59 = vld [vmem:[%s9404_s1 + $0x40] sm:$0xff] }
 0x248   : > { %v7047_v50 = vpop.permute.xlu1 %1345  ;;  %v7049_v48 = vpop.permute.xlu0 %1347 }
 0x249   : > { %9705 = vst [vmem:[#allocation129_spill] sm:$0xff] %v7047_v50  ;;  %9706 = vst [vmem:[#allocation130_spill] sm:$0xff] %v7049_v48 }
 0x24b   : > { %1537 = vrot.lane.b32.xlu1 %v9707_v49, %s5683_s28  ;;  %1539 = vrot.lane.b32.xlu0 %v9708_v51, %s5683_s28  ;;  %v7142_v49 = vld [vmem:[%s9404_s1 + $0x28] sm:$0xff] }
 0x24c   : > { %v7055_v57 = vpop.permute.xlu1 %1349  ;;  %v7057_v61 = vpop.permute.xlu0 %1351 }
 0x24d   : > { %9709 = vst [vmem:[#allocation131_spill] sm:$0xff] %v7055_v57  ;;  %9710 = vst [vmem:[#allocation132_spill] sm:$0xff] %v7057_v61  ;;  %v7132_v61 = vld [vmem:[%s9404_s1 + $0x30] sm:$0xff] }
 0x24f   : > { %1541 = vrot.lane.b32.xlu1 %v6791_v30, %s5683_s28  ;;  %1543 = vrot.lane.b32.xlu0 %v9711_v58, %s5683_s28 }
 0x250   : > { %v7063_v60 = vpop.permute.xlu1 %1353  ;;  %v7065_v50 = vpop.permute.xlu0 %1355 }
 0x251   : > { %9712 = vst [vmem:[#allocation133_spill] sm:$0xff] %v7063_v60  ;;  %9713 = vst [vmem:[#allocation134_spill] sm:$0xff] %v7065_v50 }
 0x253   : > { %1545 = vrot.lane.b32.xlu1 %v6803_v20, %s5683_s28  ;;  %1547 = vrot.lane.b32.xlu0 %v6805_v24, %s5683_s28  ;;  %v7126_v20 = vld [vmem:[%s9404_s1 + $0x18] sm:$0xff] }
 0x254   : > { %v7071_v51 = vpop.permute.xlu1 %1357  ;;  %v7073_v57 = vpop.permute.xlu0 %1359  ;;  %9725 = vst [vmem:[#allocation146_spill] sm:$0xff] %v7126_v20 }
 0x255   : > { %9714 = vst [vmem:[#allocation135_spill] sm:$0xff] %v7071_v51  ;;  %9715 = vst [vmem:[#allocation136_spill] sm:$0xff] %v7073_v57  ;;  %v7094_v57 = vld [vmem:[%s9404_s1] sm:$0xff] }
 0x256   : > { %9720 = vst [vmem:[#allocation141_spill] sm:$0xff] %v7094_v57 }
 0x257   : > { %1549 = vrot.lane.b32.xlu1 %v6813_v39, %s5683_s28  ;;  %1551 = vrot.lane.b32.xlu0 %v6815_v33, %s5683_s28  ;;  %v7116_v33 = vld [vmem:[%s9404_s1 + $0x20] sm:$0xff] }
 0x258   : > { %v7079_v58 = vpop.permute.xlu1 %1361  ;;  %v7081_v60 = vpop.permute.xlu0 %1363 }
 0x259   : > { %9716 = vst [vmem:[#allocation137_spill] sm:$0xff] %v7079_v58  ;;  %9717 = vst [vmem:[#allocation138_spill] sm:$0xff] %v7081_v60  ;;  %v7100_v60 = vld [vmem:[%s9404_s1 + $0x8] sm:$0xff]  ;;  %v7110_v58 = vld [vmem:[%s9404_s1 + $0x10] sm:$0xff] }
 0x25b   : > { %1553 = vrot.lane.b32.xlu1 %v6823_v12, %s5683_s28  ;;  %1555 = vrot.lane.b32.xlu0 %v6825_v22, %s5683_s28  ;;  %s9223_s28 = scalar_lea.vmem [#allocation7], %s4896_s7  ;;  %s5035_s7 = sshll.u32 %s5733_s16, 13 }
 0x25c   : > { %v7087_v24 = vpop.permute.xlu1 %1429  ;;  %v7089_v51 = vpop.permute.xlu0 %1431  ;;  %s4805_s29 = sshll.u32 %s9223_s28, 4  ;;  %s9354_s22 = scalar_lea.hbm %s9406_s3, %s5035_s7  ;;  %s9356_s29 = int_to_ptr.vmem [resolvable:$true] %s4805_s29 }
 0x25d   : > { %9718 = vst [vmem:[#allocation139_spill] sm:$0xff] %v7087_v24  ;;  %9719 = vst [vmem:[#allocation140_spill] sm:$0xff] %v7089_v51  ;;  %s4792_s16 = scalar_lea.sflag [#allocation4], %s5851_s6  ;;  %s5601_s8 = scalar_lea.vmem %s9356_s29, 8192 }
 0x25e   : > { %p5602_p4 = scmp.ne.s32.totalorder %s9356_s29, %s5601_s8  ;;  %p5608_p10 = scmp.lt.s32.totalorder %s9356_s29, %s5606_s4 }
 0x25f   : > { %1622 = vperm.xlu1 %5113, %v7094_v57   ;;  %1626 = vperm.xlu0 %5114, %v7100_v60   ;;  %p5609_p13 = scmp.lt.s32.totalorder %s5607_s18, %s5601_s8 }
 0x260   : > { %v7103_v12 = vpop.permute.xlu1 %1433  ;;  %v7105_v22 = vpop.permute.xlu0 %1435  ;;  %p5603_p6 = pnand %p5602_p4, %p5803_p12 }
 0x261   : > { %9721 = vst [vmem:[#allocation142_spill] sm:$0xff] %v7103_v12  ;;  %9722 = vst [vmem:[#allocation143_spill] sm:$0xff] %v7105_v22  ;;  %p5610_p3 = por %p5609_p13, %p5608_p10 }
 0x262   : > { %p5604_p8 = pneg %p5603_p6 }
 0x263   : > { %1630 = vperm.xlu1 %5113, %v7110_v58   ;;  %1638 = vperm.xlu0 %5114, %v7116_v33  }
 0x264   : > { %v7119_v39 = vpop.permute.xlu1 %1437  ;;  %v7121_v50 = vpop.permute.xlu0 %1439  ;;  %p5611_p7 = pnand %p5610_p3, %p5604_p8 }
 0x265   : > { %9723 = vst [vmem:[#allocation144_spill] sm:$0xff] %v7119_v39  ;;  %9724 = vst [vmem:[#allocation145_spill] sm:$0xff] %v7121_v50 }
 0x267   : > { %1634 = vperm.xlu1 %5113, %v7126_v20   ;;  %1646 = vperm.xlu0 %5114, %v7132_v61  }
 0x268   : > { %v7135_v30 = vpop.permute.xlu1 %1441  ;;  %v7137_v48 = vpop.permute.xlu0 %1443 }
 0x269   : > { %9726 = vst [vmem:[#allocation147_spill] sm:$0xff] %v7135_v30  ;;  %9727 = vst [vmem:[#allocation148_spill] sm:$0xff] %v7137_v48 }
 0x26b   : > { %1642 = vperm.xlu1 %5113, %v7142_v49   ;;  %1654 = vperm.xlu0 %5114, %v7148_v59  }
 0x26c   : > { %v7151_v47 = vpop.permute.xlu1 %1445  ;;  %v7153_v55 = vpop.permute.xlu0 %1447 }
 0x26d   : > { %9728 = vst [vmem:[#allocation149_spill] sm:$0xff] %v7151_v47  ;;  %9729 = vst [vmem:[#allocation150_spill] sm:$0xff] %v7153_v55 }
 0x26f   : > { %1650 = vperm.xlu1 %5113, %v7158_v8   ;;  %1662 = vperm.xlu0 %5114, %v7164_v6  }
 0x270   : > { %v7167_v31 = vpop.permute.xlu1 %1449  ;;  %v7169_v1 = vpop.permute.xlu0 %1451 }
 0x271   : > { %9730 = vst [vmem:[#allocation151_spill] sm:$0xff] %v7167_v31  ;;  %9731 = vst [vmem:[#allocation152_spill] sm:$0xff] %v7169_v1 }
 0x273   : > { %1658 = vperm.xlu1 %5113, %v7174_v29   ;;  %1670 = vperm.xlu0 %5114, %v7180_v27  }
 0x274   : > { %v7183_v25 = vpop.permute.xlu1 %1453  ;;  %v7185_v4 = vpop.permute.xlu0 %1455 }
 0x275   : > { %9732 = vst [vmem:[#allocation153_spill] sm:$0xff] %v7183_v25  ;;  %9733 = vst [vmem:[#allocation154_spill] sm:$0xff] %v7185_v4 }
 0x277   : > { %1666 = vperm.xlu1 %5113, %v7190_v23   ;;  %1678 = vperm.xlu0 %5114, %v7196_v63  }
 0x278   : > { %v7199_v2 = vpop.permute.xlu1 %1457  ;;  %v7201_v21 = vpop.permute.xlu0 %1459 }
 0x279   : > { %9734 = vst [vmem:[#allocation155_spill] sm:$0xff] %v7199_v2  ;;  %9735 = vst [vmem:[#allocation156_spill] sm:$0xff] %v7201_v21  ;;  %v7222_v21 = vld [vmem:[%s9404_s1 + $0x78] sm:$0xff]  ;;  %v7228_v2 = vld [vmem:[%s9404_s1 + $0x90] sm:$0xff] }
 0x27b   : > { %1674 = vperm.xlu1 %5113, %v7206_v43   ;;  %1686 = vperm.xlu0 %5114, %v7212_v52  }
 0x27c   : > { %v7215_v62 = vpop.permute.xlu1 %1461  ;;  %v7217_v45 = vpop.permute.xlu0 %1463 }
 0x27d   : > { %9736 = vst [vmem:[#allocation157_spill] sm:$0xff] %v7215_v62  ;;  %9737 = vst [vmem:[#allocation158_spill] sm:$0xff] %v7217_v45  ;;  %v7238_v45 = vld [vmem:[%s9404_s1 + $0x88] sm:$0xff]  ;;  %v7244_v62 = vld [vmem:[%s9404_s1 + $0xa0] sm:$0xff] }
 0x27f   : > { %1682 = vperm.xlu1 %5113, %v7222_v21   ;;  %1694 = vperm.xlu0 %5114, %v7228_v2  }
 0x280   : > { %v7231_v0 = vpop.permute.xlu1 %1465  ;;  %v7233_v41 = vpop.permute.xlu0 %1467 }
 0x281   : > { %9738 = vst [vmem:[#allocation159_spill] sm:$0xff] %v7231_v0  ;;  %9739 = vst [vmem:[#allocation160_spill] sm:$0xff] %v7233_v41  ;;  %v7254_v41 = vld [vmem:[%s9404_s1 + $0x98] sm:$0xff]  ;;  %v7260_v0 = vld [vmem:[%s9404_s1 + $0xb0] sm:$0xff] }
 0x283   : > { %1690 = vperm.xlu1 %5113, %v7238_v45   ;;  %1702 = vperm.xlu0 %5114, %v7244_v62  }
 0x284   : > { %v7247_v44 = vpop.permute.xlu1 %1469  ;;  %v7249_v54 = vpop.permute.xlu0 %1471 }
 0x285   : > { %9740 = vst [vmem:[#allocation161_spill] sm:$0xff] %v7247_v44  ;;  %9741 = vst [vmem:[#allocation162_spill] sm:$0xff] %v7249_v54  ;;  %v7270_v54 = vld [vmem:[%s9404_s1 + $0xa8] sm:$0xff]  ;;  %v7276_v44 = vld [vmem:[%s9404_s1 + $0xc0] sm:$0xff] }
 0x287   : > { %1698 = vperm.xlu1 %5113, %v7254_v41   ;;  %1710 = vperm.xlu0 %5114, %v7260_v0  }
 0x288   : > { %v7263_v4 = vpop.permute.xlu1 %1473  ;;  %v7265_v25 = vpop.permute.xlu0 %1475 }
 0x289   : > { %9742 = vst [vmem:[#allocation163_spill] sm:$0xff] %v7263_v4  ;;  %9743 = vst [vmem:[#allocation164_spill] sm:$0xff] %v7265_v25  ;;  %v7286_v25 = vld [vmem:[%s9404_s1 + $0xb8] sm:$0xff]  ;;  %v7292_v4 = vld [vmem:[%s9404_s1 + $0xd0] sm:$0xff] }
 0x28b   : > { %1706 = vperm.xlu1 %5113, %v7270_v54   ;;  %1718 = vperm.xlu0 %5114, %v7276_v44  }
 0x28c   : > { %v7279_v1 = vpop.permute.xlu1 %1477  ;;  %v7281_v31 = vpop.permute.xlu0 %1479 }
 0x28d   : > { %9744 = vst [vmem:[#allocation165_spill] sm:$0xff] %v7279_v1  ;;  %9745 = vst [vmem:[#allocation166_spill] sm:$0xff] %v7281_v31  ;;  %v7302_v31 = vld [vmem:[%s9404_s1 + $0xc8] sm:$0xff]  ;;  %v7308_v1 = vld [vmem:[%s9404_s1 + $0xe0] sm:$0xff] }
 0x28f   : > { %1714 = vperm.xlu1 %5113, %v7286_v25   ;;  %1726 = vperm.xlu0 %5114, %v7292_v4  }
 0x290   : > { %v7295_v55 = vpop.permute.xlu1 %1481  ;;  %v7297_v47 = vpop.permute.xlu0 %1483 }
 0x291   : > { %9746 = vst [vmem:[#allocation167_spill] sm:$0xff] %v7295_v55  ;;  %9747 = vst [vmem:[#allocation168_spill] sm:$0xff] %v7297_v47  ;;  %v7318_v47 = vld [vmem:[%s9404_s1 + $0xd8] sm:$0xff]  ;;  %v7324_v55 = vld [vmem:[%s9404_s1 + $0xf0] sm:$0xff] }
 0x293   : > { %1722 = vperm.xlu1 %5113, %v7302_v31   ;;  %1734 = vperm.xlu0 %5114, %v7308_v1  }
 0x294   : > { %v7311_v48 = vpop.permute.xlu1 %1485  ;;  %v7313_v30 = vpop.permute.xlu0 %1487 }
 0x295   : > { %9748 = vst [vmem:[#allocation169_spill] sm:$0xff] %v7311_v48  ;;  %9749 = vst [vmem:[#allocation170_spill] sm:$0xff] %v7313_v30  ;;  %v7334_v30 = vld [vmem:[%s9404_s1 + $0xe8] sm:$0xff]  ;;  %v7340_v48 = vld [vmem:[%s9404_s1 + $0x100] sm:$0xff] }
 0x297   : > { %1730 = vperm.xlu1 %5113, %v7318_v47   ;;  %1742 = vperm.xlu0 %5114, %v7324_v55  }
 0x298   : > { %v7327_v50 = vpop.permute.xlu1 %1489  ;;  %v7329_v39 = vpop.permute.xlu0 %1491 }
 0x299   : > { %9750 = vst [vmem:[#allocation171_spill] sm:$0xff] %v7327_v50  ;;  %9751 = vst [vmem:[#allocation172_spill] sm:$0xff] %v7329_v39  ;;  %v7350_v39 = vld [vmem:[%s9404_s1 + $0xf8] sm:$0xff]  ;;  %v7356_v50 = vld [vmem:[%s9404_s1 + $0x110] sm:$0xff] }
 0x29b   : > { %1738 = vperm.xlu1 %5113, %v7334_v30   ;;  %1750 = vperm.xlu0 %5114, %v7340_v48  }
 0x29c   : > { %v7343_v22 = vpop.permute.xlu1 %1493  ;;  %v7345_v12 = vpop.permute.xlu0 %1495 }
 0x29d   : > { %9752 = vst [vmem:[#allocation173_spill] sm:$0xff] %v7343_v22  ;;  %9753 = vst [vmem:[#allocation174_spill] sm:$0xff] %v7345_v12  ;;  %v7366_v12 = vld [vmem:[%s9404_s1 + $0x108] sm:$0xff]  ;;  %v7372_v22 = vld [vmem:[%s9404_s1 + $0x120] sm:$0xff] }
 0x29f   : > { %1746 = vperm.xlu1 %5113, %v7350_v39   ;;  %1758 = vperm.xlu0 %5114, %v7356_v50  }
 0x2a0   : > { %v7359_v51 = vpop.permute.xlu1 %1497  ;;  %v7361_v24 = vpop.permute.xlu0 %1499 }
 0x2a1   : > { %9754 = vst [vmem:[#allocation175_spill] sm:$0xff] %v7359_v51  ;;  %9755 = vst [vmem:[#allocation176_spill] sm:$0xff] %v7361_v24  ;;  %v7382_v24 = vld [vmem:[%s9404_s1 + $0x118] sm:$0xff]  ;;  %v7388_v51 = vld [vmem:[%s9404_s1 + $0x130] sm:$0xff] }
 0x2a3   : > { %1754 = vperm.xlu1 %5113, %v7366_v12   ;;  %1766 = vperm.xlu0 %5114, %v7372_v22  }
 0x2a4   : > { %v7375_v3 = vpop.permute.xlu1 %1501  ;;  %v7377_v56 = vpop.permute.xlu0 %1503 }
 0x2a5   : > { %9756 = vst [vmem:[#allocation177_spill] sm:$0xff] %v7375_v3  ;;  %9757 = vst [vmem:[#allocation178_spill] sm:$0xff] %v7377_v56  ;;  %v7398_v56 = vld [vmem:[%s9404_s1 + $0x128] sm:$0xff]  ;;  %v7404_v3 = vld [vmem:[%s9404_s1 + $0x140] sm:$0xff] }
 0x2a7   : > { %1762 = vperm.xlu1 %5113, %v7382_v24   ;;  %1774 = vperm.xlu0 %5114, %v7388_v51  }
 0x2a8   : > { %v7391_v5 = vpop.permute.xlu1 %1505  ;;  %v7393_v53 = vpop.permute.xlu0 %1507 }
 0x2a9   : > { %9758 = vst [vmem:[#allocation179_spill] sm:$0xff] %v7391_v5  ;;  %9759 = vst [vmem:[#allocation180_spill] sm:$0xff] %v7393_v53  ;;  %v7414_v53 = vld [vmem:[%s9404_s1 + $0x138] sm:$0xff]  ;;  %v7420_v5 = vld [vmem:[%s9404_s1 + $0x150] sm:$0xff] }
 0x2ab   : > { %1770 = vperm.xlu1 %5113, %v7398_v56   ;;  %1782 = vperm.xlu0 %5114, %v7404_v3  }
 0x2ac   : > { %v7407_v7 = vpop.permute.xlu1 %1509  ;;  %v7409_v42 = vpop.permute.xlu0 %1511 }
 0x2ad   : > { %9760 = vst [vmem:[#allocation181_spill] sm:$0xff] %v7407_v7  ;;  %9761 = vst [vmem:[#allocation182_spill] sm:$0xff] %v7409_v42  ;;  %v7430_v42 = vld [vmem:[%s9404_s1 + $0x148] sm:$0xff]  ;;  %v7436_v7 = vld [vmem:[%s9404_s1 + $0x160] sm:$0xff] }
 0x2af   : > { %1778 = vperm.xlu1 %5113, %v7414_v53   ;;  %1790 = vperm.xlu0 %5114, %v7420_v5  }
 0x2b0   : > { %v7423_v9 = vpop.permute.xlu1 %1513  ;;  %v7425_v19 = vpop.permute.xlu0 %1515 }
 0x2b1   : > { %9762 = vst [vmem:[#allocation183_spill] sm:$0xff] %v7423_v9  ;;  %9763 = vst [vmem:[#allocation184_spill] sm:$0xff] %v7425_v19  ;;  %v7446_v19 = vld [vmem:[%s9404_s1 + $0x158] sm:$0xff]  ;;  %v7452_v9 = vld [vmem:[%s9404_s1 + $0x170] sm:$0xff] }
 0x2b3   : > { %1786 = vperm.xlu1 %5113, %v7430_v42   ;;  %1798 = vperm.xlu0 %5114, %v7436_v7  }
 0x2b4   : > { %v7439_v13 = vpop.permute.xlu1 %1517  ;;  %v7441_v17 = vpop.permute.xlu0 %1519 }
 0x2b5   : > { %9764 = vst [vmem:[#allocation185_spill] sm:$0xff] %v7439_v13  ;;  %9765 = vst [vmem:[#allocation186_spill] sm:$0xff] %v7441_v17  ;;  %v7462_v17 = vld [vmem:[%s9404_s1 + $0x168] sm:$0xff]  ;;  %v7468_v13 = vld [vmem:[%s9404_s1 + $0x180] sm:$0xff] }
 0x2b7   : > { %1794 = vperm.xlu1 %5113, %v7446_v19   ;;  %1806 = vperm.xlu0 %5114, %v7452_v9  }
 0x2b8   : > { %v7455_v11 = vpop.permute.xlu1 %1521  ;;  %v7457_v15 = vpop.permute.xlu0 %1523 }
 0x2b9   : > { %9766 = vst [vmem:[#allocation187_spill] sm:$0xff] %v7455_v11  ;;  %9767 = vst [vmem:[#allocation188_spill] sm:$0xff] %v7457_v15  ;;  %v7478_v15 = vld [vmem:[%s9404_s1 + $0x178] sm:$0xff]  ;;  %v7484_v11 = vld [vmem:[%s9404_s1 + $0x190] sm:$0xff] }
 0x2ba   : > { %9770 = vst [vmem:[#allocation191_spill] sm:$0xff] %v7484_v11 }
 0x2bb   : > { %1802 = vperm.xlu1 %5113, %v7462_v17   ;;  %1814 = vperm.xlu0 %5114, %v7468_v13  }
 0x2bc   : > { %v7471_v46 = vpop.permute.xlu1 %1525  ;;  %v7473_v38 = vpop.permute.xlu0 %1527 }
 0x2bd   : > { %9768 = vst [vmem:[#allocation189_spill] sm:$0xff] %v7471_v46  ;;  %9769 = vst [vmem:[#allocation190_spill] sm:$0xff] %v7473_v38  ;;  %v7494_v38 = vld [vmem:[%s9404_s1 + $0x188] sm:$0xff]  ;;  %v7500_v46 = vld [vmem:[%s9404_s1 + $0x1a0] sm:$0xff] }
 0x2be   : > { %9773 = vst [vmem:[#allocation194_spill] sm:$0xff] %v7500_v46 }
 0x2bf   : > { %1810 = vperm.xlu1 %5113, %v7478_v15   ;;  %1822 = vperm.xlu0 %5114, %v7484_v11  }
 0x2c0   : > { %v7487_v26 = vpop.permute.xlu1 %1529  ;;  %v7489_v18 = vpop.permute.xlu0 %1531 }
 0x2c1   : > { %9771 = vst [vmem:[#allocation192_spill] sm:$0xff] %v7487_v26  ;;  %9772 = vst [vmem:[#allocation193_spill] sm:$0xff] %v7489_v18  ;;  %v7510_v18 = vld [vmem:[%s9404_s1 + $0x198] sm:$0xff]  ;;  %v7516_v26 = vld [vmem:[%s9404_s1 + $0x1b0] sm:$0xff] }
 0x2c2   : > { %9776 = vst [vmem:[#allocation197_spill] sm:$0xff] %v7516_v26 }
 0x2c3   : > { %1818 = vperm.xlu1 %5113, %v7494_v38   ;;  %1830 = vperm.xlu0 %5114, %v7500_v46  }
 0x2c4   : > { %v7503_v34 = vpop.permute.xlu1 %1533  ;;  %v7505_v40 = vpop.permute.xlu0 %1535 }
 0x2c5   : > { %9774 = vst [vmem:[#allocation195_spill] sm:$0xff] %v7503_v34  ;;  %9775 = vst [vmem:[#allocation196_spill] sm:$0xff] %v7505_v40  ;;  %v7526_v40 = vld [vmem:[%s9404_s1 + $0x1a8] sm:$0xff]  ;;  %v7532_v34 = vld [vmem:[%s9404_s1 + $0x1c0] sm:$0xff] }
 0x2c6   : > { %9779 = vst [vmem:[#allocation200_spill] sm:$0xff] %v7532_v34 }
 0x2c7   : > { %1826 = vperm.xlu1 %5113, %v7510_v18   ;;  %1838 = vperm.xlu0 %5114, %v7516_v26  }
 0x2c8   : > { %v7519_v14 = vpop.permute.xlu1 %1537  ;;  %v7521_v10 = vpop.permute.xlu0 %1539 }
 0x2c9   : > { %9777 = vst [vmem:[#allocation198_spill] sm:$0xff] %v7519_v14  ;;  %9778 = vst [vmem:[#allocation199_spill] sm:$0xff] %v7521_v10  ;;  %v7542_v10 = vld [vmem:[%s9404_s1 + $0x1b8] sm:$0xff]  ;;  %v7548_v14 = vld [vmem:[%s9404_s1 + $0x1d0] sm:$0xff] }
 0x2ca   : > { %9782 = vst [vmem:[#allocation203_spill] sm:$0xff] %v7548_v14 }
 0x2cb   : > { %1834 = vperm.xlu1 %5113, %v7526_v40   ;;  %1846 = vperm.xlu0 %5114, %v7532_v34  }
 0x2cc   : > { %v7535_v16 = vpop.permute.xlu1 %1541  ;;  %v7537_v35 = vpop.permute.xlu0 %1543 }
 0x2cd   : > { %9780 = vst [vmem:[#allocation201_spill] sm:$0xff] %v7535_v16  ;;  %9781 = vst [vmem:[#allocation202_spill] sm:$0xff] %v7537_v35  ;;  %v7558_v35 = vld [vmem:[%s9404_s1 + $0x1c8] sm:$0xff]  ;;  %v7564_v16 = vld [vmem:[%s9404_s1 + $0x1e0] sm:$0xff] }
 0x2ce   : > { %9785 = vst [vmem:[#allocation206_spill] sm:$0xff] %v7564_v16 }
 0x2cf   : > { %1842 = vperm.xlu1 %5113, %v7542_v10   ;;  %1854 = vperm.xlu0 %5114, %v7548_v14  }
 0x2d0   : > { %v7551_v28 = vpop.permute.xlu1 %1545  ;;  %v7553_v36 = vpop.permute.xlu0 %1547 }
 0x2d1   : > { %9783 = vst [vmem:[#allocation204_spill] sm:$0xff] %v7551_v28  ;;  %9784 = vst [vmem:[#allocation205_spill] sm:$0xff] %v7553_v36  ;;  %v7574_v36 = vld [vmem:[%s9404_s1 + $0x1d8] sm:$0xff]  ;;  %v7580_v28 = vld [vmem:[%s9404_s1 + $0x1f0] sm:$0xff] }
 0x2d2   : > { %9788 = vst [vmem:[#allocation209_spill] sm:$0xff] %v7574_v36  ;;  %9789 = vst [vmem:[#allocation210_spill] sm:$0xff] %v7580_v28 }
 0x2d3   : > { %1850 = vperm.xlu1 %5113, %v7558_v35   ;;  %1862 = vperm.xlu0 %5114, %v7564_v16  }
 0x2d4   : > { %v7567_v32 = vpop.permute.xlu1 %1549  ;;  %v7569_v37 = vpop.permute.xlu0 %1551 }
 0x2d5   : > { %9786 = vst [vmem:[#allocation207_spill] sm:$0xff] %v7567_v32  ;;  %9787 = vst [vmem:[#allocation208_spill] sm:$0xff] %v7569_v37  ;;  %v7590_v37 = vld [vmem:[%s9404_s1 + $0x1e8] sm:$0xff]  ;;  %v5684_v32 = vmov 3  }
 0x2d7   : > { %1858 = vperm.xlu1 %5113, %v7574_v36   ;;  %1870 = vperm.xlu0 %5114, %v7580_v28  }
 0x2d8   : > { %v7583_v14 = vpop.permute.xlu1 %1553  ;;  %v7585_v16 = vpop.permute.xlu0 %1555 }
 0x2d9   : > { %9790 = vst [vmem:[#allocation211_spill] sm:$0xff] %v7583_v14  ;;  %9791 = vst [vmem:[#allocation212_spill] sm:$0xff] %v7585_v16  ;;  %v7601_v14 = vld [vmem:[%s9404_s1 + $0x1f8] sm:$0xff] }
 0x2db   : > { %1866 = vperm.xlu1 %5113, %v7590_v37   ;;  %5115 = vset.pattern.permute.xlu0 %v5684_v32 }
 0x2dc   : > { %1942 = vperm.xlu0 %5115, %v7094_v57  }
 0x2de   : > { %v7594_v34 = vpop.permute.xlu1 %1622  ;;  %v7596_v36 = vpop.permute.xlu0 %1626 }
 0x2df   : > { %9792 = vst [vmem:[#allocation213_spill] sm:$0xff] %v7594_v34  ;;  %9793 = vst [vmem:[#allocation214_spill] sm:$0xff] %v7596_v36  ;;  %1874 = vperm.xlu1 %5113, %v7601_v14  }
 0x2e0   : > { %1954 = vperm.xlu0 %5115, %v7126_v20  }
 0x2e2   : > { %v7605_v16 = vpop.permute.xlu1 %1630  ;;  %v7607_v28 = vpop.permute.xlu0 %1638 }
 0x2e3   : > { %9794 = vst [vmem:[#allocation215_spill] sm:$0xff] %v7605_v16  ;;  %9795 = vst [vmem:[#allocation216_spill] sm:$0xff] %v7607_v28  ;;  %5116 = vset.pattern.permute.xlu1 %v5684_v32 }
 0x2e4   : > { %1946 = vperm.xlu1 %5116, %v7100_v60   ;;  %1962 = vperm.xlu0 %5115, %v7142_v49  }
 0x2e6   : > { %v7611_v34 = vpop.permute.xlu1 %1634  ;;  %v7613_v36 = vpop.permute.xlu0 %1646 }
 0x2e7   : > { %9796 = vst [vmem:[#allocation217_spill] sm:$0xff] %v7611_v34  ;;  %9797 = vst [vmem:[#allocation218_spill] sm:$0xff] %v7613_v36 }
 0x2e8   : > { %1950 = vperm.xlu1 %5116, %v7110_v58   ;;  %1970 = vperm.xlu0 %5115, %v7158_v8  }
 0x2ea   : > { %v7617_v57 = vpop.permute.xlu1 %1642  ;;  %v7619_v20 = vpop.permute.xlu0 %1654 }
 0x2eb   : > { %9798 = vst [vmem:[#allocation219_spill] sm:$0xff] %v7617_v57  ;;  %9799 = vst [vmem:[#allocation220_spill] sm:$0xff] %v7619_v20 }
 0x2ec   : > { %1958 = vperm.xlu1 %5116, %v7116_v33   ;;  %1978 = vperm.xlu0 %5115, %v7174_v29  }
 0x2ee   : > { %v7623_v32 = vpop.permute.xlu1 %1650  ;;  %v7625_v28 = vpop.permute.xlu0 %1662 }
 0x2ef   : > { %9800 = vst [vmem:[#allocation221_spill] sm:$0xff] %v7623_v32  ;;  %9801 = vst [vmem:[#allocation222_spill] sm:$0xff] %v7625_v28 }
 0x2f0   : > { %1966 = vperm.xlu1 %5116, %v7132_v61   ;;  %1986 = vperm.xlu0 %5115, %v7190_v23  }
 0x2f2   : > { %v7629_v36 = vpop.permute.xlu1 %1658  ;;  %v7631_v34 = vpop.permute.xlu0 %1670 }
 0x2f3   : > { %9802 = vst [vmem:[#allocation223_spill] sm:$0xff] %v7629_v36  ;;  %9803 = vst [vmem:[#allocation224_spill] sm:$0xff] %v7631_v34 }
 0x2f4   : > { %1974 = vperm.xlu1 %5116, %v7148_v59   ;;  %1994 = vperm.xlu0 %5115, %v7206_v43  }
 0x2f6   : > { %v7635_v20 = vpop.permute.xlu1 %1666  ;;  %v7637_v57 = vpop.permute.xlu0 %1678 }
 0x2f7   : > { %9804 = vst [vmem:[#allocation225_spill] sm:$0xff] %v7635_v20  ;;  %9805 = vst [vmem:[#allocation226_spill] sm:$0xff] %v7637_v57 }
 0x2f8   : > { %1982 = vperm.xlu1 %5116, %v7164_v6   ;;  %2002 = vperm.xlu0 %5115, %v7222_v21  }
 0x2fa   : > { %v7641_v28 = vpop.permute.xlu1 %1674  ;;  %v7643_v32 = vpop.permute.xlu0 %1686 }
 0x2fb   : > { %9806 = vst [vmem:[#allocation227_spill] sm:$0xff] %v7641_v28  ;;  %9807 = vst [vmem:[#allocation228_spill] sm:$0xff] %v7643_v32 }
 0x2fc   : > { %1990 = vperm.xlu1 %5116, %v7180_v27   ;;  %2010 = vperm.xlu0 %5115, %v7238_v45  }
 0x2fe   : > { %v7647_v34 = vpop.permute.xlu1 %1682  ;;  %v7649_v36 = vpop.permute.xlu0 %1694 }
 0x2ff   : > { %9808 = vst [vmem:[#allocation229_spill] sm:$0xff] %v7647_v34  ;;  %9809 = vst [vmem:[#allocation230_spill] sm:$0xff] %v7649_v36 }
 0x300   : > { %1998 = vperm.xlu1 %5116, %v7196_v63   ;;  %2018 = vperm.xlu0 %5115, %v7254_v41  }
 0x302   : > { %v7653_v57 = vpop.permute.xlu1 %1690  ;;  %v7655_v20 = vpop.permute.xlu0 %1702 }
 0x303   : > { %9810 = vst [vmem:[#allocation231_spill] sm:$0xff] %v7653_v57  ;;  %9811 = vst [vmem:[#allocation232_spill] sm:$0xff] %v7655_v20 }
 0x304   : > { %2006 = vperm.xlu1 %5116, %v7212_v52   ;;  %2026 = vperm.xlu0 %5115, %v7270_v54  }
 0x306   : > { %v7659_v32 = vpop.permute.xlu1 %1698  ;;  %v7661_v28 = vpop.permute.xlu0 %1710 }
 0x307   : > { %9812 = vst [vmem:[#allocation233_spill] sm:$0xff] %v7659_v32  ;;  %9813 = vst [vmem:[#allocation234_spill] sm:$0xff] %v7661_v28 }
 0x308   : > { %2014 = vperm.xlu1 %5116, %v7228_v2   ;;  %2034 = vperm.xlu0 %5115, %v7286_v25  }
 0x30a   : > { %v7665_v36 = vpop.permute.xlu1 %1706  ;;  %v7667_v34 = vpop.permute.xlu0 %1718 }
 0x30b   : > { %9814 = vst [vmem:[#allocation235_spill] sm:$0xff] %v7665_v36  ;;  %9815 = vst [vmem:[#allocation236_spill] sm:$0xff] %v7667_v34 }
 0x30c   : > { %2022 = vperm.xlu1 %5116, %v7244_v62   ;;  %2042 = vperm.xlu0 %5115, %v7302_v31  }
 0x30e   : > { %v7671_v20 = vpop.permute.xlu1 %1714  ;;  %v7673_v57 = vpop.permute.xlu0 %1726 }
 0x30f   : > { %9816 = vst [vmem:[#allocation237_spill] sm:$0xff] %v7671_v20  ;;  %9817 = vst [vmem:[#allocation238_spill] sm:$0xff] %v7673_v57 }
 0x310   : > { %2030 = vperm.xlu1 %5116, %v7260_v0   ;;  %2050 = vperm.xlu0 %5115, %v7318_v47  }
 0x312   : > { %v7677_v28 = vpop.permute.xlu1 %1722  ;;  %v7679_v32 = vpop.permute.xlu0 %1734 }
 0x313   : > { %9818 = vst [vmem:[#allocation239_spill] sm:$0xff] %v7677_v28  ;;  %9819 = vst [vmem:[#allocation240_spill] sm:$0xff] %v7679_v32 }
 0x314   : > { %2038 = vperm.xlu1 %5116, %v7276_v44   ;;  %2058 = vperm.xlu0 %5115, %v7334_v30  }
 0x316   : > { %v7683_v34 = vpop.permute.xlu1 %1730  ;;  %v7685_v36 = vpop.permute.xlu0 %1742 }
 0x317   : > { %9820 = vst [vmem:[#allocation241_spill] sm:$0xff] %v7683_v34  ;;  %9821 = vst [vmem:[#allocation242_spill] sm:$0xff] %v7685_v36 }
 0x318   : > { %2046 = vperm.xlu1 %5116, %v7292_v4   ;;  %2066 = vperm.xlu0 %5115, %v7350_v39  }
 0x31a   : > { %v7689_v57 = vpop.permute.xlu1 %1738  ;;  %v7691_v20 = vpop.permute.xlu0 %1750 }
 0x31b   : > { %9822 = vst [vmem:[#allocation243_spill] sm:$0xff] %v7689_v57  ;;  %9823 = vst [vmem:[#allocation244_spill] sm:$0xff] %v7691_v20 }
 0x31c   : > { %2054 = vperm.xlu1 %5116, %v7308_v1   ;;  %2074 = vperm.xlu0 %5115, %v7366_v12  }
 0x31e   : > { %v7695_v32 = vpop.permute.xlu1 %1746  ;;  %v7697_v28 = vpop.permute.xlu0 %1758 }
 0x31f   : > { %9824 = vst [vmem:[#allocation245_spill] sm:$0xff] %v7695_v32  ;;  %9825 = vst [vmem:[#allocation246_spill] sm:$0xff] %v7697_v28 }
 0x320   : > { %2062 = vperm.xlu1 %5116, %v7324_v55   ;;  %2082 = vperm.xlu0 %5115, %v7382_v24  }
 0x322   : > { %v7701_v36 = vpop.permute.xlu1 %1754  ;;  %v7703_v34 = vpop.permute.xlu0 %1766 }
 0x323   : > { %9826 = vst [vmem:[#allocation247_spill] sm:$0xff] %v7701_v36  ;;  %9827 = vst [vmem:[#allocation248_spill] sm:$0xff] %v7703_v34 }
 0x324   : > { %2070 = vperm.xlu1 %5116, %v7340_v48   ;;  %2090 = vperm.xlu0 %5115, %v7398_v56  }
 0x326   : > { %v7707_v57 = vpop.permute.xlu1 %1762  ;;  %v7709_v20 = vpop.permute.xlu0 %1774 }
 0x327   : > { %9828 = vst [vmem:[#allocation249_spill] sm:$0xff] %v7707_v57  ;;  %9829 = vst [vmem:[#allocation250_spill] sm:$0xff] %v7709_v20 }
 0x328   : > { %2078 = vperm.xlu1 %5116, %v7356_v50   ;;  %2098 = vperm.xlu0 %5115, %v7414_v53  }
 0x32a   : > { %v7713_v32 = vpop.permute.xlu1 %1770  ;;  %v7715_v28 = vpop.permute.xlu0 %1782 }
 0x32b   : > { %9830 = vst [vmem:[#allocation251_spill] sm:$0xff] %v7713_v32  ;;  %9831 = vst [vmem:[#allocation252_spill] sm:$0xff] %v7715_v28 }
 0x32c   : > { %2086 = vperm.xlu1 %5116, %v7372_v22   ;;  %2106 = vperm.xlu0 %5115, %v7430_v42  }
 0x32e   : > { %v7719_v34 = vpop.permute.xlu1 %1778  ;;  %v7721_v36 = vpop.permute.xlu0 %1790 }
 0x32f   : > { %9832 = vst [vmem:[#allocation253_spill] sm:$0xff] %v7719_v34  ;;  %9833 = vst [vmem:[#allocation254_spill] sm:$0xff] %v7721_v36 }
 0x330   : > { %2094 = vperm.xlu1 %5116, %v7388_v51   ;;  %2114 = vperm.xlu0 %5115, %v7446_v19  }
 0x332   : > { %v7725_v20 = vpop.permute.xlu1 %1786  ;;  %v7727_v57 = vpop.permute.xlu0 %1798 }
 0x333   : > { %9834 = vst [vmem:[#allocation255_spill] sm:$0xff] %v7725_v20  ;;  %9835 = vst [vmem:[#allocation256_spill] sm:$0xff] %v7727_v57 }
 0x334   : > { %2102 = vperm.xlu1 %5116, %v7404_v3   ;;  %2122 = vperm.xlu0 %5115, %v7462_v17  }
 0x336   : > { %v7731_v28 = vpop.permute.xlu1 %1794  ;;  %v7733_v32 = vpop.permute.xlu0 %1806 }
 0x337   : > { %9836 = vst [vmem:[#allocation257_spill] sm:$0xff] %v7731_v28  ;;  %9837 = vst [vmem:[#allocation258_spill] sm:$0xff] %v7733_v32 }
 0x338   : > { %2110 = vperm.xlu1 %5116, %v7420_v5   ;;  %2130 = vperm.xlu0 %5115, %v7478_v15  }
 0x33a   : > { %v7737_v36 = vpop.permute.xlu1 %1802  ;;  %v7739_v34 = vpop.permute.xlu0 %1814 }
 0x33b   : > { %9838 = vst [vmem:[#allocation259_spill] sm:$0xff] %v7737_v36  ;;  %9839 = vst [vmem:[#allocation260_spill] sm:$0xff] %v7739_v34 }
 0x33c   : > { %2118 = vperm.xlu1 %5116, %v7436_v7   ;;  %2138 = vperm.xlu0 %5115, %v7494_v38  }
 0x33e   : > { %v7743_v57 = vpop.permute.xlu1 %1810  ;;  %v7745_v20 = vpop.permute.xlu0 %1822 }
 0x33f   : > { %9840 = vst [vmem:[#allocation261_spill] sm:$0xff] %v7743_v57  ;;  %9841 = vst [vmem:[#allocation262_spill] sm:$0xff] %v7745_v20 }
 0x340   : > { %2126 = vperm.xlu1 %5116, %v7452_v9   ;;  %2146 = vperm.xlu0 %5115, %v7510_v18  }
 0x342   : > { %v7749_v32 = vpop.permute.xlu1 %1818  ;;  %v7751_v28 = vpop.permute.xlu0 %1830 }
 0x343   : > { %9842 = vst [vmem:[#allocation263_spill] sm:$0xff] %v7749_v32  ;;  %9843 = vst [vmem:[#allocation264_spill] sm:$0xff] %v7751_v28 }
 0x344   : > { %2134 = vperm.xlu1 %5116, %v7468_v13   ;;  %2154 = vperm.xlu0 %5115, %v7526_v40  }
 0x346   : > { %v7755_v34 = vpop.permute.xlu1 %1826  ;;  %v7757_v36 = vpop.permute.xlu0 %1838 }
 0x347   : > { %9844 = vst [vmem:[#allocation265_spill] sm:$0xff] %v7755_v34  ;;  %9845 = vst [vmem:[#allocation266_spill] sm:$0xff] %v7757_v36  ;;  %v9850_v34 = vld [vmem:[#allocation209_spill] sm:$0xff] }
 0x348   : > { %2142 = vperm.xlu1 %5116, %v7484_v11   ;;  %2162 = vperm.xlu0 %5115, %v7542_v10   ;;  %v9853_v11 = vld [vmem:[#allocation200_spill] sm:$0xff] }
 0x34a   : > { %v7761_v20 = vpop.permute.xlu1 %1834  ;;  %v7763_v57 = vpop.permute.xlu0 %1846 }
 0x34b   : > { %9846 = vst [vmem:[#allocation267_spill] sm:$0xff] %v7761_v20  ;;  %9847 = vst [vmem:[#allocation268_spill] sm:$0xff] %v7763_v57 }
 0x34c   : > { %2150 = vperm.xlu1 %5116, %v7500_v46   ;;  %2170 = vperm.xlu0 %5115, %v7558_v35   ;;  %v9856_v46 = vld [vmem:[#allocation203_spill] sm:$0xff] }
 0x34e   : > { %v7767_v28 = vpop.permute.xlu1 %1842  ;;  %v7769_v32 = vpop.permute.xlu0 %1854 }
 0x34f   : > { %9848 = vst [vmem:[#allocation269_spill] sm:$0xff] %v7767_v28  ;;  %9849 = vst [vmem:[#allocation270_spill] sm:$0xff] %v7769_v32 }
 0x350   : > { %2158 = vperm.xlu1 %5116, %v7516_v26   ;;  %2178 = vperm.xlu0 %5115, %v9850_v34   ;;  %v9859_v26 = vld [vmem:[#allocation206_spill] sm:$0xff] }
 0x352   : > { %v7773_v36 = vpop.permute.xlu1 %1850  ;;  %v7775_v16 = vpop.permute.xlu0 %1862 }
 0x353   : > { %9851 = vst [vmem:[#allocation209_spill] sm:$0xff] %v7773_v36  ;;  %9852 = vst [vmem:[#allocation271_spill] sm:$0xff] %v7775_v16  ;;  %v9510_v36 = vmov 4  }
 0x354   : > { %2166 = vperm.xlu1 %5116, %v9853_v11   ;;  %2186 = vperm.xlu0 %5115, %v7590_v37  }
 0x356   : > { %v7779_v57 = vpop.permute.xlu1 %1858  ;;  %v7781_v20 = vpop.permute.xlu0 %1870 }
 0x357   : > { %9854 = vst [vmem:[#allocation200_spill] sm:$0xff] %v7779_v57  ;;  %9855 = vst [vmem:[#allocation272_spill] sm:$0xff] %v7781_v20  ;;  %v9862_v20 = vld [vmem:[#allocation210_spill] sm:$0xff] }
 0x358   : > { %2174 = vperm.xlu1 %5116, %v9856_v46   ;;  %2194 = vperm.xlu0 %5115, %v7601_v14  }
 0x35a   : > { %v7785_v32 = vpop.permute.xlu1 %1866 }
 0x35b   : > { %9857 = vst [vmem:[#allocation203_spill] sm:$0xff] %v7785_v32  ;;  %v7787_v28 = vpop.permute.xlu0 %1942 }
 0x35c   : > { %9858 = vst [vmem:[#allocation273_spill] sm:$0xff] %v7787_v28  ;;  %2182 = vperm.xlu1 %5116, %v9859_v26   ;;  %5118 = vset.pattern.permute.xlu0 %v9510_v36  ;;  %v9864_v26 = vld [vmem:[#allocation141_spill] sm:$0xff] }
 0x35d   : > { %2330 = vperm.xlu0 %5118, %v7100_v60  }
 0x35e   : > { %v7792_v11 = vpop.permute.xlu1 %1874 }
 0x35f   : > { %9860 = vst [vmem:[#allocation206_spill] sm:$0xff] %v7792_v11  ;;  %v7794_v16 = vpop.permute.xlu0 %1954 }
 0x360   : > { %9861 = vst [vmem:[#allocation274_spill] sm:$0xff] %v7794_v16  ;;  %2190 = vperm.xlu1 %5116, %v9862_v20   ;;  %v9869_v16 = vld [vmem:[#allocation146_spill] sm:$0xff] }
 0x361   : > { %2342 = vperm.xlu0 %5118, %v7116_v33  }
 0x363   : > { %v7798_v46 = vpop.permute.xlu1 %1946  ;;  %v7800_v32 = vpop.permute.xlu0 %1962 }
 0x364   : > { %9863 = vst [vmem:[#allocation210_spill] sm:$0xff] %v7800_v32  ;;  %5117 = vset.pattern.permute.xlu1 %v9510_v36 }
 0x365   : > { %2326 = vperm.xlu1 %5117, %v9864_v26   ;;  %2350 = vperm.xlu0 %5118, %v7132_v61  }
 0x367   : > { %v7805_v57 = vpop.permute.xlu1 %1950  ;;  %v7807_v28 = vpop.permute.xlu0 %1970 }
 0x368   : > { %9865 = vst [vmem:[#allocation141_spill] sm:$0xff] %v7805_v57  ;;  %9866 = vst [vmem:[#allocation275_spill] sm:$0xff] %v7807_v28 }
 0x369   : > { %2334 = vperm.xlu1 %5117, %v7110_v58   ;;  %2358 = vperm.xlu0 %5118, %v7148_v59  }
 0x36b   : > { %v7811_v20 = vpop.permute.xlu1 %1958  ;;  %v7813_v11 = vpop.permute.xlu0 %1978 }
 0x36c   : > { %9867 = vst [vmem:[#allocation276_spill] sm:$0xff] %v7811_v20  ;;  %9868 = vst [vmem:[#allocation277_spill] sm:$0xff] %v7813_v11 }
 0x36d   : > { %2338 = vperm.xlu1 %5117, %v9869_v16   ;;  %2366 = vperm.xlu0 %5118, %v7164_v6  }
 0x36f   : > { %v7817_v36 = vpop.permute.xlu1 %1966  ;;  %v7819_v32 = vpop.permute.xlu0 %1986 }
 0x370   : > { %9870 = vst [vmem:[#allocation146_spill] sm:$0xff] %v7817_v36  ;;  %9871 = vst [vmem:[#allocation278_spill] sm:$0xff] %v7819_v32 }
 0x371   : > { %2346 = vperm.xlu1 %5117, %v7142_v49   ;;  %2374 = vperm.xlu0 %5118, %v7180_v27  }
 0x373   : > { %v7823_v28 = vpop.permute.xlu1 %1974  ;;  %v7825_v57 = vpop.permute.xlu0 %1994 }
 0x374   : > { %9872 = vst [vmem:[#allocation279_spill] sm:$0xff] %v7823_v28  ;;  %9873 = vst [vmem:[#allocation280_spill] sm:$0xff] %v7825_v57 }
 0x375   : > { %2354 = vperm.xlu1 %5117, %v7158_v8   ;;  %2382 = vperm.xlu0 %5118, %v7196_v63  }
 0x377   : > { %v7829_v11 = vpop.permute.xlu1 %1982  ;;  %v7831_v20 = vpop.permute.xlu0 %2002 }
 0x378   : > { %9874 = vst [vmem:[#allocation281_spill] sm:$0xff] %v7829_v11  ;;  %9875 = vst [vmem:[#allocation282_spill] sm:$0xff] %v7831_v20 }
 0x379   : > { %2362 = vperm.xlu1 %5117, %v7174_v29   ;;  %2390 = vperm.xlu0 %5118, %v7212_v52  }
 0x37b   : > { %v7835_v32 = vpop.permute.xlu1 %1990  ;;  %v7837_v36 = vpop.permute.xlu0 %2010 }
 0x37c   : > { %9876 = vst [vmem:[#allocation283_spill] sm:$0xff] %v7835_v32  ;;  %9877 = vst [vmem:[#allocation284_spill] sm:$0xff] %v7837_v36 }
 0x37d   : > { %2370 = vperm.xlu1 %5117, %v7190_v23   ;;  %2398 = vperm.xlu0 %5118, %v7228_v2  }
 0x37f   : > { %v7841_v57 = vpop.permute.xlu1 %1998  ;;  %v7843_v28 = vpop.permute.xlu0 %2018 }
 0x380   : > { %9878 = vst [vmem:[#allocation285_spill] sm:$0xff] %v7841_v57  ;;  %9879 = vst [vmem:[#allocation286_spill] sm:$0xff] %v7843_v28 }
 0x381   : > { %2378 = vperm.xlu1 %5117, %v7206_v43   ;;  %2406 = vperm.xlu0 %5118, %v7244_v62  }
 0x383   : > { %v7847_v20 = vpop.permute.xlu1 %2006  ;;  %v7849_v11 = vpop.permute.xlu0 %2026 }
 0x384   : > { %9880 = vst [vmem:[#allocation287_spill] sm:$0xff] %v7847_v20  ;;  %9881 = vst [vmem:[#allocation288_spill] sm:$0xff] %v7849_v11 }
 0x385   : > { %2386 = vperm.xlu1 %5117, %v7222_v21   ;;  %2414 = vperm.xlu0 %5118, %v7260_v0  }
 0x387   : > { %v7853_v36 = vpop.permute.xlu1 %2014  ;;  %v7855_v32 = vpop.permute.xlu0 %2034 }
 0x388   : > { %9882 = vst [vmem:[#allocation289_spill] sm:$0xff] %v7853_v36  ;;  %9883 = vst [vmem:[#allocation290_spill] sm:$0xff] %v7855_v32 }
 0x389   : > { %2394 = vperm.xlu1 %5117, %v7238_v45   ;;  %2422 = vperm.xlu0 %5118, %v7276_v44  }
 0x38b   : > { %v7859_v28 = vpop.permute.xlu1 %2022  ;;  %v7861_v57 = vpop.permute.xlu0 %2042 }
 0x38c   : > { %9884 = vst [vmem:[#allocation291_spill] sm:$0xff] %v7859_v28  ;;  %9885 = vst [vmem:[#allocation292_spill] sm:$0xff] %v7861_v57 }
 0x38d   : > { %2402 = vperm.xlu1 %5117, %v7254_v41   ;;  %2430 = vperm.xlu0 %5118, %v7292_v4  }
 0x38f   : > { %v7865_v11 = vpop.permute.xlu1 %2030  ;;  %v7867_v20 = vpop.permute.xlu0 %2050 }
 0x390   : > { %9886 = vst [vmem:[#allocation293_spill] sm:$0xff] %v7865_v11  ;;  %9887 = vst [vmem:[#allocation294_spill] sm:$0xff] %v7867_v20 }
 0x391   : > { %2410 = vperm.xlu1 %5117, %v7270_v54   ;;  %2438 = vperm.xlu0 %5118, %v7308_v1  }
 0x393   : > { %v7871_v32 = vpop.permute.xlu1 %2038  ;;  %v7873_v36 = vpop.permute.xlu0 %2058 }
 0x394   : > { %9888 = vst [vmem:[#allocation295_spill] sm:$0xff] %v7871_v32  ;;  %9889 = vst [vmem:[#allocation296_spill] sm:$0xff] %v7873_v36 }
 0x395   : > { %2418 = vperm.xlu1 %5117, %v7286_v25   ;;  %2446 = vperm.xlu0 %5118, %v7324_v55  }
 0x397   : > { %v7877_v57 = vpop.permute.xlu1 %2046  ;;  %v7879_v28 = vpop.permute.xlu0 %2066 }
 0x398   : > { %9890 = vst [vmem:[#allocation297_spill] sm:$0xff] %v7877_v57  ;;  %9891 = vst [vmem:[#allocation298_spill] sm:$0xff] %v7879_v28 }
 0x399   : > { %2426 = vperm.xlu1 %5117, %v7302_v31   ;;  %2454 = vperm.xlu0 %5118, %v7340_v48  }
 0x39b   : > { %v7883_v20 = vpop.permute.xlu1 %2054  ;;  %v7885_v54 = vpop.permute.xlu0 %2074 }
 0x39c   : > { %9892 = vst [vmem:[#allocation299_spill] sm:$0xff] %v7883_v20 }
 0x39d   : > { %2434 = vperm.xlu1 %5117, %v7318_v47   ;;  %2462 = vperm.xlu0 %5118, %v7356_v50  }
 0x39f   : > { %v7889_v36 = vpop.permute.xlu1 %2062  ;;  %v7891_v25 = vpop.permute.xlu0 %2082 }
 0x3a0   : > { %9893 = vst [vmem:[#allocation300_spill] sm:$0xff] %v7889_v36 }
 0x3a1   : > { %2442 = vperm.xlu1 %5117, %v7334_v30   ;;  %2470 = vperm.xlu0 %5118, %v7372_v22  }
 0x3a3   : > { %v7895_v28 = vpop.permute.xlu1 %2070  ;;  %v7897_v31 = vpop.permute.xlu0 %2090 }
 0x3a4   : > { %9894 = vst [vmem:[#allocation301_spill] sm:$0xff] %v7897_v31  ;;  %v9512_v31 = vmov 5  }
 0x3a5   : > { %2450 = vperm.xlu1 %5117, %v7350_v39   ;;  %2478 = vperm.xlu0 %5118, %v7388_v51  }
 0x3a7   : > { %v7901_v20 = vpop.permute.xlu1 %2078  ;;  %v7903_v47 = vpop.permute.xlu0 %2098 }
 0x3a8   : > { %9895 = vst [vmem:[#allocation302_spill] sm:$0xff] %v7903_v47 }
 0x3a9   : > { %2458 = vperm.xlu1 %5117, %v7366_v12   ;;  %2486 = vperm.xlu0 %5118, %v7404_v3  }
 0x3ab   : > { %v7907_v36 = vpop.permute.xlu1 %2086  ;;  %v7909_v30 = vpop.permute.xlu0 %2106 }
 0x3ac   : > { %9896 = vst [vmem:[#allocation303_spill] sm:$0xff] %v7907_v36  ;;  %9897 = vst [vmem:[#allocation304_spill] sm:$0xff] %v7909_v30  ;;  %v10036_v36 = vld [vmem:[#allocation180_spill] sm:$0xff] }
 0x3ad   : > { %2466 = vperm.xlu1 %5117, %v7382_v24   ;;  %2498 = vperm.xlu0 %5118, %v7446_v19  }
 0x3af   : > { %v7913_v57 = vpop.permute.xlu1 %2094  ;;  %v7915_v39 = vpop.permute.xlu0 %2114 }
 0x3b0   : > { %9898 = vst [vmem:[#allocation305_spill] sm:$0xff] %v7913_v57  ;;  %9899 = vst [vmem:[#allocation306_spill] sm:$0xff] %v7915_v39 }
 0x3b1   : > { %2474 = vperm.xlu1 %5117, %v7398_v56   ;;  %2506 = vperm.xlu0 %5118, %v7462_v17  }
 0x3b3   : > { %v7919_v32 = vpop.permute.xlu1 %2102  ;;  %v7921_v11 = vpop.permute.xlu0 %2122 }
 0x3b4   : > { %9900 = vst [vmem:[#allocation307_spill] sm:$0xff] %v7919_v32  ;;  %9901 = vst [vmem:[#allocation308_spill] sm:$0xff] %v7921_v11 }
 0x3b5   : > { %2482 = vperm.xlu1 %5117, %v7414_v53   ;;  %2514 = vperm.xlu0 %5118, %v7478_v15  }
 0x3b7   : > { %v7925_v30 = vpop.permute.xlu1 %2110  ;;  %v7927_v47 = vpop.permute.xlu0 %2130 }
 0x3b8   : > { %9902 = vst [vmem:[#allocation309_spill] sm:$0xff] %v7925_v30  ;;  %9903 = vst [vmem:[#allocation310_spill] sm:$0xff] %v7927_v47 }
 0x3b9   : > { %2490 = vperm.xlu1 %5117, %v7430_v42   ;;  %2522 = vperm.xlu0 %5118, %v7494_v38  }
 0x3bb   : > { %v7931_v39 = vpop.permute.xlu1 %2118  ;;  %v7933_v57 = vpop.permute.xlu0 %2138 }
 0x3bc   : > { %9904 = vst [vmem:[#allocation311_spill] sm:$0xff] %v7931_v39  ;;  %9905 = vst [vmem:[#allocation312_spill] sm:$0xff] %v7933_v57 }
 0x3bd   : > { %5119 = vset.pattern.permute.xlu1 %v9512_v31  ;;  %2530 = vperm.xlu0 %5118, %v7510_v18  }
 0x3be   : > { %2778 = vperm.xlu1 %5119, %v7100_v60  }
 0x3bf   : > { %v7938_v11 = vpop.permute.xlu1 %2126  ;;  %v7940_v30 = vpop.permute.xlu0 %2146 }
 0x3c0   : > { %9906 = vst [vmem:[#allocation313_spill] sm:$0xff] %v7938_v11  ;;  %9907 = vst [vmem:[#allocation314_spill] sm:$0xff] %v7940_v30  ;;  %v9974_v30 = vld [vmem:[#allocation80_spill] sm:$0xff] }
 0x3c1   : > { %2538 = vperm.xlu0 %5118, %v7526_v40  }
 0x3c2   : > { %2902 = vperm.xlu1 %5119, %v7340_v48  }
 0x3c3   : > { %v7944_v47 = vpop.permute.xlu1 %2134  ;;  %v7946_v39 = vpop.permute.xlu0 %2154 }
 0x3c4   : > { %9908 = vst [vmem:[#allocation315_spill] sm:$0xff] %v7944_v47  ;;  %9909 = vst [vmem:[#allocation316_spill] sm:$0xff] %v7946_v39 }
 0x3c5   : > { %2546 = vperm.xlu0 %5118, %v7542_v10  }
 0x3c6   : > { %2782 = vperm.xlu1 %5119, %v7110_v58  }
 0x3c7   : > { %v7950_v31 = vpop.permute.xlu1 %2142  ;;  %v7952_v57 = vpop.permute.xlu0 %2162 }
 0x3c8   : > { %9910 = vst [vmem:[#allocation317_spill] sm:$0xff] %v7950_v31  ;;  %9911 = vst [vmem:[#allocation318_spill] sm:$0xff] %v7952_v57  ;;  %v9968_v57 = vld [vmem:[#allocation75_spill] sm:$0xff]  ;;  %v9975_v31 = vld [vmem:[#allocation81_spill] sm:$0xff] }
 0x3c9   : > { %2554 = vperm.xlu0 %5118, %v7558_v35  }
 0x3ca   : > { %2910 = vperm.xlu1 %5119, %v7356_v50  }
 0x3cb   : > { %v7956_v60 = vpop.permute.xlu1 %2150  ;;  %v7958_v40 = vpop.permute.xlu0 %2170 }
 0x3cc   : > { %9912 = vst [vmem:[#allocation319_spill] sm:$0xff] %v7956_v60  ;;  %9913 = vst [vmem:[#allocation320_spill] sm:$0xff] %v7958_v40  ;;  %v9972_v60 = vld [vmem:[#allocation78_spill] sm:$0xff] }
 0x3cd   : > { %2562 = vperm.xlu0 %5118, %v9850_v34  }
 0x3ce   : > { %2790 = vperm.xlu1 %5119, %v7116_v33   ;;  %v9920_v33 = vmov 5  }
 0x3cf   : > { %v7962_v48 = vpop.permute.xlu1 %2158  ;;  %v7964_v10 = vpop.permute.xlu0 %2178 }
 0x3d0   : > { %9914 = vst [vmem:[#allocation321_spill] sm:$0xff] %v7962_v48  ;;  %9915 = vst [vmem:[#allocation322_spill] sm:$0xff] %v7964_v10  ;;  %v9924_v10 = vmov 4  }
 0x3d1   : > { %2570 = vperm.xlu0 %5118, %v7590_v37  }
 0x3d2   : > { %2918 = vperm.xlu1 %5119, %v7372_v22  }
 0x3d3   : > { %v7968_v58 = vpop.permute.xlu1 %2166  ;;  %v7970_v35 = vpop.permute.xlu0 %2186 }
 0x3d4   : > { %9916 = vst [vmem:[#allocation323_spill] sm:$0xff] %v7968_v58  ;;  %9917 = vst [vmem:[#allocation324_spill] sm:$0xff] %v7970_v35 }
 0x3d5   : > { %2578 = vperm.xlu0 %5118, %v7601_v14  }
 0x3d6   : > { %2798 = vperm.xlu1 %5119, %v7132_v61  }
 0x3d7   : > { %v7974_v50 = vpop.permute.xlu1 %2174  ;;  %v7976_v34 = vpop.permute.xlu0 %2194 }
 0x3d8   : > { %9918 = vst [vmem:[#allocation325_spill] sm:$0xff] %v7974_v50  ;;  %9919 = vst [vmem:[#allocation326_spill] sm:$0xff] %v7976_v34 }
 0x3d9   : > { %5141 = vset.pattern.permute.xlu0 %v9920_v33 }
 0x3da   : > { %2926 = vperm.xlu1 %5119, %v7388_v51   ;;  %2774 = vperm.xlu0 %5141, %v9864_v26  }
 0x3db   : > { %v7981_v37 = vpop.permute.xlu1 %2182 }
 0x3dc   : > { %9921 = vst [vmem:[#allocation327_spill] sm:$0xff] %v7981_v37  ;;  %v7983_v22 = vpop.permute.xlu0 %2330 }
 0x3de   : > { %2806 = vperm.xlu1 %5119, %v7148_v59   ;;  %2906 = vperm.xlu0 %5141, %v7366_v12  }
 0x3df   : > { %v7987_v35 = vpop.permute.xlu1 %2190 }
 0x3e0   : > { %9922 = vst [vmem:[#allocation328_spill] sm:$0xff] %v7987_v35  ;;  %v7989_v61 = vpop.permute.xlu0 %2342 }
 0x3e1   : > { %9923 = vst [vmem:[#allocation329_spill] sm:$0xff] %v7989_v61 }
 0x3e2   : > { %5120 = vset.pattern.permute.xlu1 %v9924_v10  ;;  %2786 = vperm.xlu0 %5141, %v9869_v16  }
 0x3e3   : > { %2494 = vperm.xlu1 %5120, %v7420_v5  }
 0x3e4   : > { %v7994_v51 = vpop.permute.xlu1 %2326  ;;  %v7996_v26 = vpop.permute.xlu0 %2350 }
 0x3e5   : > { %9925 = vst [vmem:[#allocation330_spill] sm:$0xff] %v7996_v26 }
 0x3e6   : > { %2914 = vperm.xlu0 %5141, %v7382_v24  }
 0x3e7   : > { %5121 = vset.pattern.permute.xlu1 %v9920_v33 }
 0x3e8   : > { %2934 = vperm.xlu1 %5121, %v7404_v3   ;;  %v8001_v59 = vpop.permute.xlu1 %2334  ;;  %v8003_v12 = vpop.permute.xlu0 %2358 }
 0x3e9   : > { %9926 = vst [vmem:[#allocation331_spill] sm:$0xff] %v8003_v12 }
 0x3ea   : > { %2794 = vperm.xlu0 %5141, %v7142_v49  }
 0x3ec   : > { %2938 = vperm.xlu1 %5121, %v7430_v42   ;;  %v8007_v16 = vpop.permute.xlu1 %2338  ;;  %v8009_v35 = vpop.permute.xlu0 %2366 }
 0x3ed   : > { %9927 = vst [vmem:[#allocation332_spill] sm:$0xff] %v8009_v35 }
 0x3ee   : > { %2922 = vperm.xlu0 %5141, %v7398_v56  }
 0x3f0   : > { %2818 = vperm.xlu1 %5121, %v7190_v23   ;;  %v8013_v24 = vpop.permute.xlu1 %2346  ;;  %v8015_v34 = vpop.permute.xlu0 %2374 }
 0x3f1   : > { %9928 = vst [vmem:[#allocation333_spill] sm:$0xff] %v8013_v24  ;;  %9929 = vst [vmem:[#allocation334_spill] sm:$0xff] %v8015_v34  ;;  %v9991_v34 = vld [vmem:[#allocation114_spill] sm:$0xff] }
 0x3f2   : > { %2802 = vperm.xlu0 %5141, %v7158_v8  }
 0x3f4   : > { %5122 = vset.pattern.permute.xlu1 %v9924_v10  ;;  %v8019_v3 = vpop.permute.xlu1 %2354  ;;  %v8021_v49 = vpop.permute.xlu0 %2382 }
 0x3f5   : > { %9930 = vst [vmem:[#allocation335_spill] sm:$0xff] %v8019_v3  ;;  %9931 = vst [vmem:[#allocation336_spill] sm:$0xff] %v8021_v49  ;;  %2502 = vperm.xlu1 %5122, %v7436_v7   ;;  %v9987_v49 = vld [vmem:[#allocation110_spill] sm:$0xff]  ;;  %v10004_v3 = vld [vmem:[#allocation145_spill] sm:$0xff] }
 0x3f6   : > { %2930 = vperm.xlu0 %5141, %v7414_v53  }
 0x3f8   : > { %v8025_v42 = vpop.permute.xlu1 %2362  ;;  %v8027_v56 = vpop.permute.xlu0 %2390 }
 0x3f9   : > { %9932 = vst [vmem:[#allocation337_spill] sm:$0xff] %v8025_v42  ;;  %9933 = vst [vmem:[#allocation338_spill] sm:$0xff] %v8027_v56  ;;  %5123 = vset.pattern.permute.xlu1 %v9920_v33  ;;  %v9993_v42 = vld [vmem:[#allocation116_spill] sm:$0xff] }
 0x3fa   : > { %2942 = vperm.xlu1 %5123, %v7420_v5   ;;  %2810 = vperm.xlu0 %5141, %v7174_v29  }
 0x3fc   : > { %v8032_v23 = vpop.permute.xlu1 %2370  ;;  %v8034_v8 = vpop.permute.xlu0 %2398 }
 0x3fd   : > { %9934 = vst [vmem:[#allocation339_spill] sm:$0xff] %v8032_v23  ;;  %9935 = vst [vmem:[#allocation340_spill] sm:$0xff] %v8034_v8  ;;  %v9990_v23 = vld [vmem:[#allocation113_spill] sm:$0xff] }
 0x3fe   : > { %2946 = vperm.xlu1 %5123, %v7446_v19   ;;  %2814 = vperm.xlu0 %5141, %v7164_v6  }
 0x400   : > { %v8038_v37 = vpop.permute.xlu1 %2378  ;;  %v8040_v53 = vpop.permute.xlu0 %2406 }
 0x401   : > { %9936 = vst [vmem:[#allocation341_spill] sm:$0xff] %v8038_v37  ;;  %9937 = vst [vmem:[#allocation342_spill] sm:$0xff] %v8040_v53  ;;  %v9973_v53 = vld [vmem:[#allocation79_spill] sm:$0xff] }
 0x402   : > { %2826 = vperm.xlu1 %5123, %v7206_v43   ;;  %2822 = vperm.xlu0 %5141, %v7180_v27  }
 0x404   : > { %v8044_v50 = vpop.permute.xlu1 %2386  ;;  %v8046_v5 = vpop.permute.xlu0 %2414 }
 0x405   : > { %9938 = vst [vmem:[#allocation343_spill] sm:$0xff] %v8044_v50  ;;  %9939 = vst [vmem:[#allocation344_spill] sm:$0xff] %v8046_v5  ;;  %v9970_v5 = vld [vmem:[#allocation77_spill] sm:$0xff] }
 0x406   : > { %5124 = vset.pattern.permute.xlu1 %v9924_v10  ;;  %2830 = vperm.xlu0 %5141, %v7196_v63   ;;  %v9986_v50 = vld [vmem:[#allocation109_spill] sm:$0xff] }
 0x407   : > { %2510 = vperm.xlu1 %5124, %v7452_v9  }
 0x408   : > { %v8051_v19 = vpop.permute.xlu1 %2394  ;;  %v8053_v6 = vpop.permute.xlu0 %2422 }
 0x409   : > { %9940 = vst [vmem:[#allocation345_spill] sm:$0xff] %v8051_v19  ;;  %9941 = vst [vmem:[#allocation346_spill] sm:$0xff] %v8053_v6  ;;  %v9981_v19 = vld [vmem:[#allocation86_spill] sm:$0xff] }
 0x40a   : > { %2838 = vperm.xlu0 %5141, %v7212_v52  }
 0x40b   : > { %5125 = vset.pattern.permute.xlu1 %v9920_v33 }
 0x40c   : > { %2950 = vperm.xlu1 %5125, %v7436_v7   ;;  %v8058_v43 = vpop.permute.xlu1 %2402  ;;  %v8060_v27 = vpop.permute.xlu0 %2430 }
 0x40d   : > { %9942 = vst [vmem:[#allocation347_spill] sm:$0xff] %v8058_v43  ;;  %9943 = vst [vmem:[#allocation348_spill] sm:$0xff] %v8060_v27  ;;  %v9976_v43 = vld [vmem:[#allocation82_spill] sm:$0xff] }
 0x40e   : > { %2846 = vperm.xlu0 %5141, %v7228_v2  }
 0x410   : > { %2954 = vperm.xlu1 %5125, %v7462_v17   ;;  %v8064_v63 = vpop.permute.xlu1 %2410  ;;  %v8066_v29 = vpop.permute.xlu0 %2438 }
 0x411   : > { %9944 = vst [vmem:[#allocation349_spill] sm:$0xff] %v8064_v63  ;;  %9945 = vst [vmem:[#allocation350_spill] sm:$0xff] %v8066_v29 }
 0x412   : > { %2854 = vperm.xlu0 %5141, %v7244_v62  }
 0x414   : > { %2834 = vperm.xlu1 %5125, %v7222_v21   ;;  %v8070_v52 = vpop.permute.xlu1 %2418  ;;  %v8072_v40 = vpop.permute.xlu0 %2446 }
 0x415   : > { %9946 = vst [vmem:[#allocation351_spill] sm:$0xff] %v8070_v52  ;;  %9947 = vst [vmem:[#allocation352_spill] sm:$0xff] %v8072_v40 }
 0x416   : > { %2862 = vperm.xlu0 %5141, %v7260_v0  }
 0x418   : > { %5126 = vset.pattern.permute.xlu1 %v9924_v10  ;;  %v8076_v7 = vpop.permute.xlu1 %2426  ;;  %v8078_v2 = vpop.permute.xlu0 %2454 }
 0x419   : > { %9948 = vst [vmem:[#allocation353_spill] sm:$0xff] %v8076_v7  ;;  %2518 = vperm.xlu1 %5126, %v7468_v13   ;;  %v5687_v7 = vmov 0.0  }
 0x41a   : > { %2870 = vperm.xlu0 %5141, %v7276_v44  }
 0x41c   : > { %v8082_v17 = vpop.permute.xlu1 %2434  ;;  %v8084_v62 = vpop.permute.xlu0 %2462 }
 0x41d   : > { %9949 = vst [vmem:[#allocation354_spill] sm:$0xff] %v8082_v17  ;;  %9950 = vst [vmem:[#allocation355_spill] sm:$0xff] %v8084_v62  ;;  %5127 = vset.pattern.permute.xlu1 %v9920_v33  ;;  %v10051_v62 = vld [vmem:[#allocation218_spill] sm:$0xff] }
 0x41e   : > { %2958 = vperm.xlu1 %5127, %v7452_v9   ;;  %2878 = vperm.xlu0 %5141, %v7292_v4   ;;  %v9956_v4 = vld [vmem:[#allocation191_spill] sm:$0xff] }
 0x420   : > { %v8089_v0 = vpop.permute.xlu1 %2442  ;;  %v8091_v21 = vpop.permute.xlu0 %2470 }
 0x421   : > { %9951 = vst [vmem:[#allocation356_spill] sm:$0xff] %v8089_v0  ;;  %9952 = vst [vmem:[#allocation357_spill] sm:$0xff] %v8091_v21 }
 0x422   : > { %2962 = vperm.xlu1 %5127, %v7478_v15   ;;  %2886 = vperm.xlu0 %5141, %v7308_v1  }
 0x424   : > { %v8095_v40 = vpop.permute.xlu1 %2450  ;;  %v8097_v44 = vpop.permute.xlu0 %2478 }
 0x425   : > { %9953 = vst [vmem:[#allocation358_spill] sm:$0xff] %v8095_v40  ;;  %9954 = vst [vmem:[#allocation359_spill] sm:$0xff] %v8097_v44  ;;  %v397_v40 = vlaneseq }
 0x426   : > { %2842 = vperm.xlu1 %5127, %v7238_v45   ;;  %2894 = vperm.xlu0 %5141, %v7324_v55  }
 0x427   : > { %v398_v0 = vand.u32 127, %v397_v40 }
 0x428   : > { %v8101_v29 = vpop.permute.xlu1 %2458  ;;  %v8103_v9 = vpop.permute.xlu0 %2486 }
 0x429   : > { %9955 = vst [vmem:[#allocation360_spill] sm:$0xff] %v8103_v9  ;;  %vm399_vm0 = vcmp.ge.s32.totalorder %v398_v0, 1  ;;  %vm402_vm1 = vcmp.le.s32.totalorder %v398_v0, 126 }
 0x42a   : > { %5128 = vset.pattern.permute.xlu1 %v9924_v10  ;;  %3026 = vperm.xlu0 %5141, %v7601_v14   ;;  %v8148_v0 = vsel %vm402_vm1, 1.0, %v5687_v7 }
 0x42b   : > { %2526 = vperm.xlu1 %5128, %v9956_v4  }
 0x42c   : > { %v8108_v15 = vpop.permute.xlu1 %2466  ;;  %v8110_v1 = vpop.permute.xlu0 %2498 }
 0x42d   : > { %9957 = vst [vmem:[#allocation191_spill] sm:$0xff] %v8108_v15  ;;  %9958 = vst [vmem:[#allocation361_spill] sm:$0xff] %v8110_v1  ;;  %v10050_v15 = vld [vmem:[#allocation217_spill] sm:$0xff] }
 0x42f   : > { %5129 = vset.pattern.permute.xlu1 %v9920_v33 }
 0x430   : > { %2966 = vperm.xlu1 %5129, %v7468_v13   ;;  %v8114_v45 = vpop.permute.xlu1 %2474  ;;  %v8116_v55 = vpop.permute.xlu0 %2506  ;;  %v8128_v13 = vsel %vm399_vm0, 1.0, %v5687_v7  ;;  %v9977_v7 = vld [vmem:[#allocation83_spill] sm:$0xff] }
 0x431   : > { %9959 = vst [vmem:[#allocation362_spill] sm:$0xff] %v8114_v45  ;;  %9960 = vst [vmem:[#allocation363_spill] sm:$0xff] %v8116_v55  ;;  %v8138_v48 = vmul.f32 %v8128_v13, %v9968_v57  ;;  %v8146_v39 = vmul.f32 %v8128_v13, %v9970_v5  ;;  %v8152_v63 = vmul.f32 %v8128_v13, %v9972_v60  ;;  %v9978_v60 = vld [vmem:[#allocation84_spill] sm:$0xff] }
 0x432   : > { %9965 = vst [vmem:[#allocation368_spill] sm:$0xff] %v8128_v13  ;;  %v8158_v57 = vmul.f32 %v8128_v13, %v9974_v30  ;;  %v8164_v5 = vmul.f32 %v8128_v13, %v9976_v43  ;;  %v8168_v8 = vmul.f32 %v8128_v13, %v9977_v7  ;;  %v9982_v43 = vld [vmem:[#allocation87_spill] sm:$0xff]  ;;  %v9983_v7 = vld [vmem:[#allocation88_spill] sm:$0xff]  ;;  %v8207_v55 = vmul.f32 %v8128_v13, %v9987_v49 }
 0x433   : > { %v8186_v56 = vmul.f32 %v8128_v13, %v9982_v43  ;;  %v1399_v43 = vmul.f32 %v8128_v13, %v9986_v50  ;;  %v8220_v9 = vmul.f32 %v8128_v13, %v9991_v34  ;;  %v9992_v50 = vld [vmem:[#allocation115_spill] sm:$0xff] }
 0x434   : > { %2970 = vperm.xlu1 %5129, %v7494_v38   ;;  %v8119_v17 = vpop.permute.xlu1 %2482  ;;  %v8121_v14 = vpop.permute.xlu0 %2514  ;;  %v9967_v38 = vld [vmem:[#allocation194_spill] sm:$0xff]  ;;  %v8224_v49 = vmul.f32 %v8128_v13, %v9992_v50  ;;  %v9998_v50 = vld [vmem:[#allocation140_spill] sm:$0xff] }
 0x435   : > { %9961 = vst [vmem:[#allocation364_spill] sm:$0xff] %v8119_v17  ;;  %9962 = vst [vmem:[#allocation365_spill] sm:$0xff] %v8121_v14  ;;  %v8190_v14 = vmul.f32 %v8128_v13, %v9983_v7  ;;  %v9988_v7 = vld [vmem:[#allocation111_spill] sm:$0xff]  ;;  %v8246_v35 = vmul.f32 %v8148_v0, %v9998_v50 }
 0x436   : > { %9971 = vst [vmem:[#allocation194_spill] sm:$0xff] %v8148_v0  ;;  %v1401_v37 = vmul.f32 %v8128_v13, %v9988_v7  ;;  %v8228_v7 = vmul.f32 %v8128_v13, %v9993_v42  ;;  %v9999_v42 = vld [vmem:[#allocation142_spill] sm:$0xff]  ;;  %v10006_v50 = vld [vmem:[#allocation147_spill] sm:$0xff] }
 0x437   : > { %v8250_v12 = vmul.f32 %v8148_v0, %v9999_v42  ;;  %v8268_v26 = vmul.f32 %v8148_v0, %v10006_v50  ;;  %v10008_v42 = vld [vmem:[#allocation148_spill] sm:$0xff] }
 0x438   : > { %2850 = vperm.xlu1 %5129, %v7254_v41   ;;  %v8124_v27 = vpop.permute.xlu1 %2490  ;;  %v8126_v58 = vpop.permute.xlu0 %2522  ;;  %v9969_v41 = vld [vmem:[#allocation76_spill] sm:$0xff]  ;;  %v8272_v45 = vmul.f32 %v8148_v0, %v10008_v42  ;;  %v10018_v42 = vld [vmem:[#allocation153_spill] sm:$0xff] }
 0x439   : > { %9963 = vst [vmem:[#allocation366_spill] sm:$0xff] %v8124_v27  ;;  %9964 = vst [vmem:[#allocation367_spill] sm:$0xff] %v8126_v58  ;;  %v8142_v52 = vmul.f32 %v8128_v13, %v9969_v41  ;;  %v1371_v41 = vmul.f32 %v8128_v13, %v9975_v31  ;;  %v8172_v58 = vmul.f32 %v8128_v13, %v9978_v60  ;;  %v9984_v60 = vld [vmem:[#allocation107_spill] sm:$0xff]  ;;  %v10016_v50 = vld [vmem:[#allocation152_spill] sm:$0xff] }
 0x43a   : > { %v8182_v31 = vmul.f32 %v8128_v13, %v9981_v19  ;;  %v8194_v11 = vmul.f32 %v8128_v13, %v9984_v60  ;;  %v9989_v60 = vld [vmem:[#allocation112_spill] sm:$0xff]  ;;  %10007 = vst [vmem:[#allocation80_spill] sm:$0xff] %v8268_v26  ;;  %10009 = vst [vmem:[#allocation81_spill] sm:$0xff] %v8272_v45  ;;  %v8289_v26 = vmul.f32 %v8148_v0, %v10016_v50 }
 0x43b   : > { %v8214_v1 = vmul.f32 %v8128_v13, %v9989_v60  ;;  %v9995_v60 = vld [vmem:[#allocation118_spill] sm:$0xff]  ;;  %v8293_v45 = vmul.f32 %v8148_v0, %v10018_v42  ;;  %v10027_v42 = vld [vmem:[#allocation176_spill] sm:$0xff] }
 0x43c   : > { %5130 = vset.pattern.permute.xlu1 %v9924_v10  ;;  %v8131_v40 = vpop.permute.xlu0 %2530  ;;  %v8236_v17 = vmul.f32 %v8128_v13, %v9995_v60  ;;  %v10001_v60 = vld [vmem:[#allocation144_spill] sm:$0xff] }
 0x43d   : > { %9966 = vst [vmem:[#allocation369_spill] sm:$0xff] %v8131_v40  ;;  %2534 = vperm.xlu1 %5130, %v9967_v38   ;;  %v8134_v6 = vpop.permute.xlu1 %2778  ;;  %v1369_v40 = vmul.f32 %v8128_v13, %v9973_v53  ;;  %v9979_v53 = vld [vmem:[#allocation85_spill] sm:$0xff]  ;;  %10019 = vst [vmem:[#allocation86_spill] sm:$0xff] %v8293_v45  ;;  %v8315_v45 = vmul.f32 %v8148_v0, %v10027_v42 }
 0x43e   : > { %v8176_v47 = vmul.f32 %v8128_v13, %v9979_v53  ;;  %10017 = vst [vmem:[#allocation85_spill] sm:$0xff] %v8289_v26  ;;  %v10038_v42 = vld [vmem:[#allocation181_spill] sm:$0xff] }
 0x440   : > { %v8178_v30 = vpop.permute.xlu0 %2538 }
 0x441   : > { %9980 = vst [vmem:[#allocation75_spill] sm:$0xff] %v8178_v30  ;;  %5131 = vset.pattern.permute.xlu1 %v9920_v33  ;;  %v8197_v53 = vpop.permute.xlu1 %2902  ;;  %v9985_v30 = vld [vmem:[#allocation108_spill] sm:$0xff] }
 0x442   : > { %v8201_v19 = vmul.f32 %v8128_v13, %v9985_v30  ;;  %2974 = vperm.xlu1 %5131, %v9956_v4   ;;  %v1403_v30 = vmul.f32 %v8128_v13, %v9990_v23  ;;  %v9994_v4 = vld [vmem:[#allocation117_spill] sm:$0xff]  ;;  %v9996_v23 = vld [vmem:[#allocation139_spill] sm:$0xff]  ;;  %10028 = vst [vmem:[#allocation108_spill] sm:$0xff] %v8315_v45  ;;  %v1880_v45 = vmul.f32 %v10050_v15, %v8152_v63 }
 0x443   : > { %v8232_v27 = vmul.f32 %v8128_v13, %v9994_v4  ;;  %v8240_v34 = vmul.f32 %v8148_v0, %v9996_v23  ;;  %v10000_v4 = vld [vmem:[#allocation143_spill] sm:$0xff]  ;;  %v8258_v13 = vmul.f32 %v8148_v0, %v10001_v60  ;;  %v10012_v60 = vld [vmem:[#allocation150_spill] sm:$0xff] }
 0x444   : > { %v8242_v44 = vpop.permute.xlu0 %2546  ;;  %v8254_v32 = vmul.f32 %v8148_v0, %v10000_v4  ;;  %v10010_v4 = vld [vmem:[#allocation149_spill] sm:$0xff]  ;;  %v8281_v24 = vmul.f32 %v8148_v0, %v10012_v60  ;;  %v10057_v63 = vld [vmem:[#allocation223_spill] sm:$0xff] }
 0x445   : > { %9997 = vst [vmem:[#allocation76_spill] sm:$0xff] %v8242_v44  ;;  %10002 = vst [vmem:[#allocation77_spill] sm:$0xff] %v8258_v13  ;;  %v8260_v23 = vpop.permute.xlu1 %2782  ;;  %v8264_v44 = vmul.f32 %v8148_v0, %v10004_v3  ;;  %v8276_v21 = vmul.f32 %v8148_v0, %v10010_v4  ;;  %v10014_v3 = vld [vmem:[#allocation151_spill] sm:$0xff]  ;;  %v10020_v4 = vld [vmem:[#allocation154_spill] sm:$0xff]  ;;  %v1886_v15 = vmul.f32 %v10057_v63, %v8172_v58 }
 0x446   : > { %10003 = vst [vmem:[#allocation78_spill] sm:$0xff] %v8260_v23  ;;  %2978 = vperm.xlu1 %5131, %v7510_v18   ;;  %10013 = vst [vmem:[#allocation83_spill] sm:$0xff] %v8281_v24  ;;  %v10022_v18 = vld [vmem:[#allocation173_spill] sm:$0xff]  ;;  %v10023_v24 = vld [vmem:[#allocation174_spill] sm:$0xff]  ;;  %v8337_v23 = vmul.f32 %v8148_v0, %v10038_v42 }
 0x447   : > { %10005 = vst [vmem:[#allocation79_spill] sm:$0xff] %v8264_v44  ;;  %10011 = vst [vmem:[#allocation82_spill] sm:$0xff] %v8276_v21  ;;  %v8285_v44 = vmul.f32 %v8148_v0, %v10014_v3  ;;  %v8297_v21 = vmul.f32 %v8148_v0, %v10020_v4  ;;  %v8301_v60 = vmul.f32 %v8148_v0, %v10022_v18  ;;  %v10029_v4 = vld [vmem:[#allocation177_spill] sm:$0xff]  ;;  %v10031_v18 = vld [vmem:[#allocation178_spill] sm:$0xff] }
 0x448   : > { %v8305_v3 = vmul.f32 %v8148_v0, %v10023_v24  ;;  %v8311_v26 = vpop.permute.xlu0 %2554  ;;  %v8323_v61 = vmul.f32 %v8148_v0, %v10031_v18  ;;  %v10033_v24 = vld [vmem:[#allocation179_spill] sm:$0xff]  ;;  %10039 = vst [vmem:[#allocation114_spill] sm:$0xff] %v8337_v23  ;;  %v10046_v42 = vld [vmem:[#allocation213_spill] sm:$0xff] }
 0x449   : > { %10015 = vst [vmem:[#allocation84_spill] sm:$0xff] %v8285_v44  ;;  %10021 = vst [vmem:[#allocation87_spill] sm:$0xff] %v8297_v21  ;;  %v10024_v44 = vld [vmem:[#allocation175_spill] sm:$0xff]  ;;  %v8319_v21 = vmul.f32 %v8148_v0, %v10029_v4  ;;  %v8327_v13 = vmul.f32 %v8148_v0, %v10033_v24  ;;  %v10040_v4 = vld [vmem:[#allocation182_spill] sm:$0xff]  ;;  %v1877_v23 = vmul.f32 %v10046_v42, %v8138_v48 }
 0x44a   : > { %v8309_v50 = vmul.f32 %v8148_v0, %v10024_v44  ;;  %10026 = vst [vmem:[#allocation107_spill] sm:$0xff] %v8311_v26  ;;  %10032 = vst [vmem:[#allocation110_spill] sm:$0xff] %v8323_v61  ;;  %v8329_v44 = vpop.permute.xlu1 %2910  ;;  %v8333_v26 = vmul.f32 %v8148_v0, %v10036_v36  ;;  %v10042_v18 = vld [vmem:[#allocation183_spill] sm:$0xff]  ;;  %v5401_v24 = vld [vmem:[%s9404_s1 + $0xa8] sm:$0xff] }
 0x44b   : > { %10030 = vst [vmem:[#allocation109_spill] sm:$0xff] %v8319_v21  ;;  %10034 = vst [vmem:[#allocation111_spill] sm:$0xff] %v8327_v13  ;;  %v8341_v21 = vmul.f32 %v8148_v0, %v10040_v4  ;;  %v8345_v61 = vmul.f32 %v8148_v0, %v10042_v18  ;;  %2858 = vperm.xlu1 %5131, %v5401_v24   ;;  %v10044_v13 = vld [vmem:[#allocation184_spill] sm:$0xff]  ;;  %v1883_v24 = vmul.f32 %v10051_v62, %v1371_v41  ;;  %v10059_v41 = vld [vmem:[#allocation225_spill] sm:$0xff] }
 0x44c   : > { %10025 = vst [vmem:[#allocation88_spill] sm:$0xff] %v8309_v50  ;;  %10035 = vst [vmem:[#allocation112_spill] sm:$0xff] %v8329_v44  ;;  %v8352_v36 = vmul.f32 %v8148_v0, %v10044_v13  ;;  %v10049_v18 = vld [vmem:[#allocation216_spill] sm:$0xff]  ;;  %v10052_v50 = vld [vmem:[#allocation219_spill] sm:$0xff]  ;;  %v8366_v0 = vpop.permute.xlu0 %2562 }
 0x44d   : > { %10037 = vst [vmem:[#allocation113_spill] sm:$0xff] %v8333_v26  ;;  %10041 = vst [vmem:[#allocation115_spill] sm:$0xff] %v8341_v21  ;;  %v10047_v26 = vld [vmem:[#allocation214_spill] sm:$0xff]  ;;  %v10048_v21 = vld [vmem:[#allocation215_spill] sm:$0xff]  ;;  %v1882_v13 = vmul.f32 %v10052_v50, %v8158_v57 }
 0x44e   : > { %10043 = vst [vmem:[#allocation116_spill] sm:$0xff] %v8345_v61  ;;  %10045 = vst [vmem:[#allocation117_spill] sm:$0xff] %v8352_v36  ;;  %v1878_v4 = vmul.f32 %v10047_v26, %v8142_v52  ;;  %v1879_v44 = vmul.f32 %v10048_v21, %v8146_v39  ;;  %v1881_v61 = vmul.f32 %v10049_v18, %v1369_v40  ;;  %v10054_v48 = vld [vmem:[#allocation220_spill] sm:$0xff]  ;;  %v10055_v26 = vld [vmem:[#allocation221_spill] sm:$0xff]  ;;  %v8380_v62 = vpop.permute.xlu1 %2790 }
 0x44f   : > { %10053 = vst [vmem:[#allocation118_spill] sm:$0xff] %v8366_v0  ;;  %v8370_v42 = vmul.f32 %v10054_v48, %v8168_v8  ;;  %v1884_v52 = vmul.f32 %v10055_v26, %v8164_v5  ;;  %v10056_v39 = vld [vmem:[#allocation222_spill] sm:$0xff]  ;;  %v10058_v40 = vld [vmem:[#allocation224_spill] sm:$0xff]  ;;  %v1888_v8 = vmul.f32 %v10059_v41, %v8182_v31  ;;  %v10060_v50 = vld [vmem:[#allocation227_spill] sm:$0xff]  ;;  %5132 = vset.pattern.permute.xlu1 %v9924_v10 }
 0x450   : > { %v8376_v21 = vmul.f32 %v10056_v39, %v8176_v47  ;;  %v8384_v57 = vmul.f32 %v10058_v40, %v8186_v56  ;;  %v8390_v18 = vmul.f32 %v10060_v50, %v8190_v14  ;;  %v10062_v5 = vld [vmem:[#allocation244_spill] sm:$0xff]  ;;  %v10063_v48 = vld [vmem:[#allocation246_spill] sm:$0xff]  ;;  %v10064_v26 = vld [vmem:[#allocation247_spill] sm:$0xff] }
 0x451   : > { %v1909_v47 = vmul.f32 %v10062_v5, %v8194_v11  ;;  %v8396_v58 = vmul.f32 %v10063_v48, %v1399_v43  ;;  %v1910_v39 = vmul.f32 %v10064_v26, %v8201_v19  ;;  %v10065_v56 = vld [vmem:[#allocation248_spill] sm:$0xff]  ;;  %v10066_v31 = vld [vmem:[#allocation249_spill] sm:$0xff]  ;;  %v10068_v41 = vld [vmem:[#allocation250_spill] sm:$0xff]  ;;  %v8419_v26 = vpop.permute.xlu0 %2570 }
 0x452   : > { %10061 = vst [vmem:[#allocation139_spill] sm:$0xff] %v8390_v18  ;;  %v8401_v63 = vmul.f32 %v10065_v56, %v1401_v37  ;;  %v8405_v40 = vmul.f32 %v10066_v31, %v8207_v55  ;;  %v10067_v14 = vld [vmem:[#allocation197_spill] sm:$0xff]  ;;  %v8409_v50 = vmul.f32 %v10068_v41, %v1403_v30  ;;  %v10070_v11 = vld [vmem:[#allocation251_spill] sm:$0xff]  ;;  %v10071_v43 = vld [vmem:[#allocation30_spill] sm:$0xff] }
 0x453   : > { %2542 = vperm.xlu1 %5132, %v10067_v14   ;;  %v8413_v5 = vmul.f32 %v10070_v11, %v8214_v1  ;;  %v10072_v48 = vld [vmem:[#allocation273_spill] sm:$0xff]  ;;  %v10073_v19 = vld [vmem:[#allocation16_spill] sm:$0xff]  ;;  %10074 = vst [vmem:[#allocation142_spill] sm:$0xff] %v8419_v26  ;;  %v10078_v14 = vld [vmem:[#allocation254_spill] sm:$0xff] }
 0x454   : > { %10069 = vst [vmem:[#allocation140_spill] sm:$0xff] %v8409_v50  ;;  %v2197_v0 = vmul.f32 %v10072_v48, %v10071_v43  ;;  %v2198_v37 = vmul.f32 %v7798_v46, %v10073_v19  ;;  %v10075_v55 = vld [vmem:[#allocation252_spill] sm:$0xff]  ;;  %v10077_v31 = vld [vmem:[#allocation253_spill] sm:$0xff]  ;;  %v8431_v1 = vmul.f32 %v10078_v14, %v8232_v27  ;;  %v10080_v41 = vld [vmem:[#allocation31_spill] sm:$0xff]  ;;  %v8435_v48 = vpop.permute.xlu1 %2918 }
 0x455   : > { %v8423_v56 = vmul.f32 %v10075_v55, %v8224_v49  ;;  %v8427_v30 = vmul.f32 %v10077_v31, %v8220_v9  ;;  %v10081_v11 = vld [vmem:[#allocation274_spill] sm:$0xff]  ;;  %10082 = vst [vmem:[#allocation145_spill] sm:$0xff] %v8435_v48  ;;  %v10083_v46 = vld [vmem:[#allocation255_spill] sm:$0xff]  ;;  %v10084_v26 = vld [vmem:[#allocation33_spill] sm:$0xff]  ;;  %v2582_v31 = vmul.f32 %v7983_v22, %v8246_v35 }
 0x456   : > { %10079 = vst [vmem:[#allocation144_spill] sm:$0xff] %v8431_v1  ;;  %v2200_v43 = vmul.f32 %v10081_v11, %v10080_v41  ;;  %v8439_v19 = vmul.f32 %v10083_v46, %v8228_v7  ;;  %v10085_v49 = vld [vmem:[#allocation210_spill] sm:$0xff]  ;;  %v10086_v18 = vld [vmem:[#allocation17_spill] sm:$0xff]  ;;  %v10090_v41 = vld [vmem:[#allocation35_spill] sm:$0xff]  ;;  %v2581_v46 = vmul.f32 %v7994_v51, %v8240_v34 }
 0x457   : > { %10076 = vst [vmem:[#allocation143_spill] sm:$0xff] %v8423_v56  ;;  %v2202_v55 = vmul.f32 %v10085_v49, %v10084_v26  ;;  %v10087_v36 = vld [vmem:[#allocation141_spill] sm:$0xff]  ;;  %v10091_v11 = vld [vmem:[#allocation275_spill] sm:$0xff]  ;;  %v10092_v56 = vld [vmem:[#allocation32_spill] sm:$0xff]  ;;  %5133 = vset.pattern.permute.xlu1 %v9920_v33  ;;  %v2261_v26 = vadd.f32 %v2197_v0, %v1877_v23 }
 0x458   : > { %v2199_v9 = vmul.f32 %v10087_v36, %v10086_v18  ;;  %v10088_v27 = vld [vmem:[#allocation257_spill] sm:$0xff]  ;;  %v2204_v1 = vmul.f32 %v10091_v11, %v10090_v41  ;;  %v10093_v48 = vld [vmem:[#allocation276_spill] sm:$0xff]  ;;  %v2262_v36 = vadd.f32 %v2198_v37, %v1878_v4  ;;  %2982 = vperm.xlu1 %5133, %v9967_v38   ;;  %v2264_v41 = vadd.f32 %v2200_v43, %v1880_v45  ;;  %v10097_v11 = vld [vmem:[#allocation34_spill] sm:$0xff]  ;;  %v8471_v23 = vpop.permute.xlu1 %2798 }
 0x459   : > { %v8449_v14 = vmul.f32 %v10088_v27, %v8236_v17  ;;  %v2201_v7 = vmul.f32 %v10093_v48, %v10092_v56  ;;  %v10094_v18 = vld [vmem:[#allocation37_spill] sm:$0xff]  ;;  %v10096_v22 = vld [vmem:[#allocation60_spill] sm:$0xff]  ;;  %v8463_v27 = vpop.permute.xlu0 %2578  ;;  %v10098_v56 = vld [vmem:[#allocation146_spill] sm:$0xff]  ;;  %v8473_v4 = vadd.f32 %v2202_v55, %v1882_v13  ;;  %v2613_v38 = vmul.f32 %v8078_v2, %v8301_v60 }
 0x45a   : > { %v10095_v49 = vld [vmem:[#allocation277_spill] sm:$0xff]  ;;  %v2229_v17 = vmul.f32 %v7895_v28, %v10096_v22  ;;  %v2203_v48 = vmul.f32 %v10098_v56, %v10097_v11  ;;  %v10100_v51 = vld [vmem:[#allocation278_spill] sm:$0xff]  ;;  %v2263_v37 = vadd.f32 %v2199_v9, %v1879_v44  ;;  %v2646_v28 = vadd.f32 %v2582_v31, %v2262_v36  ;;  %v5402_v2 = vld [vmem:[%s9404_s1 + $0x1a8] sm:$0xff] }
 0x45b   : > { %10089 = vst [vmem:[#allocation147_spill] sm:$0xff] %v8449_v14  ;;  %v2206_v35 = vmul.f32 %v10095_v49, %v10094_v18  ;;  %v10099_v14 = vld [vmem:[#allocation39_spill] sm:$0xff]  ;;  %v10101_v50 = vld [vmem:[#allocation61_spill] sm:$0xff]  ;;  %v8477_v18 = vadd.f32 %v2204_v1, %v1884_v52  ;;  %v8479_v45 = vadd.f32 %v2201_v7, %v1881_v61  ;;  %v2645_v43 = vadd.f32 %v2581_v46, %v2261_v26  ;;  %v10105_v1 = vld [vmem:[#allocation280_spill] sm:$0xff] }
 0x45c   : > { %v2208_v34 = vmul.f32 %v10100_v51, %v10099_v14  ;;  %v2230_v0 = vmul.f32 %v7885_v54, %v10101_v50  ;;  %v2614_v14 = vmul.f32 %v8101_v29, %v8305_v3  ;;  %v10102_v54 = vld [vmem:[#allocation36_spill] sm:$0xff]  ;;  %v10103_v50 = vld [vmem:[#allocation279_spill] sm:$0xff]  ;;  %v2293_v13 = vadd.f32 %v2229_v17, %v1909_v47  ;;  %2986 = vperm.xlu1 %5133, %v5402_v2   ;;  %v10104_v52 = vld [vmem:[#allocation41_spill] sm:$0xff] }
 0x45d   : > { %v8483_v49 = vadd.f32 %v2206_v35, %v1886_v15  ;;  %v2205_v22 = vmul.f32 %v10103_v50, %v10102_v54  ;;  %v3030_v44 = vmul.f32 %v8134_v6, %v2646_v28  ;;  %v8491_v60 = vadd.f32 %v2203_v48, %v1883_v24  ;;  %v8499_v15 = vpop.permute.xlu1 %2926  ;;  %v2775_v55 = vpop.permute.xlu0 %2774  ;;  %v10106_v47 = vld [vmem:[#allocation62_spill] sm:$0xff]  ;;  %v10108_v36 = vld [vmem:[#allocation281_spill] sm:$0xff]  ;;  %v10109_v17 = vld [vmem:[#allocation40_spill] sm:$0xff] }
 0x45e   : > { %v8493_v61 = vadd.f32 %v2208_v34, %v1888_v8  ;;  %v8497_v29 = vmul.f32 %v10105_v1, %v10104_v52  ;;  %v2294_v3 = vadd.f32 %v2230_v0, %v1910_v39  ;;  %v2231_v6 = vmul.f32 %v7901_v20, %v10106_v47  ;;  %v5403_v20 = vld [vmem:[%s9404_s1 + $0xb8] sm:$0xff]  ;;  %v10111_v11 = vld [vmem:[#allocation63_spill] sm:$0xff]  ;;  %v10112_v0 = vld [vmem:[#allocation88_spill] sm:$0xff] }
 0x45f   : > { %v2583_v9 = vmul.f32 %v8001_v59, %v8250_v12  ;;  %v2677_v31 = vadd.f32 %v2613_v38, %v2293_v13  ;;  %v3029_v7 = vmul.f32 %v2775_v55, %v2645_v43  ;;  %v2584_v24 = vmul.f32 %v8007_v16, %v8254_v32  ;;  %v10107_v12 = vld [vmem:[#allocation38_spill] sm:$0xff]  ;;  %v10110_v32 = vld [vmem:[#allocation283_spill] sm:$0xff]  ;;  %v10114_v54 = vld [vmem:[#allocation108_spill] sm:$0xff] }
 0x460   : > { %v2678_v8 = vadd.f32 %v2614_v14, %v2294_v3  ;;  %vm2709_vm2 = vcmp.ge.f32.partialorder %v2645_v43, 0.0  ;;  %vm2710_vm3 = vcmp.ge.f32.partialorder %v2646_v28, 0.0  ;;  %v8508_v46 = vadd.f32 %v2205_v22, %v8370_v42  ;;  %2866 = vperm.xlu1 %5133, %v5403_v20   ;;  %v10113_v38 = vld [vmem:[#allocation355_spill] sm:$0xff]  ;;  %v10116_v13 = vld [vmem:[#allocation78_spill] sm:$0xff]  ;;  %v10123_v20 = vld [vmem:[#allocation333_spill] sm:$0xff] }
 0x461   : > { %v3061_v39 = vmul.f32 %v8197_v53, %v2677_v31  ;;  %v3093_v26 = vsel %vm2709_vm2, %v2645_v43, %v3029_v7  ;;  %v3094_v59 = vsel %vm2710_vm3, %v2646_v28, %v3030_v44  ;;  %v2207_v35 = vmul.f32 %v10108_v36, %v10107_v12  ;;  %v8520_v42 = vpop.permute.xlu1 %2806  ;;  %v2907_v48 = vpop.permute.xlu0 %2906  ;;  %v10115_v50 = vld [vmem:[#allocation191_spill] sm:$0xff]  ;;  %v10124_v12 = vld [vmem:[#allocation65_spill] sm:$0xff] }
 0x462   : > { %v2209_v16 = vmul.f32 %v10110_v32, %v10109_v17  ;;  %v2232_v56 = vmul.f32 %v7891_v25, %v10111_v11  ;;  %v3157_v53 = vpack.c.bf16 %v3094_v59, %v3093_v26  ;;  %v2295_v51 = vadd.f32 %v2231_v6, %v8396_v58  ;;  %v10119_v1 = vld [vmem:[#allocation303_spill] sm:$0xff]  ;;  %v10125_v36 = vld [vmem:[#allocation301_spill] sm:$0xff]  ;;  %v10126_v17 = vld [vmem:[#allocation112_spill] sm:$0xff] }
 0x463   : > { %v2647_v34 = vadd.f32 %v2583_v9, %v2263_v37  ;;  %v2615_v43 = vmul.f32 %v10113_v38, %v10112_v0  ;;  %v3062_v28 = vmul.f32 %v2907_v48, %v2678_v8  ;;  %v2648_v14 = vadd.f32 %v2584_v24, %v2264_v41  ;;  %v10118_v41 = vld [vmem:[#allocation64_spill] sm:$0xff]  ;;  %v8539_v55 = vld [vmem:[%s9404_s1 + $0x1c0] sm:$0xff] }
 0x464   : > { %v2616_v22 = vmul.f32 %v10115_v50, %v10114_v54  ;;  %4086 = vmatpush1.bf16.msra.mxu0 %v3157_v53  ;;  %vm2741_vm4 = vcmp.ge.f32.partialorder %v2677_v31, 0.0  ;;  %vm2742_vm5 = vcmp.ge.f32.partialorder %v2678_v8, 0.0  ;;  %5134 = vset.pattern.permute.xlu1 %v9924_v10  ;;  %v10117_v52 = vmov 0   ;;  %v10127_v11 = vld [vmem:[#allocation67_spill] sm:$0xff]  ;;  %v10130_v0 = vld [vmem:[#allocation304_spill] sm:$0xff]  ;;  %v10131_v54 = vld [vmem:[#allocation66_spill] sm:$0xff] }
 0x465   : > { %v3031_v25 = vmul.f32 %v10116_v13, %v2647_v34  ;;  %v3125_v44 = vsel %vm2741_vm4, %v2677_v31, %v3061_v39  ;;  %v3126_v2 = vsel %vm2742_vm5, %v2678_v8, %v3062_v28  ;;  %4087 = vmatprep.subr.bf16.mxu0 %v10117_v52  ;;  %v8531_v58 = vadd.f32 %v2207_v35, %v8376_v21  ;;  %v2787_v47 = vpop.permute.xlu0 %2786  ;;  %v10120_v31 = vld [vmem:[#allocation77_spill] sm:$0xff]  ;;  %v8547_v8 = vpop.permute.xlu1 %2494  ;;  %v10122_v39 = vld [vmem:[#allocation79_spill] sm:$0xff] }
 0x466   : > { %v2296_v37 = vadd.f32 %v2232_v56, %v8405_v40  ;;  %v2233_v3 = vmul.f32 %v10119_v1, %v10118_v41  ;;  %2550 = vperm.xlu1 %5134, %v8539_v55   ;;  %v3173_v6 = vpack.c.bf16 %v3126_v2, %v3125_v44  ;;  %v8543_v9 = vadd.f32 %v2209_v16, %v8384_v57  ;;  %v10121_v21 = vld [vmem:[#allocation329_spill] sm:$0xff]  ;;  %v10128_v56 = vld [vmem:[#allocation302_spill] sm:$0xff] }
 0x467   : > { %v2585_v7 = vmul.f32 %v10121_v21, %v10120_v31  ;;  %v2679_v24 = vadd.f32 %v2615_v43, %v2295_v51  ;;  %v3032_v40 = vmul.f32 %v2787_v47, %v2648_v14  ;;  %v2586_v26 = vmul.f32 %v10123_v20, %v10122_v39  ;;  %v10129_v51 = vld [vmem:[#allocation69_spill] sm:$0xff]  ;;  %v10136_v41 = vld [vmem:[#allocation362_spill] sm:$0xff]  ;;  %v10139_v39 = vld [vmem:[#allocation80_spill] sm:$0xff] }
 0x468   : > { %v2680_v59 = vadd.f32 %v2616_v22, %v2296_v37  ;;  %4375 = vmatpush1.bf16.msra.mxu1 %v3173_v6  ;;  %vm2711_vm6 = vcmp.ge.f32.partialorder %v2647_v34, 0.0  ;;  %vm2712_vm7 = vcmp.ge.f32.partialorder %v2648_v14, 0.0  ;;  %v2234_v35 = vmul.f32 %v10125_v36, %v10124_v12  ;;  %v10132_v50 = vld [vmem:[#allocation305_spill] sm:$0xff]  ;;  %v10135_v37 = vld [vmem:[#allocation110_spill] sm:$0xff] }
 0x469   : > { %v3063_v57 = vmul.f32 %v10126_v17, %v2679_v24  ;;  %v3095_v32 = vsel %vm2711_vm6, %v2647_v34, %v3031_v25  ;;  %v3096_v16 = vsel %vm2712_vm7, %v2648_v14, %v3032_v40  ;;  %4376 = vmatprep.subr.bf16.mxu1 %v10117_v52  ;;  %v2236_v48 = vmul.f32 %v10128_v56, %v10127_v11  ;;  %v2915_v43 = vpop.permute.xlu0 %2914  ;;  %v10133_v14 = vld [vmem:[#allocation109_spill] sm:$0xff]  ;;  %v10138_v47 = vld [vmem:[#allocation306_spill] sm:$0xff] }
 0x46a   : > { %v2297_v53 = vadd.f32 %v2233_v3, %v8401_v63  ;;  %v2238_v38 = vmul.f32 %v10130_v0, %v10129_v51  ;;  %5135 = vset.pattern.permute.xlu1 %v9920_v33  ;;  %v3158_v28 = vpack.c.bf16 %v3096_v16, %v3095_v32  ;;  %v2235_v22 = vmul.f32 %v10132_v50, %v10131_v54  ;;  %v10134_v13 = vld [vmem:[#allocation357_spill] sm:$0xff]  ;;  %v8572_v3 = vpop.permute.xlu1 %2934  ;;  %v10140_v20 = vld [vmem:[#allocation330_spill] sm:$0xff]  ;;  %v10141_v32 = vld [vmem:[#allocation140_spill] sm:$0xff] }
 0x46b   : > { %v2649_v34 = vadd.f32 %v2585_v7, %v8479_v45  ;;  %v2617_v25 = vmul.f32 %v10134_v13, %v10133_v14  ;;  %v3064_v44 = vmul.f32 %v2915_v43, %v2680_v59  ;;  %v5405_v63 = vld [vmem:[%s9404_s1 + $0x1b0] sm:$0xff]  ;;  %v2650_v2 = vadd.f32 %v2586_v26, %v8473_v4  ;;  %v10137_v45 = vld [vmem:[#allocation71_spill] sm:$0xff]  ;;  %v10148_v54 = vld [vmem:[#allocation70_spill] sm:$0xff] }
 0x46c   : > { %2990 = vperm.xlu1 %5135, %v5405_v63   ;;  %v2618_v1 = vmul.f32 %v10136_v41, %v10135_v37  ;;  %4088 = vmatpush1.bf16.msra.mxu0 %v3158_v28  ;;  %vm2743_vm8 = vcmp.ge.f32.partialorder %v2679_v24, 0.0  ;;  %vm2744_vm9 = vcmp.ge.f32.partialorder %v2680_v59, 0.0  ;;  %v2240_v6 = vmul.f32 %v10138_v47, %v10137_v45  ;;  %v10147_v43 = vld [vmem:[#allocation307_spill] sm:$0xff]  ;;  %v10149_v50 = vld [vmem:[#allocation309_spill] sm:$0xff]  ;;  %v10152_v41 = vld [vmem:[#allocation84_spill] sm:$0xff] }
 0x46d   : > { %v3033_v31 = vmul.f32 %v8380_v62, %v2649_v34  ;;  %v3127_v21 = vsel %vm2743_vm8, %v2679_v24, %v3063_v57  ;;  %v3128_v7 = vsel %vm2744_vm9, %v2680_v59, %v3064_v44  ;;  %4089 = vmatprep.subr.bf16.mxu0 %v10117_v52  ;;  %v2298_v40 = vadd.f32 %v2234_v35, %v8413_v5  ;;  %v2795_v12 = vpop.permute.xlu0 %2794  ;;  %v5406_v62 = vld [vmem:[%s9404_s1 + $0x1b8] sm:$0xff]  ;;  %v10142_v24 = vld [vmem:[#allocation81_spill] sm:$0xff]  ;;  %v10143_v5 = vld [vmem:[#allocation335_spill] sm:$0xff] }
 0x46e   : > { %v2300_v4 = vadd.f32 %v2236_v48, %v8427_v30  ;;  %v2587_v26 = vmul.f32 %v10140_v20, %v10139_v39  ;;  %v3174_v36 = vpack.c.bf16 %v3128_v7, %v3127_v21  ;;  %v2302_v17 = vadd.f32 %v2238_v38, %v8439_v19  ;;  %v2939_v35 = vpop.permute.xlu1 %2938  ;;  %v10144_v57 = vld [vmem:[#allocation147_spill] sm:$0xff]  ;;  %v10145_v19 = vld [vmem:[#allocation145_spill] sm:$0xff]  ;;  %v10146_v38 = vld [vmem:[#allocation68_spill] sm:$0xff] }
 0x46f   : > { %v2299_v16 = vadd.f32 %v2235_v22, %v10141_v32  ;;  %v2681_v11 = vadd.f32 %v2617_v25, %v2297_v53  ;;  %v3034_v56 = vmul.f32 %v2795_v12, %v2650_v2  ;;  %v2588_v59 = vmul.f32 %v10143_v5, %v10142_v24  ;;  %v10150_v44 = vld [vmem:[#allocation82_spill] sm:$0xff]  ;;  %v10151_v63 = vld [vmem:[#allocation331_spill] sm:$0xff]  ;;  %v10157_v7 = vld [vmem:[#allocation364_spill] sm:$0xff] }
 0x470   : > { %2994 = vperm.xlu1 %5135, %v5406_v62   ;;  %v2682_v30 = vadd.f32 %v2618_v1, %v2298_v40  ;;  %4377 = vmatpush1.bf16.msra.mxu1 %v3174_v36  ;;  %vm2713_vm10 = vcmp.ge.f32.partialorder %v2649_v34, 0.0  ;;  %vm2714_vm11 = vcmp.ge.f32.partialorder %v2650_v2, 0.0  ;;  %v8590_v48 = vadd.f32 %v2240_v6, %v10144_v57  ;;  %v10153_v1 = vld [vmem:[#allocation332_spill] sm:$0xff]  ;;  %v10158_v20 = vld [vmem:[#allocation115_spill] sm:$0xff]  ;;  %v10163_v57 = vld [vmem:[#allocation337_spill] sm:$0xff] }
 0x471   : > { %v3065_v51 = vmul.f32 %v10145_v19, %v2681_v11  ;;  %v3097_v53 = vsel %vm2713_vm10, %v2649_v34, %v3033_v31  ;;  %v3098_v0 = vsel %vm2714_vm11, %v2650_v2, %v3034_v56  ;;  %4378 = vmatprep.subr.bf16.mxu1 %v10117_v52  ;;  %v2237_v28 = vmul.f32 %v10147_v43, %v10146_v38  ;;  %v2923_v13 = vpop.permute.xlu0 %2922  ;;  %v10154_v34 = vld [vmem:[#allocation111_spill] sm:$0xff]  ;;  %v5407_v31 = vld [vmem:[%s9404_s1 + $0xc8] sm:$0xff]  ;;  %v10164_v43 = vld [vmem:[#allocation114_spill] sm:$0xff] }
 0x472   : > { %v2239_v22 = vmul.f32 %v10149_v50, %v10148_v54  ;;  %v2651_v14 = vadd.f32 %v2587_v26, %v8491_v60  ;;  %v3159_v25 = vpack.c.bf16 %v3098_v0, %v3097_v53  ;;  %v2589_v37 = vmul.f32 %v10151_v63, %v10150_v44  ;;  %v10155_v2 = vld [vmem:[#allocation359_spill] sm:$0xff]  ;;  %v10156_v60 = vld [vmem:[#allocation113_spill] sm:$0xff]  ;;  %v8611_v39 = vpop.permute.xlu1 %2818  ;;  %v10159_v26 = vld [vmem:[#allocation366_spill] sm:$0xff] }
 0x473   : > { %v2591_v45 = vmul.f32 %v10153_v1, %v10152_v41  ;;  %v2619_v47 = vmul.f32 %v10155_v2, %v10154_v34  ;;  %v3066_v6 = vmul.f32 %v2923_v13, %v2682_v30  ;;  %v2652_v21 = vadd.f32 %v2588_v59, %v8477_v18  ;;  %v10160_v62 = vld [vmem:[#allocation143_spill] sm:$0xff]  ;;  %v10161_v18 = vld [vmem:[#allocation144_spill] sm:$0xff] }
 0x474   : > { %2874 = vperm.xlu1 %5135, %v5407_v31   ;;  %v2620_v40 = vmul.f32 %v10157_v7, %v10156_v60  ;;  %4090 = vmatpush1.bf16.msra.mxu0 %v3159_v25  ;;  %vm2745_vm12 = vcmp.ge.f32.partialorder %v2681_v11, 0.0  ;;  %vm2746_vm13 = vcmp.ge.f32.partialorder %v2682_v30, 0.0  ;;  %v2622_v12 = vmul.f32 %v10159_v26, %v10158_v20  ;;  %v10162_v59 = vld [vmem:[#allocation83_spill] sm:$0xff]  ;;  %v10165_v54 = vld [vmem:[#allocation360_spill] sm:$0xff]  ;;  %v10172_v31 = vld [vmem:[#allocation361_spill] sm:$0xff] }
 0x475   : > { %v3035_v36 = vmul.f32 %v8471_v23, %v2651_v14  ;;  %v3129_v32 = vsel %vm2745_vm12, %v2681_v11, %v3065_v51  ;;  %v3130_v56 = vsel %vm2746_vm13, %v2682_v30, %v3066_v6  ;;  %4091 = vmatprep.subr.bf16.mxu0 %v10117_v52  ;;  %v2301_v24 = vadd.f32 %v2237_v28, %v10160_v62  ;;  %v2803_v53 = vpop.permute.xlu0 %2802  ;;  %v8631_v51 = vld [vmem:[%s9404_s1 + $0x1d0] sm:$0xff]  ;;  %v10169_v41 = vld [vmem:[#allocation339_spill] sm:$0xff] }
 0x476   : > { %v2303_v5 = vadd.f32 %v2239_v22, %v10161_v18  ;;  %v2590_v19 = vmul.f32 %v10163_v57, %v10162_v59  ;;  %v3175_v0 = vpack.c.bf16 %v3130_v56, %v3129_v32  ;;  %v2683_v38 = vadd.f32 %v2619_v47, %v2299_v16  ;;  %v8635_v22 = vpop.permute.xlu1 %2502 }
 0x477   : > { %v2621_v50 = vmul.f32 %v10165_v54, %v10164_v43  ;;  %v3036_v13 = vmul.f32 %v2803_v53, %v2652_v21  ;;  %vm2715_vm14 = vcmp.ge.f32.partialorder %v2651_v14, 0.0  ;;  %v2653_v23 = vadd.f32 %v2589_v37, %v8508_v46  ;;  %v10168_v37 = vld [vmem:[#allocation85_spill] sm:$0xff] }
 0x478   : > { %5136 = vset.pattern.permute.xlu1 %v9924_v10  ;;  %v8626_v11 = vadd.f32 %v2591_v45, %v8531_v58  ;;  %v2684_v30 = vadd.f32 %v2620_v40, %v2300_v4  ;;  %4379 = vmatpush1.bf16.msra.mxu1 %v3175_v0  ;;  %vm2716_vm15 = vcmp.ge.f32.partialorder %v2652_v21, 0.0  ;;  %v2686_v16 = vadd.f32 %v2622_v12, %v2302_v17  ;;  %v10166_v58 = vld [vmem:[#allocation86_spill] sm:$0xff]  ;;  %v10170_v17 = vld [vmem:[#allocation116_spill] sm:$0xff]  ;;  %v10174_v12 = vld [vmem:[#allocation341_spill] sm:$0xff] }
 0x479   : > { %2558 = vperm.xlu1 %5136, %v8631_v51   ;;  %v3067_v28 = vmul.f32 %v8499_v15, %v2683_v38  ;;  %v3099_v25 = vsel %vm2715_vm14, %v2651_v14, %v3035_v36  ;;  %v3100_v46 = vsel %vm2716_vm15, %v2652_v21, %v3036_v13  ;;  %4380 = vmatprep.subr.bf16.mxu1 %v10117_v52  ;;  %v10167_v4 = vld [vmem:[#allocation334_spill] sm:$0xff]  ;;  %v2931_v45 = vpop.permute.xlu0 %2930  ;;  %v10171_v14 = vld [vmem:[#allocation117_spill] sm:$0xff]  ;;  %vm2747_vm0 = vcmp.ge.f32.partialorder %v2683_v38, 0.0 }
 0x47a   : > { %v2593_v44 = vmul.f32 %v10167_v4, %v10166_v58  ;;  %v2654_v63 = vadd.f32 %v2590_v19, %v8483_v49  ;;  %v2592_v1 = vmul.f32 %v10169_v41, %v10168_v37  ;;  %v3160_v34 = vpack.c.bf16 %v3100_v46, %v3099_v25  ;;  %v10176_v41 = vld [vmem:[#allocation119_spill] sm:$0xff] }
 0x47b   : > { %v2685_v2 = vadd.f32 %v2621_v50, %v2301_v24  ;;  %v2623_v15 = vmul.f32 %v8547_v8, %v10170_v17  ;;  %v3070_v47 = vmul.f32 %v2939_v35, %v2686_v16  ;;  %v3068_v6 = vmul.f32 %v2931_v45, %v2684_v30  ;;  %v2943_v35 = vpop.permute.xlu1 %2942 }
 0x47c   : > { %v2624_v21 = vmul.f32 %v10172_v31, %v10171_v14  ;;  %v3037_v60 = vmul.f32 %v8520_v42, %v2653_v23  ;;  %4092 = vmatpush1.bf16.msra.mxu0 %v3160_v34  ;;  %vm2748_vm1 = vcmp.ge.f32.partialorder %v2684_v30, 0.0  ;;  %v3131_v7 = vsel %vm2747_vm0, %v2683_v38, %v3067_v28  ;;  %v10173_v42 = vld [vmem:[#allocation87_spill] sm:$0xff]  ;;  %v10178_v34 = vld [vmem:[#allocation185_spill] sm:$0xff]  ;;  %v10182_v31 = vld [vmem:[#allocation120_spill] sm:$0xff] }
 0x47d   : > { %5137 = vset.pattern.permute.xlu1 %v9920_v33  ;;  %v3069_v49 = vmul.f32 %v8572_v3, %v2685_v2  ;;  %v3132_v40 = vsel %vm2748_vm1, %v2684_v30, %v3068_v6  ;;  %4093 = vmatprep.subr.bf16.mxu0 %v10117_v52  ;;  %vm2717_vm2 = vcmp.ge.f32.partialorder %v2653_v23, 0.0  ;;  %v2656_v8 = vadd.f32 %v2592_v1, %v8493_v61  ;;  %v2811_v20 = vpop.permute.xlu0 %2810  ;;  %v5409_v61 = vld [vmem:[%s9404_s1 + $0x1c8] sm:$0xff] }
 0x47e   : > { %2998 = vperm.xlu1 %5137, %v8539_v55   ;;  %v3176_v26 = vpack.c.bf16 %v3132_v40, %v3131_v7  ;;  %vm2718_vm3 = vcmp.ge.f32.partialorder %v2654_v63, 0.0  ;;  %vm2750_vm4 = vcmp.ge.f32.partialorder %v2686_v16, 0.0  ;;  %v2594_v36 = vmul.f32 %v10174_v12, %v10173_v42  ;;  %v10177_v1 = vld [vmem:[#allocation368_spill] sm:$0xff]  ;;  %v10184_v7 = vld [vmem:[#allocation73_spill] sm:$0xff]  ;;  %v10187_v42 = vld [vmem:[#allocation259_spill] sm:$0xff] }
 0x47f   : > { %v2687_v32 = vadd.f32 %v2623_v15, %v2303_v5  ;;  %v3038_v56 = vmul.f32 %v2811_v20, %v2654_v63  ;;  %v3134_v3 = vsel %vm2750_vm4, %v2686_v16, %v3070_v47  ;;  %v2688_v55 = vadd.f32 %v2624_v21, %v8590_v48  ;;  %v10175_v5 = vld [vmem:[#allocation139_spill] sm:$0xff]  ;;  %v2947_v53 = vpop.permute.xlu1 %2946  ;;  %v10180_v15 = vld [vmem:[#allocation72_spill] sm:$0xff] }
 0x480   : > { %v3040_v62 = vmul.f32 %v8611_v39, %v2656_v8  ;;  %4381 = vmatpush1.bf16.msra.mxu1 %v3176_v26  ;;  %v3101_v24 = vsel %vm2717_vm2, %v2653_v23, %v3037_v60  ;;  %vm2749_vm5 = vcmp.ge.f32.partialorder %v2685_v2, 0.0  ;;  %v2274_v19 = vadd.f32 %v8497_v29, %v10175_v5  ;;  %v5410_v29 = vld [vmem:[%s9404_s1 + $0xd8] sm:$0xff]  ;;  %v10181_v47 = vld [vmem:[#allocation311_spill] sm:$0xff]  ;;  %v10185_v40 = vld [vmem:[#allocation308_spill] sm:$0xff] }
 0x481   : > { %v3071_v18 = vmul.f32 %v2943_v35, %v2687_v32  ;;  %4382 = vmatprep.subr.bf16.mxu1 %v10117_v52  ;;  %v3102_v59 = vsel %vm2718_vm3, %v2654_v63, %v3038_v56  ;;  %v3133_v57 = vsel %vm2749_vm5, %v2685_v2, %v3069_v49  ;;  %v2815_v48 = vpop.permute.xlu0 %2814  ;;  %vm2719_vm6 = vcmp.ge.f32.partialorder %v8626_v11, 0.0  ;;  %v8677_v63 = vld [vmem:[%s9404_s1 + $0x1e0] sm:$0xff]  ;;  %v10179_v2 = vld [vmem:[#allocation194_spill] sm:$0xff]  ;;  %v10186_v35 = vld [vmem:[#allocation256_spill] sm:$0xff] }
 0x482   : > { %3002 = vperm.xlu1 %5137, %v5409_v61   ;;  %v3161_v0 = vpack.c.bf16 %v3102_v59, %v3101_v24  ;;  %v3177_v39 = vpack.c.bf16 %v3134_v3, %v3133_v57  ;;  %v2657_v38 = vadd.f32 %v2593_v44, %v8543_v9  ;;  %v3072_v43 = vmul.f32 %v2947_v53, %v2688_v55  ;;  %v10183_v60 = vld [vmem:[#allocation186_spill] sm:$0xff]  ;;  %v10189_v56 = vld [vmem:[#allocation89_spill] sm:$0xff]  ;;  %v10194_v5 = vld [vmem:[#allocation156_spill] sm:$0xff] }
 0x483   : > { %v3039_v54 = vmul.f32 %v2815_v48, %v8626_v11  ;;  %vm2720_vm7 = vcmp.ge.f32.partialorder %v2656_v8, 0.0  ;;  %v2658_v50 = vadd.f32 %v2594_v36, %v2274_v19  ;;  %vm2751_vm8 = vcmp.ge.f32.partialorder %v2687_v32, 0.0  ;;  %v2827_v16 = vpop.permute.xlu1 %2826  ;;  %v10188_v36 = vld [vmem:[#allocation363_spill] sm:$0xff]  ;;  %v10191_v24 = vld [vmem:[#allocation42_spill] sm:$0xff] }
 0x484   : > { %4094 = vmatpush1.bf16.msra.mxu0 %v3161_v0  ;;  %4383 = vmatpush1.bf16.msra.mxu1 %v3177_v39  ;;  %v3104_v13 = vsel %vm2720_vm7, %v2656_v8, %v3040_v62  ;;  %vm2752_vm9 = vcmp.ge.f32.partialorder %v2688_v55, 0.0  ;;  %v3135_v9 = vsel %vm2751_vm8, %v2687_v32, %v3071_v18  ;;  %vm2721_vm10 = vcmp.ge.f32.partialorder %v2657_v38, 0.0  ;;  %v10192_v18 = vld [vmem:[#allocation285_spill] sm:$0xff]  ;;  %v10195_v53 = vld [vmem:[#allocation43_spill] sm:$0xff]  ;;  %v10196_v48 = vld [vmem:[#allocation282_spill] sm:$0xff] }
 0x485   : > { %4095 = vmatprep.subr.bf16.mxu0 %v10117_v52  ;;  %v3103_v23 = vsel %vm2719_vm6, %v8626_v11, %v3039_v54  ;;  %v3136_v30 = vsel %vm2752_vm9, %v2688_v55, %v3072_v43  ;;  %v2823_v28 = vpop.permute.xlu0 %2822  ;;  %4384 = vmatprep.subr.bf16.mxu1 %v10117_v52  ;;  %v3042_v58 = vmul.f32 %v2827_v16, %v2658_v50  ;;  %vm2722_vm11 = vcmp.ge.f32.partialorder %v2658_v50, 0.0  ;;  %v10190_v55 = vld [vmem:[#allocation155_spill] sm:$0xff]  ;;  %v10197_v43 = vld [vmem:[#allocation226_spill] sm:$0xff] }
 0x486   : > { %2882 = vperm.xlu1 %5137, %v5410_v29   ;;  %v3162_v25 = vpack.c.bf16 %v3104_v13, %v3103_v23  ;;  %v3178_v46 = vpack.c.bf16 %v3136_v30, %v3135_v9  ;;  %v3041_v4 = vmul.f32 %v2823_v28, %v2657_v38  ;;  %v1409_v45 = vmul.f32 %v10177_v1, %v10176_v41  ;;  %v10199_v23 = vld [vmem:[#allocation229_spill] sm:$0xff]  ;;  %v10200_v30 = vld [vmem:[#allocation343_spill] sm:$0xff] }
 0x487   : > { %v3106_v11 = vsel %vm2722_vm11, %v2658_v50, %v3042_v58  ;;  %v1601_v17 = vmul.f32 %v10179_v2, %v10178_v34  ;;  %v2241_v6 = vmul.f32 %v10181_v47, %v10180_v15  ;;  %v8687_v14 = vpop.permute.xlu1 %2510  ;;  %v1410_v21 = vmul.f32 %v10177_v1, %v10182_v31  ;;  %v10198_v50 = vld [vmem:[#allocation336_spill] sm:$0xff] }
 0x488   : > { %4096 = vmatpush1.bf16.msra.mxu0 %v3162_v25  ;;  %4385 = vmatpush1.bf16.msra.mxu1 %v3178_v46  ;;  %v3105_v44 = vsel %vm2721_vm10, %v2657_v38, %v3041_v4  ;;  %v1602_v49 = vmul.f32 %v10179_v2, %v10183_v60  ;;  %v2242_v8 = vmul.f32 %v10185_v40, %v10184_v7  ;;  %v5412_v46 = vld [vmem:[%s9404_s1 + $0x1d8] sm:$0xff]  ;;  %v8724_v34 = vld [vmem:[%s9404_s1 + $0xe8] sm:$0xff]  ;;  %v10201_v40 = vld [vmem:[#allocation121_spill] sm:$0xff] }
 0x489   : > { %4097 = vmatprep.subr.bf16.mxu0 %v10117_v52  ;;  %v3163_v37 = vpack.c.bf16 %v3106_v11, %v3105_v44  ;;  %4386 = vmatprep.subr.bf16.mxu1 %v10117_v52  ;;  %v1921_v20 = vmul.f32 %v10186_v35, %v1409_v45  ;;  %v2625_v26 = vmul.f32 %v8635_v22, %v1601_v17  ;;  %v10193_v22 = vld [vmem:[#allocation90_spill] sm:$0xff]  ;;  %v2831_v4 = vpop.permute.xlu0 %2830  ;;  %v10202_v35 = vld [vmem:[#allocation187_spill] sm:$0xff] }
 0x48a   : > { %5138 = vset.pattern.permute.xlu1 %v9924_v10  ;;  %v1922_v12 = vmul.f32 %v10187_v42, %v1410_v21  ;;  %v2626_v32 = vmul.f32 %v10188_v36, %v1602_v49  ;;  %v1379_v3 = vmul.f32 %v10177_v1, %v10189_v56  ;;  %v1571_v62 = vmul.f32 %v10179_v2, %v10190_v55  ;;  %v5414_v49 = vld [vmem:[%s9404_s1 + $0x1f0] sm:$0xff]  ;;  %v10205_v36 = vld [vmem:[#allocation122_spill] sm:$0xff]  ;;  %v10206_v56 = vld [vmem:[#allocation188_spill] sm:$0xff] }
 0x48b   : > { %2566 = vperm.xlu1 %5138, %v8677_v63   ;;  %v2211_v61 = vmul.f32 %v10192_v18, %v10191_v24  ;;  %v2305_v59 = vadd.f32 %v2241_v6, %v1921_v20  ;;  %v1380_v57 = vmul.f32 %v10177_v1, %v10193_v22  ;;  %v1572_v19 = vmul.f32 %v10179_v2, %v10194_v5  ;;  %v2951_v38 = vpop.permute.xlu1 %2950  ;;  %v10204_v42 = vld [vmem:[#allocation313_spill] sm:$0xff]  ;;  %v10207_v55 = vld [vmem:[#allocation74_spill] sm:$0xff] }
 0x48c   : > { %4098 = vmatpush1.bf16.msra.mxu0 %v3163_v37  ;;  %v2212_v0 = vmul.f32 %v10196_v48, %v10195_v53  ;;  %v2306_v39 = vadd.f32 %v2242_v8, %v1922_v12  ;;  %v1891_v54 = vmul.f32 %v10197_v43, %v1379_v3  ;;  %v2595_v13 = vmul.f32 %v10198_v50, %v1571_v62  ;;  %v10208_v62 = vld [vmem:[#allocation310_spill] sm:$0xff]  ;;  %v10210_v22 = vld [vmem:[#allocation261_spill] sm:$0xff]  ;;  %v10212_v53 = vld [vmem:[#allocation91_spill] sm:$0xff] }
 0x48d   : > { %4099 = vmatprep.subr.bf16.mxu0 %v10117_v52  ;;  %v2689_v29 = vadd.f32 %v2625_v26, %v2305_v59  ;;  %v1892_v9 = vmul.f32 %v10199_v23, %v1380_v57  ;;  %v1411_v8 = vmul.f32 %v10177_v1, %v10201_v40  ;;  %v1603_v20 = vmul.f32 %v10179_v2, %v10202_v35  ;;  %v10203_v26 = vld [vmem:[#allocation18_spill] sm:$0xff]  ;;  %v10211_v5 = vld [vmem:[#allocation365_spill] sm:$0xff]  ;;  %v10215_v43 = vld [vmem:[#allocation287_spill] sm:$0xff] }
 0x48e   : > { %v2690_v16 = vadd.f32 %v2626_v32, %v2306_v39  ;;  %v2275_v28 = vadd.f32 %v2211_v61, %v1891_v54  ;;  %v2243_v12 = vmul.f32 %v10204_v42, %v10203_v26  ;;  %v1412_v32 = vmul.f32 %v10177_v1, %v10205_v36  ;;  %v10209_v18 = vld [vmem:[#allocation258_spill] sm:$0xff] }
 0x48f   : > { %5139 = vset.pattern.permute.xlu1 %v9920_v33  ;;  %v3073_v25 = vmul.f32 %v2951_v38, %v2689_v29  ;;  %v2276_v58 = vadd.f32 %v2212_v0, %v1892_v9  ;;  %v2955_v44 = vpop.permute.xlu1 %2954  ;;  %vm2753_vm12 = vcmp.ge.f32.partialorder %v2689_v29, 0.0  ;;  %v1604_v3 = vmul.f32 %v10179_v2, %v10206_v56  ;;  %v10213_v0 = vld [vmem:[#allocation157_spill] sm:$0xff]  ;;  %v10214_v38 = vld [vmem:[#allocation44_spill] sm:$0xff] }
 0x490   : > { %3006 = vperm.xlu1 %5139, %v8631_v51   ;;  %v2596_v51 = vmul.f32 %v10200_v30, %v1572_v19  ;;  %v2659_v11 = vadd.f32 %v2595_v13, %v2275_v28  ;;  %v3074_v37 = vmul.f32 %v2955_v44, %v2690_v16  ;;  %vm2754_vm13 = vcmp.ge.f32.partialorder %v2690_v16, 0.0  ;;  %v10218_v9 = vld [vmem:[#allocation45_spill] sm:$0xff]  ;;  %v10220_v28 = vld [vmem:[#allocation228_spill] sm:$0xff]  ;;  %v10222_v44 = vld [vmem:[#allocation231_spill] sm:$0xff] }
 0x491   : > { %v3137_v17 = vsel %vm2753_vm12, %v2689_v29, %v3073_v25  ;;  %v2244_v24 = vmul.f32 %v10208_v62, %v10207_v55  ;;  %v1923_v61 = vmul.f32 %v10209_v18, %v1411_v8  ;;  %v2627_v59 = vmul.f32 %v8687_v14, %v1603_v20  ;;  %v10216_v14 = vld [vmem:[#allocation92_spill] sm:$0xff]  ;;  %v10217_v29 = vld [vmem:[#allocation158_spill] sm:$0xff]  ;;  %v10224_v55 = vld [vmem:[#allocation123_spill] sm:$0xff] }
 0x492   : > { %v2660_v41 = vadd.f32 %v2596_v51, %v2276_v58  ;;  %v3043_v45 = vmul.f32 %v2831_v4, %v2659_v11  ;;  %v3138_v15 = vsel %vm2754_vm13, %v2690_v16, %v3074_v37  ;;  %vm2723_vm14 = vcmp.ge.f32.partialorder %v2659_v11, 0.0  ;;  %v10223_v37 = vld [vmem:[#allocation345_spill] sm:$0xff]  ;;  %v8775_v8 = vld [vmem:[%s9404_s1 + $0xf8] sm:$0xff] }
 0x493   : > { %v2835_v47 = vpop.permute.xlu1 %2834  ;;  %v3179_v6 = vpack.c.bf16 %v3138_v15, %v3137_v17  ;;  %v1924_v57 = vmul.f32 %v10210_v22, %v1412_v32  ;;  %v2628_v19 = vmul.f32 %v10211_v5, %v1604_v3  ;;  %v1381_v48 = vmul.f32 %v10177_v1, %v10212_v53  ;;  %v5415_v15 = vld [vmem:[%s9404_s1 + $0x1e8] sm:$0xff]  ;;  %v5147_v3 = vld [vmem:[#allocation5 + $0x4] ss:$16 sps:$4 sm:$0xff]  }
 0x494   : > { %3010 = vperm.xlu1 %5139, %v5412_v46   ;;  %v3044_v31 = vmul.f32 %v2835_v47, %v2660_v41  ;;  %vm2724_vm15 = vcmp.ge.f32.partialorder %v2660_v41, 0.0  ;;  %v3107_v21 = vsel %vm2723_vm14, %v2659_v11, %v3043_v45  ;;  %v1573_v39 = vmul.f32 %v10179_v2, %v10213_v0  ;;  %v10221_v46 = vld [vmem:[#allocation338_spill] sm:$0xff]  ;;  %v10228_v5 = vld [vmem:[#allocation124_spill] sm:$0xff]  ;;  %4117 = vmatprep.mubr.bf16.mxu0 %v5147_v3 }
 0x495   : > { %4387 = vmatpush1.bf16.msra.mxu1 %v3179_v6  ;;  %v2213_v54 = vmul.f32 %v10215_v43, %v10214_v38  ;;  %v2307_v50 = vadd.f32 %v2243_v12, %v1923_v61  ;;  %v1382_v13 = vmul.f32 %v10177_v1, %v10216_v14  ;;  %v1574_v23 = vmul.f32 %v10179_v2, %v10217_v29  ;;  %v2839_v6 = vpop.permute.xlu0 %2838  ;;  %v10226_v61 = vld [vmem:[#allocation19_spill] sm:$0xff]  ;;  %v10231_v0 = vld [vmem:[#allocation312_spill] sm:$0xff] }
 0x496   : > { %v3108_v60 = vsel %vm2724_vm15, %v2660_v41, %v3044_v31  ;;  %4388 = vmatprep.subr.bf16.mxu1 %v10117_v52  ;;  %v2308_v51 = vadd.f32 %v2244_v24, %v1924_v57  ;;  %v1893_v25 = vmul.f32 %v10220_v28, %v1381_v48  ;;  %v2597_v58 = vmul.f32 %v10221_v46, %v1573_v39  ;;  %v10225_v24 = vld [vmem:[#allocation189_spill] sm:$0xff]  ;;  %v10230_v48 = vld [vmem:[#allocation20_spill] sm:$0xff] }
 0x497   : > { %v3164_v7 = vpack.c.bf16 %v3108_v60, %v3107_v21  ;;  %v2691_v4 = vadd.f32 %v2627_v59, %v2307_v50  ;;  %v1894_v11 = vmul.f32 %v10222_v44, %v1382_v13  ;;  %v1413_v62 = vmul.f32 %v10177_v1, %v10224_v55  ;;  %v10227_v59 = vld [vmem:[#allocation315_spill] sm:$0xff]  ;;  %v10232_v38 = vld [vmem:[#allocation260_spill] sm:$0xff]  ;;  %v10238_v28 = vld [vmem:[#allocation289_spill] sm:$0xff] }
 0x498   : > { %2890 = vperm.xlu1 %5139, %v8724_v34   ;;  %v2692_v41 = vadd.f32 %v2628_v19, %v2308_v51  ;;  %v2277_v45 = vadd.f32 %v2213_v54, %v1893_v25  ;;  %v1605_v18 = vmul.f32 %v10179_v2, %v10225_v24  ;;  %v2245_v22 = vmul.f32 %v10227_v59, %v10226_v61  ;;  %v10233_v50 = vld [vmem:[#allocation263_spill] sm:$0xff] }
 0x499   : > { %4100 = vmatpush1.bf16.msra.mxu0 %v3164_v7  ;;  %vm2755_vm0 = vcmp.ge.f32.partialorder %v2691_v4, 0.0  ;;  %v1414_v19 = vmul.f32 %v10177_v1, %v10228_v5  ;;  %v2246_v39 = vmul.f32 %v10231_v0, %v10230_v48  ;;  %v1925_v43 = vmul.f32 %v10232_v38, %v1413_v62  ;;  %v10234_v13 = vld [vmem:[#allocation367_spill] sm:$0xff]  ;;  %v10248_v48 = vld [vmem:[#allocation192_spill] sm:$0xff]  ;;  %v10250_v38 = vld [vmem:[#allocation317_spill] sm:$0xff] }
 0x49a   : > { %4101 = vmatprep.subr.bf16.mxu0 %v10117_v52  ;;  %v2661_v21 = vadd.f32 %v2597_v58, %v2277_v45  ;;  %vm2756_vm1 = vcmp.ge.f32.partialorder %v2692_v41, 0.0  ;;  %v10239_v58 = vld [vmem:[#allocation94_spill] sm:$0xff]  ;;  %v1607_v0 = vmul.f32 %v10179_v2, %v10248_v48 }
 0x49b   : > { %v1926_v14 = vmul.f32 %v10233_v50, %v1414_v19  ;;  %v2309_v46 = vadd.f32 %v2245_v22, %v1925_v43  ;;  %v10251_v50 = vld [vmem:[#allocation126_spill] sm:$0xff] }
 0x49c   : > { %5140 = vset.pattern.permute.xlu1 %v9924_v10  ;;  %v8738_v10 = vpop.permute.xlu1 %2518  ;;  %v3045_v40 = vmul.f32 %v2839_v6, %v2661_v21  ;;  %vm2725_vm2 = vcmp.ge.f32.partialorder %v2661_v21, 0.0 }
 0x49d   : > { %2574 = vperm.xlu1 %5140, %v5414_v49   ;;  %v2629_v54 = vmul.f32 %v8738_v10, %v1605_v18  ;;  %v1384_v10 = vmul.f32 %v10177_v1, %v10239_v58 }
 0x49e   : > { %v3109_v36 = vsel %vm2725_vm2, %v2661_v21, %v3045_v40  ;;  %v10245_v21 = vld [vmem:[#allocation233_spill] sm:$0xff] }
 0x4a0   : > { %v2959_v16 = vpop.permute.xlu1 %2958 }
 0x4a1   : > { %5142 = vset.pattern.permute.xlu1 %v9920_v33  ;;  %v10219_v33 = vld [vmem:[#allocation284_spill] sm:$0xff]  ;;  %v3075_v17 = vmul.f32 %v2959_v16, %v2691_v4  ;;  %v10237_v16 = vld [vmem:[#allocation46_spill] sm:$0xff] }
 0x4a2   : > { %3014 = vperm.xlu1 %5142, %v8677_v63   ;;  %v2214_v30 = vmul.f32 %v10219_v33, %v10218_v9  ;;  %v2598_v63 = vmul.f32 %v10223_v37, %v1574_v23  ;;  %v5150_v23 = vld [vmem:[#allocation5 + $0xc] ss:$16 sps:$4 sm:$0xff]   ;;  %v10235_v9 = vld [vmem:[#allocation93_spill] sm:$0xff]  ;;  %v2215_v25 = vmul.f32 %v10238_v28, %v10237_v16 }
 0x4a3   : > { %v3139_v35 = vsel %vm2755_vm0, %v2691_v4, %v3075_v17  ;;  %v1383_v33 = vmul.f32 %v10177_v1, %v10235_v9  ;;  %v10240_v4 = vld [vmem:[#allocation160_spill] sm:$0xff]  ;;  %v10242_v37 = vld [vmem:[#allocation286_spill] sm:$0xff]  ;;  %4406 = vmatprep.mubr.bf16.mxu1 %v5150_v23  ;;  %v10256_v28 = vld [vmem:[#allocation265_spill] sm:$0xff] }
 0x4a4   : > { %v2278_v47 = vadd.f32 %v2214_v30, %v1894_v11  ;;  %v2963_v31 = vpop.permute.xlu1 %2962  ;;  %v10236_v30 = vld [vmem:[#allocation159_spill] sm:$0xff]  ;;  %v1576_v44 = vmul.f32 %v10179_v2, %v10240_v4  ;;  %v10243_v17 = vld [vmem:[#allocation230_spill] sm:$0xff] }
 0x4a5   : > { %v3076_v60 = vmul.f32 %v2963_v31, %v2692_v41  ;;  %v1575_v51 = vmul.f32 %v10179_v2, %v10236_v30  ;;  %v10241_v11 = vld [vmem:[#allocation47_spill] sm:$0xff]  ;;  %v2693_v31 = vadd.f32 %v2629_v54, %v2309_v46  ;;  %v10253_v23 = vld [vmem:[#allocation22_spill] sm:$0xff]  ;;  %v10257_v46 = vld [vmem:[#allocation369_spill] sm:$0xff] }
 0x4a6   : > { %3018 = vperm.xlu1 %5142, %v5415_v15   ;;  %v2662_v7 = vadd.f32 %v2598_v63, %v2278_v47  ;;  %v2216_v63 = vmul.f32 %v10242_v37, %v10241_v11  ;;  %v1895_v15 = vmul.f32 %v10243_v17, %v1383_v33  ;;  %v10244_v47 = vld [vmem:[#allocation340_spill] sm:$0xff]  ;;  %v10254_v9 = vld [vmem:[#allocation314_spill] sm:$0xff] }
 0x4a7   : > { %v3140_v20 = vsel %vm2756_vm1, %v2692_v41, %v3076_v60  ;;  %v2310_v41 = vadd.f32 %v2246_v39, %v1926_v14  ;;  %v2599_v6 = vmul.f32 %v10244_v47, %v1575_v51  ;;  %v1896_v60 = vmul.f32 %v10245_v21, %v1384_v10  ;;  %v10249_v39 = vld [vmem:[#allocation21_spill] sm:$0xff]  ;;  %v10255_v30 = vld [vmem:[#allocation262_spill] sm:$0xff]  ;;  %v10258_v10 = vld [vmem:[#allocation95_spill] sm:$0xff] }
 0x4a8   : > { %v2843_v26 = vpop.permute.xlu1 %2842  ;;  %v3180_v42 = vpack.c.bf16 %v3140_v20, %v3139_v35  ;;  %vm2726_vm3 = vcmp.ge.f32.partialorder %v2662_v7, 0.0  ;;  %v2279_v20 = vadd.f32 %v2215_v25, %v1895_v15  ;;  %vm2757_vm4 = vcmp.ge.f32.partialorder %v2693_v31, 0.0  ;;  %v10260_v37 = vld [vmem:[#allocation48_spill] sm:$0xff] }
 0x4a9   : > { %v3046_v12 = vmul.f32 %v2843_v26, %v2662_v7  ;;  %v2247_v43 = vmul.f32 %v10250_v38, %v10249_v39  ;;  %v1416_v14 = vmul.f32 %v10177_v1, %v10251_v50  ;;  %v2248_v33 = vmul.f32 %v10254_v9, %v10253_v23  ;;  %v10262_v17 = vld [vmem:[#allocation96_spill] sm:$0xff]  ;;  %v10272_v9 = vld [vmem:[#allocation23_spill] sm:$0xff] }
 0x4aa   : > { %2898 = vperm.xlu1 %5142, %v8775_v8   ;;  %4389 = vmatpush1.bf16.msra.mxu1 %v3180_v42  ;;  %v2280_v42 = vadd.f32 %v2216_v63, %v1896_v60  ;;  %v1385_v4 = vmul.f32 %v10177_v1, %v10258_v10  ;;  %v10261_v63 = vld [vmem:[#allocation291_spill] sm:$0xff]  ;;  %v1386_v15 = vmul.f32 %v10177_v1, %v10262_v17  ;;  %v10277_v10 = vld [vmem:[#allocation316_spill] sm:$0xff] }
 0x4ab   : > { %v3110_v32 = vsel %vm2726_vm3, %v2662_v7, %v3046_v12  ;;  %4390 = vmatprep.subr.bf16.mxu1 %v10117_v52  ;;  %v10246_v7 = vld [vmem:[#allocation347_spill] sm:$0xff]  ;;  %v2847_v12 = vpop.permute.xlu0 %2846  ;;  %v1928_v25 = vmul.f32 %v10256_v28, %v1416_v14 }
 0x4ac   : > { %v3165_v56 = vpack.c.bf16 %v3110_v32, %v3109_v36  ;;  %v2527_v57 = vpop.permute.xlu1 %2526  ;;  %v2600_v40 = vmul.f32 %v10246_v7, %v1576_v44  ;;  %v2663_v32 = vadd.f32 %v2599_v6, %v2279_v20  ;;  %v10259_v44 = vld [vmem:[#allocation161_spill] sm:$0xff]  ;;  %v10267_v20 = vld [vmem:[#allocation342_spill] sm:$0xff]  ;;  %v10270_v14 = vld [vmem:[#allocation127_spill] sm:$0xff] }
 0x4ad   : > { %v2631_v16 = vmul.f32 %v2527_v57, %v1607_v0  ;;  %v1577_v11 = vmul.f32 %v10179_v2, %v10259_v44  ;;  %v10263_v57 = vld [vmem:[#allocation162_spill] sm:$0xff]  ;;  %v10264_v6 = vld [vmem:[#allocation49_spill] sm:$0xff]  ;;  %v2312_v60 = vadd.f32 %v2248_v33, %v1928_v25  ;;  %v10273_v33 = vld [vmem:[#allocation319_spill] sm:$0xff] }
 0x4ae   : > { %3022 = vperm.xlu1 %5142, %v5414_v49   ;;  %v10229_v49 = vld [vmem:[#allocation190_spill] sm:$0xff]  ;;  %4102 = vmatpush1.bf16.msra.mxu0 %v3165_v56  ;;  %v2664_v3 = vadd.f32 %v2600_v40, %v2280_v42  ;;  %v3047_v55 = vmul.f32 %v2847_v12, %v2663_v32  ;;  %vm2727_vm6 = vcmp.ge.f32.partialorder %v2663_v32, 0.0  ;;  %v1578_v47 = vmul.f32 %v10179_v2, %v10263_v57  ;;  %v10266_v40 = vld [vmem:[#allocation232_spill] sm:$0xff]  ;;  %v10268_v12 = vld [vmem:[#allocation235_spill] sm:$0xff] }
 0x4af   : > { %v1606_v53 = vmul.f32 %v10179_v2, %v10229_v49  ;;  %4103 = vmatprep.subr.bf16.mxu0 %v10117_v52  ;;  %v10247_v49 = vld [vmem:[#allocation125_spill] sm:$0xff]  ;;  %v10275_v25 = vld [vmem:[#allocation196_spill] sm:$0xff] }
 0x4b0   : > { %v2967_v45 = vpop.permute.xlu1 %2966  ;;  %vm2728_vm7 = vcmp.ge.f32.partialorder %v2664_v3, 0.0  ;;  %v3111_v22 = vsel %vm2727_vm6, %v2663_v32, %v3047_v55  ;;  %v10269_v32 = vld [vmem:[#allocation349_spill] sm:$0xff]  ;;  %v10278_v44 = vld [vmem:[#allocation264_spill] sm:$0xff] }
 0x4b1   : > { %v2630_v29 = vmul.f32 %v10234_v13, %v1606_v53  ;;  %v3077_v26 = vmul.f32 %v2967_v45, %v2693_v31  ;;  %v1415_v53 = vmul.f32 %v10177_v1, %v10247_v49  ;;  %v10252_v13 = vld [vmem:[#allocation193_spill] sm:$0xff] }
 0x4b3   : > { %v2694_v35 = vadd.f32 %v2630_v29, %v2310_v41  ;;  %v3141_v62 = vsel %vm2757_vm4, %v2693_v31, %v3077_v26  ;;  %v1608_v29 = vmul.f32 %v10179_v2, %v10252_v13  ;;  %v1927_v51 = vmul.f32 %v10255_v30, %v1415_v53  ;;  %v10265_v31 = vld [vmem:[#allocation288_spill] sm:$0xff] }
 0x4b4   : > { %v2971_v36 = vpop.permute.xlu1 %2970  ;;  %v2217_v41 = vmul.f32 %v10261_v63, %v10260_v37  ;;  %v2218_v21 = vmul.f32 %v10265_v31, %v10264_v6  ;;  %v2601_v26 = vmul.f32 %v10267_v20, %v1577_v11  ;;  %v1417_v13 = vmul.f32 %v10177_v1, %v10270_v14  ;;  %v10279_v63 = vld [vmem:[#allocation267_spill] sm:$0xff]  ;;  %v10283_v31 = vld [vmem:[#allocation50_spill] sm:$0xff] }
 0x4b5   : > { %v3078_v56 = vmul.f32 %v2971_v36, %v2694_v35  ;;  %vm2758_vm5 = vcmp.ge.f32.partialorder %v2694_v35, 0.0  ;;  %v2632_v58 = vmul.f32 %v10257_v46, %v1608_v29  ;;  %v2311_v45 = vadd.f32 %v2247_v43, %v1927_v51  ;;  %v10271_v29 = vld [vmem:[#allocation195_spill] sm:$0xff] }
 0x4b6   : > { %v1898_v36 = vmul.f32 %v10268_v12, %v1386_v15  ;;  %v1609_v23 = vmul.f32 %v10179_v2, %v10271_v29  ;;  %v2249_v30 = vmul.f32 %v10273_v33, %v10272_v9  ;;  %v1610_v46 = vmul.f32 %v10179_v2, %v10275_v25  ;;  %v10281_v15 = vld [vmem:[#allocation97_spill] sm:$0xff] }
 0x4b7   : > { %v3142_v24 = vsel %vm2758_vm5, %v2694_v35, %v3078_v56  ;;  %v1897_v35 = vmul.f32 %v10266_v40, %v1385_v4  ;;  %v2695_v42 = vadd.f32 %v2631_v16, %v2311_v45  ;;  %v2602_v56 = vmul.f32 %v10269_v32, %v1578_v47  ;;  %v10274_v16 = vld [vmem:[#allocation128_spill] sm:$0xff]  ;;  %v10280_v45 = vld [vmem:[#allocation75_spill] sm:$0xff]  ;;  %v10285_v40 = vld [vmem:[#allocation98_spill] sm:$0xff] }
 0x4b8   : > { %v2851_v18 = vpop.permute.xlu1 %2850  ;;  %v3181_v61 = vpack.c.bf16 %v3142_v24, %v3141_v62  ;;  %v2282_v24 = vadd.f32 %v2218_v21, %v1898_v36  ;;  %v1418_v28 = vmul.f32 %v10177_v1, %v10274_v16  ;;  %v1929_v11 = vmul.f32 %v10278_v44, %v1417_v13  ;;  %v10282_v47 = vld [vmem:[#allocation163_spill] sm:$0xff]  ;;  %v10284_v21 = vld [vmem:[#allocation293_spill] sm:$0xff] }
 0x4b9   : > { %v3048_v59 = vmul.f32 %v2851_v18, %v2664_v3  ;;  %v2281_v55 = vadd.f32 %v2217_v41, %v1897_v35  ;;  %v2855_v18 = vpop.permute.xlu0 %2854  ;;  %vm2759_vm8 = vcmp.ge.f32.partialorder %v2695_v42, 0.0  ;;  %v2634_v17 = vmul.f32 %v10280_v45, %v1610_v46  ;;  %v10294_v46 = vld [vmem:[#allocation198_spill] sm:$0xff] }
 0x4ba   : > { %4391 = vmatpush1.bf16.msra.mxu1 %v3181_v61  ;;  %v1930_v41 = vmul.f32 %v10279_v63, %v1418_v28  ;;  %v1387_v57 = vmul.f32 %v10177_v1, %v10281_v15  ;;  %v1579_v6 = vmul.f32 %v10179_v2, %v10282_v47  ;;  %v1388_v35 = vmul.f32 %v10177_v1, %v10285_v40  ;;  %v10293_v28 = vld [vmem:[#allocation129_spill] sm:$0xff]  ;;  %v10300_v15 = vld [vmem:[#allocation318_spill] sm:$0xff] }
 0x4bb   : > { %v3112_v5 = vsel %vm2728_vm7, %v2664_v3, %v3048_v59  ;;  %4392 = vmatprep.subr.bf16.mxu1 %v10117_v52  ;;  %v2696_v3 = vadd.f32 %v2632_v58, %v2312_v60  ;;  %v2665_v59 = vadd.f32 %v2601_v26, %v2281_v55  ;;  %v10276_v58 = vld [vmem:[#allocation24_spill] sm:$0xff]  ;;  %v2219_v60 = vmul.f32 %v10284_v21, %v10283_v31  ;;  %v10287_v26 = vld [vmem:[#allocation51_spill] sm:$0xff]  ;;  %v10301_v47 = vld [vmem:[#allocation266_spill] sm:$0xff] }
 0x4bc   : > { %v3166_v19 = vpack.c.bf16 %v3112_v5, %v3111_v22  ;;  %v2535_v54 = vpop.permute.xlu1 %2534  ;;  %v2666_v5 = vadd.f32 %v2602_v56, %v2282_v24  ;;  %v2250_v4 = vmul.f32 %v10277_v10, %v10276_v58  ;;  %v10289_v56 = vld [vmem:[#allocation234_spill] sm:$0xff]  ;;  %v10290_v55 = vld [vmem:[#allocation344_spill] sm:$0xff]  ;;  %v1419_v25 = vmul.f32 %v10177_v1, %v10293_v28  ;;  %v10295_v10 = vld [vmem:[#allocation25_spill] sm:$0xff] }
 0x4bd   : > { %vm2760_vm9 = vcmp.ge.f32.partialorder %v2696_v3, 0.0  ;;  %vm2729_vm10 = vcmp.ge.f32.partialorder %v2665_v59, 0.0  ;;  %v2633_v37 = vmul.f32 %v2535_v54, %v1609_v23  ;;  %v10286_v54 = vld [vmem:[#allocation164_spill] sm:$0xff]  ;;  %v1611_v58 = vmul.f32 %v10179_v2, %v10294_v46  ;;  %v10302_v21 = vld [vmem:[#allocation269_spill] sm:$0xff] }
 0x4be   : > { %4104 = vmatpush1.bf16.msra.mxu0 %v3166_v19  ;;  %v3049_v19 = vmul.f32 %v2855_v18, %v2665_v59  ;;  %vm2730_vm11 = vcmp.ge.f32.partialorder %v2666_v5, 0.0  ;;  %v1580_v20 = vmul.f32 %v10179_v2, %v10286_v54  ;;  %v2314_v36 = vadd.f32 %v2250_v4, %v1930_v41  ;;  %v10291_v18 = vld [vmem:[#allocation237_spill] sm:$0xff]  ;;  %v10298_v41 = vld [vmem:[#allocation199_spill] sm:$0xff] }
 0x4bf   : > { %4105 = vmatprep.subr.bf16.mxu0 %v10117_v52  ;;  %v10296_v4 = vld [vmem:[#allocation321_spill] sm:$0xff]  ;;  %v1612_v45 = vmul.f32 %v10179_v2, %v10298_v41 }
 0x4c0   : > { %v3113_v38 = vsel %vm2729_vm10, %v2665_v59, %v3049_v19  ;;  %v10292_v59 = vld [vmem:[#allocation351_spill] sm:$0xff]  ;;  %v2251_v44 = vmul.f32 %v10296_v4, %v10295_v10 }
 0x4c1   : > { %v2975_v7 = vpop.permute.xlu1 %2974 }
 0x4c2   : > { %v3079_v62 = vmul.f32 %v2975_v7, %v2695_v42  ;;  %v2313_v7 = vadd.f32 %v2249_v30, %v1929_v11 }
 0x4c4   : > { %v3143_v49 = vsel %vm2759_vm8, %v2695_v42, %v3079_v62  ;;  %v10288_v42 = vld [vmem:[#allocation290_spill] sm:$0xff]  ;;  %v2603_v62 = vmul.f32 %v10290_v55, %v1579_v6  ;;  %v2697_v24 = vadd.f32 %v2633_v37, %v2313_v7  ;;  %v1931_v6 = vmul.f32 %v10301_v47, %v1419_v25  ;;  %v10303_v7 = vld [vmem:[#allocation76_spill] sm:$0xff] }
 0x4c5   : > { %v2979_v61 = vpop.permute.xlu1 %2978  ;;  %v2220_v12 = vmul.f32 %v10288_v42, %v10287_v26  ;;  %v10297_v37 = vld [vmem:[#allocation130_spill] sm:$0xff]  ;;  %v2636_v40 = vmul.f32 %v10303_v7, %v1612_v45  ;;  %v10306_v42 = vld [vmem:[#allocation52_spill] sm:$0xff]  ;;  %v10317_v45 = vld [vmem:[#allocation201_spill] sm:$0xff] }
 0x4c6   : > { %v3080_v22 = vmul.f32 %v2979_v61, %v2696_v3  ;;  %v1900_v61 = vmul.f32 %v10291_v18, %v1388_v35  ;;  %vm2761_vm12 = vcmp.ge.f32.partialorder %v2697_v24, 0.0  ;;  %v1420_v63 = vmul.f32 %v10177_v1, %v10297_v37  ;;  %v10304_v35 = vld [vmem:[#allocation99_spill] sm:$0xff] }
 0x4c7   : > { %v1389_v54 = vmul.f32 %v10177_v1, %v10304_v35  ;;  %v10323_v35 = vld [vmem:[#allocation320_spill] sm:$0xff] }
 0x4c8   : > { %v3144_v53 = vsel %vm2760_vm9, %v2696_v3, %v3080_v22  ;;  %v1899_v3 = vmul.f32 %v10289_v56, %v1387_v57  ;;  %v2604_v22 = vmul.f32 %v10292_v59, %v1580_v20  ;;  %v10305_v20 = vld [vmem:[#allocation165_spill] sm:$0xff]  ;;  %v10308_v56 = vld [vmem:[#allocation100_spill] sm:$0xff] }
 0x4c9   : > { %v3182_v0 = vpack.c.bf16 %v3144_v53, %v3143_v49  ;;  %v2284_v53 = vadd.f32 %v2220_v12, %v1900_v61  ;;  %v1581_v26 = vmul.f32 %v10179_v2, %v10305_v20  ;;  %v10307_v12 = vld [vmem:[#allocation295_spill] sm:$0xff]  ;;  %v10324_v20 = vld [vmem:[#allocation268_spill] sm:$0xff] }
 0x4ca   : > { %v2859_v48 = vpop.permute.xlu1 %2858  ;;  %v2283_v19 = vadd.f32 %v2219_v60, %v1899_v3  ;;  %v1932_v60 = vmul.f32 %v10302_v21, %v1420_v63  ;;  %v1390_v3 = vmul.f32 %v10177_v1, %v10308_v56  ;;  %v10316_v63 = vld [vmem:[#allocation131_spill] sm:$0xff] }
 0x4cb   : > { %v3050_v39 = vmul.f32 %v2859_v48, %v2666_v5  ;;  %4393 = vmatpush1.bf16.msra.mxu1 %v3182_v0  ;;  %v2863_v48 = vpop.permute.xlu0 %2862  ;;  %v1421_v41 = vmul.f32 %v10177_v1, %v10316_v63 }
 0x4cc   : > { %4394 = vmatprep.subr.bf16.mxu1 %v10117_v52 }
 0x4cd   : > { %v3114_v43 = vsel %vm2730_vm11, %v2666_v5, %v3050_v39  ;;  %v2698_v5 = vadd.f32 %v2634_v17, %v2314_v36  ;;  %v2667_v39 = vadd.f32 %v2603_v62, %v2283_v19  ;;  %v10299_v17 = vld [vmem:[#allocation26_spill] sm:$0xff]  ;;  %v2221_v36 = vmul.f32 %v10307_v12, %v10306_v42  ;;  %v10310_v62 = vld [vmem:[#allocation53_spill] sm:$0xff] }
 0x4ce   : > { %v3167_v50 = vpack.c.bf16 %v3114_v43, %v3113_v38  ;;  %v2668_v43 = vadd.f32 %v2604_v22, %v2284_v53  ;;  %v2252_v57 = vmul.f32 %v10300_v15, %v10299_v17  ;;  %v10312_v22 = vld [vmem:[#allocation236_spill] sm:$0xff]  ;;  %v10313_v19 = vld [vmem:[#allocation346_spill] sm:$0xff]  ;;  %v1613_v17 = vmul.f32 %v10179_v2, %v10317_v45  ;;  %v10318_v15 = vld [vmem:[#allocation27_spill] sm:$0xff] }
 0x4cf   : > { %vm2762_vm13 = vcmp.ge.f32.partialorder %v2698_v5, 0.0  ;;  %vm2731_vm14 = vcmp.ge.f32.partialorder %v2667_v39, 0.0  ;;  %v10325_v12 = vld [vmem:[#allocation209_spill] sm:$0xff] }
 0x4d0   : > { %4106 = vmatpush1.bf16.msra.mxu0 %v3167_v50  ;;  %v3051_v50 = vmul.f32 %v2863_v48, %v2667_v39  ;;  %vm2732_vm15 = vcmp.ge.f32.partialorder %v2668_v43, 0.0  ;;  %v2316_v61 = vadd.f32 %v2252_v57, %v1932_v60  ;;  %v10314_v48 = vld [vmem:[#allocation239_spill] sm:$0xff]  ;;  %v10321_v60 = vld [vmem:[#allocation202_spill] sm:$0xff] }
 0x4d1   : > { %4107 = vmatprep.subr.bf16.mxu0 %v10117_v52  ;;  %v10319_v57 = vld [vmem:[#allocation323_spill] sm:$0xff]  ;;  %v1614_v7 = vmul.f32 %v10179_v2, %v10321_v60 }
 0x4d2   : > { %v2543_v51 = vpop.permute.xlu1 %2542  ;;  %v3115_v33 = vsel %vm2731_vm14, %v2667_v39, %v3051_v50  ;;  %v10315_v39 = vld [vmem:[#allocation353_spill] sm:$0xff]  ;;  %v2253_v47 = vmul.f32 %v10319_v57, %v10318_v15 }
 0x4d3   : > { %v2635_v31 = vmul.f32 %v2543_v51, %v1611_v58  ;;  %v10309_v51 = vld [vmem:[#allocation166_spill] sm:$0xff]  ;;  %v5419_v57 = vld [vmem:[%s9404_s1 + $0x10] sm:$0xff] }
 0x4d4   : > { %v1582_v55 = vmul.f32 %v10179_v2, %v10309_v51 }
 0x4d7   : > { %v2983_v32 = vpop.permute.xlu1 %2982 }
 0x4d8   : > { %v3081_v49 = vmul.f32 %v2983_v32, %v2697_v24  ;;  %v2315_v32 = vadd.f32 %v2251_v44, %v1931_v6 }
 0x4da   : > { %v3145_v14 = vsel %vm2761_vm12, %v2697_v24, %v3081_v49  ;;  %v10311_v24 = vld [vmem:[#allocation292_spill] sm:$0xff]  ;;  %v2605_v49 = vmul.f32 %v10313_v19, %v1581_v26  ;;  %v2699_v53 = vadd.f32 %v2635_v31, %v2315_v32  ;;  %v1933_v26 = vmul.f32 %v10324_v20, %v1421_v41  ;;  %v10326_v32 = vld [vmem:[#allocation107_spill] sm:$0xff]  ;;  %v5422_v20 = vld [vmem:[%s9404_s1 + $0x30] sm:$0xff] }
 0x4db   : > { %v2987_v0 = vpop.permute.xlu1 %2986  ;;  %v2222_v18 = vmul.f32 %v10311_v24, %v10310_v62  ;;  %v10320_v31 = vld [vmem:[#allocation132_spill] sm:$0xff]  ;;  %v2638_v56 = vmul.f32 %v10326_v32, %v1614_v7  ;;  %v10329_v24 = vld [vmem:[#allocation54_spill] sm:$0xff]  ;;  %v10341_v32 = vld [vmem:[#allocation11_spill] sm:$0xff] }
 0x4dc   : > { %v3082_v38 = vmul.f32 %v2987_v0, %v2698_v5  ;;  %v1902_v0 = vmul.f32 %v10314_v48, %v1390_v3  ;;  %vm2763_vm0 = vcmp.ge.f32.partialorder %v2699_v53, 0.0  ;;  %v1422_v21 = vmul.f32 %v10177_v1, %v10320_v31  ;;  %v10327_v3 = vld [vmem:[#allocation101_spill] sm:$0xff] }
 0x4dd   : > { %v1391_v51 = vmul.f32 %v10177_v1, %v10327_v3 }
 0x4de   : > { %v3146_v13 = vsel %vm2762_vm13, %v2698_v5, %v3082_v38  ;;  %v1901_v5 = vmul.f32 %v10312_v22, %v1389_v54  ;;  %v2606_v38 = vmul.f32 %v10315_v39, %v1582_v55  ;;  %v10328_v55 = vld [vmem:[#allocation167_spill] sm:$0xff]  ;;  %v10331_v22 = vld [vmem:[#allocation102_spill] sm:$0xff] }
 0x4df   : > { %v2867_v29 = vpop.permute.xlu1 %2866  ;;  %v3183_v23 = vpack.c.bf16 %v3146_v13, %v3145_v14  ;;  %v2286_v13 = vadd.f32 %v2222_v18, %v1902_v0  ;;  %v1583_v62 = vmul.f32 %v10179_v2, %v10328_v55  ;;  %v10330_v18 = vld [vmem:[#allocation297_spill] sm:$0xff]  ;;  %v10343_v55 = vld [vmem:[#allocation134_spill] sm:$0xff] }
 0x4e0   : > { %v3052_v9 = vmul.f32 %v2867_v29, %v2668_v43  ;;  %v2285_v50 = vadd.f32 %v2221_v36, %v1901_v5  ;;  %v2871_v29 = vpop.permute.xlu0 %2870  ;;  %v1934_v36 = vmul.f32 %v10325_v12, %v1422_v21  ;;  %v1392_v5 = vmul.f32 %v10177_v1, %v10331_v22  ;;  %v10340_v12 = vld [vmem:[#allocation204_spill] sm:$0xff] }
 0x4e1   : > { %4395 = vmatpush1.bf16.msra.mxu1 %v3183_v23 }
 0x4e2   : > { %v3116_v30 = vsel %vm2732_vm15, %v2668_v43, %v3052_v9  ;;  %4396 = vmatprep.subr.bf16.mxu1 %v10117_v52  ;;  %v2700_v43 = vadd.f32 %v2636_v40, %v2316_v61  ;;  %v2669_v9 = vadd.f32 %v2605_v49, %v2285_v50  ;;  %v10322_v40 = vld [vmem:[#allocation28_spill] sm:$0xff]  ;;  %v2223_v61 = vmul.f32 %v10330_v18, %v10329_v24  ;;  %v10333_v49 = vld [vmem:[#allocation55_spill] sm:$0xff]  ;;  %v10344_v24 = vld [vmem:[#allocation205_spill] sm:$0xff] }
 0x4e3   : > { %v3168_v16 = vpack.c.bf16 %v3116_v30, %v3115_v33  ;;  %v2670_v30 = vadd.f32 %v2606_v38, %v2286_v13  ;;  %v2254_v54 = vmul.f32 %v10323_v35, %v10322_v40  ;;  %v10335_v38 = vld [vmem:[#allocation238_spill] sm:$0xff]  ;;  %v10336_v50 = vld [vmem:[#allocation348_spill] sm:$0xff]  ;;  %v1616_v18 = vmul.f32 %v10179_v2, %v10344_v24 }
 0x4e4   : > { %vm2764_vm1 = vcmp.ge.f32.partialorder %v2700_v43, 0.0  ;;  %vm2733_vm2 = vcmp.ge.f32.partialorder %v2669_v9, 0.0  ;;  %v5421_v35 = vld [vmem:[%s9404_s1 + $0x18] sm:$0xff] }
 0x4e5   : > { %v2551_v11 = vpop.permute.xlu1 %2550  ;;  %4108 = vmatpush1.bf16.msra.mxu0 %v3168_v16  ;;  %v3053_v16 = vmul.f32 %v2871_v29, %v2669_v9  ;;  %vm2734_vm3 = vcmp.ge.f32.partialorder %v2670_v30, 0.0  ;;  %v2318_v0 = vadd.f32 %v2254_v54, %v1934_v36  ;;  %v10337_v29 = vld [vmem:[#allocation241_spill] sm:$0xff]  ;;  %v1615_v36 = vmul.f32 %v10179_v2, %v10340_v12  ;;  %v5427_v12 = vld [vmem:[%s9404_s1 + $0x48] sm:$0xff] }
 0x4e6   : > { %4109 = vmatprep.subr.bf16.mxu0 %v10117_v52  ;;  %v2637_v42 = vmul.f32 %v2551_v11, %v1613_v17  ;;  %v10332_v11 = vld [vmem:[#allocation168_spill] sm:$0xff] }
 0x4e7   : > { %v3117_v4 = vsel %vm2733_vm2, %v2669_v9, %v3053_v16  ;;  %v1584_v19 = vmul.f32 %v10179_v2, %v10332_v11  ;;  %v10338_v9 = vld [vmem:[#allocation354_spill] sm:$0xff]  ;;  %v5688_v16 = vmov 6  }
 0x4e8   : > { %5143 = vset.pattern.permute.xlu1 %v5688_v16  ;;  %5144 = vset.pattern.permute.xlu0 %v5688_v16  ;;  %v10355_v16 = vld [vmem:[#allocation170_spill] sm:$0xff] }
 0x4eb   : > { %v2991_v59 = vpop.permute.xlu1 %2990 }
 0x4ec   : > { %v3083_v14 = vmul.f32 %v2991_v59, %v2699_v53  ;;  %v2317_v59 = vadd.f32 %v2253_v47, %v1933_v26  ;;  %v5420_v47 = vld [vmem:[%s9404_s1 + $0x20] sm:$0xff]  ;;  %v10339_v26 = vld [vmem:[#allocation133_spill] sm:$0xff] }
 0x4ee   : > { %v3147_v28 = vsel %vm2763_vm0, %v2699_v53, %v3083_v14  ;;  %v10334_v53 = vld [vmem:[#allocation294_spill] sm:$0xff]  ;;  %v2607_v14 = vmul.f32 %v10336_v50, %v1583_v62  ;;  %v2701_v13 = vadd.f32 %v2637_v42, %v2317_v59  ;;  %v1423_v42 = vmul.f32 %v10177_v1, %v10339_v26 }
 0x4ef   : > { %v2995_v23 = vpop.permute.xlu1 %2994  ;;  %v2224_v48 = vmul.f32 %v10334_v53, %v10333_v49  ;;  %v1424_v62 = vmul.f32 %v10177_v1, %v10343_v55  ;;  %v10346_v59 = vld [vmem:[#allocation322_spill] sm:$0xff]  ;;  %v5423_v49 = vld [vmem:[%s9404_s1 + $0x28] sm:$0xff] }
 0x4f0   : > { %v3084_v33 = vmul.f32 %v2995_v23, %v2700_v43  ;;  %v1904_v23 = vmul.f32 %v10337_v29, %v1392_v5  ;;  %vm2765_vm4 = vcmp.ge.f32.partialorder %v2701_v13, 0.0  ;;  %v10347_v5 = vld [vmem:[#allocation270_spill] sm:$0xff]  ;;  %v10348_v53 = vld [vmem:[#allocation200_spill] sm:$0xff]  ;;  %v10353_v29 = vld [vmem:[#allocation299_spill] sm:$0xff] }
 0x4f1   : > { %v1935_v11 = vmul.f32 %v10347_v5, %v1423_v42 }
 0x4f2   : > { %v3148_v25 = vsel %vm2764_vm1, %v2700_v43, %v3084_v33  ;;  %v1903_v43 = vmul.f32 %v10335_v38, %v1391_v51  ;;  %v2608_v33 = vmul.f32 %v10338_v9, %v1584_v19  ;;  %v5424_v38 = vld [vmem:[%s9404_s1 + $0x40] sm:$0xff] }
 0x4f3   : > { %v2875_v46 = vpop.permute.xlu1 %2874  ;;  %v3184_v58 = vpack.c.bf16 %v3148_v25, %v3147_v28 }
 0x4f4   : > { %v3054_v10 = vmul.f32 %v2875_v46, %v2670_v30  ;;  %v2287_v28 = vadd.f32 %v2223_v61, %v1903_v43  ;;  %v5417_v46 = vld [vmem:[%s9404_s1] sm:$0xff]  ;;  %v10345_v61 = vld [vmem:[#allocation29_spill] sm:$0xff] }
 0x4f5   : > { %4397 = vmatpush1.bf16.msra.mxu1 %v3184_v58  ;;  %3190 = vperm.xlu1 %5143, %v5417_v46   ;;  %v5418_v58 = vld [vmem:[%s9404_s1 + $0x8] sm:$0xff]  ;;  %v2256_v22 = vmul.f32 %v10346_v59, %v10345_v61  ;;  %v10350_v43 = vld [vmem:[#allocation103_spill] sm:$0xff]  ;;  %v5429_v61 = vld [vmem:[%s9404_s1 + $0x58] sm:$0xff] }
 0x4f6   : > { %v3118_v44 = vsel %vm2734_vm3, %v2670_v30, %v3054_v10  ;;  %4398 = vmatprep.subr.bf16.mxu1 %v10117_v52  ;;  %v2702_v30 = vadd.f32 %v2638_v56, %v2318_v0  ;;  %3194 = vperm.xlu0 %5144, %v5418_v58   ;;  %v2288_v10 = vadd.f32 %v2224_v48, %v1904_v23  ;;  %v10342_v56 = vld [vmem:[#allocation325_spill] sm:$0xff]  ;;  %v10349_v0 = vld [vmem:[#allocation118_spill] sm:$0xff]  ;;  %v10357_v46 = vld [vmem:[#allocation296_spill] sm:$0xff] }
 0x4f7   : > { %v3169_v37 = vpack.c.bf16 %v3118_v44, %v3117_v4  ;;  %v2879_v4 = vpop.permute.xlu0 %2878  ;;  %v2255_v3 = vmul.f32 %v10342_v56, %v10341_v32  ;;  %v1936_v48 = vmul.f32 %v10348_v53, %v1424_v62  ;;  %v1393_v50 = vmul.f32 %v10177_v1, %v10350_v43  ;;  %v5428_v32 = vld [vmem:[%s9404_s1 + $0x60] sm:$0xff]  ;;  %v5430_v59 = vld [vmem:[%s9404_s1 + $0x70] sm:$0xff] }
 0x4f8   : > { %v8918_v6 = vpop.permute.xlu1 %2558  ;;  %v2672_v41 = vadd.f32 %v2608_v33, %v2288_v10  ;;  %vm2766_vm5 = vcmp.ge.f32.partialorder %v2702_v30, 0.0  ;;  %v10354_v33 = vld [vmem:[#allocation104_spill] sm:$0xff]  ;;  %v10363_v53 = vld [vmem:[#allocation207_spill] sm:$0xff] }
 0x4f9   : > { %4110 = vmatpush1.bf16.msra.mxu0 %v3169_v37  ;;  %v2671_v37 = vadd.f32 %v2607_v14, %v2287_v28  ;;  %3198 = vperm.xlu1 %5143, %v5419_v57   ;;  %v2639_v19 = vmul.f32 %v8918_v6, %v1615_v36  ;;  %v10351_v6 = vld [vmem:[#allocation169_spill] sm:$0xff]  ;;  %v2319_v9 = vadd.f32 %v2255_v3, %v1935_v11 }
 0x4fa   : > { %4111 = vmatprep.subr.bf16.mxu0 %v10117_v52  ;;  %3206 = vperm.xlu0 %5144, %v5420_v47   ;;  %vm2736_vm7 = vcmp.ge.f32.partialorder %v2672_v41, 0.0  ;;  %v1585_v14 = vmul.f32 %v10179_v2, %v10351_v6  ;;  %v1586_v28 = vmul.f32 %v10179_v2, %v10355_v16  ;;  %v2320_v10 = vadd.f32 %v2256_v22, %v1936_v48  ;;  %v10361_v47 = vld [vmem:[#allocation356_spill] sm:$0xff]  ;;  %v10370_v16 = vld [vmem:[#allocation271_spill] sm:$0xff] }
 0x4fb   : > { %v3055_v45 = vmul.f32 %v2879_v4, %v2671_v37  ;;  %vm2735_vm6 = vcmp.ge.f32.partialorder %v2671_v37, 0.0  ;;  %v1617_v48 = vmul.f32 %v10179_v2, %v10363_v53  ;;  %v10366_v6 = vld [vmem:[#allocation136_spill] sm:$0xff] }
 0x4fd   : > { %v2999_v39 = vpop.permute.xlu1 %2998  ;;  %v3119_v7 = vsel %vm2735_vm6, %v2671_v37, %v3055_v45  ;;  %3202 = vperm.xlu1 %5143, %v5421_v35   ;;  %v2703_v45 = vadd.f32 %v2639_v19, %v2319_v9  ;;  %v10362_v19 = vld [vmem:[#allocation135_spill] sm:$0xff]  ;;  %v10369_v9 = vld [vmem:[#allocation324_spill] sm:$0xff] }
 0x4fe   : > { %v3085_v25 = vmul.f32 %v2999_v39, %v2701_v13  ;;  %3214 = vperm.xlu0 %5144, %v5422_v20   ;;  %v2640_v39 = vmul.f32 %v10349_v0, %v1616_v18  ;;  %v10364_v0 = vld [vmem:[#allocation13_spill] sm:$0xff] }
 0x4ff   : > { %vm2767_vm8 = vcmp.ge.f32.partialorder %v2703_v45, 0.0 }
 0x500   : > { %v3149_v17 = vsel %vm2765_vm4, %v2701_v13, %v3085_v25  ;;  %v10352_v13 = vld [vmem:[#allocation56_spill] sm:$0xff]  ;;  %v10356_v25 = vld [vmem:[#allocation57_spill] sm:$0xff] }
 0x501   : > { %v3003_v44 = vpop.permute.xlu1 %3002  ;;  %3210 = vperm.xlu1 %5143, %v5423_v49   ;;  %v2225_v23 = vmul.f32 %v10353_v29, %v10352_v13  ;;  %v2226_v58 = vmul.f32 %v10357_v46, %v10356_v25  ;;  %v1425_v49 = vmul.f32 %v10177_v1, %v10362_v19  ;;  %v10367_v13 = vld [vmem:[#allocation208_spill] sm:$0xff]  ;;  %v10371_v46 = vld [vmem:[#allocation203_spill] sm:$0xff] }
 0x502   : > { %v3086_v63 = vmul.f32 %v3003_v44, %v2702_v30  ;;  %3222 = vperm.xlu0 %5144, %v5424_v38   ;;  %v10358_v44 = vld [vmem:[#allocation240_spill] sm:$0xff]  ;;  %v1618_v29 = vmul.f32 %v10179_v2, %v10367_v13 }
 0x503   : > { %v1905_v37 = vmul.f32 %v10358_v44, %v1393_v50  ;;  %v5431_v50 = vld [vmem:[%s9404_s1 + $0x68] sm:$0xff]  ;;  %v10373_v44 = vld [vmem:[#allocation105_spill] sm:$0xff] }
 0x504   : > { %v3150_v15 = vsel %vm2766_vm5, %v2702_v30, %v3086_v63  ;;  %v1394_v30 = vmul.f32 %v10177_v1, %v10354_v33  ;;  %v10359_v63 = vld [vmem:[#allocation350_spill] sm:$0xff]  ;;  %v10387_v19 = vld [vmem:[#allocation212_spill] sm:$0xff] }
 0x505   : > { %v2883_v31 = vpop.permute.xlu1 %2882  ;;  %v3185_v21 = vpack.c.bf16 %v3150_v15, %v3149_v17  ;;  %v5425_v17 = vld [vmem:[%s9404_s1 + $0x38] sm:$0xff]  ;;  %v10360_v15 = vld [vmem:[#allocation243_spill] sm:$0xff] }
 0x506   : > { %v3056_v60 = vmul.f32 %v2883_v31, %v2672_v41  ;;  %3218 = vperm.xlu1 %5143, %v5425_v17   ;;  %v1906_v57 = vmul.f32 %v10360_v15, %v1394_v30  ;;  %v2610_v31 = vmul.f32 %v10361_v47, %v1586_v28  ;;  %v5432_v30 = vld [vmem:[%s9404_s1 + $0x80] sm:$0xff]  ;;  %v1937_v28 = vmul.f32 %v10370_v16, %v1425_v49  ;;  %v10376_v17 = vld [vmem:[#allocation300_spill] sm:$0xff]  ;;  %v10377_v47 = vld [vmem:[#allocation106_spill] sm:$0xff] }
 0x507   : > { %4399 = vmatpush1.bf16.msra.mxu1 %v3185_v21  ;;  %v2704_v21 = vadd.f32 %v2640_v39, %v2320_v10  ;;  %v10365_v39 = vld [vmem:[#allocation327_spill] sm:$0xff]  ;;  %v10372_v10 = vld [vmem:[#allocation142_spill] sm:$0xff]  ;;  %v1620_v49 = vmul.f32 %v10179_v2, %v10387_v19 }
 0x508   : > { %v3120_v40 = vsel %vm2736_vm7, %v2672_v41, %v3056_v60  ;;  %4400 = vmatprep.subr.bf16.mxu1 %v10117_v52  ;;  %v2609_v41 = vmul.f32 %v10359_v63, %v1585_v14  ;;  %v5426_v60 = vld [vmem:[%s9404_s1 + $0x50] sm:$0xff]  ;;  %v2290_v35 = vadd.f32 %v2226_v58, %v1906_v57  ;;  %v2257_v38 = vmul.f32 %v10365_v39, %v10364_v0  ;;  %v10374_v63 = vld [vmem:[#allocation171_spill] sm:$0xff]  ;;  %v10389_v0 = vld [vmem:[#allocation326_spill] sm:$0xff] }
 0x509   : > { %v3170_v54 = vpack.c.bf16 %v3120_v40, %v3119_v7  ;;  %3230 = vperm.xlu0 %5144, %v5426_v60   ;;  %v2289_v7 = vadd.f32 %v2225_v23, %v1905_v37  ;;  %vm2768_vm9 = vcmp.ge.f32.partialorder %v2704_v21, 0.0  ;;  %v1426_v14 = vmul.f32 %v10177_v1, %v10366_v6  ;;  %v10368_v23 = vld [vmem:[#allocation12_spill] sm:$0xff]  ;;  %v5436_v16 = vld [vmem:[%s9404_s1 + $0xa0] sm:$0xff] }
 0x50a   : > { %v8971_v51 = vpop.permute.xlu1 %2566  ;;  %3226 = vperm.xlu1 %5143, %v5427_v12   ;;  %v2674_v36 = vadd.f32 %v2610_v31, %v2290_v35  ;;  %v2258_v33 = vmul.f32 %v10369_v9, %v10368_v23  ;;  %v1395_v37 = vmul.f32 %v10177_v1, %v10373_v44  ;;  %v2321_v57 = vadd.f32 %v2257_v38, %v1937_v28  ;;  %v10392_v23 = vld [vmem:[#allocation15_spill] sm:$0xff]  ;;  %v10393_v9 = vld [vmem:[#allocation328_spill] sm:$0xff]  ;;  %v10394_v28 = vld [vmem:[#allocation206_spill] sm:$0xff] }
 0x50b   : > { %4112 = vmatpush1.bf16.msra.mxu0 %v3170_v54  ;;  %v2887_v54 = vpop.permute.xlu0 %2886  ;;  %v2673_v26 = vadd.f32 %v2609_v41, %v2289_v7  ;;  %v2641_v25 = vmul.f32 %v8971_v51, %v1617_v48  ;;  %v1938_v58 = vmul.f32 %v10371_v46, %v1426_v14  ;;  %v1587_v41 = vmul.f32 %v10179_v2, %v10374_v63  ;;  %v5433_v51 = vld [vmem:[%s9404_s1 + $0x78] sm:$0xff]  ;;  %v10379_v7 = vld [vmem:[#allocation59_spill] sm:$0xff]  ;;  %v10391_v14 = vld [vmem:[#allocation272_spill] sm:$0xff] }
 0x50c   : > { %4113 = vmatprep.subr.bf16.mxu0 %v10117_v52  ;;  %vm2738_vm11 = vcmp.ge.f32.partialorder %v2674_v36, 0.0  ;;  %v1396_v31 = vmul.f32 %v10177_v1, %v10377_v47  ;;  %v10388_v48 = vld [vmem:[#allocation14_spill] sm:$0xff] }
 0x50d   : > { %3238 = vperm.xlu0 %5144, %v5428_v32   ;;  %v3057_v56 = vmul.f32 %v2887_v54, %v2673_v26  ;;  %vm2737_vm10 = vcmp.ge.f32.partialorder %v2673_v26, 0.0  ;;  %v2322_v54 = vadd.f32 %v2258_v33, %v1938_v58  ;;  %v2260_v39 = vmul.f32 %v10389_v0, %v10388_v48  ;;  %v5160_v19 = vld [vmem:[#allocation5 + $0x4c] ss:$16 sps:$4 sm:$0xff]   ;;  %v5163_v48 = vld [vmem:[#allocation5 + $0x64] ss:$16 sps:$4 sm:$0xff]  }
 0x50e   : > { %3234 = vperm.xlu1 %5143, %v5429_v61   ;;  %v2259_v33 = vmul.f32 %v10393_v9, %v10392_v23  ;;  %v2644_v58 = vmul.f32 %v8463_v27, %v1620_v49  ;;  %v5438_v27 = vld [vmem:[%s9404_s1 + $0xb0] sm:$0xff]  ;;  %v5447_v49 = vld [vmem:[%s9404_s1 + $0x100] sm:$0xff]  ;;  %v5453_v23 = vld [vmem:[%s9404_s1 + $0x128] sm:$0xff] }
 0x50f   : > { %v3007_v4 = vpop.permute.xlu1 %3006  ;;  %v3121_v22 = vsel %vm2737_vm10, %v2673_v26, %v3057_v56  ;;  %v5434_v26 = vld [vmem:[%s9404_s1 + $0x90] sm:$0xff]  ;;  %v10383_v56 = vld [vmem:[#allocation352_spill] sm:$0xff]  ;;  %v5454_v9 = vld [vmem:[%s9404_s1 + $0x140] sm:$0xff] }
 0x510   : > { %v3087_v40 = vmul.f32 %v3007_v4, %v2703_v45  ;;  %v2642_v4 = vmul.f32 %v10372_v10, %v1618_v29  ;;  %v5448_v0 = vld [vmem:[%s9404_s1 + $0x110] sm:$0xff] }
 0x511   : > { %3246 = vperm.xlu0 %5144, %v5430_v59   ;;  %v10386_v59 = vld [vmem:[#allocation358_spill] sm:$0xff] }
 0x512   : > { %v3151_v3 = vsel %vm2767_vm8, %v2703_v45, %v3087_v40  ;;  %3242 = vperm.xlu1 %5143, %v5431_v50   ;;  %v10375_v45 = vld [vmem:[#allocation58_spill] sm:$0xff]  ;;  %v5435_v50 = vld [vmem:[%s9404_s1 + $0x88] sm:$0xff] }
 0x513   : > { %v3011_v20 = vpop.permute.xlu1 %3010  ;;  %v2227_v15 = vmul.f32 %v10376_v17, %v10375_v45  ;;  %v10380_v40 = vld [vmem:[#allocation298_spill] sm:$0xff] }
 0x514   : > { %v3088_v42 = vmul.f32 %v3011_v20, %v2704_v21  ;;  %v2228_v35 = vmul.f32 %v10380_v40, %v10379_v7  ;;  %v5437_v45 = vld [vmem:[%s9404_s1 + $0x98] sm:$0xff]  ;;  %v5439_v40 = vld [vmem:[%s9404_s1 + $0xa8] sm:$0xff] }
 0x515   : > { %3254 = vperm.xlu0 %5144, %v5432_v30  }
 0x516   : > { %v3152_v55 = vsel %vm2768_vm9, %v2704_v21, %v3088_v42  ;;  %3250 = vperm.xlu1 %5143, %v5433_v51   ;;  %v10378_v21 = vld [vmem:[#allocation172_spill] sm:$0xff]  ;;  %v10381_v42 = vld [vmem:[#allocation137_spill] sm:$0xff] }
 0x517   : > { %v2891_v62 = vpop.permute.xlu1 %2890  ;;  %v3186_v24 = vpack.c.bf16 %v3152_v55, %v3151_v3  ;;  %v1588_v60 = vmul.f32 %v10179_v2, %v10378_v21  ;;  %v1427_v12 = vmul.f32 %v10177_v1, %v10381_v42  ;;  %v2611_v3 = vmul.f32 %v10383_v56, %v1587_v41  ;;  %v5145_v42 = vld [vmem:[#allocation5] ss:$16 sps:$4 sm:$0xff]  }
 0x518   : > { %v3058_v18 = vmul.f32 %v2891_v62, %v2674_v36  ;;  %v2705_v55 = vadd.f32 %v2641_v25, %v2321_v57  ;;  %v10384_v62 = vld [vmem:[#allocation138_spill] sm:$0xff] }
 0x519   : > { %4401 = vmatpush1.bf16.msra.mxu1 %v3186_v24  ;;  %3262 = vperm.xlu0 %5144, %v5434_v26   ;;  %v1428_v24 = vmul.f32 %v10177_v1, %v10384_v62  ;;  %v10390_v1 = vld [vmem:[#allocation211_spill] sm:$0xff]  ;;  %v1939_v13 = vmul.f32 %v10391_v14, %v1427_v12  ;;  %v5154_v62 = vld [vmem:[#allocation5 + $0x2c] ss:$16 sps:$4 sm:$0xff]   ;;  %v5452_v14 = vld [vmem:[%s9404_s1 + $0x130] sm:$0xff] }
 0x51a   : > { %v3122_v5 = vsel %vm2738_vm11, %v2674_v36, %v3058_v18  ;;  %4402 = vmatprep.subr.bf16.mxu1 %v10117_v52  ;;  %v10382_v36 = vld [vmem:[#allocation242_spill] sm:$0xff]  ;;  %v10385_v18 = vld [vmem:[#allocation245_spill] sm:$0xff]  ;;  %3258 = vperm.xlu1 %5143, %v5435_v50   ;;  %v1619_v6 = vmul.f32 %v10179_v2, %v10390_v1  ;;  %vm2769_vm12 = vcmp.ge.f32.partialorder %v2705_v55, 0.0  ;;  %v5450_v50 = vld [vmem:[%s9404_s1 + $0x120] sm:$0xff] }
 0x51b   : > { %v3171_v11 = vpack.c.bf16 %v3122_v5, %v3121_v22  ;;  %v1907_v32 = vmul.f32 %v10382_v36, %v1395_v37  ;;  %v1908_v61 = vmul.f32 %v10385_v18, %v1396_v31  ;;  %v2612_v22 = vmul.f32 %v10386_v59, %v1588_v60  ;;  %v5151_v12 = vld [vmem:[#allocation5 + $0x24] ss:$16 sps:$4 sm:$0xff]  }
 0x51c   : > { %v2575_v43 = vpop.permute.xlu1 %2574  ;;  %v2706_v5 = vadd.f32 %v2642_v4, %v2322_v54  ;;  %v1940_v25 = vmul.f32 %v10394_v28, %v1428_v24  ;;  %v2323_v17 = vadd.f32 %v2259_v33, %v1939_v13  ;;  %v5443_v24 = vld [vmem:[%s9404_s1 + $0xc8] sm:$0xff]  ;;  %v5444_v18 = vld [vmem:[%s9404_s1 + $0xe0] sm:$0xff]  ;;  %v5456_v28 = vld [vmem:[%s9404_s1 + $0x150] sm:$0xff] }
 0x51d   : > { %4114 = vmatpush1.bf16.msra.mxu0 %v3171_v11  ;;  %v2895_v11 = vpop.permute.xlu0 %2894  ;;  %v2291_v53 = vadd.f32 %v2227_v15, %v1907_v32  ;;  %v2292_v29 = vadd.f32 %v2228_v35, %v1908_v61  ;;  %3270 = vperm.xlu0 %5144, %v5436_v16   ;;  %v2643_v2 = vmul.f32 %v2575_v43, %v1619_v6  ;;  %v5441_v32 = vld [vmem:[%s9404_s1 + $0xb8] sm:$0xff]  ;;  %v5153_v61 = vld [vmem:[#allocation5 + $0x20] ss:$16 sps:$4 sm:$0xff]   ;;  %v5157_v59 = vld [vmem:[#allocation5 + $0x44] ss:$16 sps:$4 sm:$0xff]  }
 0x51e   : > { %4115 = vmatprep.subr.bf16.mxu0 %v10117_v52  ;;  %vm2770_vm13 = vcmp.ge.f32.partialorder %v2706_v5, 0.0  ;;  %v2324_v44 = vadd.f32 %v2260_v39, %v1940_v25  ;;  %3266 = vperm.xlu1 %5143, %v5437_v45   ;;  %v5162_v39 = vld [vmem:[#allocation5 + $0x48] ss:$16 sps:$4 sm:$0xff]   ;;  %v5169_v1 = vld [vmem:[#allocation5 + $0x84] ss:$16 sps:$4 sm:$0xff]  }
 0x51f   : > { %v2675_v46 = vadd.f32 %v2611_v3, %v2291_v53  ;;  %v2676_v4 = vadd.f32 %v2612_v22, %v2292_v29  ;;  %v2707_v31 = vadd.f32 %v2643_v2, %v2323_v17  ;;  %v5442_v3 = vld [vmem:[%s9404_s1 + $0xd0] sm:$0xff]  ;;  %v5445_v22 = vld [vmem:[%s9404_s1 + $0xd8] sm:$0xff]  ;;  %v5461_v45 = vld [vmem:[%s9404_s1 + $0x168] sm:$0xff] }
 0x520   : > { %v2708_v43 = vadd.f32 %v2644_v58, %v2324_v44  ;;  %v5159_v53 = vld [vmem:[#allocation5 + $0x40] ss:$16 sps:$4 sm:$0xff]   ;;  %v5451_v6 = vld [vmem:[%s9404_s1 + $0x118] sm:$0xff]  ;;  %v5457_v58 = vld [vmem:[%s9404_s1 + $0x148] sm:$0xff] }
 0x521   : > { %v3015_v20 = vpop.permute.xlu1 %3014  ;;  %v3059_v37 = vmul.f32 %v2895_v11, %v2675_v46  ;;  %v3027_v15 = vpop.permute.xlu0 %3026  ;;  %3278 = vperm.xlu0 %5144, %v5438_v27   ;;  %vm2739_vm14 = vcmp.ge.f32.partialorder %v2675_v46, 0.0  ;;  %vm2740_vm15 = vcmp.ge.f32.partialorder %v2676_v4, 0.0  ;;  %vm2771_vm0 = vcmp.ge.f32.partialorder %v2707_v31, 0.0  ;;  %v5156_v11 = vld [vmem:[#allocation5 + $0x28] ss:$16 sps:$4 sm:$0xff]   ;;  %v5462_v17 = vld [vmem:[%s9404_s1 + $0x180] sm:$0xff] }
 0x522   : > { %v3089_v38 = vmul.f32 %v3015_v20, %v2705_v55  ;;  %v3092_v21 = vmul.f32 %v3027_v15, %v2708_v43  ;;  %3274 = vperm.xlu1 %5143, %v5439_v40   ;;  %v5440_v20 = vld [vmem:[%s9404_s1 + $0xc0] sm:$0xff]  ;;  %vm2772_vm1 = vcmp.ge.f32.partialorder %v2708_v43, 0.0  ;;  %v5168_v13 = vld [vmem:[#allocation5 + $0x68] ss:$16 sps:$4 sm:$0xff]   ;;  %v5172_v29 = vld [vmem:[#allocation5 + $0x8c] ss:$16 sps:$4 sm:$0xff]  }
 0x523   : > { %v3123_v60 = vsel %vm2739_vm14, %v2675_v46, %v3059_v37  ;;  %v5171_v33 = vld [vmem:[#allocation5 + $0x80] ss:$16 sps:$4 sm:$0xff]   ;;  %v5455_v16 = vld [vmem:[%s9404_s1 + $0x138] sm:$0xff]  ;;  %v5181_v2 = vld [vmem:[#allocation5 + $0xc4] ss:$16 sps:$4 sm:$0xff]  }
 0x524   : > { %v3153_v63 = vsel %vm2769_vm12, %v2705_v55, %v3089_v38  ;;  %v5148_v55 = vld [vmem:[#allocation5 + $0x8] ss:$16 sps:$4 sm:$0xff]   ;;  %v5178_v46 = vld [vmem:[#allocation5 + $0xac] ss:$16 sps:$4 sm:$0xff]   ;;  %v5460_v37 = vld [vmem:[%s9404_s1 + $0x170] sm:$0xff] }
 0x525   : > { %v3019_v30 = vpop.permute.xlu1 %3018  ;;  %3286 = vperm.xlu0 %5144, %v5440_v20   ;;  %v5449_v38 = vld [vmem:[%s9404_s1 + $0x108] sm:$0xff]  ;;  %v5459_v44 = vld [vmem:[%s9404_s1 + $0x158] sm:$0xff]  ;;  %v5183_v15 = vld [vmem:[#allocation5 + $0xc0] ss:$16 sps:$4 sm:$0xff]  }
 0x526   : > { %v3090_v10 = vmul.f32 %v3019_v30, %v2706_v5  ;;  %3282 = vperm.xlu1 %5143, %v5441_v32   ;;  %v5175_v30 = vld [vmem:[#allocation5 + $0xa4] ss:$16 sps:$4 sm:$0xff]   ;;  %v5174_v25 = vld [vmem:[#allocation5 + $0x88] ss:$16 sps:$4 sm:$0xff]   ;;  %v5196_v20 = vld [vmem:[#allocation5 + $0x10c] ss:$16 sps:$4 sm:$0xff]  }
 0x527   : > { %v5464_v27 = vld [vmem:[%s9404_s1 + $0x190] sm:$0xff]  ;;  %v5467_v40 = vld [vmem:[%s9404_s1 + $0x198] sm:$0xff] }
 0x528   : > { %v3154_v41 = vsel %vm2770_vm13, %v2706_v5, %v3090_v10  ;;  %v5446_v5 = vld [vmem:[%s9404_s1 + $0xf0] sm:$0xff]  ;;  %v5458_v10 = vld [vmem:[%s9404_s1 + $0x160] sm:$0xff] }
 0x529   : > { %v2899_v57 = vpop.permute.xlu1 %2898  ;;  %v3187_v51 = vpack.c.bf16 %v3154_v41, %v3153_v63  ;;  %3294 = vperm.xlu0 %5144, %v5442_v3   ;;  %v5180_v63 = vld [vmem:[#allocation5 + $0xa8] ss:$16 sps:$4 sm:$0xff]   ;;  %v5184_v41 = vld [vmem:[#allocation5 + $0xcc] ss:$16 sps:$4 sm:$0xff]   ;;  %v5472_v32 = vld [vmem:[%s9404_s1 + $0x1d0] sm:$0xff] }
 0x52a   : > { %v3060_v47 = vmul.f32 %v2899_v57, %v2676_v4  ;;  %3290 = vperm.xlu1 %5143, %v5443_v24   ;;  %v5187_v57 = vld [vmem:[#allocation5 + $0xe4] ss:$16 sps:$4 sm:$0xff]   ;;  %v5202_v3 = vld [vmem:[#allocation5 + $0x12c] ss:$16 sps:$4 sm:$0xff]   ;;  %v5201_v24 = vld [vmem:[#allocation5 + $0x120] ss:$16 sps:$4 sm:$0xff]  }
 0x52b   : > { %4403 = vmatpush1.bf16.msra.mxu1 %v3187_v51  ;;  %v5463_v51 = vld [vmem:[%s9404_s1 + $0x178] sm:$0xff] }
 0x52c   : > { %v3124_v7 = vsel %vm2740_vm15, %v2676_v4, %v3060_v47  ;;  %4404 = vmatprep.subr.bf16.mxu1 %v10117_v52  ;;  %v3156_v52 = vsel %vm2772_vm1, %v2708_v43, %v3092_v21  ;;  %v5177_v4 = vld [vmem:[#allocation5 + $0xa0] ss:$16 sps:$4 sm:$0xff]   ;;  %v5186_v43 = vld [vmem:[#allocation5 + $0xc8] ss:$16 sps:$4 sm:$0xff]   ;;  %v5190_v47 = vld [vmem:[#allocation5 + $0xec] ss:$16 sps:$4 sm:$0xff]  }
 0x52d   : > { %v3023_v35 = vpop.permute.xlu1 %3022  ;;  %v3172_v54 = vpack.c.bf16 %v3124_v7, %v3123_v60  ;;  %3302 = vperm.xlu0 %5144, %v5444_v18   ;;  %v5466_v21 = vld [vmem:[%s9404_s1 + $0x1a0] sm:$0xff] }
 0x52e   : > { %v3091_v26 = vmul.f32 %v3023_v35, %v2707_v31  ;;  %3298 = vperm.xlu1 %5143, %v5445_v22   ;;  %v5189_v60 = vld [vmem:[#allocation5 + $0xe0] ss:$16 sps:$4 sm:$0xff]   ;;  %v5193_v7 = vld [vmem:[#allocation5 + $0x104] ss:$16 sps:$4 sm:$0xff]   ;;  %v5204_v22 = vld [vmem:[#allocation5 + $0x128] ss:$16 sps:$4 sm:$0xff]  }
 0x52f   : > { %4116 = vmatpush1.bf16.msra.mxu0 %v3172_v54  ;;  %v5468_v35 = vld [vmem:[%s9404_s1 + $0x1b0] sm:$0xff]  ;;  %v5192_v54 = vld [vmem:[#allocation5 + $0xe8] ss:$16 sps:$4 sm:$0xff]  }
 0x530   : > { %v3155_v36 = vsel %vm2771_vm0, %v2707_v31, %v3091_v26  ;;  %v5465_v31 = vld [vmem:[%s9404_s1 + $0x188] sm:$0xff]  ;;  %v5205_v18 = vld [vmem:[#allocation5 + $0x144] ss:$16 sps:$4 sm:$0xff]  }
 0x531   : > { %v3188_v56 = vpack.c.bf16 %v3156_v52, %v3155_v36  ;;  %3310 = vperm.xlu0 %5144, %v5446_v5   ;;  %v5469_v26 = vld [vmem:[%s9404_s1 + $0x1a8] sm:$0xff]  ;;  %v5199_v36 = vld [vmem:[#allocation5 + $0x124] ss:$16 sps:$4 sm:$0xff]   ;;  %v5471_v52 = vld [vmem:[%s9404_s1 + $0x1b8] sm:$0xff] }
 0x532   : > { %4118 = vmatmul.mubr.bf16.vlgmr.msra.gmra.mrb[0].mxu0 %v5145_v42  ;;  %3306 = vperm.xlu1 %5143, %v8724_v34   ;;  %v5166_v34 = vld [vmem:[#allocation5 + $0x6c] ss:$16 sps:$4 sm:$0xff]   ;;  %v5470_v42 = vld [vmem:[%s9404_s1 + $0x1c0] sm:$0xff] }
 0x533   : > { %4405 = vmatpush1.bf16.msra.mxu1 %v3188_v56  ;;  %4125 = vmatprep.mubr.bf16.mxu0 %v5151_v12  ;;  %v5195_v12 = vld [vmem:[#allocation5 + $0x100] ss:$16 sps:$4 sm:$0xff]   ;;  %v5198_v56 = vld [vmem:[#allocation5 + $0x108] ss:$16 sps:$4 sm:$0xff]   ;;  %v5208_v5 = vld [vmem:[#allocation5 + $0x14c] ss:$16 sps:$4 sm:$0xff]  }
 0x535   : > { %3318 = vperm.xlu0 %5144, %v5447_v49   ;;  %v5211_v49 = vld [vmem:[#allocation5 + $0x164] ss:$16 sps:$4 sm:$0xff]  }
 0x536   : > { %4407 = vmatmul.mubr.bf16.vlgmr.msra.gmra.mrb[0].mxu1 %v5148_v55  ;;  %3314 = vperm.xlu1 %5143, %v8775_v8   ;;  %v5165_v8 = vld [vmem:[#allocation5 + $0x60] ss:$16 sps:$4 sm:$0xff]   ;;  %v5473_v55 = vld [vmem:[%s9404_s1 + $0x1c8] sm:$0xff] }
 0x537   : > { %4414 = vmatprep.mubr.bf16.mxu1 %v5154_v62  ;;  %v5474_v62 = vld [vmem:[%s9404_s1 + $0x1e0] sm:$0xff] }
 0x539   : > { %3326 = vperm.xlu0 %5144, %v5448_v0   ;;  %v5214_v0 = vld [vmem:[#allocation5 + $0x16c] ss:$16 sps:$4 sm:$0xff]  }
 0x53a   : > { %4126 = vmatmul.mubr.bf16.gmra.mrb[4].mxu0 %v5153_v61  ;;  %3322 = vperm.xlu1 %5143, %v5449_v38   ;;  %v5475_v61 = vld [vmem:[%s9404_s1 + $0x1d8] sm:$0xff] }
 0x53b   : > { %4133 = vmatprep.mubr.bf16.mxu0 %v5157_v59  ;;  %v5476_v59 = vld [vmem:[%s9404_s1 + $0x1f0] sm:$0xff]  ;;  %v5216_v38 = vld [vmem:[#allocation5 + $0x168] ss:$16 sps:$4 sm:$0xff]  }
 0x53d   : > { %3334 = vperm.xlu0 %5144, %v5450_v50   ;;  %v5220_v50 = vld [vmem:[#allocation5 + $0x18c] ss:$16 sps:$4 sm:$0xff]  }
 0x53e   : > { %4415 = vmatmul.mubr.bf16.gmra.mrb[4].mxu1 %v5156_v11  ;;  %3330 = vperm.xlu1 %5143, %v5451_v6   ;;  %v5477_v11 = vld [vmem:[%s9404_s1 + $0x1e8] sm:$0xff] }
 0x53f   : > { %4422 = vmatprep.mubr.bf16.mxu1 %v5160_v19  ;;  %v5207_v19 = vld [vmem:[#allocation5 + $0x140] ss:$16 sps:$4 sm:$0xff]   ;;  %v5222_v6 = vld [vmem:[#allocation5 + $0x188] ss:$16 sps:$4 sm:$0xff]  }
 0x541   : > { %3342 = vperm.xlu0 %5144, %v5452_v14   ;;  %v5226_v14 = vld [vmem:[#allocation5 + $0x1ac] ss:$16 sps:$4 sm:$0xff]  }
 0x542   : > { %4134 = vmatmul.mubr.bf16.gmra.mrb[8].mxu0 %v5159_v53  ;;  %3338 = vperm.xlu1 %5143, %v5453_v23   ;;  %v5478_v53 = vld [vmem:[%s9404_s1 + $0x1f8] sm:$0xff] }
 0x543   : > { %4141 = vmatprep.mubr.bf16.mxu0 %v5163_v48  ;;  %v5210_v48 = vld [vmem:[#allocation5 + $0x148] ss:$16 sps:$4 sm:$0xff]  }
 0x544   : > { %v5228_v23 = vld [vmem:[#allocation5 + $0x1a8] ss:$16 sps:$4 sm:$0xff]  }
 0x545   : > { %3350 = vperm.xlu0 %5144, %v5454_v9   ;;  %v5232_v9 = vld [vmem:[#allocation5 + $0x1cc] ss:$16 sps:$4 sm:$0xff]  }
 0x546   : > { %4423 = vmatmul.mubr.bf16.gmra.mrb[8].mxu1 %v5162_v39  ;;  %3346 = vperm.xlu1 %5143, %v5455_v16   ;;  %v5213_v39 = vld [vmem:[#allocation5 + $0x160] ss:$16 sps:$4 sm:$0xff]   ;;  %v5234_v16 = vld [vmem:[#allocation5 + $0x1c8] ss:$16 sps:$4 sm:$0xff]  }
 0x547   : > { %4430 = vmatprep.mubr.bf16.mxu1 %v5166_v34  ;;  %v5217_v34 = vld [vmem:[#allocation5 + $0x184] ss:$16 sps:$4 sm:$0xff]  }
 0x549   : > { %3358 = vperm.xlu0 %5144, %v5456_v28   ;;  %v5238_v28 = vld [vmem:[#allocation5 + $0x1ec] ss:$16 sps:$4 sm:$0xff]  }
 0x54a   : > { %4142 = vmatmul.mubr.bf16.gmra.mrb[12].mxu0 %v5165_v8  ;;  %3354 = vperm.xlu1 %5143, %v5457_v58   ;;  %v5219_v8 = vld [vmem:[#allocation5 + $0x180] ss:$16 sps:$4 sm:$0xff]   ;;  %v5240_v58 = vld [vmem:[#allocation5 + $0x1e8] ss:$16 sps:$4 sm:$0xff]  }
 0x54b   : > { %4149 = vmatprep.mubr.bf16.mxu0 %v5169_v1  ;;  %v5223_v1 = vld [vmem:[#allocation5 + $0x1a4] ss:$16 sps:$4 sm:$0xff]  }
 0x54d   : > { %3366 = vperm.xlu0 %5144, %v5458_v10   ;;  %v5244_v10 = vld [vmem:[#allocation5 + $0x20c] ss:$16 sps:$4 sm:$0xff]  }
 0x54e   : > { %4431 = vmatmul.mubr.bf16.gmra.mrb[12].mxu1 %v5168_v13  ;;  %3362 = vperm.xlu1 %5143, %v5459_v44   ;;  %v5225_v13 = vld [vmem:[#allocation5 + $0x1a0] ss:$16 sps:$4 sm:$0xff]   ;;  %v5246_v44 = vld [vmem:[#allocation5 + $0x208] ss:$16 sps:$4 sm:$0xff]  }
 0x54f   : > { %4438 = vmatprep.mubr.bf16.mxu1 %v5172_v29  ;;  %v5229_v29 = vld [vmem:[#allocation5 + $0x1c4] ss:$16 sps:$4 sm:$0xff]  }
 0x551   : > { %3374 = vperm.xlu0 %5144, %v5460_v37   ;;  %v5250_v37 = vld [vmem:[#allocation5 + $0x22c] ss:$16 sps:$4 sm:$0xff]  }
 0x552   : > { %4150 = vmatmul.mubr.bf16.gmra.mrb[16].mxu0 %v5171_v33  ;;  %3370 = vperm.xlu1 %5143, %v5461_v45   ;;  %v5231_v33 = vld [vmem:[#allocation5 + $0x1c0] ss:$16 sps:$4 sm:$0xff]   ;;  %v5252_v45 = vld [vmem:[#allocation5 + $0x228] ss:$16 sps:$4 sm:$0xff]  }
 0x553   : > { %4157 = vmatprep.mubr.bf16.mxu0 %v5175_v30  ;;  %v5235_v30 = vld [vmem:[#allocation5 + $0x1e4] ss:$16 sps:$4 sm:$0xff]  }
 0x555   : > { %3382 = vperm.xlu0 %5144, %v5462_v17   ;;  %v5256_v17 = vld [vmem:[#allocation5 + $0x24c] ss:$16 sps:$4 sm:$0xff]  }
 0x556   : > { %4439 = vmatmul.mubr.bf16.gmra.mrb[16].mxu1 %v5174_v25  ;;  %3378 = vperm.xlu1 %5143, %v5463_v51   ;;  %v5237_v25 = vld [vmem:[#allocation5 + $0x1e0] ss:$16 sps:$4 sm:$0xff]   ;;  %v5258_v51 = vld [vmem:[#allocation5 + $0x248] ss:$16 sps:$4 sm:$0xff]  }
 0x557   : > { %4446 = vmatprep.mubr.bf16.mxu1 %v5178_v46  ;;  %v5241_v46 = vld [vmem:[#allocation5 + $0x204] ss:$16 sps:$4 sm:$0xff]  }
 0x559   : > { %3390 = vperm.xlu0 %5144, %v5464_v27   ;;  %v5262_v27 = vld [vmem:[#allocation5 + $0x26c] ss:$16 sps:$4 sm:$0xff]  }
 0x55a   : > { %4158 = vmatmul.mubr.bf16.gmra.mrb[20].mxu0 %v5177_v4  ;;  %3386 = vperm.xlu1 %5143, %v5465_v31   ;;  %v5243_v4 = vld [vmem:[#allocation5 + $0x200] ss:$16 sps:$4 sm:$0xff]   ;;  %v5264_v31 = vld [vmem:[#allocation5 + $0x268] ss:$16 sps:$4 sm:$0xff]  }
 0x55b   : > { %4165 = vmatprep.mubr.bf16.mxu0 %v5181_v2  ;;  %v5247_v2 = vld [vmem:[#allocation5 + $0x224] ss:$16 sps:$4 sm:$0xff]  }
 0x55d   : > { %3398 = vperm.xlu0 %5144, %v5466_v21   ;;  %v5268_v21 = vld [vmem:[#allocation5 + $0x28c] ss:$16 sps:$4 sm:$0xff]  }
 0x55e   : > { %4447 = vmatmul.mubr.bf16.gmra.mrb[20].mxu1 %v5180_v63  ;;  %3394 = vperm.xlu1 %5143, %v5467_v40   ;;  %v5249_v63 = vld [vmem:[#allocation5 + $0x220] ss:$16 sps:$4 sm:$0xff]   ;;  %v5270_v40 = vld [vmem:[#allocation5 + $0x288] ss:$16 sps:$4 sm:$0xff]  }
 0x55f   : > { %4454 = vmatprep.mubr.bf16.mxu1 %v5184_v41  ;;  %v5253_v41 = vld [vmem:[#allocation5 + $0x244] ss:$16 sps:$4 sm:$0xff]  }
 0x561   : > { %3406 = vperm.xlu0 %5144, %v5468_v35   ;;  %v5274_v35 = vld [vmem:[#allocation5 + $0x2ac] ss:$16 sps:$4 sm:$0xff]  }
 0x562   : > { %4166 = vmatmul.mubr.bf16.gmra.mrb[24].mxu0 %v5183_v15  ;;  %3402 = vperm.xlu1 %5143, %v5469_v26   ;;  %v5255_v15 = vld [vmem:[#allocation5 + $0x240] ss:$16 sps:$4 sm:$0xff]   ;;  %v5276_v26 = vld [vmem:[#allocation5 + $0x2a8] ss:$16 sps:$4 sm:$0xff]  }
 0x563   : > { %4173 = vmatprep.mubr.bf16.mxu0 %v5187_v57  ;;  %v5259_v57 = vld [vmem:[#allocation5 + $0x264] ss:$16 sps:$4 sm:$0xff]  }
 0x565   : > { %3414 = vperm.xlu0 %5144, %v5470_v42   ;;  %v5280_v42 = vld [vmem:[#allocation5 + $0x2cc] ss:$16 sps:$4 sm:$0xff]  }
 0x566   : > { %4455 = vmatmul.mubr.bf16.gmra.mrb[24].mxu1 %v5186_v43  ;;  %3410 = vperm.xlu1 %5143, %v5471_v52   ;;  %v5261_v43 = vld [vmem:[#allocation5 + $0x260] ss:$16 sps:$4 sm:$0xff]   ;;  %v5282_v52 = vld [vmem:[#allocation5 + $0x2c8] ss:$16 sps:$4 sm:$0xff]  }
 0x567   : > { %4462 = vmatprep.mubr.bf16.mxu1 %v5190_v47  ;;  %v5265_v47 = vld [vmem:[#allocation5 + $0x284] ss:$16 sps:$4 sm:$0xff]  }
 0x569   : > { %3422 = vperm.xlu0 %5144, %v5472_v32   ;;  %v5286_v32 = vld [vmem:[#allocation5 + $0x2ec] ss:$16 sps:$4 sm:$0xff]  }
 0x56a   : > { %4174 = vmatmul.mubr.bf16.gmra.mrb[28].mxu0 %v5189_v60  ;;  %3418 = vperm.xlu1 %5143, %v5473_v55   ;;  %v5267_v60 = vld [vmem:[#allocation5 + $0x280] ss:$16 sps:$4 sm:$0xff]   ;;  %v5288_v55 = vld [vmem:[#allocation5 + $0x2e8] ss:$16 sps:$4 sm:$0xff]  }
 0x56b   : > { %4181 = vmatprep.mubr.bf16.mxu0 %v5193_v7  ;;  %v5271_v7 = vld [vmem:[#allocation5 + $0x2a4] ss:$16 sps:$4 sm:$0xff]  }
 0x56d   : > { %3430 = vperm.xlu0 %5144, %v5474_v62   ;;  %v5292_v62 = vld [vmem:[#allocation5 + $0x30c] ss:$16 sps:$4 sm:$0xff]  }
 0x56e   : > { %4463 = vmatmul.mubr.bf16.gmra.mrb[28].mxu1 %v5192_v54  ;;  %3426 = vperm.xlu1 %5143, %v5475_v61   ;;  %v5273_v54 = vld [vmem:[#allocation5 + $0x2a0] ss:$16 sps:$4 sm:$0xff]   ;;  %v5294_v61 = vld [vmem:[#allocation5 + $0x308] ss:$16 sps:$4 sm:$0xff]  }
 0x56f   : > { %4470 = vmatprep.mubr.bf16.mxu1 %v5196_v20  ;;  %v5277_v20 = vld [vmem:[#allocation5 + $0x2c4] ss:$16 sps:$4 sm:$0xff]  }
 0x571   : > { %3438 = vperm.xlu0 %5144, %v5476_v59   ;;  %v5298_v59 = vld [vmem:[#allocation5 + $0x32c] ss:$16 sps:$4 sm:$0xff]  }
 0x572   : > { %4182 = vmatmul.mubr.bf16.gmra.mrb[32].mxu0 %v5195_v12  ;;  %3434 = vperm.xlu1 %5143, %v5477_v11   ;;  %v5279_v12 = vld [vmem:[#allocation5 + $0x2c0] ss:$16 sps:$4 sm:$0xff]   ;;  %v5300_v11 = vld [vmem:[#allocation5 + $0x328] ss:$16 sps:$4 sm:$0xff]  }
 0x573   : > { %4189 = vmatprep.mubr.bf16.mxu0 %v5199_v36  ;;  %v5283_v36 = vld [vmem:[#allocation5 + $0x2e4] ss:$16 sps:$4 sm:$0xff]  }
 0x576   : > { %4471 = vmatmul.mubr.bf16.gmra.mrb[32].mxu1 %v5198_v56  ;;  %3442 = vperm.xlu1 %5143, %v5478_v53   ;;  %v5285_v56 = vld [vmem:[#allocation5 + $0x2e0] ss:$16 sps:$4 sm:$0xff]   ;;  %v5307_v53 = vld [vmem:[#allocation5 + $0x364] ss:$16 sps:$4 sm:$0xff]  }
 0x577   : > { %4478 = vmatprep.mubr.bf16.mxu1 %v5202_v3  ;;  %v5289_v3 = vld [vmem:[#allocation5 + $0x304] ss:$16 sps:$4 sm:$0xff]  }
 0x57a   : > { %4190 = vmatmul.mubr.bf16.gmra.mrb[36].mxu0 %v5201_v24  ;;  %v5291_v24 = vld [vmem:[#allocation5 + $0x300] ss:$16 sps:$4 sm:$0xff]  }
 0x57b   : > { %4197 = vmatprep.mubr.bf16.mxu0 %v5205_v18  ;;  %v5295_v18 = vld [vmem:[#allocation5 + $0x324] ss:$16 sps:$4 sm:$0xff]  }
 0x57e   : > { %4479 = vmatmul.mubr.bf16.gmra.mrb[36].mxu1 %v5204_v22  ;;  %v5297_v22 = vld [vmem:[#allocation5 + $0x320] ss:$16 sps:$4 sm:$0xff]  }
 0x57f   : > { %4486 = vmatprep.mubr.bf16.mxu1 %v5208_v5  ;;  %v5301_v5 = vld [vmem:[#allocation5 + $0x344] ss:$16 sps:$4 sm:$0xff]  }
 0x582   : > { %4198 = vmatmul.mubr.bf16.gmra.mrb[40].mxu0 %v5207_v19  ;;  %v5304_v19 = vld [vmem:[#allocation5 + $0x34c] ss:$16 sps:$4 sm:$0xff]  }
 0x583   : > { %4205 = vmatprep.mubr.bf16.mxu0 %v5211_v49  ;;  %v5303_v49 = vld [vmem:[#allocation5 + $0x340] ss:$16 sps:$4 sm:$0xff]  }
 0x586   : > { %4487 = vmatmul.mubr.bf16.gmra.mrb[40].mxu1 %v5210_v48  ;;  %v5306_v48 = vld [vmem:[#allocation5 + $0x348] ss:$16 sps:$4 sm:$0xff]  }
 0x587   : > { %4494 = vmatprep.mubr.bf16.mxu1 %v5214_v0  ;;  %v5310_v0 = vld [vmem:[#allocation5 + $0x36c] ss:$16 sps:$4 sm:$0xff]  }
 0x58a   : > { %4206 = vmatmul.mubr.bf16.gmra.mrb[44].mxu0 %v5213_v39  ;;  %v3191_v39 = vpop.permute.xlu1 %3190 }
 0x58b   : > { %4213 = vmatprep.mubr.bf16.mxu0 %v5217_v34 }
 0x58e   : > { %4495 = vmatmul.mubr.bf16.gmra.mrb[44].mxu1 %v5216_v38 }
 0x58f   : > { %4502 = vmatprep.mubr.bf16.mxu1 %v5220_v50 }
 0x592   : > { %4214 = vmatmul.mubr.bf16.gmra.mrb[48].mxu0 %v5219_v8  ;;  %v5309_v8 = vld [vmem:[#allocation5 + $0x360] ss:$16 sps:$4 sm:$0xff]  }
 0x593   : > { %4221 = vmatprep.mubr.bf16.mxu0 %v5223_v1 }
 0x596   : > { %4503 = vmatmul.mubr.bf16.gmra.mrb[48].mxu1 %v5222_v6  ;;  %v3195_v6 = vpop.permute.xlu0 %3194 }
 0x597   : > { %4510 = vmatprep.mubr.bf16.mxu1 %v5226_v14  ;;  %v5313_v14 = vld [vmem:[#allocation5 + $0x384] ss:$16 sps:$4 sm:$0xff]  }
 0x59a   : > { %4222 = vmatmul.mubr.bf16.gmra.mrb[52].mxu0 %v5225_v13 }
 0x59b   : > { %4229 = vmatprep.mubr.bf16.mxu0 %v5229_v29 }
 0x59e   : > { %4511 = vmatmul.mubr.bf16.gmra.mrb[52].mxu1 %v5228_v23 }
 0x59f   : > { %4518 = vmatprep.mubr.bf16.mxu1 %v5232_v9 }
 0x5a2   : > { %4230 = vmatmul.mubr.bf16.gmra.mrb[56].mxu0 %v5231_v33 }
 0x5a3   : > { %4237 = vmatprep.mubr.bf16.mxu0 %v5235_v30  ;;  %v5312_v30 = vld [vmem:[#allocation5 + $0x368] ss:$16 sps:$4 sm:$0xff]  }
 0x5a6   : > { %4519 = vmatmul.mubr.bf16.gmra.mrb[56].mxu1 %v5234_v16  ;;  %v3199_v16 = vpop.permute.xlu1 %3198 }
 0x5a7   : > { %4526 = vmatprep.mubr.bf16.mxu1 %v5238_v28 }
 0x5aa   : > { %4238 = vmatmul.mubr.bf16.gmra.mrb[60].mxu0 %v5237_v25  ;;  %v5316_v25 = vld [vmem:[#allocation5 + $0x38c] ss:$16 sps:$4 sm:$0xff]  }
 0x5ab   : > { %4245 = vmatprep.mubr.bf16.mxu0 %v5241_v46  ;;  %v5479_v46 = vld [vmem:[%s5857_s9] sm:$0xff] }
 0x5ae   : > { %4527 = vmatmul.mubr.bf16.gmra.mrb[60].mxu1 %v5240_v58 }
 0x5af   : > { %4534 = vmatprep.mubr.bf16.mxu1 %v5244_v10 }
 0x5b2   : > { %4246 = vmatmul.mubr.bf16.gmra.mrb[64].mxu0 %v5243_v4 }
 0x5b3   : > { %4253 = vmatprep.mubr.bf16.mxu0 %v5247_v2 }
 0x5b6   : > { %4535 = vmatmul.mubr.bf16.gmra.mrb[64].mxu1 %v5246_v44  ;;  %v5480_v44 = vld [vmem:[%s5857_s9 + $0x8] sm:$0xff] }
 0x5b7   : > { %4542 = vmatprep.mubr.bf16.mxu1 %v5250_v37 }
 0x5ba   : > { %4254 = vmatmul.mubr.bf16.gmra.mrb[68].mxu0 %v5249_v63 }
 0x5bb   : > { %4261 = vmatprep.mubr.bf16.mxu0 %v5253_v41 }
 0x5be   : > { %4543 = vmatmul.mubr.bf16.gmra.mrb[68].mxu1 %v5252_v45  ;;  %v5315_v45 = vld [vmem:[#allocation5 + $0x380] ss:$16 sps:$4 sm:$0xff]  }
 0x5bf   : > { %4550 = vmatprep.mubr.bf16.mxu1 %v5256_v17 }
 0x5c2   : > { %4262 = vmatmul.mubr.bf16.gmra.mrb[72].mxu0 %v5255_v15  ;;  %v5319_v15 = vld [vmem:[#allocation5 + $0x3a4] ss:$16 sps:$4 sm:$0xff]  }
 0x5c3   : > { %4269 = vmatprep.mubr.bf16.mxu0 %v5259_v57 }
 0x5c6   : > { %4551 = vmatmul.mubr.bf16.gmra.mrb[72].mxu1 %v5258_v51  ;;  %v3203_v51 = vpop.permute.xlu1 %3202 }
 0x5c7   : > { %4558 = vmatprep.mubr.bf16.mxu1 %v5262_v27 }
 0x5ca   : > { %4270 = vmatmul.mubr.bf16.gmra.mrb[76].mxu0 %v5261_v43 }
 0x5cb   : > { %4277 = vmatprep.mubr.bf16.mxu0 %v5265_v47 }
 0x5ce   : > { %4559 = vmatmul.mubr.bf16.gmra.mrb[76].mxu1 %v5264_v31 }
 0x5cf   : > { %4566 = vmatprep.mubr.bf16.mxu1 %v5268_v21  ;;  %v5318_v21 = vld [vmem:[#allocation5 + $0x388] ss:$16 sps:$4 sm:$0xff]  }
 0x5d2   : > { %4278 = vmatmul.mubr.bf16.gmra.mrb[80].mxu0 %v5267_v60 }
 0x5d3   : > { %4285 = vmatprep.mubr.bf16.mxu0 %v5271_v7  ;;  %v5322_v7 = vld [vmem:[#allocation5 + $0x3ac] ss:$16 sps:$4 sm:$0xff]  }
 0x5d6   : > { %4567 = vmatmul.mubr.bf16.gmra.mrb[80].mxu1 %v5270_v40  ;;  %v5481_v40 = vld [vmem:[%s5857_s9 + $0x10] sm:$0xff] }
 0x5d7   : > { %4574 = vmatprep.mubr.bf16.mxu1 %v5274_v35 }
 0x5da   : > { %4286 = vmatmul.mubr.bf16.gmra.mrb[84].mxu0 %v5273_v54 }
 0x5db   : > { %4293 = vmatprep.mubr.bf16.mxu0 %v5277_v20 }
 0x5de   : > { %4575 = vmatmul.mubr.bf16.gmra.mrb[84].mxu1 %v5276_v26 }
 0x5df   : > { %4582 = vmatprep.mubr.bf16.mxu1 %v5280_v42  ;;  %v3207_v42 = vpop.permute.xlu0 %3206 }
 0x5e2   : > { %4294 = vmatmul.mubr.bf16.gmra.mrb[88].mxu0 %v5279_v12  ;;  %v5482_v12 = vld [vmem:[%s5857_s9 + $0x18] sm:$0xff] }
 0x5e3   : > { %4301 = vmatprep.mubr.bf16.mxu0 %v5283_v36 }
 0x5e6   : > { %4583 = vmatmul.mubr.bf16.gmra.mrb[88].mxu1 %v5282_v52 }
 0x5e7   : > { %4590 = vmatprep.mubr.bf16.mxu1 %v5286_v32 }
 0x5ea   : > { %4302 = vmatmul.mubr.bf16.gmra.mrb[92].mxu0 %v5285_v56  ;;  %v5321_v56 = vld [vmem:[#allocation5 + $0x3a0] ss:$16 sps:$4 sm:$0xff]  }
 0x5eb   : > { %4309 = vmatprep.mubr.bf16.mxu0 %v5289_v3 }
 0x5ee   : > { %4591 = vmatmul.mubr.bf16.gmra.mrb[92].mxu1 %v5288_v55  ;;  %v5325_v55 = vld [vmem:[#allocation5 + $0x3c4] ss:$16 sps:$4 sm:$0xff]  }
 0x5ef   : > { %4598 = vmatprep.mubr.bf16.mxu1 %v5292_v62 }
 0x5f2   : > { %4310 = vmatmul.mubr.bf16.gmra.mrb[96].mxu0 %v5291_v24  ;;  %v3211_v24 = vpop.permute.xlu1 %3210 }
 0x5f3   : > { %4317 = vmatprep.mubr.bf16.mxu0 %v5295_v18 }
 0x5f6   : > { %4599 = vmatmul.mubr.bf16.gmra.mrb[96].mxu1 %v5294_v61 }
 0x5f7   : > { %4606 = vmatprep.mubr.bf16.mxu1 %v5298_v59 }
 0x5fa   : > { %4318 = vmatmul.mubr.bf16.gmra.mrb[100].mxu0 %v5297_v22 }
 0x5fb   : > { %4325 = vmatprep.mubr.bf16.mxu0 %v5301_v5  ;;  %v5324_v5 = vld [vmem:[#allocation5 + $0x3a8] ss:$16 sps:$4 sm:$0xff]  }
 0x5fe   : > { %4607 = vmatmul.mubr.bf16.gmra.mrb[100].mxu1 %v5300_v11 }
 0x5ff   : > { %4614 = vmatprep.mubr.bf16.mxu1 %v5304_v19  ;;  %v5328_v19 = vld [vmem:[#allocation5 + $0x3cc] ss:$16 sps:$4 sm:$0xff]  }
 0x602   : > { %4326 = vmatmul.mubr.bf16.gmra.mrb[104].mxu0 %v5303_v49  ;;  %v5483_v49 = vld [vmem:[%s5857_s9 + $0x20] sm:$0xff] }
 0x603   : > { %4333 = vmatprep.mubr.bf16.mxu0 %v5307_v53 }
 0x605   : > { %v4119_v34 = vpop.f32.mrb[0].mxu0 }
 0x606   : > { %v4120_v38 = vadd.f32 %v4119_v34, %v3191_v39  ;;  %v4121_v50 = vpop.f32.mrb[1].mxu0  ;;  %4615 = vmatmul.mubr.bf16.gmra.mrb[104].mxu1 %v5306_v48  ;;  %v3215_v39 = vpop.permute.xlu0 %3214 }
 0x607   : > { %v4122_v1 = vpop.f32.mrb[2].mxu0  ;;  %4622 = vmatprep.mubr.bf16.mxu1 %v5310_v0 }
 0x608   : > { %v4124_v13 = vpop.f32.mrb[3].mxu0  ;;  %v4123_v23 = vadd.f32 %v4122_v1, %v3195_v6  ;;  %v5327_v6 = vld [vmem:[#allocation5 + $0x3c0] ss:$16 sps:$4 sm:$0xff]  }
 0x609   : > { %v4408_v29 = vpop.f32.mrb[0].mxu1  ;;  %v5331_v13 = vld [vmem:[#allocation5 + $0x3e4] ss:$16 sps:$4 sm:$0xff]  }
 0x60a   : > { %v4409_v9 = vadd.f32 %v4408_v29, %v4120_v38  ;;  %4334 = vmatmul.mubr.bf16.gmra.mrb[108].mxu0 %v5309_v8  ;;  %v4410_v33 = vpop.f32.mrb[1].mxu1  ;;  %v5484_v38 = vld [vmem:[%s5857_s9 + $0x28] sm:$0xff] }
 0x60b   : > { %v4411_v28 = vpop.f32.mrb[2].mxu1  ;;  %4341 = vmatprep.mubr.bf16.mxu0 %v5313_v14 }
 0x60c   : > { %v4663_v58 = vadd.f32 %v5479_v46, %v4409_v9  ;;  %v4412_v10 = vadd.f32 %v4411_v28, %v4123_v23  ;;  %v4413_v4 = vpop.f32.mrb[3].mxu1  ;;  %v3219_v23 = vpop.permute.xlu1 %3218  ;;  %v5330_v28 = vld [vmem:[#allocation5 + $0x3c8] ss:$16 sps:$4 sm:$0xff]   ;;  %v5334_v46 = vld [vmem:[#allocation5 + $0x3ec] ss:$16 sps:$4 sm:$0xff]  }
 0x60d   : > { %v4127_v2 = vpop.f32.mrb[4].mxu0 }
 0x60e   : > { %4727 = vst [vmem:[%s9223_s28] sm:$0xff] %v4663_v58  ;;  %v4664_v37 = vadd.f32 %v5480_v44, %v4412_v10  ;;  %v4128_v63 = vadd.f32 %v4127_v2, %v3199_v16  ;;  %v4129_v41 = vpop.f32.mrb[5].mxu0  ;;  %4623 = vmatmul.mubr.bf16.gmra.mrb[108].mxu1 %v5312_v30  ;;  %v5485_v58 = vld [vmem:[%s5857_s9 + $0x30] sm:$0xff]  ;;  %v3223_v44 = vpop.permute.xlu0 %3222 }
 0x60f   : > { %v4130_v17 = vpop.f32.mrb[6].mxu0  ;;  %4630 = vmatprep.mubr.bf16.mxu1 %v5316_v25 }
 0x610   : > { %4728 = vst [vmem:[%s9223_s28 + $0x8] sm:$0xff] %v4664_v37  ;;  %v4132_v57 = vpop.f32.mrb[7].mxu0  ;;  %v4131_v43 = vadd.f32 %v4130_v17, %v3203_v51 }
 0x611   : > { %v4416_v27 = vpop.f32.mrb[4].mxu1 }
 0x612   : > { %v4417_v47 = vadd.f32 %v4416_v27, %v4128_v63  ;;  %4342 = vmatmul.mubr.bf16.gmra.mrb[112].mxu0 %v5315_v45  ;;  %v4418_v31 = vpop.f32.mrb[5].mxu1  ;;  %v5486_v63 = vld [vmem:[%s5857_s9 + $0x38] sm:$0xff]  ;;  %v3227_v27 = vpop.permute.xlu1 %3226 }
 0x613   : > { %v4419_v60 = vpop.f32.mrb[6].mxu1  ;;  %4349 = vmatprep.mubr.bf16.mxu0 %v5319_v15  ;;  %v5333_v15 = vld [vmem:[#allocation5 + $0x3e0] ss:$16 sps:$4 sm:$0xff]  }
 0x614   : > { %v4665_v35 = vadd.f32 %v5481_v40, %v4417_v47  ;;  %v4420_v54 = vadd.f32 %v4419_v60, %v4131_v43  ;;  %v4421_v20 = vpop.f32.mrb[7].mxu1  ;;  %v5336_v60 = vld [vmem:[#allocation5 + $0x3e8] ss:$16 sps:$4 sm:$0xff]   ;;  %v5487_v40 = vld [vmem:[%s5857_s9 + $0x40] sm:$0xff] }
 0x615   : > { %v4135_v26 = vpop.f32.mrb[8].mxu0 }
 0x616   : > { %4729 = vst [vmem:[%s9223_s28 + $0x10] sm:$0xff] %v4665_v35  ;;  %v4666_v36 = vadd.f32 %v5482_v12, %v4420_v54  ;;  %v4136_v52 = vadd.f32 %v4135_v26, %v3207_v42  ;;  %v4137_v32 = vpop.f32.mrb[9].mxu0  ;;  %4631 = vmatmul.mubr.bf16.gmra.mrb[112].mxu1 %v5318_v21  ;;  %v3231_v26 = vpop.permute.xlu0 %3230  ;;  %v5488_v12 = vld [vmem:[%s5857_s9 + $0x48] sm:$0xff] }
 0x617   : > { %v4138_v3 = vpop.f32.mrb[10].mxu0  ;;  %4638 = vmatprep.mubr.bf16.mxu1 %v5322_v7 }
 0x618   : > { %4730 = vst [vmem:[%s9223_s28 + $0x18] sm:$0xff] %v4666_v36  ;;  %v4140_v62 = vpop.f32.mrb[11].mxu0  ;;  %v4139_v61 = vadd.f32 %v4138_v3, %v3211_v24 }
 0x619   : > { %v4424_v18 = vpop.f32.mrb[8].mxu1 }
 0x61a   : > { %v4425_v59 = vadd.f32 %v4424_v18, %v4136_v52  ;;  %4350 = vmatmul.mubr.bf16.gmra.mrb[116].mxu0 %v5321_v56  ;;  %v4426_v22 = vpop.f32.mrb[9].mxu1 }
 0x61b   : > { %v4427_v11 = vpop.f32.mrb[10].mxu1  ;;  %4357 = vmatprep.mubr.bf16.mxu0 %v5325_v55  ;;  %v3235_v55 = vpop.permute.xlu1 %3234  ;;  %v5489_v22 = vld [vmem:[%s5857_s9 + $0x50] sm:$0xff] }
 0x61c   : > { %v4667_v53 = vadd.f32 %v5483_v49, %v4425_v59  ;;  %v4428_v48 = vadd.f32 %v4427_v11, %v4139_v61  ;;  %v4429_v0 = vpop.f32.mrb[11].mxu1  ;;  %v3239_v49 = vpop.permute.xlu0 %3238 }
 0x61d   : > { %v4143_v34 = vpop.f32.mrb[12].mxu0 }
 0x61e   : > { %4731 = vst [vmem:[%s9223_s28 + $0x20] sm:$0xff] %v4667_v53  ;;  %v4668_v50 = vadd.f32 %v5484_v38, %v4428_v48  ;;  %v4144_v8 = vadd.f32 %v4143_v34, %v3215_v39  ;;  %v4145_v1 = vpop.f32.mrb[13].mxu0  ;;  %4639 = vmatmul.mubr.bf16.gmra.mrb[116].mxu1 %v5324_v5  ;;  %v5490_v48 = vld [vmem:[%s5857_s9 + $0x58] sm:$0xff] }
 0x61f   : > { %v4146_v14 = vpop.f32.mrb[14].mxu0  ;;  %4646 = vmatprep.mubr.bf16.mxu1 %v5328_v19 }
 0x620   : > { %4732 = vst [vmem:[%s9223_s28 + $0x28] sm:$0xff] %v4668_v50  ;;  %v4148_v29 = vpop.f32.mrb[15].mxu0  ;;  %v4147_v33 = vadd.f32 %v4146_v14, %v3219_v23  ;;  %v5491_v23 = vld [vmem:[%s5857_s9 + $0x60] sm:$0xff] }
 0x621   : > { %v4432_v9 = vpop.f32.mrb[12].mxu1 }
 0x622   : > { %v4433_v30 = vadd.f32 %v4432_v9, %v4144_v8  ;;  %4358 = vmatmul.mubr.bf16.gmra.mrb[120].mxu0 %v5327_v6  ;;  %v4434_v16 = vpop.f32.mrb[13].mxu1  ;;  %v3243_v8 = vpop.permute.xlu1 %3242 }
 0x623   : > { %v4435_v25 = vpop.f32.mrb[14].mxu1  ;;  %4365 = vmatprep.mubr.bf16.mxu0 %v5331_v13  ;;  %v3247_v16 = vpop.permute.xlu0 %3246 }
 0x624   : > { %v4669_v10 = vadd.f32 %v5485_v58, %v4433_v30  ;;  %v4436_v4 = vadd.f32 %v4435_v25, %v4147_v33  ;;  %v4437_v2 = vpop.f32.mrb[15].mxu1  ;;  %v5492_v25 = vld [vmem:[%s5857_s9 + $0x68] sm:$0xff] }
 0x625   : > { %v4151_v37 = vpop.f32.mrb[16].mxu0 }
 0x626   : > { %4733 = vst [vmem:[%s9223_s28 + $0x30] sm:$0xff] %v4669_v10  ;;  %v4670_v41 = vadd.f32 %v5486_v63, %v4436_v4  ;;  %v4152_v45 = vadd.f32 %v4151_v37, %v3223_v44  ;;  %v4153_v17 = vpop.f32.mrb[17].mxu0  ;;  %4647 = vmatmul.mubr.bf16.gmra.mrb[120].mxu1 %v5330_v28  ;;  %v3251_v44 = vpop.permute.xlu1 %3250 }
 0x627   : > { %v4154_v57 = vpop.f32.mrb[18].mxu0  ;;  %4654 = vmatprep.mubr.bf16.mxu1 %v5334_v46 }
 0x628   : > { %4734 = vst [vmem:[%s9223_s28 + $0x38] sm:$0xff] %v4670_v41  ;;  %v4156_v51 = vpop.f32.mrb[19].mxu0  ;;  %v4155_v47 = vadd.f32 %v4154_v57, %v3227_v27 }
 0x629   : > { %v4440_v43 = vpop.f32.mrb[16].mxu1 }
 0x62a   : > { %v4441_v31 = vadd.f32 %v4440_v43, %v4152_v45  ;;  %4366 = vmatmul.mubr.bf16.gmra.mrb[124].mxu0 %v5333_v15  ;;  %v4442_v21 = vpop.f32.mrb[17].mxu1  ;;  %v5493_v15 = vld [vmem:[%s5857_s9 + $0x70] sm:$0xff]  ;;  %v3255_v43 = vpop.permute.xlu0 %3254 }
 0x62b   : > { %v4443_v7 = vpop.f32.mrb[18].mxu1 }
 0x62c   : > { %v4671_v35 = vadd.f32 %v5487_v40, %v4441_v31  ;;  %v4444_v54 = vadd.f32 %v4443_v7, %v4155_v47  ;;  %v4445_v20 = vpop.f32.mrb[19].mxu1  ;;  %v5494_v31 = vld [vmem:[%s5857_s9 + $0x78] sm:$0xff] }
 0x62d   : > { %v4159_v42 = vpop.f32.mrb[20].mxu0 }
 0x62e   : > { %4735 = vst [vmem:[%s9223_s28 + $0x40] sm:$0xff] %v4671_v35  ;;  %v4672_v36 = vadd.f32 %v5488_v12, %v4444_v54  ;;  %v4160_v52 = vadd.f32 %v4159_v42, %v3231_v26  ;;  %v4161_v32 = vpop.f32.mrb[21].mxu0  ;;  %4655 = vmatmul.mubr.bf16.gmra.mrb[124].mxu1 %v5336_v60  ;;  %v3259_v54 = vpop.permute.xlu1 %3258 }
 0x62f   : > { %v4162_v56 = vpop.f32.mrb[22].mxu0 }
 0x630   : > { %4736 = vst [vmem:[%s9223_s28 + $0x48] sm:$0xff] %v4672_v36  ;;  %v4164_v3 = vpop.f32.mrb[23].mxu0  ;;  %v4163_v24 = vadd.f32 %v4162_v56, %v3235_v55  ;;  %v3263_v55 = vpop.permute.xlu0 %3262 }
 0x631   : > { %v4448_v62 = vpop.f32.mrb[20].mxu1 }
 0x632   : > { %v4449_v18 = vadd.f32 %v4448_v62, %v4160_v52  ;;  %v4450_v61 = vpop.f32.mrb[21].mxu1  ;;  %v5495_v52 = vld [vmem:[%s5857_s9 + $0x80] sm:$0xff] }
 0x633   : > { %v4451_v59 = vpop.f32.mrb[22].mxu1 }
 0x634   : > { %v4673_v5 = vadd.f32 %v5489_v22, %v4449_v18  ;;  %v4452_v11 = vadd.f32 %v4451_v59, %v4163_v24  ;;  %v4453_v19 = vpop.f32.mrb[23].mxu1  ;;  %v5496_v24 = vld [vmem:[%s5857_s9 + $0x88] sm:$0xff] }
 0x635   : > { %v4167_v53 = vpop.f32.mrb[24].mxu0 }
 0x636   : > { %4737 = vst [vmem:[%s9223_s28 + $0x50] sm:$0xff] %v4673_v5  ;;  %v4674_v0 = vadd.f32 %v5490_v48, %v4452_v11  ;;  %v4168_v39 = vadd.f32 %v4167_v53, %v3239_v49  ;;  %v4169_v34 = vpop.f32.mrb[25].mxu0  ;;  %v3267_v11 = vpop.permute.xlu1 %3266 }
 0x637   : > { %v4170_v38 = vpop.f32.mrb[26].mxu0 }
 0x638   : > { %4738 = vst [vmem:[%s9223_s28 + $0x58] sm:$0xff] %v4674_v0  ;;  %v4172_v50 = vpop.f32.mrb[27].mxu0  ;;  %v4171_v6 = vadd.f32 %v4170_v38, %v3243_v8  ;;  %v3271_v8 = vpop.permute.xlu0 %3270 }
 0x639   : > { %v4456_v1 = vpop.f32.mrb[24].mxu1 }
 0x63a   : > { %v4457_v14 = vadd.f32 %v4456_v1, %v4168_v39  ;;  %v4458_v13 = vpop.f32.mrb[25].mxu1  ;;  %v5497_v39 = vld [vmem:[%s5857_s9 + $0x90] sm:$0xff] }
 0x63b   : > { %v4459_v29 = vpop.f32.mrb[26].mxu1 }
 0x63c   : > { %v4675_v9 = vadd.f32 %v5491_v23, %v4457_v14  ;;  %v4460_v33 = vadd.f32 %v4459_v29, %v4171_v6  ;;  %v4461_v30 = vpop.f32.mrb[27].mxu1  ;;  %v5498_v6 = vld [vmem:[%s5857_s9 + $0x98] sm:$0xff] }
 0x63d   : > { %v4175_v28 = vpop.f32.mrb[28].mxu0 }
 0x63e   : > { %4739 = vst [vmem:[%s9223_s28 + $0x60] sm:$0xff] %v4675_v9  ;;  %v4676_v46 = vadd.f32 %v5492_v25, %v4460_v33  ;;  %v4176_v58 = vadd.f32 %v4175_v28, %v3247_v16  ;;  %v4177_v10 = vpop.f32.mrb[29].mxu0  ;;  %v3275_v33 = vpop.permute.xlu1 %3274 }
 0x63f   : > { %v4178_v4 = vpop.f32.mrb[30].mxu0 }
 0x640   : > { %4740 = vst [vmem:[%s9223_s28 + $0x68] sm:$0xff] %v4676_v46  ;;  %v4180_v2 = vpop.f32.mrb[31].mxu0  ;;  %v4179_v63 = vadd.f32 %v4178_v4, %v3251_v44  ;;  %v3279_v44 = vpop.permute.xlu0 %3278 }
 0x641   : > { %v4464_v37 = vpop.f32.mrb[28].mxu1 }
 0x642   : > { %v4465_v41 = vadd.f32 %v4464_v37, %v4176_v58  ;;  %v4466_v45 = vpop.f32.mrb[29].mxu1  ;;  %v5499_v58 = vld [vmem:[%s5857_s9 + $0xa0] sm:$0xff] }
 0x643   : > { %v4467_v17 = vpop.f32.mrb[30].mxu1 }
 0x644   : > { %v4677_v57 = vadd.f32 %v5493_v15, %v4465_v41  ;;  %v4468_v51 = vadd.f32 %v4467_v17, %v4179_v63  ;;  %v4469_v27 = vpop.f32.mrb[31].mxu1  ;;  %v5500_v63 = vld [vmem:[%s5857_s9 + $0xa8] sm:$0xff] }
 0x645   : > { %v4183_v47 = vpop.f32.mrb[32].mxu0 }
 0x646   : > { %4741 = vst [vmem:[%s9223_s28 + $0x70] sm:$0xff] %v4677_v57  ;;  %v4678_v21 = vadd.f32 %v5494_v31, %v4468_v51  ;;  %v4184_v60 = vadd.f32 %v4183_v47, %v3255_v43  ;;  %v4185_v7 = vpop.f32.mrb[33].mxu0  ;;  %v3283_v51 = vpop.permute.xlu1 %3282 }
 0x647   : > { %v4186_v40 = vpop.f32.mrb[34].mxu0 }
 0x648   : > { %4742 = vst [vmem:[%s9223_s28 + $0x78] sm:$0xff] %v4678_v21  ;;  %v4188_v35 = vpop.f32.mrb[35].mxu0  ;;  %v4187_v26 = vadd.f32 %v4186_v40, %v3259_v54  ;;  %v3287_v54 = vpop.permute.xlu0 %3286 }
 0x649   : > { %v4472_v20 = vpop.f32.mrb[32].mxu1 }
 0x64a   : > { %v4473_v42 = vadd.f32 %v4472_v20, %v4184_v60  ;;  %v4474_v12 = vpop.f32.mrb[33].mxu1  ;;  %v5501_v60 = vld [vmem:[%s5857_s9 + $0xb0] sm:$0xff] }
 0x64b   : > { %v4475_v36 = vpop.f32.mrb[34].mxu1 }
 0x64c   : > { %v4679_v32 = vadd.f32 %v5495_v52, %v4473_v42  ;;  %v4476_v56 = vadd.f32 %v4475_v36, %v4187_v26  ;;  %v4477_v3 = vpop.f32.mrb[35].mxu1  ;;  %v5502_v26 = vld [vmem:[%s5857_s9 + $0xb8] sm:$0xff] }
 0x64d   : > { %v4191_v62 = vpop.f32.mrb[36].mxu0 }
 0x64e   : > { %4743 = vst [vmem:[%s9223_s28 + $0x80] sm:$0xff] %v4679_v32  ;;  %v4680_v18 = vadd.f32 %v5496_v24, %v4476_v56  ;;  %v4192_v61 = vadd.f32 %v4191_v62, %v3263_v55  ;;  %v4193_v59 = vpop.f32.mrb[37].mxu0  ;;  %v3291_v56 = vpop.permute.xlu1 %3290 }
 0x64f   : > { %v4194_v22 = vpop.f32.mrb[38].mxu0 }
 0x650   : > { %4744 = vst [vmem:[%s9223_s28 + $0x88] sm:$0xff] %v4680_v18  ;;  %v4196_v5 = vpop.f32.mrb[39].mxu0  ;;  %v4195_v49 = vadd.f32 %v4194_v22, %v3267_v11  ;;  %v3295_v11 = vpop.permute.xlu0 %3294 }
 0x651   : > { %v4480_v19 = vpop.f32.mrb[36].mxu1 }
 0x652   : > { %v4481_v53 = vadd.f32 %v4480_v19, %v4192_v61  ;;  %v4482_v48 = vpop.f32.mrb[37].mxu1  ;;  %v5503_v61 = vld [vmem:[%s5857_s9 + $0xc0] sm:$0xff] }
 0x653   : > { %v4483_v0 = vpop.f32.mrb[38].mxu1 }
 0x654   : > { %v4681_v34 = vadd.f32 %v5497_v39, %v4481_v53  ;;  %v4484_v38 = vadd.f32 %v4483_v0, %v4195_v49  ;;  %v4485_v50 = vpop.f32.mrb[39].mxu1  ;;  %v5504_v49 = vld [vmem:[%s5857_s9 + $0xc8] sm:$0xff] }
 0x655   : > { %v4199_v1 = vpop.f32.mrb[40].mxu0 }
 0x656   : > { %4745 = vst [vmem:[%s9223_s28 + $0x90] sm:$0xff] %v4681_v34  ;;  %v4682_v14 = vadd.f32 %v5498_v6, %v4484_v38  ;;  %v4200_v13 = vadd.f32 %v4199_v1, %v3271_v8  ;;  %v4201_v29 = vpop.f32.mrb[41].mxu0  ;;  %v3299_v38 = vpop.permute.xlu1 %3298 }
 0x657   : > { %v4202_v23 = vpop.f32.mrb[42].mxu0 }
 0x658   : > { %4746 = vst [vmem:[%s9223_s28 + $0x98] sm:$0xff] %v4682_v14  ;;  %v4204_v9 = vpop.f32.mrb[43].mxu0  ;;  %v4203_v16 = vadd.f32 %v4202_v23, %v3275_v33  ;;  %v3303_v33 = vpop.permute.xlu0 %3302 }
 0x659   : > { %v4488_v30 = vpop.f32.mrb[40].mxu1 }
 0x65a   : > { %v4489_v28 = vadd.f32 %v4488_v30, %v4200_v13  ;;  %v4490_v25 = vpop.f32.mrb[41].mxu1  ;;  %v5505_v13 = vld [vmem:[%s5857_s9 + $0xd0] sm:$0xff] }
 0x65b   : > { %v4491_v46 = vpop.f32.mrb[42].mxu1 }
 0x65c   : > { %v4683_v10 = vadd.f32 %v5499_v58, %v4489_v28  ;;  %v4492_v4 = vadd.f32 %v4491_v46, %v4203_v16  ;;  %v4493_v2 = vpop.f32.mrb[43].mxu1  ;;  %v5506_v16 = vld [vmem:[%s5857_s9 + $0xd8] sm:$0xff] }
 0x65d   : > { %v4207_v37 = vpop.f32.mrb[44].mxu0 }
 0x65e   : > { %4747 = vst [vmem:[%s9223_s28 + $0xa0] sm:$0xff] %v4683_v10  ;;  %v4684_v41 = vadd.f32 %v5500_v63, %v4492_v4  ;;  %v4208_v45 = vadd.f32 %v4207_v37, %v3279_v44  ;;  %v4209_v17 = vpop.f32.mrb[45].mxu0  ;;  %v3307_v4 = vpop.permute.xlu1 %3306 }
 0x65f   : > { %v4210_v15 = vpop.f32.mrb[46].mxu0 }
 0x660   : > { %4748 = vst [vmem:[%s9223_s28 + $0xa8] sm:$0xff] %v4684_v41  ;;  %v4212_v57 = vpop.f32.mrb[47].mxu0  ;;  %v4211_v43 = vadd.f32 %v4210_v15, %v3283_v51  ;;  %v3311_v51 = vpop.permute.xlu0 %3310 }
 0x661   : > { %v4496_v27 = vpop.f32.mrb[44].mxu1 }
 0x662   : > { %v4497_v47 = vadd.f32 %v4496_v27, %v4208_v45  ;;  %v4498_v31 = vpop.f32.mrb[45].mxu1  ;;  %v5507_v45 = vld [vmem:[%s5857_s9 + $0xe0] sm:$0xff] }
 0x663   : > { %v4499_v21 = vpop.f32.mrb[46].mxu1 }
 0x664   : > { %v4685_v7 = vadd.f32 %v5501_v60, %v4497_v47  ;;  %v4500_v40 = vadd.f32 %v4499_v21, %v4211_v43  ;;  %v4501_v35 = vpop.f32.mrb[47].mxu1  ;;  %v5508_v43 = vld [vmem:[%s5857_s9 + $0xe8] sm:$0xff] }
 0x665   : > { %v4215_v20 = vpop.f32.mrb[48].mxu0 }
 0x666   : > { %4749 = vst [vmem:[%s9223_s28 + $0xb0] sm:$0xff] %v4685_v7  ;;  %v4686_v42 = vadd.f32 %v5502_v26, %v4500_v40  ;;  %v4216_v12 = vadd.f32 %v4215_v20, %v3287_v54  ;;  %v4217_v36 = vpop.f32.mrb[49].mxu0  ;;  %v3315_v40 = vpop.permute.xlu1 %3314 }
 0x667   : > { %v4218_v52 = vpop.f32.mrb[50].mxu0 }
 0x668   : > { %4750 = vst [vmem:[%s9223_s28 + $0xb8] sm:$0xff] %v4686_v42  ;;  %v4220_v32 = vpop.f32.mrb[51].mxu0  ;;  %v4219_v55 = vadd.f32 %v4218_v52, %v3291_v56  ;;  %v3319_v56 = vpop.permute.xlu0 %3318 }
 0x669   : > { %v4504_v3 = vpop.f32.mrb[48].mxu1 }
 0x66a   : > { %v4505_v62 = vadd.f32 %v4504_v3, %v4216_v12  ;;  %v4506_v24 = vpop.f32.mrb[49].mxu1  ;;  %v5509_v12 = vld [vmem:[%s5857_s9 + $0xf0] sm:$0xff] }
 0x66b   : > { %v4507_v18 = vpop.f32.mrb[50].mxu1 }
 0x66c   : > { %v4687_v59 = vadd.f32 %v5503_v61, %v4505_v62  ;;  %v4508_v22 = vadd.f32 %v4507_v18, %v4219_v55  ;;  %v4509_v5 = vpop.f32.mrb[51].mxu1  ;;  %v5510_v55 = vld [vmem:[%s5857_s9 + $0xf8] sm:$0xff] }
 0x66d   : > { %v4223_v19 = vpop.f32.mrb[52].mxu0 }
 0x66e   : > { %4751 = vst [vmem:[%s9223_s28 + $0xc0] sm:$0xff] %v4687_v59  ;;  %v4688_v53 = vadd.f32 %v5504_v49, %v4508_v22  ;;  %v4224_v48 = vadd.f32 %v4223_v19, %v3295_v11  ;;  %v4225_v0 = vpop.f32.mrb[53].mxu0  ;;  %v3323_v22 = vpop.permute.xlu1 %3322 }
 0x66f   : > { %v4226_v39 = vpop.f32.mrb[54].mxu0 }
 0x670   : > { %4752 = vst [vmem:[%s9223_s28 + $0xc8] sm:$0xff] %v4688_v53  ;;  %v4228_v34 = vpop.f32.mrb[55].mxu0  ;;  %v4227_v8 = vadd.f32 %v4226_v39, %v3299_v38 }
 0x671   : > { %v4512_v50 = vpop.f32.mrb[52].mxu1 }
 0x672   : > { %v4513_v1 = vadd.f32 %v4512_v50, %v4224_v48  ;;  %v4514_v6 = vpop.f32.mrb[53].mxu1  ;;  %v5511_v48 = vld [vmem:[%s5857_s9 + $0x100] sm:$0xff]  ;;  %v5512_v50 = vld [vmem:[%s5857_s9 + $0x108] sm:$0xff] }
 0x673   : > { %v4515_v14 = vpop.f32.mrb[54].mxu1  ;;  %v3327_v6 = vpop.permute.xlu0 %3326 }
 0x674   : > { %v4689_v29 = vadd.f32 %v5505_v13, %v4513_v1  ;;  %v4516_v23 = vadd.f32 %v4515_v14, %v4227_v8  ;;  %v4517_v9 = vpop.f32.mrb[55].mxu1 }
 0x675   : > { %v4231_v30 = vpop.f32.mrb[56].mxu0 }
 0x676   : > { %4753 = vst [vmem:[%s9223_s28 + $0xd0] sm:$0xff] %v4689_v29  ;;  %v4690_v28 = vadd.f32 %v5506_v16, %v4516_v23  ;;  %v4232_v25 = vadd.f32 %v4231_v30, %v3303_v33  ;;  %v4233_v46 = vpop.f32.mrb[57].mxu0  ;;  %v3331_v23 = vpop.permute.xlu1 %3330 }
 0x677   : > { %v4234_v58 = vpop.f32.mrb[58].mxu0 }
 0x678   : > { %4754 = vst [vmem:[%s9223_s28 + $0xd8] sm:$0xff] %v4690_v28  ;;  %v4236_v10 = vpop.f32.mrb[59].mxu0  ;;  %v4235_v44 = vadd.f32 %v4234_v58, %v3307_v4 }
 0x679   : > { %v4520_v2 = vpop.f32.mrb[56].mxu1 }
 0x67a   : > { %v4521_v37 = vadd.f32 %v4520_v2, %v4232_v25  ;;  %v4522_v63 = vpop.f32.mrb[57].mxu1  ;;  %v5513_v25 = vld [vmem:[%s5857_s9 + $0x110] sm:$0xff]  ;;  %v5514_v2 = vld [vmem:[%s5857_s9 + $0x118] sm:$0xff] }
 0x67b   : > { %v4523_v41 = vpop.f32.mrb[58].mxu1  ;;  %v3335_v63 = vpop.permute.xlu0 %3334 }
 0x67c   : > { %v4691_v17 = vadd.f32 %v5507_v45, %v4521_v37  ;;  %v4524_v15 = vadd.f32 %v4523_v41, %v4235_v44  ;;  %v4525_v57 = vpop.f32.mrb[59].mxu1 }
 0x67d   : > { %v4239_v27 = vpop.f32.mrb[60].mxu0 }
 0x67e   : > { %4755 = vst [vmem:[%s9223_s28 + $0xe0] sm:$0xff] %v4691_v17  ;;  %v4692_v47 = vadd.f32 %v5508_v43, %v4524_v15  ;;  %v4240_v31 = vadd.f32 %v4239_v27, %v3311_v51  ;;  %v4241_v21 = vpop.f32.mrb[61].mxu0  ;;  %v3339_v15 = vpop.permute.xlu1 %3338 }
 0x67f   : > { %v4242_v60 = vpop.f32.mrb[62].mxu0 }
 0x680   : > { %4756 = vst [vmem:[%s9223_s28 + $0xe8] sm:$0xff] %v4692_v47  ;;  %v4244_v7 = vpop.f32.mrb[63].mxu0  ;;  %v4243_v54 = vadd.f32 %v4242_v60, %v3315_v40 }
 0x681   : > { %v4528_v35 = vpop.f32.mrb[60].mxu1 }
 0x682   : > { %v4529_v20 = vadd.f32 %v4528_v35, %v4240_v31  ;;  %v4530_v26 = vpop.f32.mrb[61].mxu1  ;;  %v5515_v31 = vld [vmem:[%s5857_s9 + $0x120] sm:$0xff]  ;;  %v5516_v35 = vld [vmem:[%s5857_s9 + $0x128] sm:$0xff] }
 0x683   : > { %v4531_v42 = vpop.f32.mrb[62].mxu1  ;;  %v3343_v26 = vpop.permute.xlu0 %3342 }
 0x684   : > { %v4693_v36 = vadd.f32 %v5509_v12, %v4529_v20  ;;  %v4532_v52 = vadd.f32 %v4531_v42, %v4243_v54  ;;  %v4533_v32 = vpop.f32.mrb[63].mxu1 }
 0x685   : > { %v4247_v3 = vpop.f32.mrb[64].mxu0 }
 0x686   : > { %4757 = vst [vmem:[%s9223_s28 + $0xf0] sm:$0xff] %v4693_v36  ;;  %v4694_v62 = vadd.f32 %v5510_v55, %v4532_v52  ;;  %v4248_v24 = vadd.f32 %v4247_v3, %v3319_v56  ;;  %v4249_v18 = vpop.f32.mrb[65].mxu0  ;;  %v3347_v52 = vpop.permute.xlu1 %3346 }
 0x687   : > { %v4250_v61 = vpop.f32.mrb[66].mxu0 }
 0x688   : > { %4758 = vst [vmem:[%s9223_s28 + $0xf8] sm:$0xff] %v4694_v62  ;;  %v4252_v59 = vpop.f32.mrb[67].mxu0  ;;  %v4251_v11 = vadd.f32 %v4250_v61, %v3323_v22 }
 0x689   : > { %v4536_v5 = vpop.f32.mrb[64].mxu1 }
 0x68a   : > { %v4537_v19 = vadd.f32 %v4536_v5, %v4248_v24  ;;  %v4538_v49 = vpop.f32.mrb[65].mxu1  ;;  %v5517_v24 = vld [vmem:[%s5857_s9 + $0x130] sm:$0xff]  ;;  %v5518_v5 = vld [vmem:[%s5857_s9 + $0x138] sm:$0xff] }
 0x68b   : > { %v4539_v53 = vpop.f32.mrb[66].mxu1  ;;  %v3351_v49 = vpop.permute.xlu0 %3350 }
 0x68c   : > { %v4695_v0 = vadd.f32 %v5511_v48, %v4537_v19  ;;  %v4540_v39 = vadd.f32 %v4539_v53, %v4251_v11  ;;  %v4541_v34 = vpop.f32.mrb[67].mxu1 }
 0x68d   : > { %v4255_v38 = vpop.f32.mrb[68].mxu0 }
 0x68e   : > { %4759 = vst [vmem:[%s9223_s28 + $0x100] sm:$0xff] %v4695_v0  ;;  %v4696_v8 = vadd.f32 %v5512_v50, %v4540_v39  ;;  %v4257_v1 = vpop.f32.mrb[69].mxu0  ;;  %v4256_v13 = vadd.f32 %v4255_v38, %v3327_v6  ;;  %v3355_v39 = vpop.permute.xlu1 %3354  ;;  %v5519_v6 = vld [vmem:[%s5857_s9 + $0x140] sm:$0xff] }
 0x68f   : > { %v4258_v14 = vpop.f32.mrb[70].mxu0 }
 0x690   : > { %4760 = vst [vmem:[%s9223_s28 + $0x108] sm:$0xff] %v4696_v8  ;;  %v4260_v29 = vpop.f32.mrb[71].mxu0  ;;  %v4259_v33 = vadd.f32 %v4258_v14, %v3331_v23 }
 0x691   : > { %v4544_v9 = vpop.f32.mrb[68].mxu1 }
 0x692   : > { %v4545_v30 = vadd.f32 %v4544_v9, %v4256_v13  ;;  %v4546_v16 = vpop.f32.mrb[69].mxu1  ;;  %v5520_v9 = vld [vmem:[%s5857_s9 + $0x148] sm:$0xff] }
 0x693   : > { %v4547_v28 = vpop.f32.mrb[70].mxu1  ;;  %v3359_v16 = vpop.permute.xlu0 %3358 }
 0x694   : > { %v4697_v46 = vadd.f32 %v5513_v25, %v4545_v30  ;;  %v4548_v58 = vadd.f32 %v4547_v28, %v4259_v33  ;;  %v4549_v10 = vpop.f32.mrb[71].mxu1 }
 0x695   : > { %v4263_v4 = vpop.f32.mrb[72].mxu0 }
 0x696   : > { %4761 = vst [vmem:[%s9223_s28 + $0x110] sm:$0xff] %v4697_v46  ;;  %v4698_v44 = vadd.f32 %v5514_v2, %v4548_v58  ;;  %v4265_v37 = vpop.f32.mrb[73].mxu0  ;;  %v4264_v45 = vadd.f32 %v4263_v4, %v3335_v63  ;;  %v3363_v58 = vpop.permute.xlu1 %3362  ;;  %v5521_v63 = vld [vmem:[%s5857_s9 + $0x150] sm:$0xff] }
 0x697   : > { %v4266_v41 = vpop.f32.mrb[74].mxu0 }
 0x698   : > { %4762 = vst [vmem:[%s9223_s28 + $0x118] sm:$0xff] %v4698_v44  ;;  %v4268_v17 = vpop.f32.mrb[75].mxu0  ;;  %v4267_v51 = vadd.f32 %v4266_v41, %v3339_v15 }
 0x699   : > { %v4552_v57 = vpop.f32.mrb[72].mxu1 }
 0x69a   : > { %v4553_v27 = vadd.f32 %v4552_v57, %v4264_v45  ;;  %v4554_v43 = vpop.f32.mrb[73].mxu1  ;;  %v5522_v57 = vld [vmem:[%s5857_s9 + $0x158] sm:$0xff] }
 0x69b   : > { %v4555_v47 = vpop.f32.mrb[74].mxu1  ;;  %v3367_v43 = vpop.permute.xlu0 %3366 }
 0x69c   : > { %v4699_v21 = vadd.f32 %v5515_v31, %v4553_v27  ;;  %v4556_v60 = vadd.f32 %v4555_v47, %v4267_v51  ;;  %v4557_v7 = vpop.f32.mrb[75].mxu1 }
 0x69d   : > { %v4271_v40 = vpop.f32.mrb[76].mxu0 }
 0x69e   : > { %4763 = vst [vmem:[%s9223_s28 + $0x120] sm:$0xff] %v4699_v21  ;;  %v4700_v54 = vadd.f32 %v5516_v35, %v4556_v60  ;;  %v4273_v20 = vpop.f32.mrb[77].mxu0  ;;  %v4272_v12 = vadd.f32 %v4271_v40, %v3343_v26  ;;  %v3371_v60 = vpop.permute.xlu1 %3370  ;;  %v5523_v26 = vld [vmem:[%s5857_s9 + $0x160] sm:$0xff] }
 0x69f   : > { %v4274_v42 = vpop.f32.mrb[78].mxu0 }
 0x6a0   : > { %4764 = vst [vmem:[%s9223_s28 + $0x128] sm:$0xff] %v4700_v54  ;;  %v4276_v36 = vpop.f32.mrb[79].mxu0  ;;  %v4275_v56 = vadd.f32 %v4274_v42, %v3347_v52 }
 0x6a1   : > { %v4560_v32 = vpop.f32.mrb[76].mxu1 }
 0x6a2   : > { %v4561_v3 = vadd.f32 %v4560_v32, %v4272_v12  ;;  %v4562_v55 = vpop.f32.mrb[77].mxu1  ;;  %v5524_v32 = vld [vmem:[%s5857_s9 + $0x168] sm:$0xff] }
 0x6a3   : > { %v4563_v62 = vpop.f32.mrb[78].mxu1  ;;  %v3375_v55 = vpop.permute.xlu0 %3374 }
 0x6a4   : > { %v4701_v18 = vadd.f32 %v5517_v24, %v4561_v3  ;;  %v4564_v61 = vadd.f32 %v4563_v62, %v4275_v56  ;;  %v4565_v59 = vpop.f32.mrb[79].mxu1 }
 0x6a5   : > { %v4279_v22 = vpop.f32.mrb[80].mxu0 }
 0x6a6   : > { %4765 = vst [vmem:[%s9223_s28 + $0x130] sm:$0xff] %v4701_v18  ;;  %v4702_v11 = vadd.f32 %v5518_v5, %v4564_v61  ;;  %v4281_v19 = vpop.f32.mrb[81].mxu0  ;;  %v4280_v48 = vadd.f32 %v4279_v22, %v3351_v49  ;;  %v3379_v61 = vpop.permute.xlu1 %3378  ;;  %v5525_v49 = vld [vmem:[%s5857_s9 + $0x170] sm:$0xff] }
 0x6a7   : > { %v4282_v53 = vpop.f32.mrb[82].mxu0 }
 0x6a8   : > { %4766 = vst [vmem:[%s9223_s28 + $0x138] sm:$0xff] %v4702_v11  ;;  %v4284_v0 = vpop.f32.mrb[83].mxu0  ;;  %v4283_v38 = vadd.f32 %v4282_v53, %v3355_v39 }
 0x6a9   : > { %v4568_v34 = vpop.f32.mrb[80].mxu1 }
 0x6aa   : > { %v4569_v50 = vadd.f32 %v4568_v34, %v4280_v48  ;;  %v4570_v8 = vpop.f32.mrb[81].mxu1  ;;  %v5526_v34 = vld [vmem:[%s5857_s9 + $0x178] sm:$0xff] }
 0x6ab   : > { %v4571_v1 = vpop.f32.mrb[82].mxu1  ;;  %v3383_v8 = vpop.permute.xlu0 %3382 }
 0x6ac   : > { %v4703_v14 = vadd.f32 %v5519_v6, %v4569_v50  ;;  %v4572_v13 = vadd.f32 %v4571_v1, %v4283_v38  ;;  %v4573_v29 = vpop.f32.mrb[83].mxu1 }
 0x6ad   : > { %v4287_v23 = vpop.f32.mrb[84].mxu0 }
 0x6ae   : > { %4767 = vst [vmem:[%s9223_s28 + $0x140] sm:$0xff] %v4703_v14  ;;  %v4704_v33 = vadd.f32 %v5520_v9, %v4572_v13  ;;  %v4289_v30 = vpop.f32.mrb[85].mxu0  ;;  %v4288_v25 = vadd.f32 %v4287_v23, %v3359_v16  ;;  %v3387_v13 = vpop.permute.xlu1 %3386  ;;  %v5527_v16 = vld [vmem:[%s5857_s9 + $0x180] sm:$0xff] }
 0x6af   : > { %v4290_v28 = vpop.f32.mrb[86].mxu0 }
 0x6b0   : > { %4768 = vst [vmem:[%s9223_s28 + $0x148] sm:$0xff] %v4704_v33  ;;  %v4292_v46 = vpop.f32.mrb[87].mxu0  ;;  %v4291_v4 = vadd.f32 %v4290_v28, %v3363_v58 }
 0x6b1   : > { %v4576_v10 = vpop.f32.mrb[84].mxu1 }
 0x6b2   : > { %v4577_v2 = vadd.f32 %v4576_v10, %v4288_v25  ;;  %v4578_v44 = vpop.f32.mrb[85].mxu1  ;;  %v5528_v10 = vld [vmem:[%s5857_s9 + $0x188] sm:$0xff] }
 0x6b3   : > { %v4579_v37 = vpop.f32.mrb[86].mxu1  ;;  %v3391_v44 = vpop.permute.xlu0 %3390 }
 0x6b4   : > { %v4705_v41 = vadd.f32 %v5521_v63, %v4577_v2  ;;  %v4580_v45 = vadd.f32 %v4579_v37, %v4291_v4  ;;  %v4581_v17 = vpop.f32.mrb[87].mxu1 }
 0x6b5   : > { %v4295_v15 = vpop.f32.mrb[88].mxu0 }
 0x6b6   : > { %4769 = vst [vmem:[%s9223_s28 + $0x150] sm:$0xff] %v4705_v41  ;;  %v4706_v51 = vadd.f32 %v5522_v57, %v4580_v45  ;;  %v4297_v27 = vpop.f32.mrb[89].mxu0  ;;  %v4296_v31 = vadd.f32 %v4295_v15, %v3367_v43  ;;  %v3395_v45 = vpop.permute.xlu1 %3394  ;;  %v5529_v43 = vld [vmem:[%s5857_s9 + $0x190] sm:$0xff] }
 0x6b7   : > { %v4298_v47 = vpop.f32.mrb[90].mxu0 }
 0x6b8   : > { %4770 = vst [vmem:[%s9223_s28 + $0x158] sm:$0xff] %v4706_v51  ;;  %v4300_v21 = vpop.f32.mrb[91].mxu0  ;;  %v4299_v40 = vadd.f32 %v4298_v47, %v3371_v60 }
 0x6b9   : > { %v4584_v7 = vpop.f32.mrb[88].mxu1 }
 0x6ba   : > { %v4585_v35 = vadd.f32 %v4584_v7, %v4296_v31  ;;  %v4586_v54 = vpop.f32.mrb[89].mxu1  ;;  %v5530_v7 = vld [vmem:[%s5857_s9 + $0x198] sm:$0xff] }
 0x6bb   : > { %v4587_v20 = vpop.f32.mrb[90].mxu1  ;;  %v3399_v54 = vpop.permute.xlu0 %3398 }
 0x6bc   : > { %v4707_v42 = vadd.f32 %v5523_v26, %v4585_v35  ;;  %v4588_v12 = vadd.f32 %v4587_v20, %v4299_v40  ;;  %v4589_v36 = vpop.f32.mrb[91].mxu1 }
 0x6bd   : > { %v4303_v52 = vpop.f32.mrb[92].mxu0 }
 0x6be   : > { %4771 = vst [vmem:[%s9223_s28 + $0x160] sm:$0xff] %v4707_v42  ;;  %v4708_v56 = vadd.f32 %v5524_v32, %v4588_v12  ;;  %v4305_v3 = vpop.f32.mrb[93].mxu0  ;;  %v4304_v24 = vadd.f32 %v4303_v52, %v3375_v55  ;;  %v3403_v12 = vpop.permute.xlu1 %3402  ;;  %v5531_v55 = vld [vmem:[%s5857_s9 + $0x1a0] sm:$0xff] }
 0x6bf   : > { %v4306_v62 = vpop.f32.mrb[94].mxu0 }
 0x6c0   : > { %4772 = vst [vmem:[%s9223_s28 + $0x168] sm:$0xff] %v4708_v56  ;;  %v4308_v18 = vpop.f32.mrb[95].mxu0  ;;  %v4307_v22 = vadd.f32 %v4306_v62, %v3379_v61 }
 0x6c1   : > { %v4592_v59 = vpop.f32.mrb[92].mxu1 }
 0x6c2   : > { %v4593_v5 = vadd.f32 %v4592_v59, %v4304_v24  ;;  %v4594_v11 = vpop.f32.mrb[93].mxu1  ;;  %v5532_v59 = vld [vmem:[%s5857_s9 + $0x1a8] sm:$0xff] }
 0x6c3   : > { %v4595_v19 = vpop.f32.mrb[94].mxu1  ;;  %v3407_v11 = vpop.permute.xlu0 %3406 }
 0x6c4   : > { %v4709_v53 = vadd.f32 %v5525_v49, %v4593_v5  ;;  %v4596_v48 = vadd.f32 %v4595_v19, %v4307_v22  ;;  %v4597_v0 = vpop.f32.mrb[95].mxu1 }
 0x6c5   : > { %v4311_v39 = vpop.f32.mrb[96].mxu0 }
 0x6c6   : > { %4773 = vst [vmem:[%s9223_s28 + $0x170] sm:$0xff] %v4709_v53  ;;  %v4710_v38 = vadd.f32 %v5526_v34, %v4596_v48  ;;  %v4313_v50 = vpop.f32.mrb[97].mxu0  ;;  %v4312_v6 = vadd.f32 %v4311_v39, %v3383_v8  ;;  %v3411_v48 = vpop.permute.xlu1 %3410  ;;  %v5533_v8 = vld [vmem:[%s5857_s9 + $0x1b0] sm:$0xff] }
 0x6c7   : > { %v4314_v1 = vpop.f32.mrb[98].mxu0 }
 0x6c8   : > { %4774 = vst [vmem:[%s9223_s28 + $0x178] sm:$0xff] %v4710_v38  ;;  %v4316_v14 = vpop.f32.mrb[99].mxu0  ;;  %v4315_v23 = vadd.f32 %v4314_v1, %v3387_v13 }
 0x6c9   : > { %v4600_v29 = vpop.f32.mrb[96].mxu1 }
 0x6ca   : > { %v4601_v9 = vadd.f32 %v4600_v29, %v4312_v6  ;;  %v4602_v33 = vpop.f32.mrb[97].mxu1  ;;  %v5534_v29 = vld [vmem:[%s5857_s9 + $0x1b8] sm:$0xff] }
 0x6cb   : > { %v4603_v30 = vpop.f32.mrb[98].mxu1  ;;  %v3415_v33 = vpop.permute.xlu0 %3414 }
 0x6cc   : > { %v4711_v28 = vadd.f32 %v5527_v16, %v4601_v9  ;;  %v4604_v25 = vadd.f32 %v4603_v30, %v4315_v23  ;;  %v4605_v46 = vpop.f32.mrb[99].mxu1 }
 0x6cd   : > { %v4319_v58 = vpop.f32.mrb[100].mxu0 }
 0x6ce   : > { %4775 = vst [vmem:[%s9223_s28 + $0x180] sm:$0xff] %v4711_v28  ;;  %v4712_v4 = vadd.f32 %v5528_v10, %v4604_v25  ;;  %v4321_v2 = vpop.f32.mrb[101].mxu0  ;;  %v4320_v63 = vadd.f32 %v4319_v58, %v3391_v44  ;;  %v3419_v25 = vpop.permute.xlu1 %3418  ;;  %v5535_v44 = vld [vmem:[%s5857_s9 + $0x1c0] sm:$0xff] }
 0x6cf   : > { %v4322_v37 = vpop.f32.mrb[102].mxu0 }
 0x6d0   : > { %4776 = vst [vmem:[%s9223_s28 + $0x188] sm:$0xff] %v4712_v4  ;;  %v4324_v41 = vpop.f32.mrb[103].mxu0  ;;  %v4323_v15 = vadd.f32 %v4322_v37, %v3395_v45 }
 0x6d1   : > { %v4608_v17 = vpop.f32.mrb[100].mxu1 }
 0x6d2   : > { %v4609_v57 = vadd.f32 %v4608_v17, %v4320_v63  ;;  %v4610_v51 = vpop.f32.mrb[101].mxu1  ;;  %v5536_v17 = vld [vmem:[%s5857_s9 + $0x1c8] sm:$0xff] }
 0x6d3   : > { %v4611_v27 = vpop.f32.mrb[102].mxu1  ;;  %v3423_v51 = vpop.permute.xlu0 %3422 }
 0x6d4   : > { %v4713_v47 = vadd.f32 %v5529_v43, %v4609_v57  ;;  %v4612_v31 = vadd.f32 %v4611_v27, %v4323_v15  ;;  %v4613_v21 = vpop.f32.mrb[103].mxu1 }
 0x6d5   : > { %v4327_v60 = vpop.f32.mrb[104].mxu0 }
 0x6d6   : > { %4777 = vst [vmem:[%s9223_s28 + $0x190] sm:$0xff] %v4713_v47  ;;  %v4714_v40 = vadd.f32 %v5530_v7, %v4612_v31  ;;  %v4329_v35 = vpop.f32.mrb[105].mxu0  ;;  %v4328_v26 = vadd.f32 %v4327_v60, %v3399_v54  ;;  %v3427_v31 = vpop.permute.xlu1 %3426  ;;  %v5537_v54 = vld [vmem:[%s5857_s9 + $0x1d0] sm:$0xff] }
 0x6d7   : > { %v4330_v20 = vpop.f32.mrb[106].mxu0 }
 0x6d8   : > { %4778 = vst [vmem:[%s9223_s28 + $0x198] sm:$0xff] %v4714_v40  ;;  %v4332_v42 = vpop.f32.mrb[107].mxu0  ;;  %v4331_v52 = vadd.f32 %v4330_v20, %v3403_v12 }
 0x6d9   : > { %v4616_v36 = vpop.f32.mrb[104].mxu1 }
 0x6da   : > { %v4617_v32 = vadd.f32 %v4616_v36, %v4328_v26  ;;  %v4618_v56 = vpop.f32.mrb[105].mxu1  ;;  %v5538_v36 = vld [vmem:[%s5857_s9 + $0x1d8] sm:$0xff] }
 0x6db   : > { %v4619_v3 = vpop.f32.mrb[106].mxu1  ;;  %v3431_v56 = vpop.permute.xlu0 %3430 }
 0x6dc   : > { %v4715_v62 = vadd.f32 %v5531_v55, %v4617_v32  ;;  %v4620_v24 = vadd.f32 %v4619_v3, %v4331_v52  ;;  %v4621_v18 = vpop.f32.mrb[107].mxu1 }
 0x6dd   : > { %v4335_v61 = vpop.f32.mrb[108].mxu0 }
 0x6de   : > { %4779 = vst [vmem:[%s9223_s28 + $0x1a0] sm:$0xff] %v4715_v62  ;;  %v4716_v22 = vadd.f32 %v5532_v59, %v4620_v24  ;;  %v4337_v5 = vpop.f32.mrb[109].mxu0  ;;  %v4336_v49 = vadd.f32 %v4335_v61, %v3407_v11  ;;  %v3435_v24 = vpop.permute.xlu1 %3434  ;;  %v5539_v11 = vld [vmem:[%s5857_s9 + $0x1e0] sm:$0xff] }
 0x6df   : > { %v4338_v19 = vpop.f32.mrb[110].mxu0 }
 0x6e0   : > { %4780 = vst [vmem:[%s9223_s28 + $0x1a8] sm:$0xff] %v4716_v22  ;;  %v4340_v53 = vpop.f32.mrb[111].mxu0  ;;  %v4339_v39 = vadd.f32 %v4338_v19, %v3411_v48 }
 0x6e1   : > { %v4624_v0 = vpop.f32.mrb[108].mxu1 }
 0x6e2   : > { %v4625_v34 = vadd.f32 %v4624_v0, %v4336_v49  ;;  %v4626_v38 = vpop.f32.mrb[109].mxu1  ;;  %v5540_v0 = vld [vmem:[%s5857_s9 + $0x1e8] sm:$0xff] }
 0x6e3   : > { %v4627_v50 = vpop.f32.mrb[110].mxu1  ;;  %v3439_v38 = vpop.permute.xlu0 %3438 }
 0x6e4   : > { %v4717_v1 = vadd.f32 %v5533_v8, %v4625_v34  ;;  %v4628_v6 = vadd.f32 %v4627_v50, %v4339_v39  ;;  %v4629_v14 = vpop.f32.mrb[111].mxu1 }
 0x6e5   : > { %v4343_v13 = vpop.f32.mrb[112].mxu0 }
 0x6e6   : > { %4781 = vst [vmem:[%s9223_s28 + $0x1b0] sm:$0xff] %v4717_v1  ;;  %v4718_v23 = vadd.f32 %v5534_v29, %v4628_v6  ;;  %v4345_v9 = vpop.f32.mrb[113].mxu0  ;;  %v4344_v16 = vadd.f32 %v4343_v13, %v3415_v33  ;;  %v3443_v6 = vpop.permute.xlu1 %3442  ;;  %v5541_v33 = vld [vmem:[%s5857_s9 + $0x1f0] sm:$0xff] }
 0x6e7   : > { %v4346_v30 = vpop.f32.mrb[114].mxu0 }
 0x6e8   : > { %4782 = vst [vmem:[%s9223_s28 + $0x1b8] sm:$0xff] %v4718_v23  ;;  %v4348_v28 = vpop.f32.mrb[115].mxu0  ;;  %v4347_v58 = vadd.f32 %v4346_v30, %v3419_v25  ;;  %v5542_v25 = vld [vmem:[%s5857_s9 + $0x1f8] sm:$0xff] }
 0x6e9   : > { %v4632_v46 = vpop.f32.mrb[112].mxu1 }
 0x6ea   : > { %v4633_v10 = vadd.f32 %v4632_v46, %v4344_v16  ;;  %v4634_v4 = vpop.f32.mrb[113].mxu1 }
 0x6eb   : > { %v4635_v2 = vpop.f32.mrb[114].mxu1 }
 0x6ec   : > { %v4719_v37 = vadd.f32 %v5535_v44, %v4633_v10  ;;  %v4636_v63 = vadd.f32 %v4635_v2, %v4347_v58  ;;  %v4637_v41 = vpop.f32.mrb[115].mxu1 }
 0x6ed   : > { %v4351_v45 = vpop.f32.mrb[116].mxu0 }
 0x6ee   : > { %4783 = vst [vmem:[%s9223_s28 + $0x1c0] sm:$0xff] %v4719_v37  ;;  %v4720_v15 = vadd.f32 %v5536_v17, %v4636_v63  ;;  %v4353_v57 = vpop.f32.mrb[117].mxu0  ;;  %v4352_v43 = vadd.f32 %v4351_v45, %v3423_v51 }
 0x6ef   : > { %v4354_v27 = vpop.f32.mrb[118].mxu0 }
 0x6f0   : > { %4784 = vst [vmem:[%s9223_s28 + $0x1c8] sm:$0xff] %v4720_v15  ;;  %v4356_v47 = vpop.f32.mrb[119].mxu0  ;;  %v4355_v60 = vadd.f32 %v4354_v27, %v3427_v31 }
 0x6f1   : > { %v4640_v21 = vpop.f32.mrb[116].mxu1 }
 0x6f2   : > { %v4641_v7 = vadd.f32 %v4640_v21, %v4352_v43  ;;  %v4642_v40 = vpop.f32.mrb[117].mxu1 }
 0x6f3   : > { %v4643_v35 = vpop.f32.mrb[118].mxu1 }
 0x6f4   : > { %v4721_v20 = vadd.f32 %v5537_v54, %v4641_v7  ;;  %v4644_v26 = vadd.f32 %v4643_v35, %v4355_v60  ;;  %v4645_v42 = vpop.f32.mrb[119].mxu1 }
 0x6f5   : > { %v4359_v12 = vpop.f32.mrb[120].mxu0 }
 0x6f6   : > { %4785 = vst [vmem:[%s9223_s28 + $0x1d0] sm:$0xff] %v4721_v20  ;;  %v4722_v52 = vadd.f32 %v5538_v36, %v4644_v26  ;;  %v4361_v32 = vpop.f32.mrb[121].mxu0  ;;  %v4360_v55 = vadd.f32 %v4359_v12, %v3431_v56 }
 0x6f7   : > { %v4362_v3 = vpop.f32.mrb[122].mxu0 }
 0x6f8   : > { %4786 = vst [vmem:[%s9223_s28 + $0x1d8] sm:$0xff] %v4722_v52  ;;  %v4364_v62 = vpop.f32.mrb[123].mxu0  ;;  %v4363_v61 = vadd.f32 %v4362_v3, %v3435_v24 }
 0x6f9   : > { %v4648_v18 = vpop.f32.mrb[120].mxu1 }
 0x6fa   : > { %v4649_v59 = vadd.f32 %v4648_v18, %v4360_v55  ;;  %v4650_v22 = vpop.f32.mrb[121].mxu1 }
 0x6fb   : > { %v4651_v5 = vpop.f32.mrb[122].mxu1 }
 0x6fc   : > { %v4723_v19 = vadd.f32 %v5539_v11, %v4649_v59  ;;  %v4652_v49 = vadd.f32 %v4651_v5, %v4363_v61  ;;  %v4653_v53 = vpop.f32.mrb[123].mxu1 }
 0x6fd   : > { %v4367_v48 = vpop.f32.mrb[124].mxu0 }
 0x6fe   : > { %4787 = vst [vmem:[%s9223_s28 + $0x1e0] sm:$0xff] %v4723_v19  ;;  %v4724_v39 = vadd.f32 %v5540_v0, %v4652_v49  ;;  %v4369_v34 = vpop.f32.mrb[125].mxu0  ;;  %v4368_v8 = vadd.f32 %v4367_v48, %v3439_v38 }
 0x6ff   : > { %v4370_v50 = vpop.f32.mrb[126].mxu0 }
 0x700   : > { %4788 = vst [vmem:[%s9223_s28 + $0x1e8] sm:$0xff] %v4724_v39  ;;  %v4372_v1 = vpop.f32.mrb[127].mxu0  ;;  %v4371_v13 = vadd.f32 %v4370_v50, %v3443_v6 }
 0x701   : > { %v4656_v14 = vpop.f32.mrb[124].mxu1 }
 0x702   : > { %v4657_v29 = vadd.f32 %v4656_v14, %v4368_v8  ;;  %v4658_v23 = vpop.f32.mrb[125].mxu1 }
 0x703   : > { %v4659_v9 = vpop.f32.mrb[126].mxu1 }
 0x704   : > { %v4725_v30 = vadd.f32 %v5541_v33, %v4657_v29  ;;  %v4660_v16 = vadd.f32 %v4659_v9, %v4371_v13  ;;  %v4661_v28 = vpop.f32.mrb[127].mxu1 }
 0x706   : > { %4789 = vst [vmem:[%s9223_s28 + $0x1f0] sm:$0xff] %v4725_v30  ;;  %v4726_v46 = vadd.f32 %v5542_v25, %v4660_v16 }
 0x708   : > { %4790 = vst [vmem:[%s9223_s28 + $0x1f8] sm:$0xff] %v4726_v46 }
 0x709   : > { %5614 = shalt.err (!%p5611_p7)
}
 0x70a   : > { %s5615_s9 = scalar_lea.hbm %s9354_s22, 8192  ;;  %s5619_s5 = scalar_lea.hbm %s9406_s3, 16384 }
 0x70b   : > { %p5616_p9 = scmp.ne.s32.totalorder %s9354_s22, %s5615_s9  ;;  %p5620_p5 = scmp.lt.u32.totalorder %s9354_s22, %s9406_s3 }
 0x70c   : > { %p5621_p11 = scmp.lt.u32.totalorder %s5619_s5, %s5615_s9  ;;  %p5623_p4 = scmp.lt.u32.totalorder %s5615_s9, %s9354_s22 }
 0x70d   : > { %p5617_p2 = pnand %p5616_p9, %p5803_p12 }
 0x70e   : > { %p5622_p1 = por %p5621_p11, %p5620_p5 }
 0x70f   : > { %p5618_p0 = pneg %p5617_p2 }
 0x710   : > { %p5624_p6 = por %p5623_p4, %p5622_p1 }
 0x712   : > { %p5625_p8 = pnand %p5624_p6, %p5618_p0 }
 0x714   : > { %5628 = shalt.err (!%p5625_p8)
}
 0x715   : > { %s5690_s27 = smov 128   ;;  %s5691_s28 = smov 8  }
 0x716   : > { %5042 = dma.vmem_to_hbm [thread:$0]  (%p5803_p12), %s9356_s29, 8192, %s9354_s22, %s4792_s16, %s5690_s27, %s5690_s27, %s5691_s28  }
 0x717 PF: > { %s4820_s7 = sand.u32 1, %s5659_s12   ;;  %p10395_p10 = scmp.ne.s32.totalorder %s9519_s19, 0 }
 0x718   : > { %p10396_p13 = scmp.ge.s32.totalorder %s5671_s15, 2  ;;  %s4821_s23 = scalar_lea.sflag [#allocation4], %s4820_s7 }
 0x71a   : > { %p5053_p3 = pnand %p10396_p13, %p10395_p10 }
 0x71c   : > { %5654 = dma.done.wait (!%p5053_p3), %s4821_s23, 8192  }
 0x71d   : > { %5656 = vsyncadd (!%p5053_p3), %s4821_s23, 4294959104  ;;  %p17_p7 = scmp.ge.s32.totalorder %s5768_s24, 4   ;;  %s10397_s12 = smov %s5663_s13 }
 0x71e   : > { %s10398_s13 = smov %s5667_s14  ;;  %s10399_s14 = smov %s5799_s17 }
 0x71f   : > { %s10400_s15 = smov %s5768_s24  ;;  %19 = sbr.rel (!%p17_p7) target bundleno = 6 (0x6), region = 81 }
 0x726   :  { %4826 = vsyncpa [#allocation3], 1 }
 0x727   :  { %4828 = vsyncpa [#allocation3 + $0x1], 1 }
 0x728   :  { %4829 = vsyncpa [#allocation6], 1 }
 0x729   :  { %4830 = vsyncpa [#allocation4], 1 }
 0x72a   :  { %4832 = vsyncpa [#allocation4 + $0x1], 1 }

</bundles_post_ra>
